<compile_context>
chip_gen: v7x
topology: tpu7x:2x2x1
jax: 0.10.0
libtpu: 0.0.40
codegen_flags: <defaults>
</compile_context>

<pallas_src>
import jax
import jax.numpy as jnp
from jax import lax
from jax.experimental import pallas as pl
from jax.experimental.pallas import tpu as pltpu


def mlp_kernel(x_ref, w1_ref, b1_ref, w2_ref, b2_ref, w3_ref, b3_ref, o_ref):
    x = x_ref[...]                                                      # (TB, 96)

    # fc1 + ReLU
    h1 = jnp.dot(x, w1_ref[...], preferred_element_type=jnp.float32) + b1_ref[...]
    h1 = jnp.maximum(h1, 0.0)                                           # (TB, 48)

    # fc2 + ReLU
    h2 = jnp.dot(h1, w2_ref[...], preferred_element_type=jnp.float32) + b2_ref[...]
    h2 = jnp.maximum(h2, 0.0)                                           # (TB, 24)

    # fc3
    h3 = jnp.dot(h2, w3_ref[...], preferred_element_type=jnp.float32) + b3_ref[...]
    # (TB, 12)

    # L2 normalization over last dim: x / ||x||_2  ==  x * rsqrt(sum(x^2)).
    # rsqrt runs on the EUP (its own VLIW slot), avoiding a per-element divide.
    # NOTE: like the literal PyTorch `x / x.norm(...)`, an all-zero row yields
    # NaN (no eps), preserving reference semantics.
    sq = jnp.sum(h3 * h3, axis=-1, keepdims=True)                       # (TB, 1)
    o_ref[...] = (h3 * lax.rsqrt(sq)).astype(o_ref.dtype)               # one bulk store


def _round_up(n, m):
    return ((n + m - 1) // m) * m


def mlp_forward(x, w1, b1, w2, b2, w3, b3, *, block_rows=2048):
    """x: (B, 96) float32. Weights are (in, out); biases are (1, out)."""
    B, F = x.shape
    assert F == 96

    # Batch tile: multiple of 8 sublanes, capped at block_rows
    # (TB=2048 -> x tile = 2048*96*4 B = 768 KiB; comfortably double-buffered).
    tb = min(block_rows, _round_up(B, 8))
    b_pad = _round_up(B, tb)
    if b_pad != B:
        x = jnp.pad(x, ((0, b_pad - B), (0, 0)))
    grid = (b_pad // tb,)

    # Weights/biases: full-array blocks with constant index_maps -> VMEM resident.
    const = lambda a: pl.BlockSpec(a.shape, lambda i: (0,) * a.ndim)

    out = pl.pallas_call(
        mlp_kernel,
        out_shape=jax.ShapeDtypeStruct((b_pad, 12), jnp.float32),
        grid=grid,
        in_specs=[
            pl.BlockSpec((tb, 96), lambda i: (i, 0)),   # x: tiled over batch
            const(w1), const(b1),
            const(w2), const(b2),
            const(w3), const(b3),
        ],
        out_specs=pl.BlockSpec((tb, 12), lambda i: (i, 0)),
        compiler_params=pltpu.CompilerParams(
            dimension_semantics=("parallel",),          # megacore sharding on v7x
        ),
    )(x, w1, b1, w2, b2, w3, b3)

    return out[:B]


def init_params(key):
    """Deterministic synthetic parameters matching nn.Linear shapes.

    PyTorch nn.Linear(in, out) has weight (out, in) and bias (out,); here we
    store weights already transposed to (in, out) and biases as (1, out).
    """
    ks = jax.random.split(key, 6)

    def lin(kw, kb, fan_in, fan_out):
        bound = 1.0 / jnp.sqrt(fan_in)
        w = jax.random.uniform(kw, (fan_in, fan_out), jnp.float32, -bound, bound)
        b = jax.random.uniform(kb, (1, fan_out), jnp.float32, -bound, bound)
        return w, b

    w1, b1 = lin(ks[0], ks[1], 96, 48)
    w2, b2 = lin(ks[2], ks[3], 48, 24)
    w3, b3 = lin(ks[4], ks[5], 24, 12)
    return w1, b1, w2, b2, w3, b3


if __name__ == "__main__":
    key = jax.random.PRNGKey(0)
    kx, kp = jax.random.split(key)

    # B chosen to exercise multiple grid steps plus a padded tail tile,
    # while staying small (~1.5 MiB of input).
    B = 4100
    x = jax.random.normal(kx, (B, 96), jnp.float32)
    params = init_params(kp)

    out = mlp_forward(x, *params)
    out = jax.block_until_ready(out)

    # Pure-JAX reference check (same math outside Pallas).
    w1, b1, w2, b2, w3, b3 = params
    h = jnp.maximum(x @ w1 + b1, 0.0)
    h = jnp.maximum(h @ w2 + b2, 0.0)
    h = h @ w3 + b3
    ref = h / jnp.linalg.norm(h, axis=-1, keepdims=True)

    assert out.shape == (B, 12)
    assert jnp.allclose(out, ref, atol=1e-5, rtol=1e-5)

    print("KERNEL_OK")
</pallas_src>

<mosaic_0001>
module attributes {stable_mosaic.version = 11 : i64} {
  func.func @mlp_kernel(%arg0: i32, %arg1: memref<2048x96xf32, #tpu.memory_space<vmem>>, %arg2: memref<96x48xf32, #tpu.memory_space<vmem>>, %arg3: memref<1x48xf32, #tpu.memory_space<vmem>>, %arg4: memref<48x24xf32, #tpu.memory_space<vmem>>, %arg5: memref<1x24xf32, #tpu.memory_space<vmem>>, %arg6: memref<24x12xf32, #tpu.memory_space<vmem>>, %arg7: memref<1x12xf32, #tpu.memory_space<vmem>>, %arg8: memref<2048x12xf32, #tpu.memory_space<vmem>>) attributes {dimension_semantics = [#tpu.dimension_semantics<parallel>], iteration_bounds = array<i64: 3>, scalar_prefetch = 0 : i64, scratch_operands = 0 : i64, tpu.core_type = #tpu.core_type<tc>, window_params = [{transform_indices = @transform_0, window_bounds = array<i64: 2048, 96>}, {pipeline_mode = #tpu.pipeline_mode<synchronous>, transform_indices = @transform_1, window_bounds = array<i64: 96, 48>}, {pipeline_mode = #tpu.pipeline_mode<synchronous>, transform_indices = @transform_2, window_bounds = array<i64: 1, 48>}, {pipeline_mode = #tpu.pipeline_mode<synchronous>, transform_indices = @transform_3, window_bounds = array<i64: 48, 24>}, {pipeline_mode = #tpu.pipeline_mode<synchronous>, transform_indices = @transform_4, window_bounds = array<i64: 1, 24>}, {pipeline_mode = #tpu.pipeline_mode<synchronous>, transform_indices = @transform_5, window_bounds = array<i64: 24, 12>}, {pipeline_mode = #tpu.pipeline_mode<synchronous>, transform_indices = @transform_6, window_bounds = array<i64: 1, 12>}, {transform_indices = @transform_7, window_bounds = array<i64: 2048, 12>}]} {
    %c0 = arith.constant 0 : index
    %c0_0 = arith.constant 0 : index
    %0 = vector.load %arg1[%c0, %c0_0] : memref<2048x96xf32, #tpu.memory_space<vmem>>, vector<2048x96xf32>
    %c0_1 = arith.constant 0 : index
    %c0_2 = arith.constant 0 : index
    %1 = vector.load %arg2[%c0_1, %c0_2] : memref<96x48xf32, #tpu.memory_space<vmem>>, vector<96x48xf32>
    %cst = arith.constant dense<0.000000e+00> : vector<2048x48xf32>
    %2 = tpu.matmul %0, %1, %cst {dimension_numbers = #tpu.dot_dimension_numbers<[1], [0], [0], [1], [0, 0, 1, 1], [], []>} : vector<2048x96xf32>, vector<96x48xf32>, vector<2048x48xf32> -> vector<2048x48xf32>
    %c0_3 = arith.constant 0 : index
    %c0_4 = arith.constant 0 : index
    %3 = vector.load %arg3[%c0_3, %c0_4] : memref<1x48xf32, #tpu.memory_space<vmem>>, vector<1x48xf32>
    %4 = vector.broadcast %3 : vector<1x48xf32> to vector<2048x48xf32>
    %5 = arith.addf %2, %4 : vector<2048x48xf32>
    %cst_5 = arith.constant 0.000000e+00 : f32
    %6 = vector.broadcast %cst_5 : f32 to vector<2048x48xf32>
    %7 = arith.maximumf %5, %6 : vector<2048x48xf32>
    %c0_6 = arith.constant 0 : index
    %c0_7 = arith.constant 0 : index
    %8 = vector.load %arg4[%c0_6, %c0_7] : memref<48x24xf32, #tpu.memory_space<vmem>>, vector<48x24xf32>
    %cst_8 = arith.constant dense<0.000000e+00> : vector<2048x24xf32>
    %9 = tpu.matmul %7, %8, %cst_8 {dimension_numbers = #tpu.dot_dimension_numbers<[1], [0], [0], [1], [0, 0, 1, 1], [], []>} : vector<2048x48xf32>, vector<48x24xf32>, vector<2048x24xf32> -> vector<2048x24xf32>
    %c0_9 = arith.constant 0 : index
    %c0_10 = arith.constant 0 : index
    %10 = vector.load %arg5[%c0_9, %c0_10] : memref<1x24xf32, #tpu.memory_space<vmem>>, vector<1x24xf32>
    %11 = vector.broadcast %10 : vector<1x24xf32> to vector<2048x24xf32>
    %12 = arith.addf %9, %11 : vector<2048x24xf32>
    %cst_11 = arith.constant 0.000000e+00 : f32
    %13 = vector.broadcast %cst_11 : f32 to vector<2048x24xf32>
    %14 = arith.maximumf %12, %13 : vector<2048x24xf32>
    %c0_12 = arith.constant 0 : index
    %c0_13 = arith.constant 0 : index
    %15 = vector.load %arg6[%c0_12, %c0_13] : memref<24x12xf32, #tpu.memory_space<vmem>>, vector<24x12xf32>
    %cst_14 = arith.constant dense<0.000000e+00> : vector<2048x12xf32>
    %16 = tpu.matmul %14, %15, %cst_14 {dimension_numbers = #tpu.dot_dimension_numbers<[1], [0], [0], [1], [0, 0, 1, 1], [], []>} : vector<2048x24xf32>, vector<24x12xf32>, vector<2048x12xf32> -> vector<2048x12xf32>
    %c0_15 = arith.constant 0 : index
    %c0_16 = arith.constant 0 : index
    %17 = vector.load %arg7[%c0_15, %c0_16] : memref<1x12xf32, #tpu.memory_space<vmem>>, vector<1x12xf32>
    %18 = vector.broadcast %17 : vector<1x12xf32> to vector<2048x12xf32>
    %19 = arith.addf %16, %18 : vector<2048x12xf32>
    %20 = arith.mulf %19, %19 : vector<2048x12xf32>
    %cst_17 = arith.constant dense<0.000000e+00> : vector<2048xf32>
    %21 = vector.multi_reduction <add>, %20, %cst_17 [1] : vector<2048x12xf32> to vector<2048xf32>
    %22 = vector.shape_cast %21 : vector<2048xf32> to vector<2048x1xf32>
    %23 = math.rsqrt %22 : vector<2048x1xf32>
    %24 = vector.broadcast %23 : vector<2048x1xf32> to vector<2048x12xf32>
    %25 = arith.mulf %19, %24 : vector<2048x12xf32>
    %c0_18 = arith.constant 0 : index
    %c0_19 = arith.constant 0 : index
    %26 = vector.load %arg8[%c0_18, %c0_19] : memref<2048x12xf32, #tpu.memory_space<vmem>>, vector<2048x12xf32>
    tpu.vector_store %arg8[%c0_18, %c0_19], %25 {strides = array<i32>} : memref<2048x12xf32, #tpu.memory_space<vmem>>, vector<2048x12xf32>,
    return
  }
  func.func @transform_0(%arg0: i32) -> (i32, i32) {
    %c0_i32 = arith.constant 0 : i32
    %c0_i32_0 = arith.constant 0 : i32
    return %arg0, %c0_i32 : i32, i32
  }
  func.func @transform_1(%arg0: i32) -> (i32, i32) {
    %c0_i32 = arith.constant 0 : i32
    %c0_i32_0 = arith.constant 0 : i32
    %c0_i32_1 = arith.constant 0 : i32
    return %c0_i32, %c0_i32_0 : i32, i32
  }
  func.func @transform_2(%arg0: i32) -> (i32, i32) {
    %c0_i32 = arith.constant 0 : i32
    %c0_i32_0 = arith.constant 0 : i32
    %c0_i32_1 = arith.constant 0 : i32
    return %c0_i32, %c0_i32_0 : i32, i32
  }
  func.func @transform_3(%arg0: i32) -> (i32, i32) {
    %c0_i32 = arith.constant 0 : i32
    %c0_i32_0 = arith.constant 0 : i32
    %c0_i32_1 = arith.constant 0 : i32
    return %c0_i32, %c0_i32_0 : i32, i32
  }
  func.func @transform_4(%arg0: i32) -> (i32, i32) {
    %c0_i32 = arith.constant 0 : i32
    %c0_i32_0 = arith.constant 0 : i32
    %c0_i32_1 = arith.constant 0 : i32
    return %c0_i32, %c0_i32_0 : i32, i32
  }
  func.func @transform_5(%arg0: i32) -> (i32, i32) {
    %c0_i32 = arith.constant 0 : i32
    %c0_i32_0 = arith.constant 0 : i32
    %c0_i32_1 = arith.constant 0 : i32
    return %c0_i32, %c0_i32_0 : i32, i32
  }
  func.func @transform_6(%arg0: i32) -> (i32, i32) {
    %c0_i32 = arith.constant 0 : i32
    %c0_i32_0 = arith.constant 0 : i32
    %c0_i32_1 = arith.constant 0 : i32
    return %c0_i32, %c0_i32_0 : i32, i32
  }
  func.func @transform_7(%arg0: i32) -> (i32, i32) {
    %c0_i32 = arith.constant 0 : i32
    %c0_i32_0 = arith.constant 0 : i32
    return %arg0, %c0_i32 : i32, i32
  }
}

</mosaic_0001>

<bundles_post_ra>
// kernel: tpu_custom_call.1
= control target key start
LH: loop header
LB: loop body
LE: loop exit
PB: predicated region body
PF: predicated region fallthrough
CT: control target
= control target key end

     0   :  { %s12673_s24 = smov 0   ;;  %s17431_s0 = inlined_call_operand.vmem [shape: f32[6144,96], index: 0, kind: input, shape index: {}]   ;;  %s17432_s1 = inlined_call_operand.vmem [shape: f32[96,48], index: 1, kind: input, shape index: {}]   ;;  %s17433_s2 = inlined_call_operand.vmem [shape: f32[1,48], index: 2, kind: input, shape index: {}]   ;;  %s17434_s3 = inlined_call_operand.vmem [shape: f32[48,24], index: 3, kind: input, shape index: {}]   ;;  %s17435_s4 = inlined_call_operand.vmem [shape: f32[1,24], index: 4, kind: input, shape index: {}]   ;;  %s17436_s5 = inlined_call_operand.vmem [shape: f32[24,12], index: 5, kind: input, shape index: {}]   ;;  %s17437_s6 = inlined_call_operand.vmem [shape: f32[1,12], index: 6, kind: input, shape index: {}]   ;;  %s17438_s7 = inlined_call_operand.vmem [shape: f32[6144,12], index: 7, kind: output, shape index: {}]  }
   0x1 LB: > { %s9283_s25 = sadd.s32 4294967295, %s12631_s24   ;;  %p9287_p0 = scmp.ge.s32.totalorder %s12631_s24, 1  ;;  %s12631_s24 = sphi %s12673_s24, %s17_s24  }
   0x2   : > { %p238_p1 = scmp.lt.s32.totalorder %s12631_s24, 4 }
   0x4   : > { %p239_p2 = pnand %p9287_p0, %p238_p1 }
   0x6   : > { %242 = sbr.rel (%p239_p2) target bundleno = 1655 (0x677), region = 48 }
   0xd   : > { %v538_v0 = vld [vmem:[%s17432_s1] sm:$0xff]  ;;  %v539_v1 = vld [vmem:[%s17432_s1 + $0x8] sm:$0xff]  ;;  %v540_v2 = vld [vmem:[%s17432_s1 + $0x10] sm:$0xff]  ;;  %s9288_s9 = sshll.u32 %s9283_s25, 8  ;;  %vm557_vm0 = vcmask 785408   ;;  %vm2940_vm1 = vcmask 392192  }
   0xe   : > { %v12048_v3 = vpack.c.bf16 %v539_v1, %v538_v0  ;;  %v541_v4 = vld [vmem:[%s17432_s1 + $0x18] sm:$0xff]  ;;  %p271_p3 = scmp.lt.s32.totalorder %s9288_s9, 767  ;;  %v542_v6 = vld [vmem:[%s17432_s1 + $0x20] sm:$0xff]  ;;  %v543_v7 = vld [vmem:[%s17432_s1 + $0x28] sm:$0xff]  ;;  %vm5320_vm2 = vcmask 195584   ;;  %vm7690_vm3 = vcmask 97280  }
   0xf   : > { %v12052_v5 = vpack.c.bf16 %v541_v4, %v540_v2  ;;  %v2927_v8 = vld [vmem:[%s17434_s3] sm:$0xff]  ;;  %v2928_v9 = vld [vmem:[%s17434_s3 + $0x8] sm:$0xff]  ;;  %v12056_v10 = vpack.c.bf16 %v543_v7, %v542_v6  ;;  %v544_v12 = vld [vmem:[%s17432_s1 + $0x30] sm:$0xff] }
  0x10   : > { %12049 = vmatprep.subr.bf16.mxu0 %v12048_v3  ;;  %s18099_s9 = smov (!%p271_p3, %s9288_s9), 767  ;;  %v12072_v11 = vpack.c.bf16 %v2928_v9, %v2927_v8  ;;  %v545_v13 = vld [vmem:[%s17432_s1 + $0x38] sm:$0xff]  ;;  %v546_v16 = vld [vmem:[%s17432_s1 + $0x40] sm:$0xff]  ;;  %v547_v17 = vld [vmem:[%s17432_s1 + $0x48] sm:$0xff] }
  0x11   : > { %12051 = vmatpush3.bf16.msra.mxu0 %v12048_v3  ;;  %s9289_s20 = sshll.u32 %s18099_s9, 3  ;;  %v12060_v15 = vpack.c.bf16 %v545_v13, %v544_v12  ;;  %v12064_v18 = vpack.c.bf16 %v547_v17, %v546_v16  ;;  %v548_v19 = vld [vmem:[%s17432_s1 + $0x50] sm:$0xff]  ;;  %v549_v20 = vld [vmem:[%s17432_s1 + $0x58] sm:$0xff] }
  0x12   : > { %12053 = vmatprep.subr.bf16.mxu0 %v12052_v5  ;;  %s12719_s28 = scalar_lea.vmem %s17431_s0, %s9289_s20  ;;  %12088 = vmatprep.subr.bf16.mxu1 %v12072_v11  ;;  %v12068_v21 = vpack.c.bf16 %v549_v20, %v548_v19  ;;  %v2929_v45 = vld [vmem:[%s17434_s3 + $0x10] sm:$0xff]  ;;  %v2930_v46 = vld [vmem:[%s17434_s3 + $0x18] sm:$0xff]  ;;  %s15368_s30 = scalar_lea.vmem %s17438_s7, %s9289_s20 }
  0x13   : > { %v282_v14 = vld [vmem:[%s12719_s28] sm:$0xff]  ;;  %12091 = vmatpush3.bf16.msra.mxu1 %v12072_v11  ;;  %v283_v22 = vld [vmem:[%s12719_s28 + $0x8] sm:$0xff]  ;;  %v284_v23 = vld [vmem:[%s12719_s28 + $0x10] sm:$0xff]  ;;  %v12076_v48 = vpack.c.bf16 %v2930_v46, %v2929_v45 }
  0x14   : > { %10878 = vmatprep.mubr.msk.f32.mxu0 %vm557_vm0, %v282_v14  ;;  %v285_v24 = vld [vmem:[%s12719_s28 + $0x18] sm:$0xff]  ;;  %v286_v25 = vld [vmem:[%s12719_s28 + $0x20] sm:$0xff]  ;;  %v287_v26 = vld [vmem:[%s12719_s28 + $0x28] sm:$0xff] }
  0x15   : > { %12055 = vmatpush3.bf16.msra.mxu0 %v12052_v5  ;;  %v288_v27 = vld [vmem:[%s12719_s28 + $0x30] sm:$0xff]  ;;  %v289_v28 = vld [vmem:[%s12719_s28 + $0x38] sm:$0xff]  ;;  %v290_v29 = vld [vmem:[%s12719_s28 + $0x40] sm:$0xff]  ;;  %12089 = vmatprep.subr.bf16.mxu1 %v12076_v48 }
  0x16   : > { %12057 = vmatprep.subr.bf16.mxu0 %v12056_v10  ;;  %v291_v30 = vld [vmem:[%s12719_s28 + $0x48] sm:$0xff]  ;;  %v292_v31 = vld [vmem:[%s12719_s28 + $0x50] sm:$0xff]  ;;  %v293_v32 = vld [vmem:[%s12719_s28 + $0x58] sm:$0xff] }
  0x17   : > { %v294_v33 = vld [vmem:[%s12719_s28 + $0x60] sm:$0xff]  ;;  %v295_v34 = vld [vmem:[%s12719_s28 + $0x68] sm:$0xff]  ;;  %v296_v35 = vld [vmem:[%s12719_s28 + $0x70] sm:$0xff]  ;;  %12092 = vmatpush3.bf16.msra.mxu1 %v12076_v48 }
  0x18   : > { %v297_v36 = vld [vmem:[%s12719_s28 + $0x78] sm:$0xff]  ;;  %v298_v37 = vld [vmem:[%s12719_s28 + $0x80] sm:$0xff]  ;;  %v299_v38 = vld [vmem:[%s12719_s28 + $0x88] sm:$0xff] }
  0x19   : > { %12059 = vmatpush3.bf16.msra.mxu0 %v12056_v10  ;;  %v300_v39 = vld [vmem:[%s12719_s28 + $0x90] sm:$0xff]  ;;  %v301_v40 = vld [vmem:[%s12719_s28 + $0x98] sm:$0xff]  ;;  %v302_v41 = vld [vmem:[%s12719_s28 + $0xa0] sm:$0xff] }
  0x1a   : > { %12061 = vmatprep.subr.bf16.mxu0 %v12060_v15  ;;  %v303_v42 = vld [vmem:[%s12719_s28 + $0xa8] sm:$0xff]  ;;  %v304_v43 = vld [vmem:[%s12719_s28 + $0xb0] sm:$0xff]  ;;  %v305_v44 = vld [vmem:[%s12719_s28 + $0xb8] sm:$0xff] }
  0x1b   : > { %v306_v47 = vld [vmem:[%s12719_s28 + $0xc0] sm:$0xff]  ;;  %v307_v49 = vld [vmem:[%s12719_s28 + $0xc8] sm:$0xff]  ;;  %v308_v50 = vld [vmem:[%s12719_s28 + $0xd0] sm:$0xff] }
  0x1c   : > { %v309_v51 = vld [vmem:[%s12719_s28 + $0xd8] sm:$0xff]  ;;  %v310_v52 = vld [vmem:[%s12719_s28 + $0xe0] sm:$0xff]  ;;  %v311_v53 = vld [vmem:[%s12719_s28 + $0xe8] sm:$0xff] }
  0x1d   : > { %12063 = vmatpush3.bf16.msra.mxu0 %v12060_v15  ;;  %v312_v54 = vld [vmem:[%s12719_s28 + $0xf0] sm:$0xff]  ;;  %v313_v55 = vld [vmem:[%s12719_s28 + $0xf8] sm:$0xff]  ;;  %v314_v56 = vld [vmem:[%s12719_s28 + $0x100] sm:$0xff] }
  0x1e   : > { %12065 = vmatprep.subr.bf16.mxu0 %v12064_v18  ;;  %v315_v57 = vld [vmem:[%s12719_s28 + $0x108] sm:$0xff]  ;;  %v316_v58 = vld [vmem:[%s12719_s28 + $0x110] sm:$0xff]  ;;  %v317_v59 = vld [vmem:[%s12719_s28 + $0x118] sm:$0xff] }
  0x1f   : > { %v318_v60 = vld [vmem:[%s12719_s28 + $0x120] sm:$0xff]  ;;  %v319_v61 = vld [vmem:[%s12719_s28 + $0x128] sm:$0xff]  ;;  %v320_v62 = vld [vmem:[%s12719_s28 + $0x130] sm:$0xff] }
  0x20   : > { %v321_v63 = vld [vmem:[%s12719_s28 + $0x138] sm:$0xff]  ;;  %v322_v0 = vld [vmem:[%s12719_s28 + $0x140] sm:$0xff]  ;;  %v323_v1 = vld [vmem:[%s12719_s28 + $0x148] sm:$0xff] }
  0x21   : > { %12067 = vmatpush3.bf16.msra.mxu0 %v12064_v18  ;;  %v324_v2 = vld [vmem:[%s12719_s28 + $0x150] sm:$0xff]  ;;  %v325_v3 = vld [vmem:[%s12719_s28 + $0x158] sm:$0xff]  ;;  %v326_v4 = vld [vmem:[%s12719_s28 + $0x160] sm:$0xff] }
  0x22   : > { %12069 = vmatprep.subr.bf16.mxu0 %v12068_v21  ;;  %v327_v5 = vld [vmem:[%s12719_s28 + $0x168] sm:$0xff]  ;;  %v328_v6 = vld [vmem:[%s12719_s28 + $0x170] sm:$0xff]  ;;  %v329_v7 = vld [vmem:[%s12719_s28 + $0x178] sm:$0xff] }
  0x23   : > { %v330_v8 = vld [vmem:[%s12719_s28 + $0x180] sm:$0xff]  ;;  %v331_v9 = vld [vmem:[%s12719_s28 + $0x188] sm:$0xff]  ;;  %v332_v10 = vld [vmem:[%s12719_s28 + $0x190] sm:$0xff] }
  0x24   : > { %v334_v12 = vld [vmem:[%s12719_s28 + $0x1a0] sm:$0xff]  ;;  %v335_v13 = vld [vmem:[%s12719_s28 + $0x1a8] sm:$0xff]  ;;  %v336_v14 = vld [vmem:[%s12719_s28 + $0x1b0] sm:$0xff] }
  0x25   : > { %12071 = vmatpush3.bf16.msra.mxu0 %v12068_v21  ;;  %v337_v15 = vld [vmem:[%s12719_s28 + $0x1b8] sm:$0xff]  ;;  %v338_v16 = vld [vmem:[%s12719_s28 + $0x1c0] sm:$0xff]  ;;  %v339_v17 = vld [vmem:[%s12719_s28 + $0x1c8] sm:$0xff] }
  0x26   : > { %12073 = vmatprep.subr.bf16.mxu0 %v12072_v11  ;;  %v340_v18 = vld [vmem:[%s12719_s28 + $0x1d0] sm:$0xff]  ;;  %v341_v19 = vld [vmem:[%s12719_s28 + $0x1d8] sm:$0xff]  ;;  %v342_v20 = vld [vmem:[%s12719_s28 + $0x1e0] sm:$0xff] }
  0x27   : > { %v343_v21 = vld [vmem:[%s12719_s28 + $0x1e8] sm:$0xff]  ;;  %v368_v46 = vld [vmem:[%s12719_s28 + $0x2b0] sm:$0xff] }
  0x28   : > { %10879 = vmatmul.mubr.msk.f32.vlgmr.msra.gmra.mrb[0].mxu0 %vm557_vm0, %v283_v22  ;;  %v344_v22 = vld [vmem:[%s12719_s28 + $0x1f0] sm:$0xff]  ;;  %v367_v45 = vld [vmem:[%s12719_s28 + $0x2a8] sm:$0xff] }
  0x29   : > { %12075 = vmatpush3.bf16.msra.mxu0 %v12072_v11  ;;  %10881 = vmatprep.mubr.msk.f32.mxu0 %vm557_vm0, %v284_v23  ;;  %v333_v11 = vld [vmem:[%s12719_s28 + $0x198] sm:$0xff] }
  0x2a   : > { %12077 = vmatprep.subr.bf16.mxu0 %v12076_v48  ;;  %v345_v23 = vld [vmem:[%s12719_s28 + $0x1f8] sm:$0xff] }
  0x2c   : > { %10882 = vmatmul.mubr.msk.f32.gmra.mrb[2].mxu0 %vm557_vm0, %v285_v24  ;;  %v346_v24 = vld [vmem:[%s12719_s28 + $0x200] sm:$0xff] }
  0x2d   : > { %10884 = vmatprep.mubr.msk.f32.mxu0 %vm557_vm0, %v286_v25  ;;  %12079 = vmatpush3.bf16.msra.mxu0 %v12076_v48  ;;  %v347_v25 = vld [vmem:[%s12719_s28 + $0x208] sm:$0xff]  ;;  %v370_v48 = vld [vmem:[%s12719_s28 + $0x2c0] sm:$0xff] }
  0x30   : > { %10885 = vmatmul.mubr.msk.f32.gmra.mrb[4].mxu0 %vm557_vm0, %v287_v26  ;;  %v348_v26 = vld [vmem:[%s12719_s28 + $0x210] sm:$0xff] }
  0x31   : > { %10887 = vmatprep.mubr.msk.f32.mxu0 %vm557_vm0, %v288_v27  ;;  %v349_v27 = vld [vmem:[%s12719_s28 + $0x218] sm:$0xff] }
  0x34   : > { %10888 = vmatmul.mubr.msk.f32.gmra.mrb[6].mxu0 %vm557_vm0, %v289_v28  ;;  %v350_v28 = vld [vmem:[%s12719_s28 + $0x220] sm:$0xff] }
  0x35   : > { %10890 = vmatprep.mubr.msk.f32.mxu0 %vm557_vm0, %v290_v29  ;;  %v351_v29 = vld [vmem:[%s12719_s28 + $0x228] sm:$0xff] }
  0x38   : > { %10891 = vmatmul.mubr.msk.f32.gmra.mrb[8].mxu0 %vm557_vm0, %v291_v30  ;;  %v352_v30 = vld [vmem:[%s12719_s28 + $0x230] sm:$0xff] }
  0x39   : > { %10893 = vmatprep.mubr.msk.f32.mxu0 %vm557_vm0, %v292_v31  ;;  %v353_v31 = vld [vmem:[%s12719_s28 + $0x238] sm:$0xff] }
  0x3c   : > { %10894 = vmatmul.mubr.msk.f32.gmra.mrb[10].mxu0 %vm557_vm0, %v293_v32  ;;  %v354_v32 = vld [vmem:[%s12719_s28 + $0x240] sm:$0xff] }
  0x3d   : > { %10896 = vmatprep.mubr.msk.f32.mxu0 %vm557_vm0, %v294_v33  ;;  %v355_v33 = vld [vmem:[%s12719_s28 + $0x248] sm:$0xff] }
  0x40   : > { %10897 = vmatmul.mubr.msk.f32.gmra.mrb[12].mxu0 %vm557_vm0, %v295_v34  ;;  %v356_v34 = vld [vmem:[%s12719_s28 + $0x250] sm:$0xff] }
  0x41   : > { %10899 = vmatprep.mubr.msk.f32.mxu0 %vm557_vm0, %v296_v35  ;;  %v357_v35 = vld [vmem:[%s12719_s28 + $0x258] sm:$0xff] }
  0x44   : > { %10900 = vmatmul.mubr.msk.f32.gmra.mrb[14].mxu0 %vm557_vm0, %v297_v36  ;;  %v358_v36 = vld [vmem:[%s12719_s28 + $0x260] sm:$0xff] }
  0x45   : > { %10902 = vmatprep.mubr.msk.f32.mxu0 %vm557_vm0, %v298_v37  ;;  %v359_v37 = vld [vmem:[%s12719_s28 + $0x268] sm:$0xff] }
  0x48   : > { %10903 = vmatmul.mubr.msk.f32.gmra.mrb[16].mxu0 %vm557_vm0, %v299_v38  ;;  %v360_v38 = vld [vmem:[%s12719_s28 + $0x270] sm:$0xff] }
  0x49   : > { %10905 = vmatprep.mubr.msk.f32.mxu0 %vm557_vm0, %v300_v39  ;;  %v361_v39 = vld [vmem:[%s12719_s28 + $0x278] sm:$0xff] }
  0x4c   : > { %10906 = vmatmul.mubr.msk.f32.gmra.mrb[18].mxu0 %vm557_vm0, %v301_v40  ;;  %v362_v40 = vld [vmem:[%s12719_s28 + $0x280] sm:$0xff] }
  0x4d   : > { %10908 = vmatprep.mubr.msk.f32.mxu0 %vm557_vm0, %v302_v41  ;;  %v363_v41 = vld [vmem:[%s12719_s28 + $0x288] sm:$0xff] }
  0x50   : > { %10909 = vmatmul.mubr.msk.f32.gmra.mrb[20].mxu0 %vm557_vm0, %v303_v42  ;;  %v364_v42 = vld [vmem:[%s12719_s28 + $0x290] sm:$0xff] }
  0x51   : > { %10911 = vmatprep.mubr.msk.f32.mxu0 %vm557_vm0, %v304_v43  ;;  %v365_v43 = vld [vmem:[%s12719_s28 + $0x298] sm:$0xff] }
  0x54   : > { %10912 = vmatmul.mubr.msk.f32.gmra.mrb[22].mxu0 %vm557_vm0, %v305_v44  ;;  %v366_v44 = vld [vmem:[%s12719_s28 + $0x2a0] sm:$0xff] }
  0x55   : > { %10914 = vmatprep.mubr.msk.f32.mxu0 %vm557_vm0, %v306_v47  ;;  %v369_v47 = vld [vmem:[%s12719_s28 + $0x2b8] sm:$0xff] }
  0x58   : > { %10915 = vmatmul.mubr.msk.f32.gmra.mrb[24].mxu0 %vm557_vm0, %v307_v49  ;;  %v371_v49 = vld [vmem:[%s12719_s28 + $0x2c8] sm:$0xff] }
  0x59   : > { %10917 = vmatprep.mubr.msk.f32.mxu0 %vm557_vm0, %v308_v50  ;;  %v372_v50 = vld [vmem:[%s12719_s28 + $0x2d0] sm:$0xff] }
  0x5c   : > { %10918 = vmatmul.mubr.msk.f32.gmra.mrb[26].mxu0 %vm557_vm0, %v309_v51  ;;  %v373_v51 = vld [vmem:[%s12719_s28 + $0x2d8] sm:$0xff] }
  0x5d   : > { %10920 = vmatprep.mubr.msk.f32.mxu0 %vm557_vm0, %v310_v52  ;;  %v374_v52 = vld [vmem:[%s12719_s28 + $0x2e0] sm:$0xff] }
  0x60   : > { %10921 = vmatmul.mubr.msk.f32.gmra.mrb[28].mxu0 %vm557_vm0, %v311_v53  ;;  %v375_v53 = vld [vmem:[%s12719_s28 + $0x2e8] sm:$0xff] }
  0x61   : > { %10923 = vmatprep.mubr.msk.f32.mxu0 %vm557_vm0, %v312_v54  ;;  %v376_v54 = vld [vmem:[%s12719_s28 + $0x2f0] sm:$0xff] }
  0x64   : > { %10924 = vmatmul.mubr.msk.f32.gmra.mrb[30].mxu0 %vm557_vm0, %v313_v55  ;;  %v377_v55 = vld [vmem:[%s12719_s28 + $0x2f8] sm:$0xff] }
  0x65   : > { %10926 = vmatprep.mubr.msk.f32.mxu0 %vm557_vm0, %v314_v56  ;;  %v378_v56 = vld [vmem:[%s12719_s28 + $0x300] sm:$0xff] }
  0x68   : > { %10927 = vmatmul.mubr.msk.f32.gmra.mrb[32].mxu0 %vm557_vm0, %v315_v57  ;;  %v379_v57 = vld [vmem:[%s12719_s28 + $0x308] sm:$0xff] }
  0x69   : > { %10929 = vmatprep.mubr.msk.f32.mxu0 %vm557_vm0, %v316_v58  ;;  %v380_v58 = vld [vmem:[%s12719_s28 + $0x310] sm:$0xff] }
  0x6c   : > { %10930 = vmatmul.mubr.msk.f32.gmra.mrb[34].mxu0 %vm557_vm0, %v317_v59  ;;  %v381_v59 = vld [vmem:[%s12719_s28 + $0x318] sm:$0xff] }
  0x6d   : > { %10932 = vmatprep.mubr.msk.f32.mxu0 %vm557_vm0, %v318_v60  ;;  %v382_v60 = vld [vmem:[%s12719_s28 + $0x320] sm:$0xff] }
  0x70   : > { %10933 = vmatmul.mubr.msk.f32.gmra.mrb[36].mxu0 %vm557_vm0, %v319_v61  ;;  %v383_v61 = vld [vmem:[%s12719_s28 + $0x328] sm:$0xff] }
  0x71   : > { %10935 = vmatprep.mubr.msk.f32.mxu0 %vm557_vm0, %v320_v62  ;;  %v384_v62 = vld [vmem:[%s12719_s28 + $0x330] sm:$0xff] }
  0x74   : > { %10936 = vmatmul.mubr.msk.f32.gmra.mrb[38].mxu0 %vm557_vm0, %v321_v63  ;;  %v385_v63 = vld [vmem:[%s12719_s28 + $0x338] sm:$0xff] }
  0x75   : > { %10938 = vmatprep.mubr.msk.f32.mxu0 %vm557_vm0, %v322_v0  ;;  %v386_v0 = vld [vmem:[%s12719_s28 + $0x340] sm:$0xff] }
  0x78   : > { %10939 = vmatmul.mubr.msk.f32.gmra.mrb[40].mxu0 %vm557_vm0, %v323_v1  ;;  %v387_v1 = vld [vmem:[%s12719_s28 + $0x348] sm:$0xff] }
  0x79   : > { %10941 = vmatprep.mubr.msk.f32.mxu0 %vm557_vm0, %v324_v2  ;;  %v388_v2 = vld [vmem:[%s12719_s28 + $0x350] sm:$0xff] }
  0x7c   : > { %10942 = vmatmul.mubr.msk.f32.gmra.mrb[42].mxu0 %vm557_vm0, %v325_v3  ;;  %v389_v3 = vld [vmem:[%s12719_s28 + $0x358] sm:$0xff] }
  0x7d   : > { %10944 = vmatprep.mubr.msk.f32.mxu0 %vm557_vm0, %v326_v4  ;;  %v390_v4 = vld [vmem:[%s12719_s28 + $0x360] sm:$0xff] }
  0x80   : > { %10945 = vmatmul.mubr.msk.f32.gmra.mrb[44].mxu0 %vm557_vm0, %v327_v5 }
  0x81   : > { %10947 = vmatprep.mubr.msk.f32.mxu0 %vm557_vm0, %v328_v6 }
  0x84   : > { %10948 = vmatmul.mubr.msk.f32.gmra.mrb[46].mxu0 %vm557_vm0, %v329_v7  ;;  %v391_v7 = vld [vmem:[%s12719_s28 + $0x368] sm:$0xff] }
  0x85   : > { %10950 = vmatprep.mubr.msk.f32.mxu0 %vm557_vm0, %v330_v8  ;;  %v392_v8 = vld [vmem:[%s12719_s28 + $0x370] sm:$0xff] }
  0x88   : > { %10951 = vmatmul.mubr.msk.f32.gmra.mrb[48].mxu0 %vm557_vm0, %v331_v9 }
  0x89   : > { %10953 = vmatprep.mubr.msk.f32.mxu0 %vm557_vm0, %v332_v10  ;;  %v2931_v10 = vld [vmem:[%s17434_s3 + $0x20] sm:$0xff] }
  0x8c   : > { %10954 = vmatmul.mubr.msk.f32.gmra.mrb[50].mxu0 %vm557_vm0, %v333_v11  ;;  %v2932_v11 = vld [vmem:[%s17434_s3 + $0x28] sm:$0xff] }
  0x8d   : > { %10956 = vmatprep.mubr.msk.f32.mxu0 %vm557_vm0, %v334_v12 }
  0x90   : > { %10957 = vmatmul.mubr.msk.f32.gmra.mrb[52].mxu0 %vm557_vm0, %v335_v13  ;;  %v12080_v13 = vpack.c.bf16 %v2932_v11, %v2931_v10  ;;  %v422_v10 = vld [vmem:[%s12719_s28 + $0x460] sm:$0xff] }
  0x91   : > { %10959 = vmatprep.mubr.msk.f32.mxu0 %vm557_vm0, %v336_v14  ;;  %v393_v14 = vld [vmem:[%s12719_s28 + $0x378] sm:$0xff] }
  0x92   : > { %12081 = vmatprep.subr.bf16.mxu0 %v12080_v13  ;;  %12090 = vmatprep.subr.bf16.mxu1 %v12080_v13 }
  0x93   : > { %12083 = vmatpush3.bf16.msra.mxu0 %v12080_v13  ;;  %12093 = vmatpush3.bf16.msra.mxu1 %v12080_v13 }
  0x94   : > { %10960 = vmatmul.mubr.msk.f32.gmra.mrb[54].mxu0 %vm557_vm0, %v337_v15  ;;  %v394_v15 = vld [vmem:[%s12719_s28 + $0x380] sm:$0xff] }
  0x95   : > { %10962 = vmatprep.mubr.msk.f32.mxu0 %vm557_vm0, %v338_v16 }
  0x98   : > { %10963 = vmatmul.mubr.msk.f32.gmra.mrb[56].mxu0 %vm557_vm0, %v339_v17 }
  0x99   : > { %10965 = vmatprep.mubr.msk.f32.mxu0 %vm557_vm0, %v340_v18  ;;  %v395_v18 = vld [vmem:[%s12719_s28 + $0x388] sm:$0xff] }
  0x9c   : > { %10966 = vmatmul.mubr.msk.f32.gmra.mrb[58].mxu0 %vm557_vm0, %v341_v19  ;;  %v396_v19 = vld [vmem:[%s12719_s28 + $0x390] sm:$0xff] }
  0x9d   : > { %10968 = vmatprep.mubr.msk.f32.mxu0 %vm557_vm0, %v342_v20 }
  0xa0   : > { %10969 = vmatmul.mubr.msk.f32.gmra.mrb[60].mxu0 %vm557_vm0, %v343_v21 }
  0xa1   : > { %10971 = vmatprep.mubr.msk.f32.mxu0 %vm557_vm0, %v344_v22  ;;  %v397_v22 = vld [vmem:[%s12719_s28 + $0x398] sm:$0xff] }
  0xa4   : > { %10972 = vmatmul.mubr.msk.f32.gmra.mrb[62].mxu0 %vm557_vm0, %v345_v23  ;;  %v398_v23 = vld [vmem:[%s12719_s28 + $0x3a0] sm:$0xff] }
  0xa5   : > { %10974 = vmatprep.mubr.msk.f32.mxu0 %vm557_vm0, %v346_v24 }
  0xa8   : > { %10975 = vmatmul.mubr.msk.f32.gmra.mrb[64].mxu0 %vm557_vm0, %v347_v25 }
  0xa9   : > { %10977 = vmatprep.mubr.msk.f32.mxu0 %vm557_vm0, %v348_v26  ;;  %v399_v26 = vld [vmem:[%s12719_s28 + $0x3a8] sm:$0xff] }
  0xac   : > { %10978 = vmatmul.mubr.msk.f32.gmra.mrb[66].mxu0 %vm557_vm0, %v349_v27  ;;  %v400_v27 = vld [vmem:[%s12719_s28 + $0x3b0] sm:$0xff] }
  0xad   : > { %10980 = vmatprep.mubr.msk.f32.mxu0 %vm557_vm0, %v350_v28 }
  0xb0   : > { %10981 = vmatmul.mubr.msk.f32.gmra.mrb[68].mxu0 %vm557_vm0, %v351_v29 }
  0xb1   : > { %10983 = vmatprep.mubr.msk.f32.mxu0 %vm557_vm0, %v352_v30  ;;  %v401_v30 = vld [vmem:[%s12719_s28 + $0x3b8] sm:$0xff] }
  0xb4   : > { %10984 = vmatmul.mubr.msk.f32.gmra.mrb[70].mxu0 %vm557_vm0, %v353_v31  ;;  %v402_v31 = vld [vmem:[%s12719_s28 + $0x3c0] sm:$0xff] }
  0xb5   : > { %10986 = vmatprep.mubr.msk.f32.mxu0 %vm557_vm0, %v354_v32 }
  0xb8   : > { %10987 = vmatmul.mubr.msk.f32.gmra.mrb[72].mxu0 %vm557_vm0, %v355_v33 }
  0xb9   : > { %10989 = vmatprep.mubr.msk.f32.mxu0 %vm557_vm0, %v356_v34  ;;  %v403_v34 = vld [vmem:[%s12719_s28 + $0x3c8] sm:$0xff] }
  0xbc   : > { %10990 = vmatmul.mubr.msk.f32.gmra.mrb[74].mxu0 %vm557_vm0, %v357_v35  ;;  %v404_v35 = vld [vmem:[%s12719_s28 + $0x3d0] sm:$0xff] }
  0xbd   : > { %10992 = vmatprep.mubr.msk.f32.mxu0 %vm557_vm0, %v358_v36 }
  0xc0   : > { %10993 = vmatmul.mubr.msk.f32.gmra.mrb[76].mxu0 %vm557_vm0, %v359_v37 }
  0xc1   : > { %10995 = vmatprep.mubr.msk.f32.mxu0 %vm557_vm0, %v360_v38  ;;  %v405_v38 = vld [vmem:[%s12719_s28 + $0x3d8] sm:$0xff] }
  0xc4   : > { %10996 = vmatmul.mubr.msk.f32.gmra.mrb[78].mxu0 %vm557_vm0, %v361_v39  ;;  %v406_v39 = vld [vmem:[%s12719_s28 + $0x3e0] sm:$0xff] }
  0xc5   : > { %10998 = vmatprep.mubr.msk.f32.mxu0 %vm557_vm0, %v362_v40 }
  0xc8   : > { %10999 = vmatmul.mubr.msk.f32.gmra.mrb[80].mxu0 %vm557_vm0, %v363_v41 }
  0xc9   : > { %11001 = vmatprep.mubr.msk.f32.mxu0 %vm557_vm0, %v364_v42  ;;  %v407_v42 = vld [vmem:[%s12719_s28 + $0x3e8] sm:$0xff] }
  0xcc   : > { %11002 = vmatmul.mubr.msk.f32.gmra.mrb[82].mxu0 %vm557_vm0, %v365_v43  ;;  %v408_v43 = vld [vmem:[%s12719_s28 + $0x3f0] sm:$0xff] }
  0xcd   : > { %11004 = vmatprep.mubr.msk.f32.mxu0 %vm557_vm0, %v366_v44 }
  0xd0   : > { %11005 = vmatmul.mubr.msk.f32.gmra.mrb[84].mxu0 %vm557_vm0, %v367_v45 }
  0xd1   : > { %11007 = vmatprep.mubr.msk.f32.mxu0 %vm557_vm0, %v368_v46  ;;  %v409_v46 = vld [vmem:[%s12719_s28 + $0x3f8] sm:$0xff] }
  0xd4   : > { %11008 = vmatmul.mubr.msk.f32.gmra.mrb[86].mxu0 %vm557_vm0, %v369_v47  ;;  %v410_v47 = vld [vmem:[%s12719_s28 + $0x400] sm:$0xff] }
  0xd5   : > { %11010 = vmatprep.mubr.msk.f32.mxu0 %vm557_vm0, %v370_v48 }
  0xd8   : > { %11011 = vmatmul.mubr.msk.f32.gmra.mrb[88].mxu0 %vm557_vm0, %v371_v49 }
  0xd9   : > { %11013 = vmatprep.mubr.msk.f32.mxu0 %vm557_vm0, %v372_v50  ;;  %v411_v50 = vld [vmem:[%s12719_s28 + $0x408] sm:$0xff] }
  0xdc   : > { %11014 = vmatmul.mubr.msk.f32.gmra.mrb[90].mxu0 %vm557_vm0, %v373_v51  ;;  %v412_v51 = vld [vmem:[%s12719_s28 + $0x410] sm:$0xff] }
  0xdd   : > { %11016 = vmatprep.mubr.msk.f32.mxu0 %vm557_vm0, %v374_v52 }
  0xe0   : > { %11017 = vmatmul.mubr.msk.f32.gmra.mrb[92].mxu0 %vm557_vm0, %v375_v53 }
  0xe1   : > { %11019 = vmatprep.mubr.msk.f32.mxu0 %vm557_vm0, %v376_v54  ;;  %v413_v54 = vld [vmem:[%s12719_s28 + $0x418] sm:$0xff] }
  0xe4   : > { %11020 = vmatmul.mubr.msk.f32.gmra.mrb[94].mxu0 %vm557_vm0, %v377_v55  ;;  %v414_v55 = vld [vmem:[%s12719_s28 + $0x420] sm:$0xff] }
  0xe5   : > { %11022 = vmatprep.mubr.msk.f32.mxu0 %vm557_vm0, %v378_v56 }
  0xe8   : > { %11023 = vmatmul.mubr.msk.f32.gmra.mrb[96].mxu0 %vm557_vm0, %v379_v57 }
  0xe9   : > { %11025 = vmatprep.mubr.msk.f32.mxu0 %vm557_vm0, %v380_v58  ;;  %v415_v58 = vld [vmem:[%s12719_s28 + $0x428] sm:$0xff] }
  0xec   : > { %11026 = vmatmul.mubr.msk.f32.gmra.mrb[98].mxu0 %vm557_vm0, %v381_v59  ;;  %v416_v59 = vld [vmem:[%s12719_s28 + $0x430] sm:$0xff] }
  0xed   : > { %11028 = vmatprep.mubr.msk.f32.mxu0 %vm557_vm0, %v382_v60 }
  0xf0   : > { %11029 = vmatmul.mubr.msk.f32.gmra.mrb[100].mxu0 %vm557_vm0, %v383_v61 }
  0xf1   : > { %11031 = vmatprep.mubr.msk.f32.mxu0 %vm557_vm0, %v384_v62  ;;  %v417_v62 = vld [vmem:[%s12719_s28 + $0x438] sm:$0xff] }
  0xf4   : > { %11032 = vmatmul.mubr.msk.f32.gmra.mrb[102].mxu0 %vm557_vm0, %v385_v63  ;;  %v418_v63 = vld [vmem:[%s12719_s28 + $0x440] sm:$0xff] }
  0xf5   : > { %11034 = vmatprep.mubr.msk.f32.mxu0 %vm557_vm0, %v386_v0 }
  0xf8   : > { %11035 = vmatmul.mubr.msk.f32.gmra.mrb[104].mxu0 %vm557_vm0, %v387_v1 }
  0xf9   : > { %11037 = vmatprep.mubr.msk.f32.mxu0 %vm557_vm0, %v388_v2  ;;  %v419_v2 = vld [vmem:[%s12719_s28 + $0x448] sm:$0xff] }
  0xfb   : > { %v12955_v5 = vpop.f32.mrb[0].mxu0 }
  0xfc   : > { %v12957_v6 = vpop.f32.mrb[1].mxu0  ;;  %11038 = vmatmul.mubr.msk.f32.gmra.mrb[106].mxu0 %vm557_vm0, %v389_v3  ;;  %v420_v3 = vld [vmem:[%s12719_s28 + $0x450] sm:$0xff] }
  0xfd   : > { %11040 = vmatprep.mubr.msk.f32.mxu0 %vm557_vm0, %v390_v4 }
  0xff   : > { %v12963_v9 = vpop.f32.mrb[2].mxu0 }
 0x100   : > { %v12971_v12 = vpop.f32.mrb[3].mxu0  ;;  %11041 = vmatmul.mubr.msk.f32.gmra.mrb[108].mxu0 %vm557_vm0, %v391_v7 }
 0x101   : > { %11043 = vmatprep.mubr.msk.f32.mxu0 %vm557_vm0, %v392_v8  ;;  %v421_v8 = vld [vmem:[%s12719_s28 + $0x458] sm:$0xff] }
 0x103   : > { %v12977_v16 = vpop.f32.mrb[4].mxu0 }
 0x104   : > { %v12979_v17 = vpop.f32.mrb[5].mxu0  ;;  %11044 = vmatmul.mubr.msk.f32.gmra.mrb[110].mxu0 %vm557_vm0, %v393_v14  ;;  %v423_v14 = vld [vmem:[%s12719_s28 + $0x468] sm:$0xff] }
 0x105   : > { %11046 = vmatprep.mubr.msk.f32.mxu0 %vm557_vm0, %v394_v15  ;;  %v424_v15 = vld [vmem:[%s12719_s28 + $0x470] sm:$0xff] }
 0x107   : > { %v12985_v20 = vpop.f32.mrb[6].mxu0 }
 0x108   : > { %v12987_v21 = vpop.f32.mrb[7].mxu0  ;;  %11047 = vmatmul.mubr.msk.f32.gmra.mrb[112].mxu0 %vm557_vm0, %v395_v18 }
 0x109   : > { %11049 = vmatprep.mubr.msk.f32.mxu0 %vm557_vm0, %v396_v19 }
 0x10b   : > { %v12993_v24 = vpop.f32.mrb[8].mxu0 }
 0x10c   : > { %v12995_v25 = vpop.f32.mrb[9].mxu0  ;;  %11050 = vmatmul.mubr.msk.f32.gmra.mrb[114].mxu0 %vm557_vm0, %v397_v22  ;;  %v425_v22 = vld [vmem:[%s12719_s28 + $0x478] sm:$0xff] }
 0x10d   : > { %11052 = vmatprep.mubr.msk.f32.mxu0 %vm557_vm0, %v398_v23  ;;  %v426_v23 = vld [vmem:[%s12719_s28 + $0x480] sm:$0xff] }
 0x10f   : > { %v13001_v28 = vpop.f32.mrb[10].mxu0 }
 0x110   : > { %v13003_v29 = vpop.f32.mrb[11].mxu0  ;;  %11053 = vmatmul.mubr.msk.f32.gmra.mrb[116].mxu0 %vm557_vm0, %v399_v26 }
 0x111   : > { %11055 = vmatprep.mubr.msk.f32.mxu0 %vm557_vm0, %v400_v27 }
 0x113   : > { %v13009_v32 = vpop.f32.mrb[12].mxu0 }
 0x114   : > { %v13011_v33 = vpop.f32.mrb[13].mxu0  ;;  %11056 = vmatmul.mubr.msk.f32.gmra.mrb[118].mxu0 %vm557_vm0, %v401_v30  ;;  %v427_v30 = vld [vmem:[%s12719_s28 + $0x488] sm:$0xff] }
 0x115   : > { %11058 = vmatprep.mubr.msk.f32.mxu0 %vm557_vm0, %v402_v31  ;;  %v428_v31 = vld [vmem:[%s12719_s28 + $0x490] sm:$0xff] }
 0x117   : > { %v13017_v36 = vpop.f32.mrb[14].mxu0 }
 0x118   : > { %v13019_v37 = vpop.f32.mrb[15].mxu0  ;;  %11059 = vmatmul.mubr.msk.f32.gmra.mrb[120].mxu0 %vm557_vm0, %v403_v34 }
 0x119   : > { %11061 = vmatprep.mubr.msk.f32.mxu0 %vm557_vm0, %v404_v35 }
 0x11b   : > { %v13025_v40 = vpop.f32.mrb[16].mxu0 }
 0x11c   : > { %v13027_v41 = vpop.f32.mrb[17].mxu0  ;;  %11062 = vmatmul.mubr.msk.f32.gmra.mrb[122].mxu0 %vm557_vm0, %v405_v38  ;;  %v429_v38 = vld [vmem:[%s12719_s28 + $0x498] sm:$0xff] }
 0x11d   : > { %11064 = vmatprep.mubr.msk.f32.mxu0 %vm557_vm0, %v406_v39  ;;  %v430_v39 = vld [vmem:[%s12719_s28 + $0x4a0] sm:$0xff] }
 0x11f   : > { %v13033_v44 = vpop.f32.mrb[18].mxu0 }
 0x120   : > { %v13035_v45 = vpop.f32.mrb[19].mxu0  ;;  %11065 = vmatmul.mubr.msk.f32.gmra.mrb[124].mxu0 %vm557_vm0, %v407_v42 }
 0x121   : > { %11067 = vmatprep.mubr.msk.f32.mxu0 %vm557_vm0, %v408_v43 }
 0x123   : > { %v13041_v48 = vpop.f32.mrb[20].mxu0 }
 0x124   : > { %v13043_v49 = vpop.f32.mrb[21].mxu0  ;;  %11068 = vmatmul.mubr.msk.f32.gmra.mrb[126].mxu0 %vm557_vm0, %v409_v46  ;;  %v431_v46 = vld [vmem:[%s12719_s28 + $0x4a8] sm:$0xff] }
 0x125   : > { %11070 = vmatprep.mubr.msk.f32.mxu0 %vm557_vm0, %v410_v47  ;;  %v432_v47 = vld [vmem:[%s12719_s28 + $0x4b0] sm:$0xff] }
 0x127   : > { %v13049_v52 = vpop.f32.mrb[22].mxu0 }
 0x128   : > { %v13051_v53 = vpop.f32.mrb[23].mxu0  ;;  %11071 = vmatmul.mubr.msk.f32.gmra.mrb[128].mxu0 %vm557_vm0, %v411_v50 }
 0x129   : > { %11073 = vmatprep.mubr.msk.f32.mxu0 %vm557_vm0, %v412_v51 }
 0x12b   : > { %v13057_v56 = vpop.f32.mrb[24].mxu0 }
 0x12c   : > { %v13059_v57 = vpop.f32.mrb[25].mxu0  ;;  %11074 = vmatmul.mubr.msk.f32.gmra.mrb[130].mxu0 %vm557_vm0, %v413_v54  ;;  %v433_v54 = vld [vmem:[%s12719_s28 + $0x4b8] sm:$0xff] }
 0x12d   : > { %11076 = vmatprep.mubr.msk.f32.mxu0 %vm557_vm0, %v414_v55  ;;  %v434_v55 = vld [vmem:[%s12719_s28 + $0x4c0] sm:$0xff] }
 0x12f   : > { %v13065_v60 = vpop.f32.mrb[26].mxu0 }
 0x130   : > { %v13067_v61 = vpop.f32.mrb[27].mxu0  ;;  %11077 = vmatmul.mubr.msk.f32.gmra.mrb[132].mxu0 %vm557_vm0, %v415_v58 }
 0x131   : > { %11079 = vmatprep.mubr.msk.f32.mxu0 %vm557_vm0, %v416_v59 }
 0x133   : > { %v13073_v0 = vpop.f32.mrb[28].mxu0 }
 0x134   : > { %v13075_v1 = vpop.f32.mrb[29].mxu0  ;;  %11080 = vmatmul.mubr.msk.f32.gmra.mrb[134].mxu0 %vm557_vm0, %v417_v62  ;;  %v435_v62 = vld [vmem:[%s12719_s28 + $0x4c8] sm:$0xff] }
 0x135   : > { %11082 = vmatprep.mubr.msk.f32.mxu0 %vm557_vm0, %v418_v63  ;;  %v436_v63 = vld [vmem:[%s12719_s28 + $0x4d0] sm:$0xff] }
 0x137   : > { %v13081_v4 = vpop.f32.mrb[30].mxu0 }
 0x138   : > { %v13083_v7 = vpop.f32.mrb[31].mxu0  ;;  %11083 = vmatmul.mubr.msk.f32.gmra.mrb[136].mxu0 %vm557_vm0, %v419_v2 }
 0x139   : > { %11085 = vmatprep.mubr.msk.f32.mxu0 %vm557_vm0, %v420_v3 }
 0x13b   : > { %v13089_v11 = vpop.f32.mrb[32].mxu0 }
 0x13c   : > { %v13091_v13 = vpop.f32.mrb[33].mxu0  ;;  %11086 = vmatmul.mubr.msk.f32.gmra.mrb[138].mxu0 %vm557_vm0, %v421_v8  ;;  %v437_v8 = vld [vmem:[%s12719_s28 + $0x4d8] sm:$0xff] }
 0x13d   : > { %11088 = vmatprep.mubr.msk.f32.mxu0 %vm557_vm0, %v422_v10  ;;  %v438_v10 = vld [vmem:[%s12719_s28 + $0x4e0] sm:$0xff] }
 0x13f   : > { %v13097_v18 = vpop.f32.mrb[34].mxu0 }
 0x140   : > { %v13099_v19 = vpop.f32.mrb[35].mxu0  ;;  %11089 = vmatmul.mubr.msk.f32.gmra.mrb[140].mxu0 %vm557_vm0, %v423_v14 }
 0x141   : > { %11091 = vmatprep.mubr.msk.f32.mxu0 %vm557_vm0, %v424_v15 }
 0x143   : > { %v13105_v26 = vpop.f32.mrb[36].mxu0 }
 0x144   : > { %v13107_v27 = vpop.f32.mrb[37].mxu0  ;;  %11092 = vmatmul.mubr.msk.f32.gmra.mrb[142].mxu0 %vm557_vm0, %v425_v22  ;;  %v439_v22 = vld [vmem:[%s12719_s28 + $0x4e8] sm:$0xff] }
 0x145   : > { %11094 = vmatprep.mubr.msk.f32.mxu0 %vm557_vm0, %v426_v23  ;;  %v440_v23 = vld [vmem:[%s12719_s28 + $0x4f0] sm:$0xff] }
 0x147   : > { %v13113_v34 = vpop.f32.mrb[38].mxu0 }
 0x148   : > { %v13115_v35 = vpop.f32.mrb[39].mxu0  ;;  %11095 = vmatmul.mubr.msk.f32.gmra.mrb[144].mxu0 %vm557_vm0, %v427_v30 }
 0x149   : > { %11097 = vmatprep.mubr.msk.f32.mxu0 %vm557_vm0, %v428_v31 }
 0x14b   : > { %v13121_v42 = vpop.f32.mrb[40].mxu0 }
 0x14c   : > { %v13123_v43 = vpop.f32.mrb[41].mxu0  ;;  %11098 = vmatmul.mubr.msk.f32.gmra.mrb[146].mxu0 %vm557_vm0, %v429_v38  ;;  %v441_v38 = vld [vmem:[%s12719_s28 + $0x4f8] sm:$0xff] }
 0x14d   : > { %11100 = vmatprep.mubr.msk.f32.mxu0 %vm557_vm0, %v430_v39  ;;  %v442_v39 = vld [vmem:[%s12719_s28 + $0x500] sm:$0xff] }
 0x14f   : > { %v13129_v50 = vpop.f32.mrb[42].mxu0 }
 0x150   : > { %v13131_v51 = vpop.f32.mrb[43].mxu0  ;;  %11101 = vmatmul.mubr.msk.f32.gmra.mrb[148].mxu0 %vm557_vm0, %v431_v46 }
 0x151   : > { %11103 = vmatprep.mubr.msk.f32.mxu0 %vm557_vm0, %v432_v47 }
 0x153   : > { %v13137_v58 = vpop.f32.mrb[44].mxu0 }
 0x154   : > { %v13139_v59 = vpop.f32.mrb[45].mxu0  ;;  %11104 = vmatmul.mubr.msk.f32.gmra.mrb[150].mxu0 %vm557_vm0, %v433_v54  ;;  %v443_v54 = vld [vmem:[%s12719_s28 + $0x508] sm:$0xff] }
 0x155   : > { %11106 = vmatprep.mubr.msk.f32.mxu0 %vm557_vm0, %v434_v55  ;;  %v444_v55 = vld [vmem:[%s12719_s28 + $0x510] sm:$0xff] }
 0x157   : > { %v13145_v2 = vpop.f32.mrb[46].mxu0 }
 0x158   : > { %v13147_v3 = vpop.f32.mrb[47].mxu0  ;;  %11107 = vmatmul.mubr.msk.f32.gmra.mrb[152].mxu0 %vm557_vm0, %v435_v62 }
 0x159   : > { %11109 = vmatprep.mubr.msk.f32.mxu0 %vm557_vm0, %v436_v63 }
 0x15b   : > { %v13153_v14 = vpop.f32.mrb[48].mxu0 }
 0x15c   : > { %17550 = vst [vmem:[#allocation2_spill] sm:$0xff] %v13153_v14  ;;  %v13155_v15 = vpop.f32.mrb[49].mxu0  ;;  %11110 = vmatmul.mubr.msk.f32.gmra.mrb[154].mxu0 %vm557_vm0, %v437_v8  ;;  %v445_v8 = vld [vmem:[%s12719_s28 + $0x518] sm:$0xff] }
 0x15d   : > { %11112 = vmatprep.mubr.msk.f32.mxu0 %vm557_vm0, %v438_v10  ;;  %v446_v10 = vld [vmem:[%s12719_s28 + $0x520] sm:$0xff] }
 0x15f   : > { %v13161_v30 = vpop.f32.mrb[50].mxu0 }
 0x160   : > { %17551 = vst [vmem:[#allocation3_spill] sm:$0xff] %v13161_v30  ;;  %v13163_v31 = vpop.f32.mrb[51].mxu0  ;;  %11113 = vmatmul.mubr.msk.f32.gmra.mrb[156].mxu0 %vm557_vm0, %v439_v22 }
 0x161   : > { %17552 = vst [vmem:[#allocation4_spill] sm:$0xff] %v13163_v31  ;;  %11115 = vmatprep.mubr.msk.f32.mxu0 %vm557_vm0, %v440_v23 }
 0x163   : > { %v13169_v46 = vpop.f32.mrb[52].mxu0 }
 0x164   : > { %17553 = vst [vmem:[#allocation5_spill] sm:$0xff] %v13169_v46  ;;  %v13171_v47 = vpop.f32.mrb[53].mxu0  ;;  %11116 = vmatmul.mubr.msk.f32.gmra.mrb[158].mxu0 %vm557_vm0, %v441_v38  ;;  %v447_v38 = vld [vmem:[%s12719_s28 + $0x528] sm:$0xff] }
 0x165   : > { %17554 = vst [vmem:[#allocation6_spill] sm:$0xff] %v13171_v47  ;;  %11118 = vmatprep.mubr.msk.f32.mxu0 %vm557_vm0, %v442_v39  ;;  %v448_v39 = vld [vmem:[%s12719_s28 + $0x530] sm:$0xff] }
 0x167   : > { %v13177_v62 = vpop.f32.mrb[54].mxu0 }
 0x168   : > { %17555 = vst [vmem:[#allocation7_spill] sm:$0xff] %v13177_v62  ;;  %v13179_v63 = vpop.f32.mrb[55].mxu0  ;;  %11119 = vmatmul.mubr.msk.f32.gmra.mrb[160].mxu0 %vm557_vm0, %v443_v54 }
 0x169   : > { %17556 = vst [vmem:[#allocation8_spill] sm:$0xff] %v13179_v63  ;;  %11121 = vmatprep.mubr.msk.f32.mxu0 %vm557_vm0, %v444_v55  ;;  %v449_v55 = vld [vmem:[%s12719_s28 + $0x538] sm:$0xff] }
 0x16b   : > { %v13185_v22 = vpop.f32.mrb[56].mxu0 }
 0x16c   : > { %17557 = vst [vmem:[#allocation9_spill] sm:$0xff] %v13185_v22  ;;  %v13187_v23 = vpop.f32.mrb[57].mxu0  ;;  %11122 = vmatmul.mubr.msk.f32.gmra.mrb[162].mxu0 %vm557_vm0, %v445_v8  ;;  %v450_v22 = vld [vmem:[%s12719_s28 + $0x540] sm:$0xff]  ;;  %v451_v8 = vld [vmem:[%s12719_s28 + $0x548] sm:$0xff] }
 0x16d   : > { %17558 = vst [vmem:[#allocation10_spill] sm:$0xff] %v13187_v23  ;;  %11124 = vmatprep.mubr.msk.f32.mxu0 %vm557_vm0, %v446_v10  ;;  %v452_v10 = vld [vmem:[%s12719_s28 + $0x550] sm:$0xff] }
 0x16f   : > { %v13193_v62 = vpop.f32.mrb[58].mxu0 }
 0x170   : > { %17559 = vst [vmem:[#allocation11_spill] sm:$0xff] %v13193_v62  ;;  %v13195_v54 = vpop.f32.mrb[59].mxu0  ;;  %11125 = vmatmul.mubr.msk.f32.gmra.mrb[164].mxu0 %vm557_vm0, %v447_v38  ;;  %v453_v38 = vld [vmem:[%s12719_s28 + $0x558] sm:$0xff] }
 0x171   : > { %17560 = vst [vmem:[#allocation12_spill] sm:$0xff] %v13195_v54  ;;  %11127 = vmatprep.mubr.msk.f32.mxu0 %vm557_vm0, %v448_v39  ;;  %v454_v39 = vld [vmem:[%s12719_s28 + $0x560] sm:$0xff] }
 0x173   : > { %v13201_v23 = vpop.f32.mrb[60].mxu0 }
 0x174   : > { %17561 = vst [vmem:[#allocation13_spill] sm:$0xff] %v13201_v23  ;;  %v13203_v63 = vpop.f32.mrb[61].mxu0  ;;  %11128 = vmatmul.mubr.msk.f32.gmra.mrb[166].mxu0 %vm557_vm0, %v449_v55  ;;  %v5311_v55 = vld [vmem:[%s17436_s5 + $0x8] sm:$0xff] }
 0x175   : > { %17562 = vst [vmem:[#allocation14_spill] sm:$0xff] %v13203_v63  ;;  %11130 = vmatprep.mubr.msk.f32.mxu0 %vm557_vm0, %v450_v22  ;;  %v5310_v22 = vld [vmem:[%s17436_s5] sm:$0xff] }
 0x177   : > { %v13209_v62 = vpop.f32.mrb[62].mxu0 }
 0x178   : > { %17563 = vst [vmem:[#allocation15_spill] sm:$0xff] %v13209_v62  ;;  %v13211_v54 = vpop.f32.mrb[63].mxu0  ;;  %11131 = vmatmul.mubr.msk.f32.gmra.mrb[168].mxu0 %vm557_vm0, %v451_v8  ;;  %v13228_v8 = vpack.c.bf16 %v5311_v55, %v5310_v22  ;;  %v458_v22 = vld [vmem:[%s12719_s28 + $0x580] sm:$0xff] }
 0x179   : > { %17564 = vst [vmem:[#allocation16_spill] sm:$0xff] %v13211_v54  ;;  %11133 = vmatprep.mubr.msk.f32.mxu0 %vm557_vm0, %v452_v10  ;;  %v455_v10 = vld [vmem:[%s12719_s28 + $0x568] sm:$0xff] }
 0x17a   : > { %12085 = vmatprep.subr.bf16.mxu1 %v13228_v8 }
 0x17b   : > { %v13217_v23 = vpop.f32.mrb[64].mxu0 }
 0x17c   : > { %17565 = vst [vmem:[#allocation17_spill] sm:$0xff] %v13217_v23  ;;  %v13225_v62 = vpop.f32.mrb[65].mxu0  ;;  %11134 = vmatmul.mubr.msk.f32.gmra.mrb[170].mxu0 %vm557_vm0, %v453_v38  ;;  %v456_v23 = vld [vmem:[%s12719_s28 + $0x570] sm:$0xff]  ;;  %v457_v38 = vld [vmem:[%s12719_s28 + $0x578] sm:$0xff] }
 0x17d   : > { %17566 = vst [vmem:[#allocation18_spill] sm:$0xff] %v13225_v62  ;;  %11136 = vmatprep.mubr.msk.f32.mxu0 %vm557_vm0, %v454_v39  ;;  %v460_v62 = vld [vmem:[%s12719_s28 + $0x590] sm:$0xff] }
 0x17f   : > { %v13234_v54 = vpop.f32.mrb[66].mxu0 }
 0x180   : > { %17567 = vst [vmem:[#allocation19_spill] sm:$0xff] %v13234_v54  ;;  %v13236_v63 = vpop.f32.mrb[67].mxu0  ;;  %11137 = vmatmul.mubr.msk.f32.gmra.mrb[172].mxu0 %vm557_vm0, %v455_v10  ;;  %v459_v54 = vld [vmem:[%s12719_s28 + $0x588] sm:$0xff] }
 0x181   : > { %17568 = vst [vmem:[#allocation20_spill] sm:$0xff] %v13236_v63  ;;  %11139 = vmatprep.mubr.msk.f32.mxu0 %vm557_vm0, %v456_v23  ;;  %v461_v23 = vld [vmem:[%s12719_s28 + $0x598] sm:$0xff] }
 0x183   : > { %v13242_v55 = vpop.f32.mrb[68].mxu0 }
 0x184   : > { %17569 = vst [vmem:[#allocation21_spill] sm:$0xff] %v13242_v55  ;;  %v13244_v39 = vpop.f32.mrb[69].mxu0  ;;  %11140 = vmatmul.mubr.msk.f32.gmra.mrb[174].mxu0 %vm557_vm0, %v457_v38  ;;  %v462_v55 = vld [vmem:[%s12719_s28 + $0x5a0] sm:$0xff] }
 0x185   : > { %17570 = vst [vmem:[#allocation22_spill] sm:$0xff] %v13244_v39  ;;  %11142 = vmatprep.mubr.msk.f32.mxu0 %vm557_vm0, %v458_v22  ;;  %v463_v22 = vld [vmem:[%s12719_s28 + $0x5a8] sm:$0xff] }
 0x187   : > { %v13250_v63 = vpop.f32.mrb[70].mxu0 }
 0x188   : > { %17571 = vst [vmem:[#allocation23_spill] sm:$0xff] %v13250_v63  ;;  %v13252_v10 = vpop.f32.mrb[71].mxu0  ;;  %11143 = vmatmul.mubr.msk.f32.gmra.mrb[176].mxu0 %vm557_vm0, %v459_v54  ;;  %v464_v63 = vld [vmem:[%s12719_s28 + $0x5b0] sm:$0xff] }
 0x189   : > { %17572 = vst [vmem:[#allocation24_spill] sm:$0xff] %v13252_v10  ;;  %11145 = vmatprep.mubr.msk.f32.mxu0 %vm557_vm0, %v460_v62  ;;  %v465_v62 = vld [vmem:[%s12719_s28 + $0x5b8] sm:$0xff] }
 0x18b   : > { %v13258_v39 = vpop.f32.mrb[72].mxu0 }
 0x18c   : > { %17573 = vst [vmem:[#allocation25_spill] sm:$0xff] %v13258_v39  ;;  %v13260_v38 = vpop.f32.mrb[73].mxu0  ;;  %11146 = vmatmul.mubr.msk.f32.gmra.mrb[178].mxu0 %vm557_vm0, %v461_v23  ;;  %v466_v39 = vld [vmem:[%s12719_s28 + $0x5c0] sm:$0xff] }
 0x18d   : > { %17574 = vst [vmem:[#allocation26_spill] sm:$0xff] %v13260_v38  ;;  %11148 = vmatprep.mubr.msk.f32.mxu0 %vm557_vm0, %v462_v55  ;;  %v467_v55 = vld [vmem:[%s12719_s28 + $0x5c8] sm:$0xff] }
 0x18f   : > { %v13266_v10 = vpop.f32.mrb[74].mxu0 }
 0x190   : > { %17575 = vst [vmem:[#allocation27_spill] sm:$0xff] %v13266_v10  ;;  %v13268_v54 = vpop.f32.mrb[75].mxu0  ;;  %11149 = vmatmul.mubr.msk.f32.gmra.mrb[180].mxu0 %vm557_vm0, %v463_v22  ;;  %v468_v10 = vld [vmem:[%s12719_s28 + $0x5d0] sm:$0xff] }
 0x191   : > { %17576 = vst [vmem:[#allocation28_spill] sm:$0xff] %v13268_v54  ;;  %11151 = vmatprep.mubr.msk.f32.mxu0 %vm557_vm0, %v464_v63  ;;  %v469_v63 = vld [vmem:[%s12719_s28 + $0x5d8] sm:$0xff] }
 0x193   : > { %v13274_v38 = vpop.f32.mrb[76].mxu0 }
 0x194   : > { %17577 = vst [vmem:[#allocation29_spill] sm:$0xff] %v13274_v38  ;;  %v13276_v23 = vpop.f32.mrb[77].mxu0  ;;  %11152 = vmatmul.mubr.msk.f32.gmra.mrb[182].mxu0 %vm557_vm0, %v465_v62  ;;  %v470_v38 = vld [vmem:[%s12719_s28 + $0x5e0] sm:$0xff] }
 0x195   : > { %17578 = vst [vmem:[#allocation30_spill] sm:$0xff] %v13276_v23  ;;  %11154 = vmatprep.mubr.msk.f32.mxu0 %vm557_vm0, %v466_v39  ;;  %v471_v39 = vld [vmem:[%s12719_s28 + $0x5e8] sm:$0xff] }
 0x197   : > { %v13282_v54 = vpop.f32.mrb[78].mxu0 }
 0x198   : > { %17579 = vst [vmem:[#allocation31_spill] sm:$0xff] %v13282_v54  ;;  %v13284_v22 = vpop.f32.mrb[79].mxu0  ;;  %11155 = vmatmul.mubr.msk.f32.gmra.mrb[184].mxu0 %vm557_vm0, %v467_v55  ;;  %v472_v54 = vld [vmem:[%s12719_s28 + $0x5f0] sm:$0xff] }
 0x199   : > { %17580 = vst [vmem:[#allocation32_spill] sm:$0xff] %v13284_v22  ;;  %11157 = vmatprep.mubr.msk.f32.mxu0 %vm557_vm0, %v468_v10  ;;  %v473_v10 = vld [vmem:[%s12719_s28 + $0x5f8] sm:$0xff] }
 0x19b   : > { %v13290_v23 = vpop.f32.mrb[80].mxu0 }
 0x19c   : > { %17581 = vst [vmem:[#allocation33_spill] sm:$0xff] %v13290_v23  ;;  %v13292_v62 = vpop.f32.mrb[81].mxu0  ;;  %11158 = vmatmul.mubr.msk.f32.gmra.mrb[186].mxu0 %vm557_vm0, %v469_v63  ;;  %v474_v23 = vld [vmem:[%s12719_s28 + $0x600] sm:$0xff] }
 0x19d   : > { %17582 = vst [vmem:[#allocation34_spill] sm:$0xff] %v13292_v62  ;;  %11160 = vmatprep.mubr.msk.f32.mxu0 %vm557_vm0, %v470_v38  ;;  %v475_v38 = vld [vmem:[%s12719_s28 + $0x608] sm:$0xff] }
 0x19f   : > { %v13298_v22 = vpop.f32.mrb[82].mxu0 }
 0x1a0   : > { %17583 = vst [vmem:[#allocation35_spill] sm:$0xff] %v13298_v22  ;;  %v13300_v55 = vpop.f32.mrb[83].mxu0  ;;  %11161 = vmatmul.mubr.msk.f32.gmra.mrb[188].mxu0 %vm557_vm0, %v471_v39  ;;  %v476_v22 = vld [vmem:[%s12719_s28 + $0x610] sm:$0xff] }
 0x1a1   : > { %17584 = vst [vmem:[#allocation36_spill] sm:$0xff] %v13300_v55  ;;  %11163 = vmatprep.mubr.msk.f32.mxu0 %vm557_vm0, %v472_v54  ;;  %v477_v54 = vld [vmem:[%s12719_s28 + $0x618] sm:$0xff] }
 0x1a3   : > { %v13306_v62 = vpop.f32.mrb[84].mxu0 }
 0x1a4   : > { %17585 = vst [vmem:[#allocation37_spill] sm:$0xff] %v13306_v62  ;;  %v13308_v63 = vpop.f32.mrb[85].mxu0  ;;  %11164 = vmatmul.mubr.msk.f32.gmra.mrb[190].mxu0 %vm557_vm0, %v473_v10  ;;  %v478_v62 = vld [vmem:[%s12719_s28 + $0x620] sm:$0xff] }
 0x1a5   : > { %17586 = vst [vmem:[#allocation38_spill] sm:$0xff] %v13308_v63  ;;  %11166 = vmatprep.mubr.msk.f32.mxu0 %vm557_vm0, %v474_v23  ;;  %v479_v23 = vld [vmem:[%s12719_s28 + $0x628] sm:$0xff] }
 0x1a7   : > { %v13314_v55 = vpop.f32.mrb[86].mxu0 }
 0x1a8   : > { %17587 = vst [vmem:[#allocation39_spill] sm:$0xff] %v13314_v55  ;;  %v13316_v39 = vpop.f32.mrb[87].mxu0  ;;  %11167 = vmatmul.mubr.msk.f32.gmra.mrb[192].mxu0 %vm557_vm0, %v475_v38  ;;  %v480_v55 = vld [vmem:[%s12719_s28 + $0x630] sm:$0xff] }
 0x1a9   : > { %17588 = vst [vmem:[#allocation40_spill] sm:$0xff] %v13316_v39  ;;  %11169 = vmatprep.mubr.msk.f32.mxu0 %vm557_vm0, %v476_v22  ;;  %v481_v22 = vld [vmem:[%s12719_s28 + $0x638] sm:$0xff] }
 0x1ab   : > { %v13322_v63 = vpop.f32.mrb[88].mxu0 }
 0x1ac   : > { %17589 = vst [vmem:[#allocation41_spill] sm:$0xff] %v13322_v63  ;;  %v13324_v10 = vpop.f32.mrb[89].mxu0  ;;  %11170 = vmatmul.mubr.msk.f32.gmra.mrb[194].mxu0 %vm557_vm0, %v477_v54  ;;  %v482_v63 = vld [vmem:[%s12719_s28 + $0x640] sm:$0xff] }
 0x1ad   : > { %17590 = vst [vmem:[#allocation42_spill] sm:$0xff] %v13324_v10  ;;  %11172 = vmatprep.mubr.msk.f32.mxu0 %vm557_vm0, %v478_v62  ;;  %v483_v62 = vld [vmem:[%s12719_s28 + $0x648] sm:$0xff] }
 0x1af   : > { %v13330_v39 = vpop.f32.mrb[90].mxu0 }
 0x1b0   : > { %17591 = vst [vmem:[#allocation43_spill] sm:$0xff] %v13330_v39  ;;  %v13332_v38 = vpop.f32.mrb[91].mxu0  ;;  %11173 = vmatmul.mubr.msk.f32.gmra.mrb[196].mxu0 %vm557_vm0, %v479_v23  ;;  %v484_v39 = vld [vmem:[%s12719_s28 + $0x650] sm:$0xff] }
 0x1b1   : > { %17592 = vst [vmem:[#allocation44_spill] sm:$0xff] %v13332_v38  ;;  %11175 = vmatprep.mubr.msk.f32.mxu0 %vm557_vm0, %v480_v55  ;;  %v485_v55 = vld [vmem:[%s12719_s28 + $0x658] sm:$0xff] }
 0x1b3   : > { %v13338_v10 = vpop.f32.mrb[92].mxu0 }
 0x1b4   : > { %17593 = vst [vmem:[#allocation45_spill] sm:$0xff] %v13338_v10  ;;  %v13340_v54 = vpop.f32.mrb[93].mxu0  ;;  %11176 = vmatmul.mubr.msk.f32.gmra.mrb[198].mxu0 %vm557_vm0, %v481_v22  ;;  %v486_v10 = vld [vmem:[%s12719_s28 + $0x660] sm:$0xff] }
 0x1b5   : > { %17594 = vst [vmem:[#allocation46_spill] sm:$0xff] %v13340_v54  ;;  %11178 = vmatprep.mubr.msk.f32.mxu0 %vm557_vm0, %v482_v63  ;;  %v487_v63 = vld [vmem:[%s12719_s28 + $0x668] sm:$0xff] }
 0x1b7   : > { %v13346_v38 = vpop.f32.mrb[94].mxu0 }
 0x1b8   : > { %17595 = vst [vmem:[#allocation47_spill] sm:$0xff] %v13346_v38  ;;  %v13348_v23 = vpop.f32.mrb[95].mxu0  ;;  %11179 = vmatmul.mubr.msk.f32.gmra.mrb[200].mxu0 %vm557_vm0, %v483_v62  ;;  %v488_v38 = vld [vmem:[%s12719_s28 + $0x670] sm:$0xff] }
 0x1b9   : > { %17596 = vst [vmem:[#allocation48_spill] sm:$0xff] %v13348_v23  ;;  %11181 = vmatprep.mubr.msk.f32.mxu0 %vm557_vm0, %v484_v39  ;;  %v489_v39 = vld [vmem:[%s12719_s28 + $0x678] sm:$0xff] }
 0x1bb   : > { %v13354_v54 = vpop.f32.mrb[96].mxu0 }
 0x1bc   : > { %17597 = vst [vmem:[#allocation49_spill] sm:$0xff] %v13354_v54  ;;  %v13356_v22 = vpop.f32.mrb[97].mxu0  ;;  %11182 = vmatmul.mubr.msk.f32.gmra.mrb[202].mxu0 %vm557_vm0, %v485_v55  ;;  %v490_v54 = vld [vmem:[%s12719_s28 + $0x680] sm:$0xff] }
 0x1bd   : > { %17598 = vst [vmem:[#allocation50_spill] sm:$0xff] %v13356_v22  ;;  %11184 = vmatprep.mubr.msk.f32.mxu0 %vm557_vm0, %v486_v10  ;;  %v491_v10 = vld [vmem:[%s12719_s28 + $0x688] sm:$0xff] }
 0x1bf   : > { %v13362_v23 = vpop.f32.mrb[98].mxu0 }
 0x1c0   : > { %17599 = vst [vmem:[#allocation51_spill] sm:$0xff] %v13362_v23  ;;  %v13364_v62 = vpop.f32.mrb[99].mxu0  ;;  %11185 = vmatmul.mubr.msk.f32.gmra.mrb[204].mxu0 %vm557_vm0, %v487_v63  ;;  %v492_v23 = vld [vmem:[%s12719_s28 + $0x690] sm:$0xff] }
 0x1c1   : > { %17600 = vst [vmem:[#allocation52_spill] sm:$0xff] %v13364_v62  ;;  %11187 = vmatprep.mubr.msk.f32.mxu0 %vm557_vm0, %v488_v38  ;;  %v493_v38 = vld [vmem:[%s12719_s28 + $0x698] sm:$0xff] }
 0x1c3   : > { %v13370_v22 = vpop.f32.mrb[100].mxu0 }
 0x1c4   : > { %17601 = vst [vmem:[#allocation53_spill] sm:$0xff] %v13370_v22  ;;  %v13372_v55 = vpop.f32.mrb[101].mxu0  ;;  %11188 = vmatmul.mubr.msk.f32.gmra.mrb[206].mxu0 %vm557_vm0, %v489_v39  ;;  %v494_v22 = vld [vmem:[%s12719_s28 + $0x6a0] sm:$0xff] }
 0x1c5   : > { %17602 = vst [vmem:[#allocation54_spill] sm:$0xff] %v13372_v55  ;;  %11190 = vmatprep.mubr.msk.f32.mxu0 %vm557_vm0, %v490_v54  ;;  %v495_v54 = vld [vmem:[%s12719_s28 + $0x6a8] sm:$0xff] }
 0x1c7   : > { %v13378_v62 = vpop.f32.mrb[102].mxu0 }
 0x1c8   : > { %17603 = vst [vmem:[#allocation55_spill] sm:$0xff] %v13378_v62  ;;  %v13380_v63 = vpop.f32.mrb[103].mxu0  ;;  %11191 = vmatmul.mubr.msk.f32.gmra.mrb[208].mxu0 %vm557_vm0, %v491_v10  ;;  %v496_v62 = vld [vmem:[%s12719_s28 + $0x6b0] sm:$0xff] }
 0x1c9   : > { %17604 = vst [vmem:[#allocation56_spill] sm:$0xff] %v13380_v63  ;;  %11193 = vmatprep.mubr.msk.f32.mxu0 %vm557_vm0, %v492_v23  ;;  %v497_v23 = vld [vmem:[%s12719_s28 + $0x6b8] sm:$0xff] }
 0x1cb   : > { %v13386_v55 = vpop.f32.mrb[104].mxu0 }
 0x1cc   : > { %17605 = vst [vmem:[#allocation57_spill] sm:$0xff] %v13386_v55  ;;  %v13388_v39 = vpop.f32.mrb[105].mxu0  ;;  %11194 = vmatmul.mubr.msk.f32.gmra.mrb[210].mxu0 %vm557_vm0, %v493_v38  ;;  %v498_v55 = vld [vmem:[%s12719_s28 + $0x6c0] sm:$0xff] }
 0x1cd   : > { %17606 = vst [vmem:[#allocation58_spill] sm:$0xff] %v13388_v39  ;;  %11196 = vmatprep.mubr.msk.f32.mxu0 %vm557_vm0, %v494_v22  ;;  %v499_v22 = vld [vmem:[%s12719_s28 + $0x6c8] sm:$0xff] }
 0x1cf   : > { %v13394_v63 = vpop.f32.mrb[106].mxu0 }
 0x1d0   : > { %17607 = vst [vmem:[#allocation59_spill] sm:$0xff] %v13394_v63  ;;  %v13396_v10 = vpop.f32.mrb[107].mxu0  ;;  %11197 = vmatmul.mubr.msk.f32.gmra.mrb[212].mxu0 %vm557_vm0, %v495_v54  ;;  %v500_v63 = vld [vmem:[%s12719_s28 + $0x6d0] sm:$0xff] }
 0x1d1   : > { %17608 = vst [vmem:[#allocation60_spill] sm:$0xff] %v13396_v10  ;;  %11199 = vmatprep.mubr.msk.f32.mxu0 %vm557_vm0, %v496_v62  ;;  %v501_v62 = vld [vmem:[%s12719_s28 + $0x6d8] sm:$0xff] }
 0x1d3   : > { %v13402_v39 = vpop.f32.mrb[108].mxu0 }
 0x1d4   : > { %17609 = vst [vmem:[#allocation61_spill] sm:$0xff] %v13402_v39  ;;  %v13404_v38 = vpop.f32.mrb[109].mxu0  ;;  %11200 = vmatmul.mubr.msk.f32.gmra.mrb[214].mxu0 %vm557_vm0, %v497_v23  ;;  %v502_v39 = vld [vmem:[%s12719_s28 + $0x6e0] sm:$0xff] }
 0x1d5   : > { %17610 = vst [vmem:[#allocation62_spill] sm:$0xff] %v13404_v38  ;;  %11202 = vmatprep.mubr.msk.f32.mxu0 %vm557_vm0, %v498_v55  ;;  %v503_v55 = vld [vmem:[%s12719_s28 + $0x6e8] sm:$0xff] }
 0x1d7   : > { %v13410_v10 = vpop.f32.mrb[110].mxu0 }
 0x1d8   : > { %17611 = vst [vmem:[#allocation63_spill] sm:$0xff] %v13410_v10  ;;  %v13412_v54 = vpop.f32.mrb[111].mxu0  ;;  %11203 = vmatmul.mubr.msk.f32.gmra.mrb[216].mxu0 %vm557_vm0, %v499_v22  ;;  %v504_v10 = vld [vmem:[%s12719_s28 + $0x6f0] sm:$0xff] }
 0x1d9   : > { %17612 = vst [vmem:[#allocation64_spill] sm:$0xff] %v13412_v54  ;;  %11205 = vmatprep.mubr.msk.f32.mxu0 %vm557_vm0, %v500_v63  ;;  %v505_v63 = vld [vmem:[%s12719_s28 + $0x6f8] sm:$0xff] }
 0x1db   : > { %v13418_v38 = vpop.f32.mrb[112].mxu0 }
 0x1dc   : > { %17613 = vst [vmem:[#allocation65_spill] sm:$0xff] %v13418_v38  ;;  %v13420_v23 = vpop.f32.mrb[113].mxu0  ;;  %11206 = vmatmul.mubr.msk.f32.gmra.mrb[218].mxu0 %vm557_vm0, %v501_v62  ;;  %v506_v38 = vld [vmem:[%s12719_s28 + $0x700] sm:$0xff] }
 0x1dd   : > { %17614 = vst [vmem:[#allocation66_spill] sm:$0xff] %v13420_v23  ;;  %11208 = vmatprep.mubr.msk.f32.mxu0 %vm557_vm0, %v502_v39  ;;  %v507_v39 = vld [vmem:[%s12719_s28 + $0x708] sm:$0xff] }
 0x1df   : > { %v13426_v54 = vpop.f32.mrb[114].mxu0 }
 0x1e0   : > { %17615 = vst [vmem:[#allocation67_spill] sm:$0xff] %v13426_v54  ;;  %v13428_v22 = vpop.f32.mrb[115].mxu0  ;;  %11209 = vmatmul.mubr.msk.f32.gmra.mrb[220].mxu0 %vm557_vm0, %v503_v55  ;;  %v508_v54 = vld [vmem:[%s12719_s28 + $0x710] sm:$0xff] }
 0x1e1   : > { %17616 = vst [vmem:[#allocation68_spill] sm:$0xff] %v13428_v22  ;;  %11211 = vmatprep.mubr.msk.f32.mxu0 %vm557_vm0, %v504_v10  ;;  %v509_v10 = vld [vmem:[%s12719_s28 + $0x718] sm:$0xff] }
 0x1e3   : > { %v13434_v23 = vpop.f32.mrb[116].mxu0 }
 0x1e4   : > { %17617 = vst [vmem:[#allocation69_spill] sm:$0xff] %v13434_v23  ;;  %v13436_v62 = vpop.f32.mrb[117].mxu0  ;;  %11212 = vmatmul.mubr.msk.f32.gmra.mrb[222].mxu0 %vm557_vm0, %v505_v63  ;;  %v510_v23 = vld [vmem:[%s12719_s28 + $0x720] sm:$0xff]  ;;  %v512_v63 = vld [vmem:[%s12719_s28 + $0x730] sm:$0xff] }
 0x1e5   : > { %17618 = vst [vmem:[#allocation70_spill] sm:$0xff] %v13436_v62  ;;  %11214 = vmatprep.mubr.msk.f32.mxu0 %vm557_vm0, %v506_v38  ;;  %v511_v38 = vld [vmem:[%s12719_s28 + $0x728] sm:$0xff] }
 0x1e7   : > { %v13442_v22 = vpop.f32.mrb[118].mxu0 }
 0x1e8   : > { %17619 = vst [vmem:[#allocation71_spill] sm:$0xff] %v13442_v22  ;;  %v13444_v55 = vpop.f32.mrb[119].mxu0  ;;  %11215 = vmatmul.mubr.msk.f32.gmra.mrb[224].mxu0 %vm557_vm0, %v507_v39  ;;  %v514_v39 = vld [vmem:[%s12719_s28 + $0x740] sm:$0xff] }
 0x1e9   : > { %17620 = vst [vmem:[#allocation72_spill] sm:$0xff] %v13444_v55  ;;  %11217 = vmatprep.mubr.msk.f32.mxu0 %vm557_vm0, %v508_v54  ;;  %v513_v54 = vld [vmem:[%s12719_s28 + $0x738] sm:$0xff] }
 0x1eb   : > { %v13450_v62 = vpop.f32.mrb[120].mxu0 }
 0x1ec   : > { %17621 = vst [vmem:[#allocation73_spill] sm:$0xff] %v13450_v62  ;;  %v13452_v46 = vpop.f32.mrb[121].mxu0  ;;  %11218 = vmatmul.mubr.msk.f32.gmra.mrb[226].mxu0 %vm557_vm0, %v509_v10  ;;  %v13469_v10 = vld [vmem:[%s17433_s2] ss:$0 sm:$0xff] }
 0x1ed   : > { %17622 = vst [vmem:[#allocation74_spill] sm:$0xff] %v13452_v46  ;;  %11220 = vmatprep.mubr.msk.f32.mxu0 %vm557_vm0, %v510_v23 }
 0x1ef   : > { %v13458_v22 = vpop.f32.mrb[122].mxu0 }
 0x1f0   : > { %17623 = vst [vmem:[#allocation75_spill] sm:$0xff] %v13458_v22  ;;  %v13460_v55 = vpop.f32.mrb[123].mxu0  ;;  %11221 = vmatmul.mubr.msk.f32.gmra.mrb[228].mxu0 %vm557_vm0, %v511_v38  ;;  %v515_v38 = vld [vmem:[%s12719_s28 + $0x748] sm:$0xff] }
 0x1f1   : > { %17624 = vst [vmem:[#allocation76_spill] sm:$0xff] %v13460_v55  ;;  %11223 = vmatprep.mubr.msk.f32.mxu0 %vm557_vm0, %v512_v63  ;;  %v516_v63 = vld [vmem:[%s12719_s28 + $0x750] sm:$0xff] }
 0x1f3   : > { %v11066_v23 = vpop.f32.mrb[124].mxu0 }
 0x1f4   : > { %v2018_v62 = vadd.f32 %v11066_v23, %v13469_v10  ;;  %v2012_v46 = vpop.f32.mrb[125].mxu0  ;;  %11224 = vmatmul.mubr.msk.f32.gmra.mrb[230].mxu0 %vm557_vm0, %v513_v54  ;;  %v518_v54 = vld [vmem:[%s12719_s28 + $0x760] sm:$0xff] }
 0x1f5   : > { %v2013_v22 = vadd.f32 %v13469_v10, %v2012_v46  ;;  %11226 = vmatprep.mubr.msk.f32.mxu0 %vm557_vm0, %v514_v39  ;;  %v517_v46 = vld [vmem:[%s12719_s28 + $0x758] sm:$0xff] }
 0x1f6   : > { %v2796_v30 = vmax.f32 %v2018_v62, 0.0 }
 0x1f7   : > { %v2795_v55 = vmax.f32 %v2013_v22, 0.0  ;;  %v11069_v47 = vpop.f32.mrb[126].mxu0 }
 0x1f8   : > { %v2028_v31 = vadd.f32 %v11069_v47, %v13469_v10  ;;  %v2022_v14 = vpop.f32.mrb[127].mxu0  ;;  %11227 = vmatmul.mubr.msk.f32.gmra.mrb[232].mxu0 %vm557_vm0, %v515_v38 }
 0x1f9   : > { %v2023_v23 = vadd.f32 %v13469_v10, %v2022_v14  ;;  %11460 = vmatprep.mubr.msk.f32.mxu1 %vm2940_vm1, %v2795_v55  ;;  %11229 = vmatprep.mubr.msk.f32.mxu0 %vm557_vm0, %v516_v63  ;;  %v519_v55 = vld [vmem:[%s12719_s28 + $0x768] sm:$0xff] }
 0x1fa   : > { %11461 = vmatmul.mubr.msk.f32.vlgmr.msra.gmra.mrb[0].mxu1 %vm2940_vm1, %v2796_v30  ;;  %v2798_v47 = vmax.f32 %v2028_v31, 0.0  ;;  %v520_v30 = vld [vmem:[%s12719_s28 + $0x770] sm:$0xff] }
 0x1fb   : > { %v2797_v22 = vmax.f32 %v2023_v23, 0.0  ;;  %v11072_v39 = vpop.f32.mrb[128].mxu0  ;;  %12087 = vmatpush3.bf16.msra.mxu1 %v13228_v8  ;;  %v5312_v31 = vld [vmem:[%s17436_s5 + $0x10] sm:$0xff] }
 0x1fc   : > { %v2038_v62 = vadd.f32 %v11072_v39, %v13469_v10  ;;  %v2032_v38 = vpop.f32.mrb[129].mxu0  ;;  %11230 = vmatmul.mubr.msk.f32.gmra.mrb[234].mxu0 %vm557_vm0, %v517_v46  ;;  %11662 = vmatprep.subr.mxu1 %v5312_v31 }
 0x1fd   : > { %v2033_v14 = vadd.f32 %v13469_v10, %v2032_v38  ;;  %11463 = vmatprep.mubr.msk.f32.mxu1 %vm2940_vm1, %v2797_v22  ;;  %11232 = vmatprep.mubr.msk.f32.mxu0 %vm557_vm0, %v518_v54  ;;  %v521_v22 = vld [vmem:[%s12719_s28 + $0x778] sm:$0xff] }
 0x1fe   : > { %11464 = vmatmul.mubr.msk.f32.gmra.mrb[2].mxu1 %vm2940_vm1, %v2798_v47  ;;  %v2800_v23 = vmax.f32 %v2038_v62, 0.0  ;;  %v522_v47 = vld [vmem:[%s12719_s28 + $0x780] sm:$0xff] }
 0x1ff   : > { %v2799_v63 = vmax.f32 %v2033_v14, 0.0  ;;  %v11075_v8 = vpop.f32.mrb[130].mxu0  ;;  %11663 = vmatpush3.msra.mxu1 %v5312_v31 }
 0x200   : > { %v2048_v46 = vadd.f32 %v11075_v8, %v13469_v10  ;;  %v2042_v39 = vpop.f32.mrb[131].mxu0  ;;  %11233 = vmatmul.mubr.msk.f32.gmra.mrb[236].mxu0 %vm557_vm0, %v519_v55 }
 0x201   : > { %v2043_v54 = vadd.f32 %v13469_v10, %v2042_v39  ;;  %11466 = vmatprep.mubr.msk.f32.mxu1 %vm2940_vm1, %v2799_v63  ;;  %11235 = vmatprep.mubr.msk.f32.mxu0 %vm557_vm0, %v520_v30  ;;  %v523_v30 = vld [vmem:[%s12719_s28 + $0x788] sm:$0xff]  ;;  %v524_v63 = vld [vmem:[%s12719_s28 + $0x790] sm:$0xff] }
 0x202   : > { %11467 = vmatmul.mubr.msk.f32.gmra.mrb[4].mxu1 %vm2940_vm1, %v2800_v23  ;;  %v2802_v14 = vmax.f32 %v2048_v46, 0.0 }
 0x203   : > { %v2801_v38 = vmax.f32 %v2043_v54, 0.0  ;;  %v11078_v62 = vpop.f32.mrb[132].mxu0 }
 0x204   : > { %v2058_v8 = vadd.f32 %v11078_v62, %v13469_v10  ;;  %v2052_v55 = vpop.f32.mrb[133].mxu0  ;;  %11236 = vmatmul.mubr.msk.f32.gmra.mrb[238].mxu0 %vm557_vm0, %v521_v22 }
 0x205   : > { %v2053_v39 = vadd.f32 %v13469_v10, %v2052_v55  ;;  %11469 = vmatprep.mubr.msk.f32.mxu1 %vm2940_vm1, %v2801_v38  ;;  %11238 = vmatprep.mubr.msk.f32.mxu0 %vm557_vm0, %v522_v47  ;;  %v525_v47 = vld [vmem:[%s12719_s28 + $0x798] sm:$0xff]  ;;  %v526_v38 = vld [vmem:[%s12719_s28 + $0x7a0] sm:$0xff] }
 0x206   : > { %11470 = vmatmul.mubr.msk.f32.gmra.mrb[6].mxu1 %vm2940_vm1, %v2802_v14  ;;  %v2804_v46 = vmax.f32 %v2058_v8, 0.0 }
 0x207   : > { %v2803_v23 = vmax.f32 %v2053_v39, 0.0  ;;  %v11081_v31 = vpop.f32.mrb[134].mxu0 }
 0x208   : > { %v2068_v54 = vadd.f32 %v11081_v31, %v13469_v10  ;;  %v2062_v62 = vpop.f32.mrb[135].mxu0  ;;  %11239 = vmatmul.mubr.msk.f32.gmra.mrb[240].mxu0 %vm557_vm0, %v523_v30 }
 0x209   : > { %v2063_v22 = vadd.f32 %v13469_v10, %v2062_v62  ;;  %11472 = vmatprep.mubr.msk.f32.mxu1 %vm2940_vm1, %v2803_v23  ;;  %11241 = vmatprep.mubr.msk.f32.mxu0 %vm557_vm0, %v524_v63  ;;  %v527_v63 = vld [vmem:[%s12719_s28 + $0x7a8] sm:$0xff]  ;;  %v528_v23 = vld [vmem:[%s12719_s28 + $0x7b0] sm:$0xff] }
 0x20a   : > { %11473 = vmatmul.mubr.msk.f32.gmra.mrb[8].mxu1 %vm2940_vm1, %v2804_v46  ;;  %v2806_v8 = vmax.f32 %v2068_v54, 0.0 }
 0x20b   : > { %v2805_v14 = vmax.f32 %v2063_v22, 0.0  ;;  %v11084_v55 = vpop.f32.mrb[136].mxu0 }
 0x20c   : > { %v2078_v39 = vadd.f32 %v11084_v55, %v13469_v10  ;;  %v2072_v31 = vpop.f32.mrb[137].mxu0  ;;  %11242 = vmatmul.mubr.msk.f32.gmra.mrb[242].mxu0 %vm557_vm0, %v525_v47 }
 0x20d   : > { %v2073_v30 = vadd.f32 %v13469_v10, %v2072_v31  ;;  %11475 = vmatprep.mubr.msk.f32.mxu1 %vm2940_vm1, %v2805_v14  ;;  %11244 = vmatprep.mubr.msk.f32.mxu0 %vm557_vm0, %v526_v38  ;;  %v529_v38 = vld [vmem:[%s12719_s28 + $0x7b8] sm:$0xff]  ;;  %v530_v14 = vld [vmem:[%s12719_s28 + $0x7c0] sm:$0xff] }
 0x20e   : > { %11476 = vmatmul.mubr.msk.f32.gmra.mrb[10].mxu1 %vm2940_vm1, %v2806_v8  ;;  %v2808_v54 = vmax.f32 %v2078_v39, 0.0 }
 0x20f   : > { %v2807_v46 = vmax.f32 %v2073_v30, 0.0  ;;  %v11087_v62 = vpop.f32.mrb[138].mxu0 }
 0x210   : > { %v2088_v22 = vadd.f32 %v11087_v62, %v13469_v10  ;;  %v2082_v55 = vpop.f32.mrb[139].mxu0  ;;  %11245 = vmatmul.mubr.msk.f32.gmra.mrb[244].mxu0 %vm557_vm0, %v527_v63 }
 0x211   : > { %v2083_v47 = vadd.f32 %v13469_v10, %v2082_v55  ;;  %11478 = vmatprep.mubr.msk.f32.mxu1 %vm2940_vm1, %v2807_v46  ;;  %11247 = vmatprep.mubr.msk.f32.mxu0 %vm557_vm0, %v528_v23  ;;  %v531_v23 = vld [vmem:[%s12719_s28 + $0x7c8] sm:$0xff]  ;;  %v532_v46 = vld [vmem:[%s12719_s28 + $0x7d0] sm:$0xff] }
 0x212   : > { %11479 = vmatmul.mubr.msk.f32.gmra.mrb[12].mxu1 %vm2940_vm1, %v2808_v54  ;;  %v2810_v39 = vmax.f32 %v2088_v22, 0.0 }
 0x213   : > { %v2809_v8 = vmax.f32 %v2083_v47, 0.0  ;;  %v11090_v31 = vpop.f32.mrb[140].mxu0 }
 0x214   : > { %v2098_v30 = vadd.f32 %v11090_v31, %v13469_v10  ;;  %v2092_v62 = vpop.f32.mrb[141].mxu0  ;;  %11248 = vmatmul.mubr.msk.f32.gmra.mrb[246].mxu0 %vm557_vm0, %v529_v38 }
 0x215   : > { %v2093_v63 = vadd.f32 %v13469_v10, %v2092_v62  ;;  %11481 = vmatprep.mubr.msk.f32.mxu1 %vm2940_vm1, %v2809_v8  ;;  %11250 = vmatprep.mubr.msk.f32.mxu0 %vm557_vm0, %v530_v14  ;;  %v533_v14 = vld [vmem:[%s12719_s28 + $0x7d8] sm:$0xff]  ;;  %v534_v8 = vld [vmem:[%s12719_s28 + $0x7e0] sm:$0xff] }
 0x216   : > { %11482 = vmatmul.mubr.msk.f32.gmra.mrb[14].mxu1 %vm2940_vm1, %v2810_v39  ;;  %v2812_v22 = vmax.f32 %v2098_v30, 0.0 }
 0x217   : > { %v2811_v54 = vmax.f32 %v2093_v63, 0.0  ;;  %v11093_v55 = vpop.f32.mrb[142].mxu0 }
 0x218   : > { %v2108_v47 = vadd.f32 %v11093_v55, %v13469_v10  ;;  %v2102_v31 = vpop.f32.mrb[143].mxu0  ;;  %11251 = vmatmul.mubr.msk.f32.gmra.mrb[248].mxu0 %vm557_vm0, %v531_v23 }
 0x219   : > { %v2103_v38 = vadd.f32 %v13469_v10, %v2102_v31  ;;  %11484 = vmatprep.mubr.msk.f32.mxu1 %vm2940_vm1, %v2811_v54  ;;  %11253 = vmatprep.mubr.msk.f32.mxu0 %vm557_vm0, %v532_v46  ;;  %v535_v46 = vld [vmem:[%s12719_s28 + $0x7e8] sm:$0xff]  ;;  %v536_v54 = vld [vmem:[%s12719_s28 + $0x7f0] sm:$0xff] }
 0x21a   : > { %11485 = vmatmul.mubr.msk.f32.gmra.mrb[16].mxu1 %vm2940_vm1, %v2812_v22  ;;  %v2814_v30 = vmax.f32 %v2108_v47, 0.0  ;;  %v1393_v22 = vadd.f32 %v13469_v10, %v12957_v6 }
 0x21b   : > { %v2813_v39 = vmax.f32 %v2103_v38, 0.0  ;;  %v11096_v62 = vpop.f32.mrb[144].mxu0 }
 0x21c   : > { %v2118_v63 = vadd.f32 %v11096_v62, %v13469_v10  ;;  %v2112_v55 = vpop.f32.mrb[145].mxu0  ;;  %11254 = vmatmul.mubr.msk.f32.gmra.mrb[250].mxu0 %vm557_vm0, %v533_v14  ;;  %v2671_v6 = vmax.f32 %v1393_v22, 0.0  ;;  %v1408_v22 = vadd.f32 %v12963_v9, %v13469_v10 }
 0x21d   : > { %v2113_v23 = vadd.f32 %v13469_v10, %v2112_v55  ;;  %11487 = vmatprep.mubr.msk.f32.mxu1 %vm2940_vm1, %v2813_v39  ;;  %11256 = vmatprep.mubr.msk.f32.mxu0 %vm557_vm0, %v534_v8  ;;  %v537_v8 = vld [vmem:[%s12719_s28 + $0x7f8] sm:$0xff]  ;;  %v1398_v39 = vadd.f32 %v12955_v5, %v13469_v10 }
 0x21e   : > { %11488 = vmatmul.mubr.msk.f32.gmra.mrb[18].mxu1 %vm2940_vm1, %v2814_v30  ;;  %v2816_v38 = vmax.f32 %v2118_v63, 0.0  ;;  %v1403_v30 = vadd.f32 %v13469_v10, %v12971_v12  ;;  %v2674_v9 = vmax.f32 %v1408_v22, 0.0  ;;  %v1428_v22 = vadd.f32 %v12985_v20, %v13469_v10 }
 0x21f   : > { %v2815_v47 = vmax.f32 %v2113_v23, 0.0  ;;  %v11099_v31 = vpop.f32.mrb[146].mxu0  ;;  %v2672_v5 = vmax.f32 %v1398_v39, 0.0  ;;  %v1418_v39 = vadd.f32 %v12977_v16, %v13469_v10 }
 0x220   : > { %v2128_v62 = vadd.f32 %v11099_v31, %v13469_v10  ;;  %v2122_v14 = vpop.f32.mrb[147].mxu0  ;;  %11257 = vmatmul.mubr.msk.f32.gmra.mrb[252].mxu0 %vm557_vm0, %v535_v46  ;;  %v2673_v12 = vmax.f32 %v1403_v30, 0.0  ;;  %v1423_v30 = vadd.f32 %v13469_v10, %v12987_v21  ;;  %v2678_v20 = vmax.f32 %v1428_v22, 0.0 }
 0x221   : > { %v2123_v55 = vadd.f32 %v13469_v10, %v2122_v14  ;;  %11490 = vmatprep.mubr.msk.f32.mxu1 %vm2940_vm1, %v2815_v47  ;;  %11259 = vmatprep.mubr.msk.f32.mxu0 %vm557_vm0, %v536_v54  ;;  %v1413_v47 = vadd.f32 %v13469_v10, %v12979_v17  ;;  %v2676_v16 = vmax.f32 %v1418_v39, 0.0 }
 0x222   : > { %11491 = vmatmul.mubr.msk.f32.gmra.mrb[20].mxu1 %vm2940_vm1, %v2816_v38  ;;  %v2818_v31 = vmax.f32 %v2128_v62, 0.0  ;;  %v2677_v21 = vmax.f32 %v1423_v30, 0.0 }
 0x223   : > { %v2817_v63 = vmax.f32 %v2123_v55, 0.0  ;;  %v11102_v23 = vpop.f32.mrb[148].mxu0  ;;  %v2675_v17 = vmax.f32 %v1413_v47, 0.0 }
 0x224   : > { %v2138_v46 = vadd.f32 %v11102_v23, %v13469_v10  ;;  %v2132_v14 = vpop.f32.mrb[149].mxu0  ;;  %11260 = vmatmul.mubr.msk.f32.gmra.mrb[254].mxu0 %vm557_vm0, %v537_v8 }
 0x225   : > { %v2133_v54 = vadd.f32 %v13469_v10, %v2132_v14  ;;  %11274 = vmatprep.mubr.msk.f32.mxu0 %vm2940_vm1, %v2671_v6  ;;  %11493 = vmatprep.mubr.msk.f32.mxu1 %vm2940_vm1, %v2817_v63 }
 0x226   : > { %11494 = vmatmul.mubr.msk.f32.gmra.mrb[22].mxu1 %vm2940_vm1, %v2818_v31  ;;  %v2820_v55 = vmax.f32 %v2138_v46, 0.0 }
 0x227   : > { %v2819_v38 = vmax.f32 %v2133_v54, 0.0  ;;  %v11105_v62 = vpop.f32.mrb[150].mxu0 }
 0x228   : > { %v2148_v8 = vadd.f32 %v11105_v62, %v13469_v10  ;;  %v2142_v23 = vpop.f32.mrb[151].mxu0  ;;  %11275 = vmatmul.mubr.msk.f32.vlgmr.msra.gmra.mrb[0].mxu0 %vm2940_vm1, %v2672_v5 }
 0x229   : > { %v2143_v6 = vadd.f32 %v13469_v10, %v2142_v23  ;;  %11277 = vmatprep.mubr.msk.f32.mxu0 %vm2940_vm1, %v2673_v12  ;;  %11496 = vmatprep.mubr.msk.f32.mxu1 %vm2940_vm1, %v2819_v38  ;;  %v1433_v12 = vadd.f32 %v13469_v10, %v12995_v25 }
 0x22a   : > { %11497 = vmatmul.mubr.msk.f32.gmra.mrb[24].mxu1 %vm2940_vm1, %v2820_v55  ;;  %v2822_v46 = vmax.f32 %v2148_v8, 0.0 }
 0x22b   : > { %v2821_v63 = vmax.f32 %v2143_v6, 0.0  ;;  %v11108_v31 = vpop.f32.mrb[152].mxu0  ;;  %v1438_v6 = vadd.f32 %v12993_v24, %v13469_v10  ;;  %v2679_v25 = vmax.f32 %v1433_v12, 0.0 }
 0x22c   : > { %v2158_v14 = vadd.f32 %v11108_v31, %v13469_v10  ;;  %v2152_v54 = vpop.f32.mrb[153].mxu0  ;;  %11278 = vmatmul.mubr.msk.f32.gmra.mrb[2].mxu0 %vm2940_vm1, %v2674_v9  ;;  %v1443_v9 = vadd.f32 %v13469_v10, %v13003_v29 }
 0x22d   : > { %v2153_v5 = vadd.f32 %v13469_v10, %v2152_v54  ;;  %11280 = vmatprep.mubr.msk.f32.mxu0 %vm2940_vm1, %v2675_v17  ;;  %11499 = vmatprep.mubr.msk.f32.mxu1 %vm2940_vm1, %v2821_v63  ;;  %v2680_v24 = vmax.f32 %v1438_v6, 0.0  ;;  %v1453_v54 = vadd.f32 %v13469_v10, %v13011_v33 }
 0x22e   : > { %11500 = vmatmul.mubr.msk.f32.gmra.mrb[26].mxu1 %vm2940_vm1, %v2822_v46  ;;  %v2824_v62 = vmax.f32 %v2158_v14, 0.0  ;;  %v1448_v14 = vadd.f32 %v13001_v28, %v13469_v10  ;;  %v2681_v29 = vmax.f32 %v1443_v9, 0.0  ;;  %v1468_v9 = vadd.f32 %v13017_v36, %v13469_v10 }
 0x22f   : > { %v2823_v47 = vmax.f32 %v2153_v5, 0.0  ;;  %v11111_v38 = vpop.f32.mrb[154].mxu0  ;;  %v2683_v33 = vmax.f32 %v1453_v54, 0.0 }
 0x230   : > { %v2168_v55 = vadd.f32 %v11111_v38, %v13469_v10  ;;  %v2162_v8 = vpop.f32.mrb[155].mxu0  ;;  %11281 = vmatmul.mubr.msk.f32.gmra.mrb[4].mxu0 %vm2940_vm1, %v2676_v16  ;;  %v2682_v28 = vmax.f32 %v1448_v14, 0.0  ;;  %v1458_v38 = vadd.f32 %v13009_v32, %v13469_v10  ;;  %v2686_v36 = vmax.f32 %v1468_v9, 0.0 }
 0x231   : > { %v2163_v23 = vadd.f32 %v13469_v10, %v2162_v8  ;;  %11283 = vmatprep.mubr.msk.f32.mxu0 %vm2940_vm1, %v2677_v21  ;;  %11502 = vmatprep.mubr.msk.f32.mxu1 %vm2940_vm1, %v2823_v47  ;;  %v1478_v14 = vadd.f32 %v13025_v40, %v13469_v10 }
 0x232   : > { %11503 = vmatmul.mubr.msk.f32.gmra.mrb[28].mxu1 %vm2940_vm1, %v2824_v62  ;;  %v2826_v30 = vmax.f32 %v2168_v55, 0.0  ;;  %v1463_v62 = vadd.f32 %v13469_v10, %v13019_v37  ;;  %v2684_v32 = vmax.f32 %v1458_v38, 0.0 }
 0x233   : > { %v2825_v39 = vmax.f32 %v2163_v23, 0.0  ;;  %v11114_v17 = vpop.f32.mrb[156].mxu0  ;;  %v2688_v40 = vmax.f32 %v1478_v14, 0.0 }
 0x234   : > { %v2178_v63 = vadd.f32 %v11114_v17, %v13469_v10  ;;  %v2172_v31 = vpop.f32.mrb[157].mxu0  ;;  %11284 = vmatmul.mubr.msk.f32.gmra.mrb[6].mxu0 %vm2940_vm1, %v2678_v20  ;;  %v2685_v37 = vmax.f32 %v1463_v62, 0.0 }
 0x235   : > { %v2173_v46 = vadd.f32 %v13469_v10, %v2172_v31  ;;  %11286 = vmatprep.mubr.msk.f32.mxu0 %vm2940_vm1, %v2679_v25  ;;  %11505 = vmatprep.mubr.msk.f32.mxu1 %vm2940_vm1, %v2825_v39  ;;  %v1473_v39 = vadd.f32 %v13469_v10, %v13027_v41 }
 0x236   : > { %11506 = vmatmul.mubr.msk.f32.gmra.mrb[30].mxu1 %vm2940_vm1, %v2826_v30  ;;  %v2828_v22 = vmax.f32 %v2178_v63, 0.0 }
 0x237   : > { %v2827_v5 = vmax.f32 %v2173_v46, 0.0  ;;  %v11117_v16 = vpop.f32.mrb[158].mxu0  ;;  %v2687_v41 = vmax.f32 %v1473_v39, 0.0 }
 0x238   : > { %v2188_v21 = vadd.f32 %v11117_v16, %v13469_v10  ;;  %v2182_v12 = vpop.f32.mrb[159].mxu0  ;;  %11287 = vmatmul.mubr.msk.f32.gmra.mrb[8].mxu0 %vm2940_vm1, %v2680_v24 }
 0x239   : > { %v2183_v47 = vadd.f32 %v13469_v10, %v2182_v12  ;;  %11289 = vmatprep.mubr.msk.f32.mxu0 %vm2940_vm1, %v2681_v29  ;;  %11508 = vmatprep.mubr.msk.f32.mxu1 %vm2940_vm1, %v2827_v5  ;;  %v1483_v29 = vadd.f32 %v13469_v10, %v13035_v45 }
 0x23a   : > { %11509 = vmatmul.mubr.msk.f32.gmra.mrb[32].mxu1 %vm2940_vm1, %v2828_v22  ;;  %v2830_v23 = vmax.f32 %v2188_v21, 0.0 }
 0x23b   : > { %v2829_v55 = vmax.f32 %v2183_v47, 0.0  ;;  %v11120_v8 = vpop.f32.mrb[160].mxu0  ;;  %v1488_v47 = vadd.f32 %v13033_v44, %v13469_v10  ;;  %v2689_v45 = vmax.f32 %v1483_v29, 0.0  ;;  %v1518_v29 = vadd.f32 %v13057_v56, %v13469_v10 }
 0x23c   : > { %v2198_v20 = vadd.f32 %v11120_v8, %v13469_v10  ;;  %v2192_v6 = vpop.f32.mrb[161].mxu0  ;;  %11290 = vmatmul.mubr.msk.f32.gmra.mrb[10].mxu0 %vm2940_vm1, %v2682_v28  ;;  %v1493_v28 = vadd.f32 %v13469_v10, %v13043_v49 }
 0x23d   : > { %v2193_v25 = vadd.f32 %v13469_v10, %v2192_v6  ;;  %11292 = vmatprep.mubr.msk.f32.mxu0 %vm2940_vm1, %v2683_v33  ;;  %11511 = vmatprep.mubr.msk.f32.mxu1 %vm2940_vm1, %v2829_v55  ;;  %v2690_v44 = vmax.f32 %v1488_v47, 0.0  ;;  %v1503_v6 = vadd.f32 %v13469_v10, %v13051_v53  ;;  %v2696_v56 = vmax.f32 %v1518_v29, 0.0 }
 0x23e   : > { %11512 = vmatmul.mubr.msk.f32.gmra.mrb[34].mxu1 %vm2940_vm1, %v2830_v23  ;;  %v2832_v63 = vmax.f32 %v2198_v20, 0.0  ;;  %v1498_v20 = vadd.f32 %v13041_v48, %v13469_v10  ;;  %v2691_v49 = vmax.f32 %v1493_v28, 0.0  ;;  %v1528_v47 = vadd.f32 %v13065_v60, %v13469_v10 }
 0x23f   : > { %v2831_v17 = vmax.f32 %v2193_v25, 0.0  ;;  %v11123_v30 = vpop.f32.mrb[162].mxu0  ;;  %v2693_v53 = vmax.f32 %v1503_v6, 0.0 }
 0x240   : > { %v2208_v31 = vadd.f32 %v11123_v30, %v13469_v10  ;;  %v2202_v46 = vpop.f32.mrb[163].mxu0  ;;  %11293 = vmatmul.mubr.msk.f32.gmra.mrb[12].mxu0 %vm2940_vm1, %v2684_v32  ;;  %v2692_v48 = vmax.f32 %v1498_v20, 0.0  ;;  %v1508_v30 = vadd.f32 %v13049_v52, %v13469_v10  ;;  %v2698_v60 = vmax.f32 %v1528_v47, 0.0 }
 0x241   : > { %v2203_v24 = vadd.f32 %v13469_v10, %v2202_v46  ;;  %11295 = vmatprep.mubr.msk.f32.mxu0 %vm2940_vm1, %v2685_v37  ;;  %11514 = vmatprep.mubr.msk.f32.mxu1 %vm2940_vm1, %v2831_v17  ;;  %v1578_v47 = vadd.f32 %v13105_v26, %v13469_v10 }
 0x242   : > { %11515 = vmatmul.mubr.msk.f32.gmra.mrb[36].mxu1 %vm2940_vm1, %v2832_v63  ;;  %v2834_v16 = vmax.f32 %v2208_v31, 0.0  ;;  %v1513_v63 = vadd.f32 %v13469_v10, %v13059_v57  ;;  %v2694_v52 = vmax.f32 %v1508_v30, 0.0 }
 0x243   : > { %v2833_v54 = vmax.f32 %v2203_v24, 0.0  ;;  %v11126_v5 = vpop.f32.mrb[164].mxu0  ;;  %v2708_v26 = vmax.f32 %v1578_v47, 0.0  ;;  %v17626_v47 = vld [vmem:[#allocation4_spill] sm:$0xff] }
 0x244   : > { %v2218_v22 = vadd.f32 %v11126_v5, %v13469_v10  ;;  %v2212_v21 = vpop.f32.mrb[165].mxu0  ;;  %11296 = vmatmul.mubr.msk.f32.gmra.mrb[14].mxu0 %vm2940_vm1, %v2686_v36  ;;  %v2695_v57 = vmax.f32 %v1513_v63, 0.0 }
 0x245   : > { %v2213_v12 = vadd.f32 %v13469_v10, %v2212_v21  ;;  %11298 = vmatprep.mubr.msk.f32.mxu0 %vm2940_vm1, %v2687_v41  ;;  %11517 = vmatprep.mubr.msk.f32.mxu1 %vm2940_vm1, %v2833_v54  ;;  %v1523_v54 = vadd.f32 %v13469_v10, %v13067_v61 }
 0x246   : > { %11518 = vmatmul.mubr.msk.f32.gmra.mrb[38].mxu1 %vm2940_vm1, %v2834_v16  ;;  %v2836_v62 = vmax.f32 %v2218_v22, 0.0 }
 0x247   : > { %v2835_v38 = vmax.f32 %v2213_v12, 0.0  ;;  %v11129_v33 = vpop.f32.mrb[166].mxu0  ;;  %v2697_v61 = vmax.f32 %v1523_v54, 0.0  ;;  %v1568_v54 = vadd.f32 %v13097_v18, %v13469_v10 }
 0x248   : > { %v2228_v55 = vadd.f32 %v11129_v33, %v13469_v10  ;;  %v2222_v8 = vpop.f32.mrb[167].mxu0  ;;  %11299 = vmatmul.mubr.msk.f32.gmra.mrb[16].mxu0 %vm2940_vm1, %v2688_v40 }
 0x249   : > { %v2223_v23 = vadd.f32 %v13469_v10, %v2222_v8  ;;  %11301 = vmatprep.mubr.msk.f32.mxu0 %vm2940_vm1, %v2689_v45  ;;  %11520 = vmatprep.mubr.msk.f32.mxu1 %vm2940_vm1, %v2835_v38  ;;  %v1533_v45 = vadd.f32 %v13469_v10, %v13075_v1  ;;  %v2706_v18 = vmax.f32 %v1568_v54, 0.0  ;;  %v1628_v54 = vadd.f32 %v13145_v2, %v13469_v10 }
 0x24a   : > { %11521 = vmatmul.mubr.msk.f32.gmra.mrb[40].mxu1 %vm2940_vm1, %v2836_v62  ;;  %v2838_v9 = vmax.f32 %v2228_v55, 0.0 }
 0x24b   : > { %v2837_v25 = vmax.f32 %v2223_v23, 0.0  ;;  %v11132_v32 = vpop.f32.mrb[168].mxu0  ;;  %v1538_v23 = vadd.f32 %v13073_v0, %v13469_v10  ;;  %v2699_v1 = vmax.f32 %v1533_v45, 0.0  ;;  %v2718_v2 = vmax.f32 %v1628_v54, 0.0 }
 0x24c   : > { %v2238_v37 = vadd.f32 %v11132_v32, %v13469_v10  ;;  %v2232_v39 = vpop.f32.mrb[169].mxu0  ;;  %11302 = vmatmul.mubr.msk.f32.gmra.mrb[18].mxu0 %vm2940_vm1, %v2690_v44  ;;  %v1543_v44 = vadd.f32 %v13469_v10, %v13083_v7 }
 0x24d   : > { %v2233_v17 = vadd.f32 %v13469_v10, %v2232_v39  ;;  %11304 = vmatprep.mubr.msk.f32.mxu0 %vm2940_vm1, %v2691_v49  ;;  %11523 = vmatprep.mubr.msk.f32.mxu1 %vm2940_vm1, %v2837_v25  ;;  %v2700_v0 = vmax.f32 %v1538_v23, 0.0  ;;  %v1553_v39 = vadd.f32 %v13469_v10, %v13091_v13 }
 0x24e   : > { %11524 = vmatmul.mubr.msk.f32.gmra.mrb[42].mxu1 %vm2940_vm1, %v2838_v9  ;;  %v2840_v24 = vmax.f32 %v2238_v37, 0.0  ;;  %v1548_v37 = vadd.f32 %v13081_v4, %v13469_v10  ;;  %v2701_v7 = vmax.f32 %v1543_v44, 0.0 }
 0x24f   : > { %v2839_v31 = vmax.f32 %v2233_v17, 0.0  ;;  %v11135_v46 = vpop.f32.mrb[170].mxu0  ;;  %v2703_v13 = vmax.f32 %v1553_v39, 0.0 }
 0x250   : > { %v2248_v36 = vadd.f32 %v11135_v46, %v13469_v10  ;;  %v2242_v14 = vpop.f32.mrb[171].mxu0  ;;  %11305 = vmatmul.mubr.msk.f32.gmra.mrb[20].mxu0 %vm2940_vm1, %v2692_v48  ;;  %v2702_v4 = vmax.f32 %v1548_v37, 0.0  ;;  %v1558_v46 = vadd.f32 %v13089_v11, %v13469_v10 }
 0x251   : > { %v2243_v41 = vadd.f32 %v13469_v10, %v2242_v14  ;;  %11307 = vmatprep.mubr.msk.f32.mxu0 %vm2940_vm1, %v2693_v53  ;;  %11526 = vmatprep.mubr.msk.f32.mxu1 %vm2940_vm1, %v2839_v31 }
 0x252   : > { %11527 = vmatmul.mubr.msk.f32.gmra.mrb[44].mxu1 %vm2940_vm1, %v2840_v24  ;;  %v2842_v22 = vmax.f32 %v2248_v36, 0.0  ;;  %v1563_v24 = vadd.f32 %v13469_v10, %v13099_v19  ;;  %v2704_v11 = vmax.f32 %v1558_v46, 0.0 }
 0x253   : > { %v2841_v5 = vmax.f32 %v2243_v41, 0.0  ;;  %v11138_v16 = vpop.f32.mrb[172].mxu0 }
 0x254   : > { %v2258_v21 = vadd.f32 %v11138_v16, %v13469_v10  ;;  %v2252_v12 = vpop.f32.mrb[173].mxu0  ;;  %11308 = vmatmul.mubr.msk.f32.gmra.mrb[22].mxu0 %vm2940_vm1, %v2694_v52  ;;  %v2705_v19 = vmax.f32 %v1563_v24, 0.0  ;;  %v1618_v24 = vadd.f32 %v13137_v58, %v13469_v10 }
 0x255   : > { %v2253_v40 = vadd.f32 %v13469_v10, %v2252_v12  ;;  %11310 = vmatprep.mubr.msk.f32.mxu0 %vm2940_vm1, %v2695_v57  ;;  %11529 = vmatprep.mubr.msk.f32.mxu1 %vm2940_vm1, %v2841_v5  ;;  %v1573_v5 = vadd.f32 %v13469_v10, %v13107_v27 }
 0x256   : > { %11530 = vmatmul.mubr.msk.f32.gmra.mrb[46].mxu1 %vm2940_vm1, %v2842_v22  ;;  %v2844_v33 = vmax.f32 %v2258_v21, 0.0  ;;  %v2716_v58 = vmax.f32 %v1618_v24, 0.0 }
 0x257   : > { %v2843_v28 = vmax.f32 %v2253_v40, 0.0  ;;  %v11141_v38 = vpop.f32.mrb[174].mxu0  ;;  %v2707_v27 = vmax.f32 %v1573_v5, 0.0 }
 0x258   : > { %v2268_v62 = vadd.f32 %v11141_v38, %v13469_v10  ;;  %v2262_v55 = vpop.f32.mrb[175].mxu0  ;;  %11311 = vmatmul.mubr.msk.f32.gmra.mrb[24].mxu0 %vm2940_vm1, %v2696_v56 }
 0x259   : > { %v2263_v8 = vadd.f32 %v13469_v10, %v2262_v55  ;;  %11313 = vmatprep.mubr.msk.f32.mxu0 %vm2940_vm1, %v2697_v61  ;;  %11532 = vmatprep.mubr.msk.f32.mxu1 %vm2940_vm1, %v2843_v28  ;;  %v1583_v61 = vadd.f32 %v13469_v10, %v13115_v35 }
 0x25a   : > { %11533 = vmatmul.mubr.msk.f32.gmra.mrb[48].mxu1 %vm2940_vm1, %v2844_v33  ;;  %v2846_v6 = vmax.f32 %v2268_v62, 0.0 }
 0x25b   : > { %v2845_v20 = vmax.f32 %v2263_v8, 0.0  ;;  %v11144_v49 = vpop.f32.mrb[176].mxu0  ;;  %v1588_v8 = vadd.f32 %v13113_v34, %v13469_v10  ;;  %v2709_v35 = vmax.f32 %v1583_v61, 0.0 }
 0x25c   : > { %v2278_v25 = vadd.f32 %v11144_v49, %v13469_v10  ;;  %v2272_v32 = vpop.f32.mrb[177].mxu0  ;;  %11314 = vmatmul.mubr.msk.f32.gmra.mrb[26].mxu0 %vm2940_vm1, %v2698_v60  ;;  %v1593_v60 = vadd.f32 %v13469_v10, %v13123_v43 }
 0x25d   : > { %v2273_v9 = vadd.f32 %v13469_v10, %v2272_v32  ;;  %11316 = vmatprep.mubr.msk.f32.mxu0 %vm2940_vm1, %v2699_v1  ;;  %11535 = vmatprep.mubr.msk.f32.mxu1 %vm2940_vm1, %v2845_v20  ;;  %v2710_v34 = vmax.f32 %v1588_v8, 0.0  ;;  %v1603_v32 = vadd.f32 %v13469_v10, %v13131_v51 }
 0x25e   : > { %11536 = vmatmul.mubr.msk.f32.gmra.mrb[50].mxu1 %vm2940_vm1, %v2846_v6  ;;  %v2848_v30 = vmax.f32 %v2278_v25, 0.0  ;;  %v1598_v25 = vadd.f32 %v13121_v42, %v13469_v10  ;;  %v2711_v43 = vmax.f32 %v1593_v60, 0.0  ;;  %v17628_v60 = vld [vmem:[#allocation6_spill] sm:$0xff] }
 0x25f   : > { %v2847_v17 = vmax.f32 %v2273_v9, 0.0  ;;  %v11147_v48 = vpop.f32.mrb[178].mxu0  ;;  %v2713_v51 = vmax.f32 %v1603_v32, 0.0 }
 0x260   : > { %v2288_v53 = vadd.f32 %v11147_v48, %v13469_v10  ;;  %v2282_v63 = vpop.f32.mrb[179].mxu0  ;;  %11317 = vmatmul.mubr.msk.f32.gmra.mrb[28].mxu0 %vm2940_vm1, %v2700_v0  ;;  %v2712_v42 = vmax.f32 %v1598_v25, 0.0  ;;  %v1608_v48 = vadd.f32 %v13129_v50, %v13469_v10 }
 0x261   : > { %v2283_v31 = vadd.f32 %v13469_v10, %v2282_v63  ;;  %11319 = vmatprep.mubr.msk.f32.mxu0 %vm2940_vm1, %v2701_v7  ;;  %11538 = vmatprep.mubr.msk.f32.mxu1 %vm2940_vm1, %v2847_v17 }
 0x262   : > { %11539 = vmatmul.mubr.msk.f32.gmra.mrb[52].mxu1 %vm2940_vm1, %v2848_v30  ;;  %v2850_v41 = vmax.f32 %v2288_v53, 0.0  ;;  %v1613_v30 = vadd.f32 %v13469_v10, %v13139_v59  ;;  %v2714_v50 = vmax.f32 %v1608_v48, 0.0 }
 0x263   : > { %v2849_v36 = vmax.f32 %v2283_v31, 0.0  ;;  %v11150_v14 = vpop.f32.mrb[180].mxu0 }
 0x264   : > { %v2298_v52 = vadd.f32 %v11150_v14, %v13469_v10  ;;  %v2292_v29 = vpop.f32.mrb[181].mxu0  ;;  %11320 = vmatmul.mubr.msk.f32.gmra.mrb[30].mxu0 %vm2940_vm1, %v2702_v4  ;;  %v2715_v59 = vmax.f32 %v1613_v30, 0.0 }
 0x265   : > { %v2293_v57 = vadd.f32 %v13469_v10, %v2292_v29  ;;  %11322 = vmatprep.mubr.msk.f32.mxu0 %vm2940_vm1, %v2703_v13  ;;  %11541 = vmatprep.mubr.msk.f32.mxu1 %vm2940_vm1, %v2849_v36  ;;  %v1623_v36 = vadd.f32 %v13469_v10, %v13147_v3 }
 0x266   : > { %11542 = vmatmul.mubr.msk.f32.gmra.mrb[54].mxu1 %vm2940_vm1, %v2850_v41  ;;  %v2852_v21 = vmax.f32 %v2298_v52, 0.0 }
 0x267   : > { %v2851_v16 = vmax.f32 %v2293_v57, 0.0  ;;  %v11153_v22 = vpop.f32.mrb[182].mxu0  ;;  %v2717_v3 = vmax.f32 %v1623_v36, 0.0 }
 0x268   : > { %v2308_v12 = vadd.f32 %v11153_v22, %v13469_v10  ;;  %v2302_v40 = vpop.f32.mrb[183].mxu0  ;;  %11323 = vmatmul.mubr.msk.f32.gmra.mrb[32].mxu0 %vm2940_vm1, %v2704_v11 }
 0x269   : > { %v2303_v56 = vadd.f32 %v13469_v10, %v2302_v40  ;;  %11325 = vmatprep.mubr.msk.f32.mxu0 %vm2940_vm1, %v2705_v19  ;;  %11544 = vmatprep.mubr.msk.f32.mxu1 %vm2940_vm1, %v2851_v16  ;;  %v1633_v19 = vadd.f32 %v13469_v10, %v13155_v15 }
 0x26a   : > { %11545 = vmatmul.mubr.msk.f32.gmra.mrb[56].mxu1 %vm2940_vm1, %v2852_v21  ;;  %v2854_v38 = vmax.f32 %v2308_v12, 0.0 }
 0x26b   : > { %v2853_v45 = vmax.f32 %v2303_v56, 0.0  ;;  %v11156_v28 = vpop.f32.mrb[184].mxu0  ;;  %v17625_v56 = vld [vmem:[#allocation2_spill] sm:$0xff]  ;;  %v2719_v15 = vmax.f32 %v1633_v19, 0.0 }
 0x26c   : > { %v2318_v33 = vadd.f32 %v11156_v28, %v13469_v10  ;;  %v2312_v62 = vpop.f32.mrb[185].mxu0  ;;  %11326 = vmatmul.mubr.msk.f32.gmra.mrb[34].mxu0 %vm2940_vm1, %v2706_v18  ;;  %v1638_v18 = vadd.f32 %v17625_v56, %v13469_v10  ;;  %v17636_v56 = vld [vmem:[#allocation14_spill] sm:$0xff] }
 0x26d   : > { %v2313_v55 = vadd.f32 %v13469_v10, %v2312_v62  ;;  %11328 = vmatprep.mubr.msk.f32.mxu0 %vm2940_vm1, %v2707_v27  ;;  %11547 = vmatprep.mubr.msk.f32.mxu1 %vm2940_vm1, %v2853_v45  ;;  %v1643_v27 = vadd.f32 %v13469_v10, %v17626_v47 }
 0x26e   : > { %11548 = vmatmul.mubr.msk.f32.gmra.mrb[58].mxu1 %vm2940_vm1, %v2854_v38  ;;  %v2856_v44 = vmax.f32 %v2318_v33, 0.0 }
 0x26f   : > { %v2855_v23 = vmax.f32 %v2313_v55, 0.0  ;;  %v11159_v1 = vpop.f32.mrb[186].mxu0  ;;  %v2720_v55 = vmax.f32 %v1638_v18, 0.0 }
 0x270   : > { %v2328_v20 = vadd.f32 %v11159_v1, %v13469_v10  ;;  %v2322_v49 = vpop.f32.mrb[187].mxu0  ;;  %11329 = vmatmul.mubr.msk.f32.gmra.mrb[36].mxu0 %vm2940_vm1, %v2708_v26  ;;  %v17627_v26 = vld [vmem:[#allocation3_spill] sm:$0xff] }
 0x271   : > { %v2323_v6 = vadd.f32 %v13469_v10, %v2322_v49  ;;  %11331 = vmatprep.mubr.msk.f32.mxu0 %vm2940_vm1, %v2709_v35  ;;  %11550 = vmatprep.mubr.msk.f32.mxu1 %vm2940_vm1, %v2855_v23  ;;  %v1648_v8 = vadd.f32 %v17627_v26, %v13469_v10  ;;  %v2721_v35 = vmax.f32 %v1643_v27, 0.0  ;;  %v1653_v23 = vadd.f32 %v13469_v10, %v17628_v60  ;;  %v17638_v26 = vld [vmem:[#allocation16_spill] sm:$0xff] }
 0x272   : > { %11551 = vmatmul.mubr.msk.f32.gmra.mrb[60].mxu1 %vm2940_vm1, %v2856_v44  ;;  %v2858_v37 = vmax.f32 %v2328_v20, 0.0 }
 0x273   : > { %v2857_v9 = vmax.f32 %v2323_v6, 0.0  ;;  %v11162_v0 = vpop.f32.mrb[188].mxu0  ;;  %v2722_v25 = vmax.f32 %v1648_v8, 0.0 }
 0x274   : > { %v2338_v7 = vadd.f32 %v11162_v0, %v13469_v10  ;;  %v2332_v39 = vpop.f32.mrb[189].mxu0  ;;  %11332 = vmatmul.mubr.msk.f32.gmra.mrb[38].mxu0 %vm2940_vm1, %v2710_v34  ;;  %v13835_v0 = vld [vmem:[%s17433_s2] ss:$0 sm:$0xff] }
 0x275   : > { %v2333_v17 = vadd.f32 %v13469_v10, %v2332_v39  ;;  %11334 = vmatprep.mubr.msk.f32.mxu0 %vm2940_vm1, %v2711_v43  ;;  %11553 = vmatprep.mubr.msk.f32.mxu1 %vm2940_vm1, %v2857_v9  ;;  %v17629_v43 = vld [vmem:[#allocation5_spill] sm:$0xff]  ;;  %v2723_v9 = vmax.f32 %v1653_v23, 0.0  ;;  %v1693_v18 = vadd.f32 %v13835_v0, %v17636_v56  ;;  %v1703_v8 = vadd.f32 %v13835_v0, %v17638_v26 }
 0x276   : > { %11554 = vmatmul.mubr.msk.f32.gmra.mrb[62].mxu1 %vm2940_vm1, %v2858_v37  ;;  %v2860_v31 = vmax.f32 %v2338_v7, 0.0  ;;  %v1658_v32 = vadd.f32 %v17629_v43, %v13469_v10  ;;  %v17630_v37 = vld [vmem:[#allocation8_spill] sm:$0xff]  ;;  %v17640_v43 = vld [vmem:[#allocation18_spill] sm:$0xff] }
 0x277   : > { %v2859_v53 = vmax.f32 %v2333_v17, 0.0  ;;  %v11165_v63 = vpop.f32.mrb[190].mxu0  ;;  %v1663_v7 = vadd.f32 %v13835_v0, %v17630_v37 }
 0x278   : > { %v2348_v4 = vadd.f32 %v11165_v63, %v13469_v10  ;;  %v2342_v46 = vpop.f32.mrb[191].mxu0  ;;  %11335 = vmatmul.mubr.msk.f32.gmra.mrb[40].mxu0 %vm2940_vm1, %v2712_v42  ;;  %v2724_v30 = vmax.f32 %v1658_v32, 0.0  ;;  %v1713_v32 = vadd.f32 %v13835_v0, %v17640_v43 }
 0x279   : > { %v2343_v13 = vadd.f32 %v13469_v10, %v2342_v46  ;;  %11337 = vmatprep.mubr.msk.f32.mxu0 %vm2940_vm1, %v2713_v51  ;;  %11556 = vmatprep.mubr.msk.f32.mxu1 %vm2940_vm1, %v2859_v53  ;;  %v17631_v53 = vld [vmem:[#allocation7_spill] sm:$0xff] }
 0x27a   : > { %11557 = vmatmul.mubr.msk.f32.gmra.mrb[64].mxu1 %vm2940_vm1, %v2860_v31  ;;  %v2862_v52 = vmax.f32 %v2348_v4, 0.0  ;;  %v1668_v63 = vadd.f32 %v13835_v0, %v17631_v53  ;;  %v2725_v31 = vmax.f32 %v1663_v7, 0.0  ;;  %v17632_v4 = vld [vmem:[#allocation10_spill] sm:$0xff]  ;;  %v17642_v53 = vld [vmem:[#allocation20_spill] sm:$0xff] }
 0x27b   : > { %v2861_v14 = vmax.f32 %v2343_v13, 0.0  ;;  %v11168_v41 = vpop.f32.mrb[192].mxu0  ;;  %v1673_v46 = vadd.f32 %v13835_v0, %v17632_v4 }
 0x27c   : > { %v2358_v29 = vadd.f32 %v11168_v41, %v13469_v10  ;;  %v2352_v57 = vpop.f32.mrb[193].mxu0  ;;  %11338 = vmatmul.mubr.msk.f32.gmra.mrb[42].mxu0 %vm2940_vm1, %v2714_v50  ;;  %v2726_v41 = vmax.f32 %v1668_v63, 0.0  ;;  %v1723_v63 = vadd.f32 %v13835_v0, %v17642_v53 }
 0x27d   : > { %v2353_v11 = vadd.f32 %v13469_v10, %v2352_v57  ;;  %11340 = vmatprep.mubr.msk.f32.mxu0 %vm2940_vm1, %v2715_v59  ;;  %11559 = vmatprep.mubr.msk.f32.mxu1 %vm2940_vm1, %v2861_v14  ;;  %v2727_v57 = vmax.f32 %v1673_v46, 0.0 }
 0x27e   : > { %11560 = vmatmul.mubr.msk.f32.gmra.mrb[66].mxu1 %vm2940_vm1, %v2862_v52  ;;  %v2864_v22 = vmax.f32 %v2358_v29, 0.0  ;;  %v17633_v52 = vld [vmem:[#allocation9_spill] sm:$0xff] }
 0x27f   : > { %v2863_v5 = vmax.f32 %v2353_v11, 0.0  ;;  %v11171_v16 = vpop.f32.mrb[194].mxu0  ;;  %v1678_v29 = vadd.f32 %v13835_v0, %v17633_v52  ;;  %v17634_v11 = vld [vmem:[#allocation12_spill] sm:$0xff]  ;;  %v17644_v52 = vld [vmem:[#allocation22_spill] sm:$0xff] }
 0x280   : > { %v2368_v21 = vadd.f32 %v11171_v16, %v13469_v10  ;;  %v2362_v12 = vpop.f32.mrb[195].mxu0  ;;  %11341 = vmatmul.mubr.msk.f32.gmra.mrb[44].mxu0 %vm2940_vm1, %v2716_v58  ;;  %v1683_v58 = vadd.f32 %v13835_v0, %v17634_v11 }
 0x281   : > { %v2363_v40 = vadd.f32 %v13469_v10, %v2362_v12  ;;  %11343 = vmatprep.mubr.msk.f32.mxu0 %vm2940_vm1, %v2717_v3  ;;  %11562 = vmatprep.mubr.msk.f32.mxu1 %vm2940_vm1, %v2863_v5  ;;  %v17635_v12 = vld [vmem:[#allocation11_spill] sm:$0xff] }
 0x282   : > { %11563 = vmatmul.mubr.msk.f32.gmra.mrb[68].mxu1 %vm2940_vm1, %v2864_v22  ;;  %v2866_v28 = vmax.f32 %v2368_v21, 0.0  ;;  %v2728_v21 = vmax.f32 %v1678_v29, 0.0  ;;  %v1733_v29 = vadd.f32 %v13835_v0, %v17644_v52 }
 0x283   : > { %v2865_v61 = vmax.f32 %v2363_v40, 0.0  ;;  %v11174_v45 = vpop.f32.mrb[196].mxu0  ;;  %v1688_v40 = vadd.f32 %v13835_v0, %v17635_v12  ;;  %v17646_v12 = vld [vmem:[#allocation24_spill] sm:$0xff] }
 0x284   : > { %v2378_v38 = vadd.f32 %v11174_v45, %v13469_v10  ;;  %v2372_v33 = vpop.f32.mrb[197].mxu0  ;;  %11344 = vmatmul.mubr.msk.f32.gmra.mrb[46].mxu0 %vm2940_vm1, %v2718_v2  ;;  %v2729_v2 = vmax.f32 %v1683_v58, 0.0 }
 0x285   : > { %v2373_v62 = vadd.f32 %v13469_v10, %v2372_v33  ;;  %11346 = vmatprep.mubr.msk.f32.mxu0 %vm2940_vm1, %v2719_v15  ;;  %11565 = vmatprep.mubr.msk.f32.mxu1 %vm2940_vm1, %v2865_v61  ;;  %v17637_v33 = vld [vmem:[#allocation13_spill] sm:$0xff] }
 0x286   : > { %11566 = vmatmul.mubr.msk.f32.gmra.mrb[70].mxu1 %vm2940_vm1, %v2866_v28  ;;  %v2868_v20 = vmax.f32 %v2378_v38, 0.0  ;;  %v2730_v38 = vmax.f32 %v1688_v40, 0.0  ;;  %v1743_v40 = vadd.f32 %v13835_v0, %v17646_v12 }
 0x287   : > { %v2867_v1 = vmax.f32 %v2373_v62, 0.0  ;;  %v11177_v44 = vpop.f32.mrb[198].mxu0  ;;  %v1698_v62 = vadd.f32 %v13835_v0, %v17637_v33  ;;  %v17648_v33 = vld [vmem:[#allocation26_spill] sm:$0xff] }
 0x288   : > { %v2388_v49 = vadd.f32 %v11177_v44, %v13469_v10  ;;  %v2382_v6 = vpop.f32.mrb[199].mxu0  ;;  %11347 = vmatmul.mubr.msk.f32.gmra.mrb[48].mxu0 %vm2940_vm1, %v2720_v55  ;;  %v2731_v55 = vmax.f32 %v1693_v18, 0.0 }
 0x289   : > { %v2383_v34 = vadd.f32 %v13469_v10, %v2382_v6  ;;  %11349 = vmatprep.mubr.msk.f32.mxu0 %vm2940_vm1, %v2721_v35  ;;  %11568 = vmatprep.mubr.msk.f32.mxu1 %vm2940_vm1, %v2867_v1  ;;  %v17639_v6 = vld [vmem:[#allocation15_spill] sm:$0xff] }
 0x28a   : > { %11569 = vmatmul.mubr.msk.f32.gmra.mrb[72].mxu1 %vm2940_vm1, %v2868_v20  ;;  %v2870_v42 = vmax.f32 %v2388_v49, 0.0  ;;  %v2732_v49 = vmax.f32 %v1698_v62, 0.0  ;;  %v1753_v62 = vadd.f32 %v13835_v0, %v17648_v33 }
 0x28b   : > { %v2869_v39 = vmax.f32 %v2383_v34, 0.0  ;;  %v11180_v17 = vpop.f32.mrb[200].mxu0  ;;  %v1708_v34 = vadd.f32 %v13835_v0, %v17639_v6  ;;  %v17650_v6 = vld [vmem:[#allocation28_spill] sm:$0xff] }
 0x28c   : > { %v2398_v48 = vadd.f32 %v13835_v0, %v11180_v17  ;;  %v2392_v51 = vpop.f32.mrb[201].mxu0  ;;  %11350 = vmatmul.mubr.msk.f32.gmra.mrb[50].mxu0 %vm2940_vm1, %v2722_v25  ;;  %v2733_v25 = vmax.f32 %v1703_v8, 0.0 }
 0x28d   : > { %v2393_v10 = vadd.f32 %v13835_v0, %v2392_v51  ;;  %11352 = vmatprep.mubr.msk.f32.mxu0 %vm2940_vm1, %v2723_v9  ;;  %11571 = vmatprep.mubr.msk.f32.mxu1 %vm2940_vm1, %v2869_v39  ;;  %v17641_v51 = vld [vmem:[#allocation17_spill] sm:$0xff] }
 0x28e   : > { %11572 = vmatmul.mubr.msk.f32.gmra.mrb[74].mxu1 %vm2940_vm1, %v2870_v42  ;;  %v2872_v24 = vmax.f32 %v2398_v48, 0.0  ;;  %v2734_v48 = vmax.f32 %v1708_v34, 0.0  ;;  %v1763_v34 = vadd.f32 %v13835_v0, %v17650_v6 }
 0x28f   : > { %v2871_v13 = vmax.f32 %v2393_v10, 0.0  ;;  %v11183_v50 = vpop.f32.mrb[202].mxu0  ;;  %v1718_v10 = vadd.f32 %v13835_v0, %v17641_v51  ;;  %v17652_v51 = vld [vmem:[#allocation30_spill] sm:$0xff] }
 0x290   : > { %v2408_v59 = vadd.f32 %v13835_v0, %v11183_v50  ;;  %v2402_v36 = vpop.f32.mrb[203].mxu0  ;;  %11353 = vmatmul.mubr.msk.f32.gmra.mrb[52].mxu0 %vm2940_vm1, %v2724_v30  ;;  %v2735_v30 = vmax.f32 %v1713_v32, 0.0 }
 0x291   : > { %v2403_v14 = vadd.f32 %v13835_v0, %v2402_v36  ;;  %11355 = vmatprep.mubr.msk.f32.mxu0 %vm2940_vm1, %v2725_v31  ;;  %11574 = vmatprep.mubr.msk.f32.mxu1 %vm2940_vm1, %v2871_v13  ;;  %v17643_v36 = vld [vmem:[#allocation19_spill] sm:$0xff] }
 0x292   : > { %11575 = vmatmul.mubr.msk.f32.gmra.mrb[76].mxu1 %vm2940_vm1, %v2872_v24  ;;  %v2874_v19 = vmax.f32 %v2408_v59, 0.0  ;;  %v2736_v59 = vmax.f32 %v1718_v10, 0.0  ;;  %v1773_v10 = vadd.f32 %v13835_v0, %v17652_v51 }
 0x293   : > { %v2873_v54 = vmax.f32 %v2403_v14, 0.0  ;;  %v11186_v3 = vpop.f32.mrb[204].mxu0  ;;  %v1728_v14 = vadd.f32 %v13835_v0, %v17643_v36  ;;  %v17654_v36 = vld [vmem:[#allocation32_spill] sm:$0xff] }
 0x294   : > { %v2418_v5 = vadd.f32 %v13835_v0, %v11186_v3  ;;  %v2412_v16 = vpop.f32.mrb[205].mxu0  ;;  %11356 = vmatmul.mubr.msk.f32.gmra.mrb[54].mxu0 %vm2940_vm1, %v2726_v41  ;;  %v2737_v41 = vmax.f32 %v1723_v63, 0.0 }
 0x295   : > { %v2413_v22 = vadd.f32 %v13835_v0, %v2412_v16  ;;  %11358 = vmatprep.mubr.msk.f32.mxu0 %vm2940_vm1, %v2727_v57  ;;  %11577 = vmatprep.mubr.msk.f32.mxu1 %vm2940_vm1, %v2873_v54  ;;  %v17645_v16 = vld [vmem:[#allocation21_spill] sm:$0xff] }
 0x296   : > { %11578 = vmatmul.mubr.msk.f32.gmra.mrb[78].mxu1 %vm2940_vm1, %v2874_v19  ;;  %v2876_v27 = vmax.f32 %v2418_v5, 0.0  ;;  %v2738_v5 = vmax.f32 %v1728_v14, 0.0  ;;  %v1783_v14 = vadd.f32 %v13835_v0, %v17654_v36 }
 0x297   : > { %v2875_v15 = vmax.f32 %v2413_v22, 0.0  ;;  %v11189_v47 = vpop.f32.mrb[206].mxu0  ;;  %v1738_v22 = vadd.f32 %v13835_v0, %v17645_v16  ;;  %v17656_v16 = vld [vmem:[#allocation34_spill] sm:$0xff] }
 0x298   : > { %v2428_v61 = vadd.f32 %v13835_v0, %v11189_v47  ;;  %v2422_v45 = vpop.f32.mrb[207].mxu0  ;;  %11359 = vmatmul.mubr.msk.f32.gmra.mrb[56].mxu0 %vm2940_vm1, %v2728_v21  ;;  %v2739_v21 = vmax.f32 %v1733_v29, 0.0 }
 0x299   : > { %v2423_v28 = vadd.f32 %v13835_v0, %v2422_v45  ;;  %11361 = vmatprep.mubr.msk.f32.mxu0 %vm2940_vm1, %v2729_v2  ;;  %11580 = vmatprep.mubr.msk.f32.mxu1 %vm2940_vm1, %v2875_v15  ;;  %v17647_v45 = vld [vmem:[#allocation23_spill] sm:$0xff] }
 0x29a   : > { %11581 = vmatmul.mubr.msk.f32.gmra.mrb[80].mxu1 %vm2940_vm1, %v2876_v27  ;;  %v2878_v23 = vmax.f32 %v2428_v61, 0.0  ;;  %v2740_v61 = vmax.f32 %v1738_v22, 0.0  ;;  %v1793_v22 = vadd.f32 %v13835_v0, %v17656_v16 }
 0x29b   : > { %v2877_v35 = vmax.f32 %v2423_v28, 0.0  ;;  %v11192_v60 = vpop.f32.mrb[208].mxu0  ;;  %v1748_v28 = vadd.f32 %v13835_v0, %v17647_v45  ;;  %v17658_v45 = vld [vmem:[#allocation36_spill] sm:$0xff] }
 0x29c   : > { %v2438_v1 = vadd.f32 %v13835_v0, %v11192_v60  ;;  %v2432_v44 = vpop.f32.mrb[209].mxu0  ;;  %11362 = vmatmul.mubr.msk.f32.gmra.mrb[58].mxu0 %vm2940_vm1, %v2730_v38  ;;  %v2741_v38 = vmax.f32 %v1743_v40, 0.0 }
 0x29d   : > { %v2433_v20 = vadd.f32 %v13835_v0, %v2432_v44  ;;  %11364 = vmatprep.mubr.msk.f32.mxu0 %vm2940_vm1, %v2731_v55  ;;  %11583 = vmatprep.mubr.msk.f32.mxu1 %vm2940_vm1, %v2877_v35  ;;  %v17649_v44 = vld [vmem:[#allocation25_spill] sm:$0xff] }
 0x29e   : > { %11584 = vmatmul.mubr.msk.f32.gmra.mrb[82].mxu1 %vm2940_vm1, %v2878_v23  ;;  %v2880_v7 = vmax.f32 %v2438_v1, 0.0  ;;  %v2742_v1 = vmax.f32 %v1748_v28, 0.0  ;;  %v1803_v28 = vadd.f32 %v13835_v0, %v17658_v45 }
 0x29f   : > { %v2879_v9 = vmax.f32 %v2433_v20, 0.0  ;;  %v11195_v37 = vpop.f32.mrb[210].mxu0  ;;  %v1758_v20 = vadd.f32 %v13835_v0, %v17649_v44  ;;  %v17660_v44 = vld [vmem:[#allocation38_spill] sm:$0xff] }
 0x2a0   : > { %v2448_v39 = vadd.f32 %v13835_v0, %v11195_v37  ;;  %v2442_v17 = vpop.f32.mrb[211].mxu0  ;;  %11365 = vmatmul.mubr.msk.f32.gmra.mrb[60].mxu0 %vm2940_vm1, %v2732_v49  ;;  %v2743_v49 = vmax.f32 %v1753_v62, 0.0 }
 0x2a1   : > { %v2443_v42 = vadd.f32 %v13835_v0, %v2442_v17  ;;  %11367 = vmatprep.mubr.msk.f32.mxu0 %vm2940_vm1, %v2733_v25  ;;  %11586 = vmatprep.mubr.msk.f32.mxu1 %vm2940_vm1, %v2879_v9  ;;  %v17651_v17 = vld [vmem:[#allocation27_spill] sm:$0xff] }
 0x2a2   : > { %11587 = vmatmul.mubr.msk.f32.gmra.mrb[84].mxu1 %vm2940_vm1, %v2880_v7  ;;  %v2882_v46 = vmax.f32 %v2448_v39, 0.0  ;;  %v2744_v39 = vmax.f32 %v1758_v20, 0.0  ;;  %v1813_v20 = vadd.f32 %v13835_v0, %v17660_v44 }
 0x2a3   : > { %v2881_v31 = vmax.f32 %v2443_v42, 0.0  ;;  %v11198_v4 = vpop.f32.mrb[212].mxu0  ;;  %v1768_v42 = vadd.f32 %v13835_v0, %v17651_v17  ;;  %v17662_v17 = vld [vmem:[#allocation40_spill] sm:$0xff] }
 0x2a4   : > { %v2458_v13 = vadd.f32 %v13835_v0, %v11198_v4  ;;  %v2452_v50 = vpop.f32.mrb[213].mxu0  ;;  %11368 = vmatmul.mubr.msk.f32.gmra.mrb[62].mxu0 %vm2940_vm1, %v2734_v48  ;;  %v2745_v48 = vmax.f32 %v1763_v34, 0.0 }
 0x2a5   : > { %v2453_v24 = vadd.f32 %v13835_v0, %v2452_v50  ;;  %11370 = vmatprep.mubr.msk.f32.mxu0 %vm2940_vm1, %v2735_v30  ;;  %11589 = vmatprep.mubr.msk.f32.mxu1 %vm2940_vm1, %v2881_v31  ;;  %v17653_v50 = vld [vmem:[#allocation29_spill] sm:$0xff] }
 0x2a6   : > { %11590 = vmatmul.mubr.msk.f32.gmra.mrb[86].mxu1 %vm2940_vm1, %v2882_v46  ;;  %v2884_v58 = vmax.f32 %v2458_v13, 0.0  ;;  %v2746_v13 = vmax.f32 %v1768_v42, 0.0  ;;  %v1823_v42 = vadd.f32 %v13835_v0, %v17662_v17 }
 0x2a7   : > { %v2883_v57 = vmax.f32 %v2453_v24, 0.0  ;;  %v11201_v11 = vpop.f32.mrb[214].mxu0  ;;  %v1778_v24 = vadd.f32 %v13835_v0, %v17653_v50 }
 0x2a8   : > { %v2468_v54 = vadd.f32 %v13835_v0, %v11201_v11  ;;  %v2462_v3 = vpop.f32.mrb[215].mxu0  ;;  %11371 = vmatmul.mubr.msk.f32.gmra.mrb[64].mxu0 %vm2940_vm1, %v2736_v59  ;;  %v2747_v59 = vmax.f32 %v1773_v10, 0.0 }
 0x2a9   : > { %v2463_v19 = vadd.f32 %v13835_v0, %v2462_v3  ;;  %11373 = vmatprep.mubr.msk.f32.mxu0 %vm2940_vm1, %v2737_v41  ;;  %11592 = vmatprep.mubr.msk.f32.mxu1 %vm2940_vm1, %v2883_v57  ;;  %v17655_v3 = vld [vmem:[#allocation31_spill] sm:$0xff] }
 0x2aa   : > { %11593 = vmatmul.mubr.msk.f32.gmra.mrb[88].mxu1 %vm2940_vm1, %v2884_v58  ;;  %v2886_v18 = vmax.f32 %v2468_v54, 0.0  ;;  %v2748_v54 = vmax.f32 %v1778_v24, 0.0  ;;  %v2757_v24 = vmax.f32 %v1823_v42, 0.0 }
 0x2ab   : > { %v2885_v2 = vmax.f32 %v2463_v19, 0.0  ;;  %v11204_v56 = vpop.f32.mrb[216].mxu0  ;;  %v1788_v19 = vadd.f32 %v13835_v0, %v17655_v3  ;;  %v17665_v3 = vld [vmem:[#allocation41_spill] sm:$0xff] }
 0x2ac   : > { %v2478_v15 = vadd.f32 %v13835_v0, %v11204_v56  ;;  %v2472_v47 = vpop.f32.mrb[217].mxu0  ;;  %11374 = vmatmul.mubr.msk.f32.gmra.mrb[66].mxu0 %vm2940_vm1, %v2738_v5  ;;  %v2749_v5 = vmax.f32 %v1783_v14, 0.0 }
 0x2ad   : > { %v2473_v27 = vadd.f32 %v13835_v0, %v2472_v47  ;;  %11376 = vmatprep.mubr.msk.f32.mxu0 %vm2940_vm1, %v2739_v21  ;;  %11595 = vmatprep.mubr.msk.f32.mxu1 %vm2940_vm1, %v2885_v2  ;;  %v17657_v47 = vld [vmem:[#allocation33_spill] sm:$0xff] }
 0x2ae   : > { %11596 = vmatmul.mubr.msk.f32.gmra.mrb[90].mxu1 %vm2940_vm1, %v2886_v18  ;;  %v2888_v8 = vmax.f32 %v2478_v15, 0.0  ;;  %v2750_v15 = vmax.f32 %v1788_v19, 0.0  ;;  %v1838_v19 = vadd.f32 %v13835_v0, %v17665_v3  ;;  %v17674_v3 = vld [vmem:[#allocation52_spill] sm:$0xff] }
 0x2af   : > { %v2887_v55 = vmax.f32 %v2473_v27, 0.0  ;;  %v11207_v26 = vpop.f32.mrb[218].mxu0  ;;  %v1798_v27 = vadd.f32 %v13835_v0, %v17657_v47 }
 0x2b0   : > { %v2488_v35 = vadd.f32 %v13835_v0, %v11207_v26  ;;  %v2482_v60 = vpop.f32.mrb[219].mxu0  ;;  %11377 = vmatmul.mubr.msk.f32.gmra.mrb[68].mxu0 %vm2940_vm1, %v2740_v61  ;;  %v2751_v61 = vmax.f32 %v1793_v22, 0.0  ;;  %v17666_v22 = vld [vmem:[#allocation44_spill] sm:$0xff] }
 0x2b1   : > { %v2483_v23 = vadd.f32 %v13835_v0, %v2482_v60  ;;  %11379 = vmatprep.mubr.msk.f32.mxu0 %vm2940_vm1, %v2741_v38  ;;  %11598 = vmatprep.mubr.msk.f32.mxu1 %vm2940_vm1, %v2887_v55  ;;  %v17659_v60 = vld [vmem:[#allocation35_spill] sm:$0xff] }
 0x2b2   : > { %11599 = vmatmul.mubr.msk.f32.gmra.mrb[92].mxu1 %vm2940_vm1, %v2888_v8  ;;  %v2890_v32 = vmax.f32 %v2488_v35, 0.0  ;;  %v2752_v35 = vmax.f32 %v1798_v27, 0.0  ;;  %v2760_v27 = vmax.f32 %v1838_v19, 0.0  ;;  %v1883_v19 = vadd.f32 %v13835_v0, %v17674_v3 }
 0x2b3   : > { %v2889_v25 = vmax.f32 %v2483_v23, 0.0  ;;  %v11210_v43 = vpop.f32.mrb[220].mxu0  ;;  %v1808_v23 = vadd.f32 %v13835_v0, %v17659_v60 }
 0x2b4   : > { %v2498_v9 = vadd.f32 %v13835_v0, %v11210_v43  ;;  %v2492_v37 = vpop.f32.mrb[221].mxu0  ;;  %11380 = vmatmul.mubr.msk.f32.gmra.mrb[70].mxu0 %vm2940_vm1, %v2742_v1  ;;  %v2753_v1 = vmax.f32 %v1803_v28, 0.0 }
 0x2b5   : > { %v2493_v7 = vadd.f32 %v13835_v0, %v2492_v37  ;;  %11382 = vmatprep.mubr.msk.f32.mxu0 %vm2940_vm1, %v2743_v49  ;;  %11601 = vmatprep.mubr.msk.f32.mxu1 %vm2940_vm1, %v2889_v25  ;;  %v17661_v37 = vld [vmem:[#allocation37_spill] sm:$0xff] }
 0x2b6   : > { %11602 = vmatmul.mubr.msk.f32.gmra.mrb[94].mxu1 %vm2940_vm1, %v2890_v32  ;;  %v2892_v63 = vmax.f32 %v2498_v9, 0.0  ;;  %v2754_v9 = vmax.f32 %v1808_v23, 0.0 }
 0x2b7   : > { %v2891_v30 = vmax.f32 %v2493_v7, 0.0  ;;  %v11213_v53 = vpop.f32.mrb[222].mxu0  ;;  %v1818_v7 = vadd.f32 %v13835_v0, %v17661_v37 }
 0x2b8   : > { %v2508_v31 = vadd.f32 %v13835_v0, %v11213_v53  ;;  %v2502_v4 = vpop.f32.mrb[223].mxu0  ;;  %11383 = vmatmul.mubr.msk.f32.gmra.mrb[72].mxu0 %vm2940_vm1, %v2744_v39  ;;  %v2755_v39 = vmax.f32 %v1813_v20, 0.0  ;;  %v17669_v20 = vld [vmem:[#allocation45_spill] sm:$0xff] }
 0x2b9   : > { %v2503_v46 = vadd.f32 %v13835_v0, %v2502_v4  ;;  %11385 = vmatprep.mubr.msk.f32.mxu0 %vm2940_vm1, %v2745_v48  ;;  %11604 = vmatprep.mubr.msk.f32.mxu1 %vm2940_vm1, %v2891_v30  ;;  %v2756_v4 = vmax.f32 %v1818_v7, 0.0 }
 0x2ba   : > { %11605 = vmatmul.mubr.msk.f32.gmra.mrb[96].mxu1 %vm2940_vm1, %v2892_v63  ;;  %v2894_v29 = vmax.f32 %v2508_v31, 0.0 }
 0x2bb   : > { %v2893_v41 = vmax.f32 %v2503_v46, 0.0  ;;  %v11216_v52 = vpop.f32.mrb[224].mxu0  ;;  %v17663_v46 = vld [vmem:[#allocation39_spill] sm:$0xff] }
 0x2bc   : > { %v2518_v57 = vadd.f32 %v13835_v0, %v11216_v52  ;;  %v2512_v11 = vpop.f32.mrb[225].mxu0  ;;  %11386 = vmatmul.mubr.msk.f32.gmra.mrb[74].mxu0 %vm2940_vm1, %v2746_v13  ;;  %v1828_v13 = vadd.f32 %v13835_v0, %v17663_v46 }
 0x2bd   : > { %v2513_v58 = vadd.f32 %v13835_v0, %v2512_v11  ;;  %11388 = vmatprep.mubr.msk.f32.mxu0 %vm2940_vm1, %v2747_v59  ;;  %11607 = vmatprep.mubr.msk.f32.mxu1 %vm2940_vm1, %v2893_v41  ;;  %v17664_v59 = vld [vmem:[#allocation42_spill] sm:$0xff] }
 0x2be   : > { %11608 = vmatmul.mubr.msk.f32.gmra.mrb[98].mxu1 %vm2940_vm1, %v2894_v29  ;;  %v2896_v40 = vmax.f32 %v2518_v57, 0.0  ;;  %v1833_v36 = vadd.f32 %v13835_v0, %v17664_v59 }
 0x2bf   : > { %v2895_v21 = vmax.f32 %v2513_v58, 0.0  ;;  %v11219_v12 = vpop.f32.mrb[226].mxu0 }
 0x2c0   : > { %v2528_v2 = vadd.f32 %v13835_v0, %v11219_v12  ;;  %v2522_v56 = vpop.f32.mrb[227].mxu0  ;;  %11389 = vmatmul.mubr.msk.f32.gmra.mrb[76].mxu0 %vm2940_vm1, %v2748_v54  ;;  %v2758_v54 = vmax.f32 %v1828_v13, 0.0  ;;  %v2759_v16 = vmax.f32 %v1833_v36, 0.0 }
 0x2c1   : > { %v2523_v18 = vadd.f32 %v13835_v0, %v2522_v56  ;;  %11391 = vmatprep.mubr.msk.f32.mxu0 %vm2940_vm1, %v2749_v5  ;;  %11610 = vmatprep.mubr.msk.f32.mxu1 %vm2940_vm1, %v2895_v21  ;;  %v1843_v21 = vadd.f32 %v13835_v0, %v17666_v22 }
 0x2c2   : > { %11611 = vmatmul.mubr.msk.f32.gmra.mrb[100].mxu1 %vm2940_vm1, %v2896_v40  ;;  %v2898_v62 = vmax.f32 %v2528_v2, 0.0 }
 0x2c3   : > { %v2897_v38 = vmax.f32 %v2523_v18, 0.0  ;;  %v11222_v33 = vpop.f32.mrb[228].mxu0 }
 0x2c4   : > { %v2538_v55 = vadd.f32 %v13835_v0, %v11222_v33  ;;  %v2532_v26 = vpop.f32.mrb[229].mxu0  ;;  %11392 = vmatmul.mubr.msk.f32.gmra.mrb[78].mxu0 %vm2940_vm1, %v2750_v15  ;;  %v17668_v33 = vld [vmem:[#allocation46_spill] sm:$0xff] }
 0x2c5   : > { %v2533_v8 = vadd.f32 %v13835_v0, %v2532_v26  ;;  %11394 = vmatprep.mubr.msk.f32.mxu0 %vm2940_vm1, %v2751_v61  ;;  %11613 = vmatprep.mubr.msk.f32.mxu1 %vm2940_vm1, %v2897_v38  ;;  %v17667_v61 = vld [vmem:[#allocation43_spill] sm:$0xff]  ;;  %v2761_v38 = vmax.f32 %v1843_v21, 0.0 }
 0x2c6   : > { %11614 = vmatmul.mubr.msk.f32.gmra.mrb[102].mxu1 %vm2940_vm1, %v2898_v62  ;;  %v2900_v34 = vmax.f32 %v2538_v55, 0.0  ;;  %v1848_v45 = vadd.f32 %v13835_v0, %v17667_v61  ;;  %v1853_v62 = vadd.f32 %v13835_v0, %v17668_v33 }
 0x2c7   : > { %v2899_v49 = vmax.f32 %v2533_v8, 0.0  ;;  %v11225_v6 = vpop.f32.mrb[230].mxu0 }
 0x2c8   : > { %v2548_v25 = vadd.f32 %v13835_v0, %v11225_v6  ;;  %v2542_v43 = vpop.f32.mrb[231].mxu0  ;;  %11395 = vmatmul.mubr.msk.f32.gmra.mrb[80].mxu0 %vm2940_vm1, %v2752_v35  ;;  %v2762_v44 = vmax.f32 %v1848_v45, 0.0  ;;  %v2769_v45 = vmax.f32 %v1883_v19, 0.0  ;;  %v17681_v19 = vld [vmem:[#allocation57_spill] sm:$0xff] }
 0x2c9   : > { %v2543_v32 = vadd.f32 %v13835_v0, %v2542_v43  ;;  %11397 = vmatprep.mubr.msk.f32.mxu0 %vm2940_vm1, %v2753_v1  ;;  %11616 = vmatprep.mubr.msk.f32.mxu1 %vm2940_vm1, %v2899_v49  ;;  %v1858_v49 = vadd.f32 %v13835_v0, %v17669_v20  ;;  %v17677_v20 = vld [vmem:[#allocation53_spill] sm:$0xff] }
 0x2ca   : > { %11617 = vmatmul.mubr.msk.f32.gmra.mrb[104].mxu1 %vm2940_vm1, %v2900_v34  ;;  %v2902_v10 = vmax.f32 %v2548_v25, 0.0  ;;  %v2763_v34 = vmax.f32 %v1853_v62, 0.0  ;;  %v17670_v25 = vld [vmem:[#allocation48_spill] sm:$0xff] }
 0x2cb   : > { %v2901_v48 = vmax.f32 %v2543_v32, 0.0  ;;  %v11228_v51 = vpop.f32.mrb[232].mxu0  ;;  %v1863_v43 = vadd.f32 %v13835_v0, %v17670_v25 }
 0x2cc   : > { %v2558_v30 = vadd.f32 %v13835_v0, %v11228_v51  ;;  %v2552_v53 = vpop.f32.mrb[233].mxu0  ;;  %11398 = vmatmul.mubr.msk.f32.gmra.mrb[82].mxu0 %vm2940_vm1, %v2754_v9  ;;  %v17671_v51 = vld [vmem:[#allocation47_spill] sm:$0xff] }
 0x2cd   : > { %v2553_v63 = vadd.f32 %v13835_v0, %v2552_v53  ;;  %11400 = vmatprep.mubr.msk.f32.mxu0 %vm2940_vm1, %v2755_v39  ;;  %v14003_v31 = vpop.f32.mrb[0].mxu1  ;;  %11619 = vmatprep.mubr.msk.f32.mxu1 %vm2940_vm1, %v2901_v48  ;;  %v2764_v48 = vmax.f32 %v1858_v49, 0.0  ;;  %v2765_v53 = vmax.f32 %v1863_v43, 0.0  ;;  %v1898_v49 = vadd.f32 %v13835_v0, %v17677_v20  ;;  %v17678_v43 = vld [vmem:[#allocation56_spill] sm:$0xff] }
 0x2ce   : > { %v14008_v50 = vpop.f32.mrb[1].mxu1  ;;  %11620 = vmatmul.mubr.msk.f32.gmra.mrb[106].mxu1 %vm2940_vm1, %v2902_v10  ;;  %v2904_v52 = vmax.f32 %v2558_v30, 0.0  ;;  %v1868_v10 = vadd.f32 %v13835_v0, %v17671_v51 }
 0x2cf   : > { %v2903_v14 = vmax.f32 %v2553_v63, 0.0  ;;  %v11231_v41 = vpop.f32.mrb[234].mxu0  ;;  %v17672_v63 = vld [vmem:[#allocation50_spill] sm:$0xff] }
 0x2d0   : > { %v2568_v29 = vadd.f32 %v13835_v0, %v11231_v41  ;;  %v2562_v57 = vpop.f32.mrb[235].mxu0  ;;  %11401 = vmatmul.mubr.msk.f32.gmra.mrb[84].mxu0 %vm2940_vm1, %v2756_v4  ;;  %v1873_v4 = vadd.f32 %v13835_v0, %v17672_v63 }
 0x2d1   : > { %v2563_v11 = vadd.f32 %v13835_v0, %v2562_v57  ;;  %11403 = vmatprep.mubr.msk.f32.mxu0 %vm2940_vm1, %v2757_v24  ;;  %v14017_v58 = vpop.f32.mrb[2].mxu1  ;;  %11622 = vmatprep.mubr.msk.f32.mxu1 %vm2940_vm1, %v2903_v14 }
 0x2d2   : > { %v14022_v5 = vpop.f32.mrb[3].mxu1  ;;  %11623 = vmatmul.mubr.msk.f32.gmra.mrb[108].mxu1 %vm2940_vm1, %v2904_v52  ;;  %v2906_v2 = vmax.f32 %v2568_v29, 0.0  ;;  %v2766_v52 = vmax.f32 %v1868_v10, 0.0  ;;  %v17673_v29 = vld [vmem:[#allocation49_spill] sm:$0xff]  ;;  %v2772_v10 = vmax.f32 %v1898_v49, 0.0 }
 0x2d3   : > { %v2905_v12 = vmax.f32 %v2563_v11, 0.0  ;;  %v11234_v40 = vpop.f32.mrb[236].mxu0  ;;  %v1878_v57 = vadd.f32 %v13835_v0, %v17673_v29 }
 0x2d4   : > { %v2578_v56 = vadd.f32 %v13835_v0, %v11234_v40  ;;  %v2572_v18 = vpop.f32.mrb[237].mxu0  ;;  %11404 = vmatmul.mubr.msk.f32.gmra.mrb[86].mxu0 %vm2940_vm1, %v2758_v54  ;;  %v2767_v54 = vmax.f32 %v1873_v4, 0.0 }
 0x2d5   : > { %v2573_v15 = vadd.f32 %v13835_v0, %v2572_v18  ;;  %11406 = vmatprep.mubr.msk.f32.mxu0 %vm2940_vm1, %v2759_v16  ;;  %v14031_v47 = vpop.f32.mrb[4].mxu1  ;;  %11625 = vmatprep.mubr.msk.f32.mxu1 %vm2940_vm1, %v2905_v12  ;;  %v2768_v18 = vmax.f32 %v1878_v57, 0.0 }
 0x2d6   : > { %v14036_v28 = vpop.f32.mrb[5].mxu1  ;;  %11626 = vmatmul.mubr.msk.f32.gmra.mrb[110].mxu1 %vm2940_vm1, %v2906_v2  ;;  %v2908_v8 = vmax.f32 %v2578_v56, 0.0 }
 0x2d7   : > { %v2907_v55 = vmax.f32 %v2573_v15, 0.0  ;;  %v11237_v26 = vpop.f32.mrb[238].mxu0  ;;  %v17675_v15 = vld [vmem:[#allocation51_spill] sm:$0xff] }
 0x2d8   : > { %v2588_v35 = vadd.f32 %v13835_v0, %v11237_v26  ;;  %v2582_v60 = vpop.f32.mrb[239].mxu0  ;;  %11407 = vmatmul.mubr.msk.f32.gmra.mrb[88].mxu0 %vm2940_vm1, %v2760_v27  ;;  %v1888_v27 = vadd.f32 %v13835_v0, %v17675_v15 }
 0x2d9   : > { %v2583_v23 = vadd.f32 %v13835_v0, %v2582_v60  ;;  %11409 = vmatprep.mubr.msk.f32.mxu0 %vm2940_vm1, %v2761_v38  ;;  %v14045_v1 = vpop.f32.mrb[6].mxu1  ;;  %11628 = vmatprep.mubr.msk.f32.mxu1 %vm2940_vm1, %v2907_v55  ;;  %v17676_v38 = vld [vmem:[#allocation54_spill] sm:$0xff] }
 0x2da   : > { %v14050_v6 = vpop.f32.mrb[7].mxu1  ;;  %11629 = vmatmul.mubr.msk.f32.gmra.mrb[112].mxu1 %vm2940_vm1, %v2908_v8  ;;  %v2910_v37 = vmax.f32 %v2588_v35, 0.0  ;;  %v1893_v33 = vadd.f32 %v13835_v0, %v17676_v38 }
 0x2db   : > { %v2909_v32 = vmax.f32 %v2583_v23, 0.0  ;;  %v11240_v9 = vpop.f32.mrb[240].mxu0 }
 0x2dc   : > { %v2598_v7 = vadd.f32 %v13835_v0, %v11240_v9  ;;  %v2592_v39 = vpop.f32.mrb[241].mxu0  ;;  %11410 = vmatmul.mubr.msk.f32.gmra.mrb[90].mxu0 %vm2940_vm1, %v2762_v44  ;;  %v2770_v44 = vmax.f32 %v1888_v27, 0.0  ;;  %v2771_v25 = vmax.f32 %v1893_v33, 0.0 }
 0x2dd   : > { %v2593_v17 = vadd.f32 %v13835_v0, %v2592_v39  ;;  %11412 = vmatprep.mubr.msk.f32.mxu0 %vm2940_vm1, %v2763_v34  ;;  %v14059_v42 = vpop.f32.mrb[8].mxu1  ;;  %11631 = vmatprep.mubr.msk.f32.mxu1 %vm2940_vm1, %v2909_v32  ;;  %v1903_v32 = vadd.f32 %v13835_v0, %v17678_v43 }
 0x2de   : > { %v14064_v30 = vpop.f32.mrb[9].mxu1  ;;  %11632 = vmatmul.mubr.msk.f32.gmra.mrb[114].mxu1 %vm2940_vm1, %v2910_v37  ;;  %v2912_v24 = vmax.f32 %v2598_v7, 0.0 }
 0x2df   : > { %v2911_v46 = vmax.f32 %v2593_v17, 0.0  ;;  %v11243_v13 = vpop.f32.mrb[242].mxu0 }
 0x2e0   : > { %v2608_v59 = vadd.f32 %v13835_v0, %v11243_v13  ;;  %v2602_v36 = vpop.f32.mrb[243].mxu0  ;;  %11413 = vmatmul.mubr.msk.f32.gmra.mrb[92].mxu0 %vm2940_vm1, %v2764_v48  ;;  %v17680_v13 = vld [vmem:[#allocation58_spill] sm:$0xff] }
 0x2e1   : > { %v2603_v14 = vadd.f32 %v13835_v0, %v2602_v36  ;;  %11415 = vmatprep.mubr.msk.f32.mxu0 %vm2940_vm1, %v2765_v53  ;;  %v14073_v41 = vpop.f32.mrb[10].mxu1  ;;  %11634 = vmatprep.mubr.msk.f32.mxu1 %vm2940_vm1, %v2911_v46  ;;  %v17679_v53 = vld [vmem:[#allocation55_spill] sm:$0xff]  ;;  %v2773_v46 = vmax.f32 %v1903_v32, 0.0 }
 0x2e2   : > { %v14078_v11 = vpop.f32.mrb[11].mxu1  ;;  %11635 = vmatmul.mubr.msk.f32.gmra.mrb[116].mxu1 %vm2940_vm1, %v2912_v24  ;;  %v2914_v21 = vmax.f32 %v2608_v59, 0.0  ;;  %v1908_v63 = vadd.f32 %v13835_v0, %v17679_v53  ;;  %v1913_v24 = vadd.f32 %v13835_v0, %v17680_v13  ;;  %v17686_v53 = vld [vmem:[#allocation64_spill] sm:$0xff] }
 0x2e3   : > { %v2913_v16 = vmax.f32 %v2603_v14, 0.0  ;;  %v11246_v22 = vpop.f32.mrb[244].mxu0 }
 0x2e4   : > { %v2618_v12 = vadd.f32 %v13835_v0, %v11246_v22  ;;  %v2612_v40 = vpop.f32.mrb[245].mxu0  ;;  %11416 = vmatmul.mubr.msk.f32.gmra.mrb[94].mxu0 %vm2940_vm1, %v2766_v52  ;;  %v2774_v3 = vmax.f32 %v1908_v63, 0.0  ;;  %v1943_v63 = vadd.f32 %v13835_v0, %v17686_v53  ;;  %v17691_v53 = vld [vmem:[#allocation67_spill] sm:$0xff] }
 0x2e5   : > { %v2613_v2 = vadd.f32 %v13835_v0, %v2612_v40  ;;  %11418 = vmatprep.mubr.msk.f32.mxu0 %vm2940_vm1, %v2767_v54  ;;  %v14087_v56 = vpop.f32.mrb[12].mxu1  ;;  %11637 = vmatprep.mubr.msk.f32.mxu1 %vm2940_vm1, %v2913_v16  ;;  %v1918_v16 = vadd.f32 %v13835_v0, %v17681_v19 }
 0x2e6   : > { %v14092_v61 = vpop.f32.mrb[13].mxu1  ;;  %11638 = vmatmul.mubr.msk.f32.gmra.mrb[118].mxu1 %vm2940_vm1, %v2914_v21  ;;  %v2916_v26 = vmax.f32 %v2618_v12, 0.0  ;;  %v2775_v21 = vmax.f32 %v1913_v24, 0.0  ;;  %v17682_v12 = vld [vmem:[#allocation60_spill] sm:$0xff] }
 0x2e7   : > { %v2915_v62 = vmax.f32 %v2613_v2, 0.0  ;;  %v11249_v55 = vpop.f32.mrb[246].mxu0  ;;  %v1923_v40 = vadd.f32 %v13835_v0, %v17682_v12  ;;  %v17688_v12 = vld [vmem:[#allocation66_spill] sm:$0xff] }
 0x2e8   : > { %v2628_v8 = vadd.f32 %v13835_v0, %v11249_v55  ;;  %v2622_v35 = vpop.f32.mrb[247].mxu0  ;;  %11419 = vmatmul.mubr.msk.f32.gmra.mrb[96].mxu0 %vm2940_vm1, %v2768_v18  ;;  %v17683_v55 = vld [vmem:[#allocation59_spill] sm:$0xff] }
 0x2e9   : > { %v2623_v60 = vadd.f32 %v13835_v0, %v2622_v35  ;;  %11421 = vmatprep.mubr.msk.f32.mxu0 %vm2940_vm1, %v2769_v45  ;;  %v14101_v23 = vpop.f32.mrb[14].mxu1  ;;  %11640 = vmatprep.mubr.msk.f32.mxu1 %vm2940_vm1, %v2915_v62  ;;  %v2776_v62 = vmax.f32 %v1918_v16, 0.0  ;;  %v2777_v35 = vmax.f32 %v1923_v40, 0.0  ;;  %v1953_v40 = vadd.f32 %v13835_v0, %v17688_v12 }
 0x2ea   : > { %v14106_v34 = vpop.f32.mrb[15].mxu1  ;;  %11641 = vmatmul.mubr.msk.f32.gmra.mrb[120].mxu1 %vm2940_vm1, %v2916_v26  ;;  %v2918_v7 = vmax.f32 %v2628_v8, 0.0  ;;  %v1928_v26 = vadd.f32 %v13835_v0, %v17683_v55 }
 0x2eb   : > { %v2917_v9 = vmax.f32 %v2623_v60, 0.0  ;;  %v11252_v37 = vpop.f32.mrb[248].mxu0  ;;  %v17684_v60 = vld [vmem:[#allocation62_spill] sm:$0xff] }
 0x2ec   : > { %v2638_v39 = vadd.f32 %v13835_v0, %v11252_v37  ;;  %v2632_v17 = vpop.f32.mrb[249].mxu0  ;;  %11422 = vmatmul.mubr.msk.f32.gmra.mrb[98].mxu0 %vm2940_vm1, %v2770_v44  ;;  %v1933_v44 = vadd.f32 %v13835_v0, %v17684_v60 }
 0x2ed   : > { %v2633_v48 = vadd.f32 %v13835_v0, %v2632_v17  ;;  %11424 = vmatprep.mubr.msk.f32.mxu0 %vm2940_vm1, %v2771_v25  ;;  %v14115_v51 = vpop.f32.mrb[16].mxu1  ;;  %11643 = vmatprep.mubr.msk.f32.mxu1 %vm2940_vm1, %v2917_v9 }
 0x2ee   : > { %v14120_v4 = vpop.f32.mrb[17].mxu1  ;;  %11644 = vmatmul.mubr.msk.f32.gmra.mrb[122].mxu1 %vm2940_vm1, %v2918_v7  ;;  %v2920_v14 = vmax.f32 %v2638_v39, 0.0  ;;  %v2778_v7 = vmax.f32 %v1928_v26, 0.0  ;;  %v17685_v39 = vld [vmem:[#allocation61_spill] sm:$0xff] }
 0x2ef   : > { %v2919_v59 = vmax.f32 %v2633_v48, 0.0  ;;  %v11255_v36 = vpop.f32.mrb[250].mxu0  ;;  %v1938_v17 = vadd.f32 %v13835_v0, %v17685_v39  ;;  %v17689_v26 = vld [vmem:[#allocation65_spill] sm:$0xff] }
 0x2f0   : > { %v2648_v52 = vadd.f32 %v13835_v0, %v11255_v36  ;;  %v2642_v29 = vpop.f32.mrb[251].mxu0  ;;  %11425 = vmatmul.mubr.msk.f32.gmra.mrb[100].mxu0 %vm2940_vm1, %v2772_v10  ;;  %v2779_v10 = vmax.f32 %v1933_v44, 0.0  ;;  %v2783_v44 = vmax.f32 %v1953_v40, 0.0 }
 0x2f1   : > { %v2643_v57 = vadd.f32 %v13835_v0, %v2642_v29  ;;  %11427 = vmatprep.mubr.msk.f32.mxu0 %vm2940_vm1, %v2773_v46  ;;  %v14129_v54 = vpop.f32.mrb[18].mxu1  ;;  %11646 = vmatprep.mubr.msk.f32.mxu1 %vm2940_vm1, %v2919_v59  ;;  %v14170_v46 = vld [vmem:[%s17435_s4] ss:$0 sm:$0xff] }
 0x2f2   : > { %v14134_v22 = vpop.f32.mrb[19].mxu1  ;;  %11647 = vmatmul.mubr.msk.f32.gmra.mrb[124].mxu1 %vm2940_vm1, %v2920_v14  ;;  %v2922_v15 = vmax.f32 %v2648_v52, 0.0 }
 0x2f3   : > { %v2921_v2 = vmax.f32 %v2643_v57, 0.0  ;;  %v11258_v18 = vpop.f32.mrb[252].mxu0  ;;  %v2780_v57 = vmax.f32 %v1938_v17, 0.0 }
 0x2f4   : > { %v2658_v27 = vadd.f32 %v13835_v0, %v11258_v18  ;;  %v2652_v45 = vpop.f32.mrb[253].mxu0  ;;  %11428 = vmatmul.mubr.msk.f32.gmra.mrb[102].mxu0 %vm2940_vm1, %v2774_v3  ;;  %v17687_v3 = vld [vmem:[#allocation63_spill] sm:$0xff] }
 0x2f5   : > { %v2653_v38 = vadd.f32 %v13835_v0, %v2652_v45  ;;  %11430 = vmatprep.mubr.msk.f32.mxu0 %vm2940_vm1, %v2775_v21  ;;  %v14143_v33 = vpop.f32.mrb[20].mxu1  ;;  %11649 = vmatprep.mubr.msk.f32.mxu1 %vm2940_vm1, %v2921_v2  ;;  %v1948_v19 = vadd.f32 %v13835_v0, %v17687_v3  ;;  %v2781_v21 = vmax.f32 %v1943_v63, 0.0  ;;  %v1968_v63 = vadd.f32 %v13835_v0, %v17691_v53 }
 0x2f6   : > { %v14148_v8 = vpop.f32.mrb[21].mxu1  ;;  %11650 = vmatmul.mubr.msk.f32.gmra.mrb[126].mxu1 %vm2940_vm1, %v2922_v15  ;;  %v2924_v25 = vmax.f32 %v2658_v27, 0.0 }
 0x2f7   : > { %v2923_v20 = vmax.f32 %v2653_v38, 0.0  ;;  %v11261_v49 = vpop.f32.mrb[254].mxu0  ;;  %v2782_v55 = vmax.f32 %v1948_v19, 0.0  ;;  %v2786_v40 = vmax.f32 %v1968_v63, 0.0 }
 0x2f8   : > { %v2668_v43 = vadd.f32 %v13835_v0, %v11261_v49  ;;  %v2662_v32 = vpop.f32.mrb[255].mxu0  ;;  %11431 = vmatmul.mubr.msk.f32.gmra.mrb[104].mxu0 %vm2940_vm1, %v2776_v62 }
 0x2f9   : > { %v2663_v9 = vadd.f32 %v13835_v0, %v2662_v32  ;;  %11433 = vmatprep.mubr.msk.f32.mxu0 %vm2940_vm1, %v2777_v35  ;;  %v14157_v37 = vpop.f32.mrb[22].mxu1  ;;  %11652 = vmatprep.mubr.msk.f32.mxu1 %vm2940_vm1, %v2923_v20  ;;  %v1958_v35 = vadd.f32 %v13835_v0, %v17689_v26  ;;  %v17690_v20 = vld [vmem:[#allocation68_spill] sm:$0xff] }
 0x2fa   : > { %v14162_v48 = vpop.f32.mrb[23].mxu1  ;;  %11653 = vmatmul.mubr.msk.f32.gmra.mrb[128].mxu1 %vm2940_vm1, %v2924_v25  ;;  %v2926_v59 = vmax.f32 %v2668_v43, 0.0  ;;  %v1963_v49 = vadd.f32 %v13835_v0, %v17690_v20 }
 0x2fb   : > { %v2925_v13 = vmax.f32 %v2663_v9, 0.0  ;;  %v11276_v24 = vpop.f32.mrb[0].mxu0 }
 0x2fc   : > { %v3781_v36 = vadd.f32 %v11276_v24, %v14170_v46  ;;  %v3775_v14 = vpop.f32.mrb[1].mxu0  ;;  %11434 = vmatmul.mubr.msk.f32.gmra.mrb[106].mxu0 %vm2940_vm1, %v2778_v7  ;;  %v2785_v24 = vmax.f32 %v1963_v49, 0.0 }
 0x2fd   : > { %v3776_v52 = vadd.f32 %v14170_v46, %v3775_v14  ;;  %11436 = vmatprep.mubr.msk.f32.mxu0 %vm2940_vm1, %v2779_v10  ;;  %v14176_v29 = vpop.f32.mrb[24].mxu1  ;;  %11655 = vmatprep.mubr.msk.f32.mxu1 %vm2940_vm1, %v2925_v13  ;;  %v2784_v10 = vmax.f32 %v1958_v35, 0.0 }
 0x2fe   : > { %v14181_v16 = vpop.f32.mrb[25].mxu1  ;;  %11656 = vmatmul.mubr.msk.f32.gmra.mrb[130].mxu1 %vm2940_vm1, %v2926_v59  ;;  %v5055_v15 = vmax.f32 %v3781_v36, 0.0  ;;  %v17692_v59 = vld [vmem:[#allocation70_spill] sm:$0xff] }
 0x2ff   : > { %v5054_v2 = vmax.f32 %v3776_v52, 0.0  ;;  %v11279_v18 = vpop.f32.mrb[2].mxu0  ;;  %v1973_v36 = vadd.f32 %v13835_v0, %v17692_v59 }
 0x300   : > { %v3791_v27 = vadd.f32 %v11279_v18, %v14170_v46  ;;  %v3785_v45 = vpop.f32.mrb[3].mxu0  ;;  %11437 = vmatmul.mubr.msk.f32.gmra.mrb[108].mxu0 %vm2940_vm1, %v2780_v57 }
 0x301   : > { %v3786_v38 = vadd.f32 %v14170_v46, %v3785_v45  ;;  %11439 = vmatprep.mubr.msk.f32.mxu0 %vm2940_vm1, %v2781_v21  ;;  %v14190_v62 = vpop.f32.mrb[26].mxu1  ;;  %11664 = vmatprep.mubr.msk.f32.mxu1 %vm5320_vm2, %v5054_v2  ;;  %v17693_v2 = vld [vmem:[#allocation69_spill] sm:$0xff]  ;;  %v17694_v45 = vld [vmem:[#allocation72_spill] sm:$0xff] }
 0x302   : > { %v14195_v60 = vpop.f32.mrb[27].mxu1  ;;  %11665 = vmatmul.mubr.msk.f32.vlgmr.msra.gmra.mrb[132].mxu1 %vm5320_vm2, %v5055_v15  ;;  %v5057_v32 = vmax.f32 %v3791_v27, 0.0  ;;  %v1978_v18 = vadd.f32 %v13835_v0, %v17693_v2  ;;  %v2787_v27 = vmax.f32 %v1973_v36, 0.0 }
 0x303   : > { %v5056_v25 = vmax.f32 %v3786_v38, 0.0  ;;  %v11282_v43 = vpop.f32.mrb[4].mxu0  ;;  %v1983_v38 = vadd.f32 %v13835_v0, %v17694_v45 }
 0x304   : > { %v3801_v9 = vadd.f32 %v11282_v43, %v14170_v46  ;;  %v3795_v7 = vpop.f32.mrb[5].mxu0  ;;  %11440 = vmatmul.mubr.msk.f32.gmra.mrb[110].mxu0 %vm2940_vm1, %v2782_v55  ;;  %v2788_v43 = vmax.f32 %v1978_v18, 0.0  ;;  %v12615_v18 = vld [vmem:[%s17433_s2] ss:$0 sm:$0xff] }
 0x305   : > { %v3796_v39 = vadd.f32 %v14170_v46, %v3795_v7  ;;  %11442 = vmatprep.mubr.msk.f32.mxu0 %vm2940_vm1, %v2783_v44  ;;  %v14204_v17 = vpop.f32.mrb[28].mxu1  ;;  %11667 = vmatprep.mubr.msk.f32.mxu1 %vm5320_vm2, %v5056_v25 }
 0x306   : > { %v14209_v13 = vpop.f32.mrb[29].mxu1  ;;  %11668 = vmatmul.mubr.msk.f32.gmra.mrb[134].mxu1 %vm5320_vm2, %v5057_v32  ;;  %v5059_v57 = vmax.f32 %v3801_v9, 0.0  ;;  %v17695_v32 = vld [vmem:[#allocation71_spill] sm:$0xff] }
 0x307   : > { %v5058_v14 = vmax.f32 %v3796_v39, 0.0  ;;  %v11285_v52 = vpop.f32.mrb[6].mxu0  ;;  %v1988_v9 = vadd.f32 %v13835_v0, %v17695_v32  ;;  %v2789_v39 = vmax.f32 %v1983_v38, 0.0 }
 0x308   : > { %v3811_v3 = vadd.f32 %v11285_v52, %v14170_v46  ;;  %v3805_v19 = vpop.f32.mrb[7].mxu0  ;;  %11443 = vmatmul.mubr.msk.f32.gmra.mrb[112].mxu0 %vm2940_vm1, %v2784_v10  ;;  %v17696_v10 = vld [vmem:[#allocation74_spill] sm:$0xff] }
 0x309   : > { %v3806_v21 = vadd.f32 %v14170_v46, %v3805_v19  ;;  %11445 = vmatprep.mubr.msk.f32.mxu0 %vm2940_vm1, %v2785_v24  ;;  %v14218_v12 = vpop.f32.mrb[30].mxu1  ;;  %11670 = vmatprep.mubr.msk.f32.mxu1 %vm5320_vm2, %v5058_v14  ;;  %v1993_v53 = vadd.f32 %v13835_v0, %v17696_v10  ;;  %v17697_v19 = vld [vmem:[#allocation73_spill] sm:$0xff] }
 0x30a   : > { %v14223_v15 = vpop.f32.mrb[31].mxu1  ;;  %11671 = vmatmul.mubr.msk.f32.gmra.mrb[136].mxu1 %vm5320_vm2, %v5059_v57  ;;  %v5061_v35 = vmax.f32 %v3811_v3, 0.0  ;;  %v2790_v3 = vmax.f32 %v1988_v9, 0.0 }
 0x30b   : > { %v5060_v55 = vmax.f32 %v3806_v21, 0.0  ;;  %v11288_v26 = vpop.f32.mrb[8].mxu0  ;;  %v1998_v21 = vadd.f32 %v13835_v0, %v17697_v19  ;;  %v2791_v2 = vmax.f32 %v1993_v53, 0.0 }
 0x30c   : > { %v3821_v44 = vadd.f32 %v11288_v26, %v14170_v46  ;;  %v3815_v20 = vpop.f32.mrb[9].mxu0  ;;  %11446 = vmatmul.mubr.msk.f32.gmra.mrb[114].mxu0 %vm2940_vm1, %v2786_v40 }
 0x30d   : > { %v3816_v49 = vadd.f32 %v14170_v46, %v3815_v20  ;;  %11448 = vmatprep.mubr.msk.f32.mxu0 %vm2940_vm1, %v2787_v27  ;;  %v14232_v25 = vpop.f32.mrb[32].mxu1  ;;  %11673 = vmatprep.mubr.msk.f32.mxu1 %vm5320_vm2, %v5060_v55  ;;  %v17698_v27 = vld [vmem:[#allocation76_spill] sm:$0xff] }
 0x30e   : > { %v14237_v7 = vpop.f32.mrb[33].mxu1  ;;  %11674 = vmatmul.mubr.msk.f32.gmra.mrb[138].mxu1 %vm5320_vm2, %v5061_v35  ;;  %v5063_v59 = vmax.f32 %v3821_v44, 0.0  ;;  %v2003_v45 = vadd.f32 %v12615_v18, %v17698_v27 }
 0x30f   : > { %v5062_v63 = vmax.f32 %v3816_v49, 0.0  ;;  %v11291_v24 = vpop.f32.mrb[10].mxu0  ;;  %v2792_v49 = vmax.f32 %v1998_v21, 0.0 }
 0x310   : > { %v3831_v36 = vadd.f32 %v11291_v24, %v14170_v46  ;;  %v3825_v14 = vpop.f32.mrb[11].mxu0  ;;  %11449 = vmatmul.mubr.msk.f32.gmra.mrb[116].mxu0 %vm2940_vm1, %v2788_v43  ;;  %v17699_v43 = vld [vmem:[#allocation75_spill] sm:$0xff] }
 0x311   : > { %v3826_v52 = vadd.f32 %v14170_v46, %v3825_v14  ;;  %11451 = vmatprep.mubr.msk.f32.mxu0 %vm2940_vm1, %v2789_v39  ;;  %v14246_v57 = vpop.f32.mrb[34].mxu1  ;;  %11676 = vmatprep.mubr.msk.f32.mxu1 %vm5320_vm2, %v5062_v63  ;;  %v2008_v32 = vadd.f32 %v12615_v18, %v17699_v43  ;;  %v2793_v39 = vmax.f32 %v2003_v45, 0.0 }
 0x312   : > { %v14251_v40 = vpop.f32.mrb[35].mxu1  ;;  %11677 = vmatmul.mubr.msk.f32.gmra.mrb[140].mxu1 %vm5320_vm2, %v5063_v59  ;;  %v5065_v26 = vmax.f32 %v3831_v36, 0.0 }
 0x313   : > { %v5064_v38 = vmax.f32 %v3826_v52, 0.0  ;;  %v11294_v55 = vpop.f32.mrb[12].mxu0  ;;  %v2794_v52 = vmax.f32 %v2008_v32, 0.0 }
 0x314   : > { %v3841_v35 = vadd.f32 %v11294_v55, %v14170_v46  ;;  %v3835_v44 = vpop.f32.mrb[13].mxu0  ;;  %11452 = vmatmul.mubr.msk.f32.gmra.mrb[118].mxu0 %vm2940_vm1, %v2790_v3 }
 0x315   : > { %v3836_v0 = vadd.f32 %v14170_v46, %v3835_v44  ;;  %11454 = vmatprep.mubr.msk.f32.mxu0 %vm2940_vm1, %v2791_v2  ;;  %v14262_v20 = vpop.f32.mrb[36].mxu1  ;;  %11679 = vmatprep.mubr.msk.f32.mxu1 %vm5320_vm2, %v5064_v38 }
 0x316   : > { %v14266_v9 = vpop.f32.mrb[37].mxu1  ;;  %11680 = vmatmul.mubr.msk.f32.gmra.mrb[142].mxu1 %vm5320_vm2, %v5065_v26  ;;  %v5067_v63 = vmax.f32 %v3841_v35, 0.0 }
 0x317   : > { %v5066_v10 = vmax.f32 %v3836_v0, 0.0  ;;  %v11297_v53 = vpop.f32.mrb[14].mxu0 }
 0x318   : > { %v3851_v24 = vadd.f32 %v11297_v53, %v14170_v46  ;;  %v3845_v59 = vpop.f32.mrb[15].mxu0  ;;  %11455 = vmatmul.mubr.msk.f32.gmra.mrb[120].mxu0 %vm2940_vm1, %v2792_v49 }
 0x319   : > { %v3846_v36 = vadd.f32 %v14170_v46, %v3845_v59  ;;  %11457 = vmatprep.mubr.msk.f32.mxu0 %vm2940_vm1, %v2793_v39  ;;  %v14273_v14 = vpop.f32.mrb[38].mxu1  ;;  %11682 = vmatprep.mubr.msk.f32.mxu1 %vm5320_vm2, %v5066_v10 }
 0x31a   : > { %v14276_v3 = vpop.f32.mrb[39].mxu1  ;;  %11683 = vmatmul.mubr.msk.f32.gmra.mrb[144].mxu1 %vm5320_vm2, %v5067_v63  ;;  %v5069_v2 = vmax.f32 %v3851_v24, 0.0 }
 0x31b   : > { %v5068_v19 = vmax.f32 %v3846_v36, 0.0  ;;  %v11300_v21 = vpop.f32.mrb[16].mxu0 }
 0x31c   : > { %v3861_v18 = vadd.f32 %v11300_v21, %v14170_v46  ;;  %v3855_v27 = vpop.f32.mrb[17].mxu0  ;;  %11458 = vmatmul.mubr.msk.f32.gmra.mrb[122].mxu0 %vm2940_vm1, %v2794_v52 }
 0x31d   : > { %v3856_v45 = vadd.f32 %v14170_v46, %v3855_v27  ;;  %v14282_v38 = vpop.f32.mrb[40].mxu1  ;;  %11685 = vmatprep.mubr.msk.f32.mxu1 %vm5320_vm2, %v5068_v19 }
 0x31e   : > { %v14285_v55 = vpop.f32.mrb[41].mxu1  ;;  %11686 = vmatmul.mubr.msk.f32.gmra.mrb[146].mxu1 %vm5320_vm2, %v5069_v2  ;;  %v5071_v44 = vmax.f32 %v3861_v18, 0.0 }
 0x31f   : > { %v5070_v26 = vmax.f32 %v3856_v45, 0.0  ;;  %v11303_v35 = vpop.f32.mrb[18].mxu0 }
 0x320   : > { %v3871_v0 = vadd.f32 %v11303_v35, %v14170_v46  ;;  %v3865_v49 = vpop.f32.mrb[19].mxu0 }
 0x321   : > { %v3866_v43 = vadd.f32 %v14170_v46, %v3865_v49  ;;  %v14290_v32 = vpop.f32.mrb[42].mxu1  ;;  %11688 = vmatprep.mubr.msk.f32.mxu1 %vm5320_vm2, %v5070_v26 }
 0x322   : > { %v14293_v39 = vpop.f32.mrb[43].mxu1  ;;  %11689 = vmatmul.mubr.msk.f32.gmra.mrb[148].mxu1 %vm5320_vm2, %v5071_v44  ;;  %v5073_v63 = vmax.f32 %v3871_v0, 0.0 }
 0x323   : > { %v5072_v10 = vmax.f32 %v3866_v43, 0.0  ;;  %v11306_v53 = vpop.f32.mrb[20].mxu0 }
 0x324   : > { %v3881_v24 = vadd.f32 %v11306_v53, %v14170_v46  ;;  %v3875_v59 = vpop.f32.mrb[21].mxu0 }
 0x325   : > { %v3876_v36 = vadd.f32 %v14170_v46, %v3875_v59  ;;  %v14298_v52 = vpop.f32.mrb[44].mxu1  ;;  %11691 = vmatprep.mubr.msk.f32.mxu1 %vm5320_vm2, %v5072_v10 }
 0x326   : > { %17700 = vst [vmem:[#allocation2_spill] sm:$0xff] %v14298_v52  ;;  %v14301_v19 = vpop.f32.mrb[45].mxu1  ;;  %11692 = vmatmul.mubr.msk.f32.gmra.mrb[150].mxu1 %vm5320_vm2, %v5073_v63  ;;  %v5075_v18 = vmax.f32 %v3881_v24, 0.0 }
 0x327   : > { %17701 = vst [vmem:[#allocation4_spill] sm:$0xff] %v14301_v19  ;;  %v5074_v21 = vmax.f32 %v3876_v36, 0.0  ;;  %v11309_v2 = vpop.f32.mrb[22].mxu0 }
 0x328   : > { %v3891_v27 = vadd.f32 %v11309_v2, %v14170_v46  ;;  %v3885_v45 = vpop.f32.mrb[23].mxu0 }
 0x329   : > { %v3886_v26 = vadd.f32 %v14170_v46, %v3885_v45  ;;  %v14306_v35 = vpop.f32.mrb[46].mxu1  ;;  %11694 = vmatprep.mubr.msk.f32.mxu1 %vm5320_vm2, %v5074_v21 }
 0x32a   : > { %17702 = vst [vmem:[#allocation3_spill] sm:$0xff] %v14306_v35  ;;  %v14309_v44 = vpop.f32.mrb[47].mxu1  ;;  %11695 = vmatmul.mubr.msk.f32.gmra.mrb[152].mxu1 %vm5320_vm2, %v5075_v18  ;;  %v5077_v43 = vmax.f32 %v3891_v27, 0.0 }
 0x32b   : > { %17703 = vst [vmem:[#allocation6_spill] sm:$0xff] %v14309_v44  ;;  %v5076_v0 = vmax.f32 %v3886_v26, 0.0  ;;  %v11312_v49 = vpop.f32.mrb[24].mxu0 }
 0x32c   : > { %v3901_v10 = vadd.f32 %v11312_v49, %v14170_v46  ;;  %v3895_v53 = vpop.f32.mrb[25].mxu0 }
 0x32d   : > { %v3896_v63 = vadd.f32 %v14170_v46, %v3895_v53  ;;  %v14314_v24 = vpop.f32.mrb[48].mxu1  ;;  %11697 = vmatprep.mubr.msk.f32.mxu1 %vm5320_vm2, %v5076_v0 }
 0x32e   : > { %17704 = vst [vmem:[#allocation5_spill] sm:$0xff] %v14314_v24  ;;  %v14317_v59 = vpop.f32.mrb[49].mxu1  ;;  %11698 = vmatmul.mubr.msk.f32.gmra.mrb[154].mxu1 %vm5320_vm2, %v5077_v43  ;;  %v5079_v2 = vmax.f32 %v3901_v10, 0.0 }
 0x32f   : > { %17705 = vst [vmem:[#allocation8_spill] sm:$0xff] %v14317_v59  ;;  %v5078_v36 = vmax.f32 %v3896_v63, 0.0  ;;  %v11315_v21 = vpop.f32.mrb[26].mxu0 }
 0x330   : > { %v3911_v18 = vadd.f32 %v11315_v21, %v14170_v46  ;;  %v3905_v45 = vpop.f32.mrb[27].mxu0 }
 0x331   : > { %v3906_v27 = vadd.f32 %v14170_v46, %v3905_v45  ;;  %v14322_v26 = vpop.f32.mrb[50].mxu1  ;;  %11700 = vmatprep.mubr.msk.f32.mxu1 %vm5320_vm2, %v5078_v36 }
 0x332   : > { %17706 = vst [vmem:[#allocation7_spill] sm:$0xff] %v14322_v26  ;;  %v14325_v49 = vpop.f32.mrb[51].mxu1  ;;  %11701 = vmatmul.mubr.msk.f32.gmra.mrb[156].mxu1 %vm5320_vm2, %v5079_v2  ;;  %v5081_v24 = vmax.f32 %v3911_v18, 0.0 }
 0x333   : > { %17707 = vst [vmem:[#allocation10_spill] sm:$0xff] %v14325_v49  ;;  %v5080_v0 = vmax.f32 %v3906_v27, 0.0  ;;  %v11318_v53 = vpop.f32.mrb[28].mxu0 }
 0x334   : > { %v3921_v43 = vadd.f32 %v11318_v53, %v14170_v46  ;;  %v3915_v63 = vpop.f32.mrb[29].mxu0 }
 0x335   : > { %v3916_v10 = vadd.f32 %v14170_v46, %v3915_v63  ;;  %v14330_v21 = vpop.f32.mrb[52].mxu1  ;;  %11703 = vmatprep.mubr.msk.f32.mxu1 %vm5320_vm2, %v5080_v0 }
 0x336   : > { %17708 = vst [vmem:[#allocation9_spill] sm:$0xff] %v14330_v21  ;;  %v14333_v45 = vpop.f32.mrb[53].mxu1  ;;  %11704 = vmatmul.mubr.msk.f32.gmra.mrb[158].mxu1 %vm5320_vm2, %v5081_v24  ;;  %v5083_v49 = vmax.f32 %v3921_v43, 0.0 }
 0x337   : > { %17709 = vst [vmem:[#allocation12_spill] sm:$0xff] %v14333_v45  ;;  %v5082_v36 = vmax.f32 %v3916_v10, 0.0  ;;  %v11321_v26 = vpop.f32.mrb[30].mxu0 }
 0x338   : > { %v3931_v2 = vadd.f32 %v11321_v26, %v14170_v46  ;;  %v3925_v27 = vpop.f32.mrb[31].mxu0 }
 0x339   : > { %v3926_v18 = vadd.f32 %v14170_v46, %v3925_v27  ;;  %v14338_v53 = vpop.f32.mrb[54].mxu1  ;;  %11706 = vmatprep.mubr.msk.f32.mxu1 %vm5320_vm2, %v5082_v36 }
 0x33a   : > { %17710 = vst [vmem:[#allocation11_spill] sm:$0xff] %v14338_v53  ;;  %v14341_v63 = vpop.f32.mrb[55].mxu1  ;;  %11707 = vmatmul.mubr.msk.f32.gmra.mrb[160].mxu1 %vm5320_vm2, %v5083_v49  ;;  %v5085_v45 = vmax.f32 %v3931_v2, 0.0 }
 0x33b   : > { %17711 = vst [vmem:[#allocation14_spill] sm:$0xff] %v14341_v63  ;;  %v5084_v0 = vmax.f32 %v3926_v18, 0.0  ;;  %v11324_v21 = vpop.f32.mrb[32].mxu0 }
 0x33c   : > { %v3941_v24 = vadd.f32 %v11324_v21, %v14170_v46  ;;  %v3935_v10 = vpop.f32.mrb[33].mxu0 }
 0x33d   : > { %v3936_v43 = vadd.f32 %v14170_v46, %v3935_v10  ;;  %v14346_v26 = vpop.f32.mrb[56].mxu1  ;;  %11709 = vmatprep.mubr.msk.f32.mxu1 %vm5320_vm2, %v5084_v0 }
 0x33e   : > { %17712 = vst [vmem:[#allocation13_spill] sm:$0xff] %v14346_v26  ;;  %v14349_v27 = vpop.f32.mrb[57].mxu1  ;;  %11710 = vmatmul.mubr.msk.f32.gmra.mrb[162].mxu1 %vm5320_vm2, %v5085_v45  ;;  %v5087_v63 = vmax.f32 %v3941_v24, 0.0 }
 0x33f   : > { %17713 = vst [vmem:[#allocation16_spill] sm:$0xff] %v14349_v27  ;;  %v5086_v36 = vmax.f32 %v3936_v43, 0.0  ;;  %v11327_v53 = vpop.f32.mrb[34].mxu0 }
 0x340   : > { %v3951_v49 = vadd.f32 %v11327_v53, %v14170_v46  ;;  %v3945_v18 = vpop.f32.mrb[35].mxu0 }
 0x341   : > { %v3946_v2 = vadd.f32 %v14170_v46, %v3945_v18  ;;  %v14354_v21 = vpop.f32.mrb[58].mxu1  ;;  %11712 = vmatprep.mubr.msk.f32.mxu1 %vm5320_vm2, %v5086_v36 }
 0x342   : > { %17714 = vst [vmem:[#allocation15_spill] sm:$0xff] %v14354_v21  ;;  %v14357_v10 = vpop.f32.mrb[59].mxu1  ;;  %11713 = vmatmul.mubr.msk.f32.gmra.mrb[164].mxu1 %vm5320_vm2, %v5087_v63  ;;  %v5089_v27 = vmax.f32 %v3951_v49, 0.0 }
 0x343   : > { %17715 = vst [vmem:[#allocation18_spill] sm:$0xff] %v14357_v10  ;;  %v5088_v0 = vmax.f32 %v3946_v2, 0.0  ;;  %v11330_v26 = vpop.f32.mrb[36].mxu0 }
 0x344   : > { %v3961_v45 = vadd.f32 %v11330_v26, %v14170_v46  ;;  %v3955_v43 = vpop.f32.mrb[37].mxu0 }
 0x345   : > { %v3956_v24 = vadd.f32 %v14170_v46, %v3955_v43  ;;  %v14362_v53 = vpop.f32.mrb[60].mxu1  ;;  %11715 = vmatprep.mubr.msk.f32.mxu1 %vm5320_vm2, %v5088_v0 }
 0x346   : > { %17716 = vst [vmem:[#allocation17_spill] sm:$0xff] %v14362_v53  ;;  %v14365_v18 = vpop.f32.mrb[61].mxu1  ;;  %11716 = vmatmul.mubr.msk.f32.gmra.mrb[166].mxu1 %vm5320_vm2, %v5089_v27  ;;  %v5091_v10 = vmax.f32 %v3961_v45, 0.0 }
 0x347   : > { %17717 = vst [vmem:[#allocation20_spill] sm:$0xff] %v14365_v18  ;;  %v5090_v36 = vmax.f32 %v3956_v24, 0.0  ;;  %v11333_v21 = vpop.f32.mrb[38].mxu0 }
 0x348   : > { %v3971_v63 = vadd.f32 %v11333_v21, %v14170_v46  ;;  %v3965_v2 = vpop.f32.mrb[39].mxu0 }
 0x349   : > { %v3966_v49 = vadd.f32 %v14170_v46, %v3965_v2  ;;  %v14370_v26 = vpop.f32.mrb[62].mxu1  ;;  %11718 = vmatprep.mubr.msk.f32.mxu1 %vm5320_vm2, %v5090_v36 }
 0x34a   : > { %17718 = vst [vmem:[#allocation19_spill] sm:$0xff] %v14370_v26  ;;  %v14373_v43 = vpop.f32.mrb[63].mxu1  ;;  %11719 = vmatmul.mubr.msk.f32.gmra.mrb[168].mxu1 %vm5320_vm2, %v5091_v10  ;;  %v5093_v18 = vmax.f32 %v3971_v63, 0.0 }
 0x34b   : > { %17719 = vst [vmem:[#allocation22_spill] sm:$0xff] %v14373_v43  ;;  %v5092_v0 = vmax.f32 %v3966_v49, 0.0  ;;  %v11336_v53 = vpop.f32.mrb[40].mxu0 }
 0x34c   : > { %v3981_v27 = vadd.f32 %v11336_v53, %v14170_v46  ;;  %v3975_v24 = vpop.f32.mrb[41].mxu0 }
 0x34d   : > { %v3976_v45 = vadd.f32 %v14170_v46, %v3975_v24  ;;  %v14378_v21 = vpop.f32.mrb[64].mxu1  ;;  %11721 = vmatprep.mubr.msk.f32.mxu1 %vm5320_vm2, %v5092_v0 }
 0x34e   : > { %17720 = vst [vmem:[#allocation21_spill] sm:$0xff] %v14378_v21  ;;  %v14381_v2 = vpop.f32.mrb[65].mxu1  ;;  %11722 = vmatmul.mubr.msk.f32.gmra.mrb[170].mxu1 %vm5320_vm2, %v5093_v18  ;;  %v5095_v43 = vmax.f32 %v3981_v27, 0.0 }
 0x34f   : > { %17721 = vst [vmem:[#allocation24_spill] sm:$0xff] %v14381_v2  ;;  %v5094_v36 = vmax.f32 %v3976_v45, 0.0  ;;  %v11339_v26 = vpop.f32.mrb[42].mxu0 }
 0x350   : > { %v3991_v10 = vadd.f32 %v11339_v26, %v14170_v46  ;;  %v3985_v49 = vpop.f32.mrb[43].mxu0 }
 0x351   : > { %v3986_v63 = vadd.f32 %v14170_v46, %v3985_v49  ;;  %v14386_v53 = vpop.f32.mrb[66].mxu1  ;;  %11724 = vmatprep.mubr.msk.f32.mxu1 %vm5320_vm2, %v5094_v36 }
 0x352   : > { %17722 = vst [vmem:[#allocation23_spill] sm:$0xff] %v14386_v53  ;;  %v14389_v24 = vpop.f32.mrb[67].mxu1  ;;  %11725 = vmatmul.mubr.msk.f32.gmra.mrb[172].mxu1 %vm5320_vm2, %v5095_v43  ;;  %v5097_v2 = vmax.f32 %v3991_v10, 0.0 }
 0x353   : > { %17723 = vst [vmem:[#allocation26_spill] sm:$0xff] %v14389_v24  ;;  %v5096_v0 = vmax.f32 %v3986_v63, 0.0  ;;  %v11342_v21 = vpop.f32.mrb[44].mxu0 }
 0x354   : > { %v4001_v18 = vadd.f32 %v11342_v21, %v14170_v46  ;;  %v3995_v45 = vpop.f32.mrb[45].mxu0 }
 0x355   : > { %v3996_v27 = vadd.f32 %v14170_v46, %v3995_v45  ;;  %v14394_v26 = vpop.f32.mrb[68].mxu1  ;;  %11727 = vmatprep.mubr.msk.f32.mxu1 %vm5320_vm2, %v5096_v0 }
 0x356   : > { %17724 = vst [vmem:[#allocation25_spill] sm:$0xff] %v14394_v26  ;;  %v14397_v49 = vpop.f32.mrb[69].mxu1  ;;  %11728 = vmatmul.mubr.msk.f32.gmra.mrb[174].mxu1 %vm5320_vm2, %v5097_v2  ;;  %v5099_v24 = vmax.f32 %v4001_v18, 0.0 }
 0x357   : > { %17725 = vst [vmem:[#allocation28_spill] sm:$0xff] %v14397_v49  ;;  %v5098_v36 = vmax.f32 %v3996_v27, 0.0  ;;  %v11345_v53 = vpop.f32.mrb[46].mxu0 }
 0x358   : > { %v4011_v43 = vadd.f32 %v11345_v53, %v14170_v46  ;;  %v4005_v63 = vpop.f32.mrb[47].mxu0 }
 0x359   : > { %v4006_v10 = vadd.f32 %v14170_v46, %v4005_v63  ;;  %v14402_v21 = vpop.f32.mrb[70].mxu1  ;;  %11730 = vmatprep.mubr.msk.f32.mxu1 %vm5320_vm2, %v5098_v36 }
 0x35a   : > { %17726 = vst [vmem:[#allocation27_spill] sm:$0xff] %v14402_v21  ;;  %v14405_v45 = vpop.f32.mrb[71].mxu1  ;;  %11731 = vmatmul.mubr.msk.f32.gmra.mrb[176].mxu1 %vm5320_vm2, %v5099_v24  ;;  %v5101_v49 = vmax.f32 %v4011_v43, 0.0 }
 0x35b   : > { %17727 = vst [vmem:[#allocation30_spill] sm:$0xff] %v14405_v45  ;;  %v5100_v0 = vmax.f32 %v4006_v10, 0.0  ;;  %v11348_v26 = vpop.f32.mrb[48].mxu0 }
 0x35c   : > { %v4021_v2 = vadd.f32 %v11348_v26, %v14170_v46  ;;  %v4015_v27 = vpop.f32.mrb[49].mxu0 }
 0x35d   : > { %v4016_v18 = vadd.f32 %v14170_v46, %v4015_v27  ;;  %v14410_v53 = vpop.f32.mrb[72].mxu1  ;;  %11733 = vmatprep.mubr.msk.f32.mxu1 %vm5320_vm2, %v5100_v0 }
 0x35e   : > { %17728 = vst [vmem:[#allocation29_spill] sm:$0xff] %v14410_v53  ;;  %v14413_v63 = vpop.f32.mrb[73].mxu1  ;;  %11734 = vmatmul.mubr.msk.f32.gmra.mrb[178].mxu1 %vm5320_vm2, %v5101_v49  ;;  %v5103_v45 = vmax.f32 %v4021_v2, 0.0 }
 0x35f   : > { %17729 = vst [vmem:[#allocation32_spill] sm:$0xff] %v14413_v63  ;;  %v5102_v36 = vmax.f32 %v4016_v18, 0.0  ;;  %v11351_v21 = vpop.f32.mrb[50].mxu0 }
 0x360   : > { %v4031_v24 = vadd.f32 %v11351_v21, %v14170_v46  ;;  %v4025_v10 = vpop.f32.mrb[51].mxu0 }
 0x361   : > { %v4026_v43 = vadd.f32 %v14170_v46, %v4025_v10  ;;  %v14418_v26 = vpop.f32.mrb[74].mxu1  ;;  %11736 = vmatprep.mubr.msk.f32.mxu1 %vm5320_vm2, %v5102_v36 }
 0x362   : > { %17730 = vst [vmem:[#allocation31_spill] sm:$0xff] %v14418_v26  ;;  %v14421_v27 = vpop.f32.mrb[75].mxu1  ;;  %11737 = vmatmul.mubr.msk.f32.gmra.mrb[180].mxu1 %vm5320_vm2, %v5103_v45  ;;  %v5105_v63 = vmax.f32 %v4031_v24, 0.0 }
 0x363   : > { %17731 = vst [vmem:[#allocation34_spill] sm:$0xff] %v14421_v27  ;;  %v5104_v0 = vmax.f32 %v4026_v43, 0.0  ;;  %v11354_v53 = vpop.f32.mrb[52].mxu0 }
 0x364   : > { %v4041_v49 = vadd.f32 %v11354_v53, %v14170_v46  ;;  %v4035_v18 = vpop.f32.mrb[53].mxu0 }
 0x365   : > { %v4036_v2 = vadd.f32 %v14170_v46, %v4035_v18  ;;  %v14426_v21 = vpop.f32.mrb[76].mxu1  ;;  %11739 = vmatprep.mubr.msk.f32.mxu1 %vm5320_vm2, %v5104_v0 }
 0x366   : > { %17732 = vst [vmem:[#allocation33_spill] sm:$0xff] %v14426_v21  ;;  %v14429_v10 = vpop.f32.mrb[77].mxu1  ;;  %11740 = vmatmul.mubr.msk.f32.gmra.mrb[182].mxu1 %vm5320_vm2, %v5105_v63  ;;  %v5107_v27 = vmax.f32 %v4041_v49, 0.0 }
 0x367   : > { %17733 = vst [vmem:[#allocation36_spill] sm:$0xff] %v14429_v10  ;;  %v5106_v36 = vmax.f32 %v4036_v2, 0.0  ;;  %v11357_v26 = vpop.f32.mrb[54].mxu0 }
 0x368   : > { %v4051_v45 = vadd.f32 %v11357_v26, %v14170_v46  ;;  %v4045_v43 = vpop.f32.mrb[55].mxu0 }
 0x369   : > { %v4046_v24 = vadd.f32 %v14170_v46, %v4045_v43  ;;  %v14434_v53 = vpop.f32.mrb[78].mxu1  ;;  %11742 = vmatprep.mubr.msk.f32.mxu1 %vm5320_vm2, %v5106_v36 }
 0x36a   : > { %17734 = vst [vmem:[#allocation35_spill] sm:$0xff] %v14434_v53  ;;  %v14437_v18 = vpop.f32.mrb[79].mxu1  ;;  %11743 = vmatmul.mubr.msk.f32.gmra.mrb[184].mxu1 %vm5320_vm2, %v5107_v27  ;;  %v5109_v10 = vmax.f32 %v4051_v45, 0.0 }
 0x36b   : > { %17735 = vst [vmem:[#allocation38_spill] sm:$0xff] %v14437_v18  ;;  %v5108_v0 = vmax.f32 %v4046_v24, 0.0  ;;  %v11360_v21 = vpop.f32.mrb[56].mxu0 }
 0x36c   : > { %v4061_v63 = vadd.f32 %v11360_v21, %v14170_v46  ;;  %v4055_v2 = vpop.f32.mrb[57].mxu0 }
 0x36d   : > { %v4056_v49 = vadd.f32 %v14170_v46, %v4055_v2  ;;  %v14442_v26 = vpop.f32.mrb[80].mxu1  ;;  %11745 = vmatprep.mubr.msk.f32.mxu1 %vm5320_vm2, %v5108_v0 }
 0x36e   : > { %17736 = vst [vmem:[#allocation37_spill] sm:$0xff] %v14442_v26  ;;  %v14445_v43 = vpop.f32.mrb[81].mxu1  ;;  %11746 = vmatmul.mubr.msk.f32.gmra.mrb[186].mxu1 %vm5320_vm2, %v5109_v10  ;;  %v5111_v18 = vmax.f32 %v4061_v63, 0.0 }
 0x36f   : > { %17737 = vst [vmem:[#allocation40_spill] sm:$0xff] %v14445_v43  ;;  %v5110_v36 = vmax.f32 %v4056_v49, 0.0  ;;  %v11363_v53 = vpop.f32.mrb[58].mxu0 }
 0x370   : > { %v4071_v27 = vadd.f32 %v11363_v53, %v14170_v46  ;;  %v4065_v24 = vpop.f32.mrb[59].mxu0 }
 0x371   : > { %v4066_v45 = vadd.f32 %v14170_v46, %v4065_v24  ;;  %v14450_v21 = vpop.f32.mrb[82].mxu1  ;;  %11748 = vmatprep.mubr.msk.f32.mxu1 %vm5320_vm2, %v5110_v36 }
 0x372   : > { %17738 = vst [vmem:[#allocation39_spill] sm:$0xff] %v14450_v21  ;;  %v14453_v2 = vpop.f32.mrb[83].mxu1  ;;  %11749 = vmatmul.mubr.msk.f32.gmra.mrb[188].mxu1 %vm5320_vm2, %v5111_v18  ;;  %v5113_v43 = vmax.f32 %v4071_v27, 0.0 }
 0x373   : > { %17739 = vst [vmem:[#allocation42_spill] sm:$0xff] %v14453_v2  ;;  %v5112_v0 = vmax.f32 %v4066_v45, 0.0  ;;  %v11366_v26 = vpop.f32.mrb[60].mxu0 }
 0x374   : > { %v4081_v10 = vadd.f32 %v11366_v26, %v14170_v46  ;;  %v4075_v49 = vpop.f32.mrb[61].mxu0 }
 0x375   : > { %v4076_v63 = vadd.f32 %v14170_v46, %v4075_v49  ;;  %v14458_v53 = vpop.f32.mrb[84].mxu1  ;;  %11751 = vmatprep.mubr.msk.f32.mxu1 %vm5320_vm2, %v5112_v0 }
 0x376   : > { %17740 = vst [vmem:[#allocation41_spill] sm:$0xff] %v14458_v53  ;;  %v14461_v24 = vpop.f32.mrb[85].mxu1  ;;  %11752 = vmatmul.mubr.msk.f32.gmra.mrb[190].mxu1 %vm5320_vm2, %v5113_v43  ;;  %v5115_v2 = vmax.f32 %v4081_v10, 0.0 }
 0x377   : > { %17741 = vst [vmem:[#allocation44_spill] sm:$0xff] %v14461_v24  ;;  %v5114_v36 = vmax.f32 %v4076_v63, 0.0  ;;  %v11369_v21 = vpop.f32.mrb[62].mxu0 }
 0x378   : > { %v4091_v18 = vadd.f32 %v11369_v21, %v14170_v46  ;;  %v4085_v45 = vpop.f32.mrb[63].mxu0 }
 0x379   : > { %v4086_v27 = vadd.f32 %v14170_v46, %v4085_v45  ;;  %v14466_v26 = vpop.f32.mrb[86].mxu1  ;;  %11754 = vmatprep.mubr.msk.f32.mxu1 %vm5320_vm2, %v5114_v36 }
 0x37a   : > { %17742 = vst [vmem:[#allocation43_spill] sm:$0xff] %v14466_v26  ;;  %v14469_v49 = vpop.f32.mrb[87].mxu1  ;;  %11755 = vmatmul.mubr.msk.f32.gmra.mrb[192].mxu1 %vm5320_vm2, %v5115_v2  ;;  %v5117_v24 = vmax.f32 %v4091_v18, 0.0 }
 0x37b   : > { %17743 = vst [vmem:[#allocation46_spill] sm:$0xff] %v14469_v49  ;;  %v5116_v0 = vmax.f32 %v4086_v27, 0.0  ;;  %v11372_v53 = vpop.f32.mrb[64].mxu0 }
 0x37c   : > { %v4101_v43 = vadd.f32 %v11372_v53, %v14170_v46  ;;  %v4095_v63 = vpop.f32.mrb[65].mxu0 }
 0x37d   : > { %v4096_v10 = vadd.f32 %v14170_v46, %v4095_v63  ;;  %v14474_v21 = vpop.f32.mrb[88].mxu1  ;;  %11757 = vmatprep.mubr.msk.f32.mxu1 %vm5320_vm2, %v5116_v0 }
 0x37e   : > { %17744 = vst [vmem:[#allocation45_spill] sm:$0xff] %v14474_v21  ;;  %v14477_v45 = vpop.f32.mrb[89].mxu1  ;;  %11758 = vmatmul.mubr.msk.f32.gmra.mrb[194].mxu1 %vm5320_vm2, %v5117_v24  ;;  %v5119_v49 = vmax.f32 %v4101_v43, 0.0 }
 0x37f   : > { %17745 = vst [vmem:[#allocation48_spill] sm:$0xff] %v14477_v45  ;;  %v5118_v36 = vmax.f32 %v4096_v10, 0.0  ;;  %v11375_v26 = vpop.f32.mrb[66].mxu0 }
 0x380   : > { %v4111_v2 = vadd.f32 %v11375_v26, %v14170_v46  ;;  %v4105_v27 = vpop.f32.mrb[67].mxu0 }
 0x381   : > { %v4106_v18 = vadd.f32 %v14170_v46, %v4105_v27  ;;  %v14482_v53 = vpop.f32.mrb[90].mxu1  ;;  %11760 = vmatprep.mubr.msk.f32.mxu1 %vm5320_vm2, %v5118_v36 }
 0x382   : > { %17746 = vst [vmem:[#allocation47_spill] sm:$0xff] %v14482_v53  ;;  %v14485_v63 = vpop.f32.mrb[91].mxu1  ;;  %11761 = vmatmul.mubr.msk.f32.gmra.mrb[196].mxu1 %vm5320_vm2, %v5119_v49  ;;  %v5121_v45 = vmax.f32 %v4111_v2, 0.0 }
 0x383   : > { %17747 = vst [vmem:[#allocation50_spill] sm:$0xff] %v14485_v63  ;;  %v5120_v0 = vmax.f32 %v4106_v18, 0.0  ;;  %v11378_v21 = vpop.f32.mrb[68].mxu0 }
 0x384   : > { %v4121_v24 = vadd.f32 %v11378_v21, %v14170_v46  ;;  %v4115_v10 = vpop.f32.mrb[69].mxu0 }
 0x385   : > { %v4116_v43 = vadd.f32 %v14170_v46, %v4115_v10  ;;  %v14490_v26 = vpop.f32.mrb[92].mxu1  ;;  %11763 = vmatprep.mubr.msk.f32.mxu1 %vm5320_vm2, %v5120_v0 }
 0x386   : > { %17748 = vst [vmem:[#allocation49_spill] sm:$0xff] %v14490_v26  ;;  %v14493_v27 = vpop.f32.mrb[93].mxu1  ;;  %11764 = vmatmul.mubr.msk.f32.gmra.mrb[198].mxu1 %vm5320_vm2, %v5121_v45  ;;  %v5123_v63 = vmax.f32 %v4121_v24, 0.0 }
 0x387   : > { %17749 = vst [vmem:[#allocation52_spill] sm:$0xff] %v14493_v27  ;;  %v5122_v36 = vmax.f32 %v4116_v43, 0.0  ;;  %v11381_v53 = vpop.f32.mrb[70].mxu0 }
 0x388   : > { %v4131_v49 = vadd.f32 %v11381_v53, %v14170_v46  ;;  %v4125_v18 = vpop.f32.mrb[71].mxu0 }
 0x389   : > { %v4126_v2 = vadd.f32 %v14170_v46, %v4125_v18  ;;  %v14498_v21 = vpop.f32.mrb[94].mxu1  ;;  %11766 = vmatprep.mubr.msk.f32.mxu1 %vm5320_vm2, %v5122_v36 }
 0x38a   : > { %17750 = vst [vmem:[#allocation51_spill] sm:$0xff] %v14498_v21  ;;  %v14501_v10 = vpop.f32.mrb[95].mxu1  ;;  %11767 = vmatmul.mubr.msk.f32.gmra.mrb[200].mxu1 %vm5320_vm2, %v5123_v63  ;;  %v5125_v27 = vmax.f32 %v4131_v49, 0.0 }
 0x38b   : > { %17751 = vst [vmem:[#allocation54_spill] sm:$0xff] %v14501_v10  ;;  %v5124_v0 = vmax.f32 %v4126_v2, 0.0  ;;  %v11384_v26 = vpop.f32.mrb[72].mxu0 }
 0x38c   : > { %v4141_v45 = vadd.f32 %v11384_v26, %v14170_v46  ;;  %v4135_v43 = vpop.f32.mrb[73].mxu0 }
 0x38d   : > { %v4136_v24 = vadd.f32 %v14170_v46, %v4135_v43  ;;  %v14506_v53 = vpop.f32.mrb[96].mxu1  ;;  %11769 = vmatprep.mubr.msk.f32.mxu1 %vm5320_vm2, %v5124_v0 }
 0x38e   : > { %17752 = vst [vmem:[#allocation53_spill] sm:$0xff] %v14506_v53  ;;  %v14509_v18 = vpop.f32.mrb[97].mxu1  ;;  %11770 = vmatmul.mubr.msk.f32.gmra.mrb[202].mxu1 %vm5320_vm2, %v5125_v27  ;;  %v5127_v10 = vmax.f32 %v4141_v45, 0.0 }
 0x38f   : > { %17753 = vst [vmem:[#allocation56_spill] sm:$0xff] %v14509_v18  ;;  %v5126_v36 = vmax.f32 %v4136_v24, 0.0  ;;  %v11387_v21 = vpop.f32.mrb[74].mxu0 }
 0x390   : > { %v4151_v63 = vadd.f32 %v11387_v21, %v14170_v46  ;;  %v4145_v2 = vpop.f32.mrb[75].mxu0 }
 0x391   : > { %v4146_v49 = vadd.f32 %v14170_v46, %v4145_v2  ;;  %v14514_v26 = vpop.f32.mrb[98].mxu1  ;;  %11772 = vmatprep.mubr.msk.f32.mxu1 %vm5320_vm2, %v5126_v36 }
 0x392   : > { %17754 = vst [vmem:[#allocation55_spill] sm:$0xff] %v14514_v26  ;;  %v14517_v43 = vpop.f32.mrb[99].mxu1  ;;  %11773 = vmatmul.mubr.msk.f32.gmra.mrb[204].mxu1 %vm5320_vm2, %v5127_v10  ;;  %v5129_v18 = vmax.f32 %v4151_v63, 0.0 }
 0x393   : > { %17755 = vst [vmem:[#allocation58_spill] sm:$0xff] %v14517_v43  ;;  %v5128_v0 = vmax.f32 %v4146_v49, 0.0  ;;  %v11390_v53 = vpop.f32.mrb[76].mxu0 }
 0x394   : > { %v4161_v27 = vadd.f32 %v11390_v53, %v14170_v46  ;;  %v4155_v24 = vpop.f32.mrb[77].mxu0 }
 0x395   : > { %v4156_v45 = vadd.f32 %v14170_v46, %v4155_v24  ;;  %v14522_v21 = vpop.f32.mrb[100].mxu1  ;;  %11775 = vmatprep.mubr.msk.f32.mxu1 %vm5320_vm2, %v5128_v0 }
 0x396   : > { %17756 = vst [vmem:[#allocation57_spill] sm:$0xff] %v14522_v21  ;;  %v14525_v2 = vpop.f32.mrb[101].mxu1  ;;  %11776 = vmatmul.mubr.msk.f32.gmra.mrb[206].mxu1 %vm5320_vm2, %v5129_v18  ;;  %v5131_v43 = vmax.f32 %v4161_v27, 0.0 }
 0x397   : > { %17757 = vst [vmem:[#allocation60_spill] sm:$0xff] %v14525_v2  ;;  %v5130_v36 = vmax.f32 %v4156_v45, 0.0  ;;  %v11393_v26 = vpop.f32.mrb[78].mxu0 }
 0x398   : > { %v4171_v10 = vadd.f32 %v11393_v26, %v14170_v46  ;;  %v4165_v49 = vpop.f32.mrb[79].mxu0 }
 0x399   : > { %v4166_v63 = vadd.f32 %v14170_v46, %v4165_v49  ;;  %v14530_v53 = vpop.f32.mrb[102].mxu1  ;;  %11778 = vmatprep.mubr.msk.f32.mxu1 %vm5320_vm2, %v5130_v36 }
 0x39a   : > { %17758 = vst [vmem:[#allocation59_spill] sm:$0xff] %v14530_v53  ;;  %v14533_v24 = vpop.f32.mrb[103].mxu1  ;;  %11779 = vmatmul.mubr.msk.f32.gmra.mrb[208].mxu1 %vm5320_vm2, %v5131_v43  ;;  %v5133_v2 = vmax.f32 %v4171_v10, 0.0 }
 0x39b   : > { %17759 = vst [vmem:[#allocation62_spill] sm:$0xff] %v14533_v24  ;;  %v5132_v0 = vmax.f32 %v4166_v63, 0.0  ;;  %v11396_v21 = vpop.f32.mrb[80].mxu0 }
 0x39c   : > { %v4181_v18 = vadd.f32 %v11396_v21, %v14170_v46  ;;  %v4175_v45 = vpop.f32.mrb[81].mxu0 }
 0x39d   : > { %v4176_v27 = vadd.f32 %v14170_v46, %v4175_v45  ;;  %v14538_v26 = vpop.f32.mrb[104].mxu1  ;;  %11781 = vmatprep.mubr.msk.f32.mxu1 %vm5320_vm2, %v5132_v0 }
 0x39e   : > { %17760 = vst [vmem:[#allocation61_spill] sm:$0xff] %v14538_v26  ;;  %v14541_v49 = vpop.f32.mrb[105].mxu1  ;;  %11782 = vmatmul.mubr.msk.f32.gmra.mrb[210].mxu1 %vm5320_vm2, %v5133_v2  ;;  %v5135_v24 = vmax.f32 %v4181_v18, 0.0 }
 0x39f   : > { %17761 = vst [vmem:[#allocation64_spill] sm:$0xff] %v14541_v49  ;;  %v5134_v36 = vmax.f32 %v4176_v27, 0.0  ;;  %v11399_v53 = vpop.f32.mrb[82].mxu0 }
 0x3a0   : > { %v4191_v43 = vadd.f32 %v11399_v53, %v14170_v46  ;;  %v4185_v63 = vpop.f32.mrb[83].mxu0 }
 0x3a1   : > { %v4186_v10 = vadd.f32 %v14170_v46, %v4185_v63  ;;  %v14546_v21 = vpop.f32.mrb[106].mxu1  ;;  %11784 = vmatprep.mubr.msk.f32.mxu1 %vm5320_vm2, %v5134_v36 }
 0x3a2   : > { %17762 = vst [vmem:[#allocation63_spill] sm:$0xff] %v14546_v21  ;;  %v14549_v45 = vpop.f32.mrb[107].mxu1  ;;  %11785 = vmatmul.mubr.msk.f32.gmra.mrb[212].mxu1 %vm5320_vm2, %v5135_v24  ;;  %v5137_v49 = vmax.f32 %v4191_v43, 0.0 }
 0x3a3   : > { %17763 = vst [vmem:[#allocation66_spill] sm:$0xff] %v14549_v45  ;;  %v5136_v0 = vmax.f32 %v4186_v10, 0.0  ;;  %v11402_v26 = vpop.f32.mrb[84].mxu0 }
 0x3a4   : > { %v4201_v2 = vadd.f32 %v11402_v26, %v14170_v46  ;;  %v4195_v27 = vpop.f32.mrb[85].mxu0 }
 0x3a5   : > { %v4196_v18 = vadd.f32 %v14170_v46, %v4195_v27  ;;  %v14554_v53 = vpop.f32.mrb[108].mxu1  ;;  %11787 = vmatprep.mubr.msk.f32.mxu1 %vm5320_vm2, %v5136_v0 }
 0x3a6   : > { %17764 = vst [vmem:[#allocation65_spill] sm:$0xff] %v14554_v53  ;;  %v14557_v63 = vpop.f32.mrb[109].mxu1  ;;  %11788 = vmatmul.mubr.msk.f32.gmra.mrb[214].mxu1 %vm5320_vm2, %v5137_v49  ;;  %v5139_v45 = vmax.f32 %v4201_v2, 0.0 }
 0x3a7   : > { %17765 = vst [vmem:[#allocation68_spill] sm:$0xff] %v14557_v63  ;;  %v5138_v36 = vmax.f32 %v4196_v18, 0.0  ;;  %v11405_v21 = vpop.f32.mrb[86].mxu0 }
 0x3a8   : > { %v4211_v24 = vadd.f32 %v11405_v21, %v14170_v46  ;;  %v4205_v10 = vpop.f32.mrb[87].mxu0 }
 0x3a9   : > { %v4206_v43 = vadd.f32 %v14170_v46, %v4205_v10  ;;  %v14562_v26 = vpop.f32.mrb[110].mxu1  ;;  %11790 = vmatprep.mubr.msk.f32.mxu1 %vm5320_vm2, %v5138_v36 }
 0x3aa   : > { %17766 = vst [vmem:[#allocation67_spill] sm:$0xff] %v14562_v26  ;;  %v14565_v27 = vpop.f32.mrb[111].mxu1  ;;  %11791 = vmatmul.mubr.msk.f32.gmra.mrb[216].mxu1 %vm5320_vm2, %v5139_v45  ;;  %v5141_v63 = vmax.f32 %v4211_v24, 0.0 }
 0x3ab   : > { %17767 = vst [vmem:[#allocation70_spill] sm:$0xff] %v14565_v27  ;;  %v5140_v0 = vmax.f32 %v4206_v43, 0.0  ;;  %v11408_v53 = vpop.f32.mrb[88].mxu0 }
 0x3ac   : > { %v4221_v49 = vadd.f32 %v11408_v53, %v14170_v46  ;;  %v4215_v18 = vpop.f32.mrb[89].mxu0 }
 0x3ad   : > { %v4216_v2 = vadd.f32 %v14170_v46, %v4215_v18  ;;  %v14570_v21 = vpop.f32.mrb[112].mxu1  ;;  %11793 = vmatprep.mubr.msk.f32.mxu1 %vm5320_vm2, %v5140_v0 }
 0x3ae   : > { %17768 = vst [vmem:[#allocation69_spill] sm:$0xff] %v14570_v21  ;;  %v14573_v10 = vpop.f32.mrb[113].mxu1  ;;  %11794 = vmatmul.mubr.msk.f32.gmra.mrb[218].mxu1 %vm5320_vm2, %v5141_v63  ;;  %v5143_v27 = vmax.f32 %v4221_v49, 0.0 }
 0x3af   : > { %17769 = vst [vmem:[#allocation72_spill] sm:$0xff] %v14573_v10  ;;  %v5142_v36 = vmax.f32 %v4216_v2, 0.0  ;;  %v11411_v26 = vpop.f32.mrb[90].mxu0 }
 0x3b0   : > { %v4231_v45 = vadd.f32 %v11411_v26, %v14170_v46  ;;  %v4225_v43 = vpop.f32.mrb[91].mxu0  ;;  %v14588_v26 = vld [vmem:[%s17435_s4] ss:$0 sm:$0xff] }
 0x3b1   : > { %v4226_v24 = vadd.f32 %v14170_v46, %v4225_v43  ;;  %v14578_v53 = vpop.f32.mrb[114].mxu1  ;;  %11796 = vmatprep.mubr.msk.f32.mxu1 %vm5320_vm2, %v5142_v36 }
 0x3b2   : > { %17770 = vst [vmem:[#allocation71_spill] sm:$0xff] %v14578_v53  ;;  %v14581_v18 = vpop.f32.mrb[115].mxu1  ;;  %11797 = vmatmul.mubr.msk.f32.gmra.mrb[220].mxu1 %vm5320_vm2, %v5143_v27  ;;  %v5145_v10 = vmax.f32 %v4231_v45, 0.0 }
 0x3b3   : > { %17771 = vst [vmem:[#allocation74_spill] sm:$0xff] %v14581_v18  ;;  %v5144_v0 = vmax.f32 %v4226_v24, 0.0  ;;  %v11414_v21 = vpop.f32.mrb[92].mxu0 }
 0x3b4   : > { %v4241_v63 = vadd.f32 %v11414_v21, %v14170_v46  ;;  %v4235_v2 = vpop.f32.mrb[93].mxu0 }
 0x3b5   : > { %v4236_v49 = vadd.f32 %v14588_v26, %v4235_v2  ;;  %v14591_v43 = vpop.f32.mrb[116].mxu1  ;;  %11799 = vmatprep.mubr.msk.f32.mxu1 %vm5320_vm2, %v5144_v0 }
 0x3b6   : > { %17772 = vst [vmem:[#allocation73_spill] sm:$0xff] %v14591_v43  ;;  %v14594_v36 = vpop.f32.mrb[117].mxu1  ;;  %11800 = vmatmul.mubr.msk.f32.gmra.mrb[222].mxu1 %vm5320_vm2, %v5145_v10  ;;  %v5147_v24 = vmax.f32 %v4241_v63, 0.0 }
 0x3b7   : > { %17773 = vst [vmem:[#allocation76_spill] sm:$0xff] %v14594_v36  ;;  %v5146_v27 = vmax.f32 %v4236_v49, 0.0  ;;  %v11417_v45 = vpop.f32.mrb[94].mxu0 }
 0x3b8   : > { %v4251_v46 = vadd.f32 %v14588_v26, %v11417_v45  ;;  %v4245_v21 = vpop.f32.mrb[95].mxu0 }
 0x3b9   : > { %v4246_v53 = vadd.f32 %v14588_v26, %v4245_v21  ;;  %v14599_v18 = vpop.f32.mrb[118].mxu1  ;;  %11802 = vmatprep.mubr.msk.f32.mxu1 %vm5320_vm2, %v5146_v27 }
 0x3ba   : > { %17774 = vst [vmem:[#allocation75_spill] sm:$0xff] %v14599_v18  ;;  %v14602_v2 = vpop.f32.mrb[119].mxu1  ;;  %11803 = vmatmul.mubr.msk.f32.gmra.mrb[224].mxu1 %vm5320_vm2, %v5147_v24  ;;  %v5149_v36 = vmax.f32 %v4251_v46, 0.0 }
 0x3bb   : > { %17775 = vst [vmem:[#allocation77_spill] sm:$0xff] %v14602_v2  ;;  %v5148_v0 = vmax.f32 %v4246_v53, 0.0  ;;  %v11420_v43 = vpop.f32.mrb[96].mxu0 }
 0x3bc   : > { %v4261_v10 = vadd.f32 %v14588_v26, %v11420_v43  ;;  %v4255_v49 = vpop.f32.mrb[97].mxu0 }
 0x3bd   : > { %v4256_v63 = vadd.f32 %v14588_v26, %v4255_v49  ;;  %v14607_v45 = vpop.f32.mrb[120].mxu1  ;;  %11805 = vmatprep.mubr.msk.f32.mxu1 %vm5320_vm2, %v5148_v0 }
 0x3be   : > { %17776 = vst [vmem:[#allocation78_spill] sm:$0xff] %v14607_v45  ;;  %v14610_v21 = vpop.f32.mrb[121].mxu1  ;;  %11806 = vmatmul.mubr.msk.f32.gmra.mrb[226].mxu1 %vm5320_vm2, %v5149_v36  ;;  %v5151_v2 = vmax.f32 %v4261_v10, 0.0 }
 0x3bf   : > { %17777 = vst [vmem:[#allocation79_spill] sm:$0xff] %v14610_v21  ;;  %v5150_v27 = vmax.f32 %v4256_v63, 0.0  ;;  %v11423_v18 = vpop.f32.mrb[98].mxu0 }
 0x3c0   : > { %v4271_v53 = vadd.f32 %v14588_v26, %v11423_v18  ;;  %v4265_v24 = vpop.f32.mrb[99].mxu0 }
 0x3c1   : > { %v4266_v46 = vadd.f32 %v14588_v26, %v4265_v24  ;;  %v14615_v43 = vpop.f32.mrb[122].mxu1  ;;  %11808 = vmatprep.mubr.msk.f32.mxu1 %vm5320_vm2, %v5150_v27 }
 0x3c2   : > { %17778 = vst [vmem:[#allocation80_spill] sm:$0xff] %v14615_v43  ;;  %v14618_v49 = vpop.f32.mrb[123].mxu1  ;;  %11809 = vmatmul.mubr.msk.f32.gmra.mrb[228].mxu1 %vm5320_vm2, %v5151_v2  ;;  %v5153_v21 = vmax.f32 %v4271_v53, 0.0 }
 0x3c3   : > { %17779 = vst [vmem:[#allocation81_spill] sm:$0xff] %v14618_v49  ;;  %v5152_v0 = vmax.f32 %v4266_v46, 0.0  ;;  %v11426_v45 = vpop.f32.mrb[100].mxu0 }
 0x3c4   : > { %v4281_v36 = vadd.f32 %v14588_v26, %v11426_v45  ;;  %v4275_v63 = vpop.f32.mrb[101].mxu0 }
 0x3c5   : > { %v4276_v10 = vadd.f32 %v14588_v26, %v4275_v63  ;;  %v14623_v18 = vpop.f32.mrb[124].mxu1  ;;  %11811 = vmatprep.mubr.msk.f32.mxu1 %vm5320_vm2, %v5152_v0 }
 0x3c6   : > { %17780 = vst [vmem:[#allocation82_spill] sm:$0xff] %v14623_v18  ;;  %v14626_v24 = vpop.f32.mrb[125].mxu1  ;;  %11812 = vmatmul.mubr.msk.f32.gmra.mrb[230].mxu1 %vm5320_vm2, %v5153_v21  ;;  %v5155_v49 = vmax.f32 %v4281_v36, 0.0 }
 0x3c7   : > { %17781 = vst [vmem:[#allocation83_spill] sm:$0xff] %v14626_v24  ;;  %v5154_v27 = vmax.f32 %v4276_v10, 0.0  ;;  %v11429_v43 = vpop.f32.mrb[102].mxu0 }
 0x3c8   : > { %v4291_v2 = vadd.f32 %v14588_v26, %v11429_v43  ;;  %v4285_v46 = vpop.f32.mrb[103].mxu0 }
 0x3c9   : > { %v4286_v53 = vadd.f32 %v14588_v26, %v4285_v46  ;;  %v14631_v45 = vpop.f32.mrb[126].mxu1  ;;  %11814 = vmatprep.mubr.msk.f32.mxu1 %vm5320_vm2, %v5154_v27 }
 0x3ca   : > { %17782 = vst [vmem:[#allocation84_spill] sm:$0xff] %v14631_v45  ;;  %v14634_v63 = vpop.f32.mrb[127].mxu1  ;;  %11815 = vmatmul.mubr.msk.f32.gmra.mrb[232].mxu1 %vm5320_vm2, %v5155_v49  ;;  %v5157_v24 = vmax.f32 %v4291_v2, 0.0 }
 0x3cb   : > { %17783 = vst [vmem:[#allocation85_spill] sm:$0xff] %v14634_v63  ;;  %v5156_v0 = vmax.f32 %v4286_v53, 0.0  ;;  %v11432_v18 = vpop.f32.mrb[104].mxu0 }
 0x3cc   : > { %v4301_v21 = vadd.f32 %v14588_v26, %v11432_v18  ;;  %v4295_v10 = vpop.f32.mrb[105].mxu0 }
 0x3cd   : > { %v4296_v36 = vadd.f32 %v14588_v26, %v4295_v10  ;;  %v14639_v43 = vpop.f32.mrb[128].mxu1  ;;  %11817 = vmatprep.mubr.msk.f32.mxu1 %vm5320_vm2, %v5156_v0 }
 0x3ce   : > { %17784 = vst [vmem:[#allocation86_spill] sm:$0xff] %v14639_v43  ;;  %v14642_v46 = vpop.f32.mrb[129].mxu1  ;;  %11818 = vmatmul.mubr.msk.f32.gmra.mrb[234].mxu1 %vm5320_vm2, %v5157_v24  ;;  %v5159_v63 = vmax.f32 %v4301_v21, 0.0  ;;  %v14656_v24 = vld [vmem:[%s17437_s6] ss:$0 sm:$0xff] }
 0x3cf   : > { %17785 = vst [vmem:[#allocation87_spill] sm:$0xff] %v14642_v46  ;;  %v5158_v27 = vmax.f32 %v4296_v36, 0.0  ;;  %v11435_v45 = vpop.f32.mrb[106].mxu0 }
 0x3d0   : > { %v4311_v49 = vadd.f32 %v14588_v26, %v11435_v45  ;;  %v4305_v53 = vpop.f32.mrb[107].mxu0 }
 0x3d1   : > { %v4306_v2 = vadd.f32 %v14588_v26, %v4305_v53  ;;  %v14647_v18 = vpop.f32.mrb[130].mxu1  ;;  %11820 = vmatprep.mubr.msk.f32.mxu1 %vm5320_vm2, %v5158_v27 }
 0x3d2   : > { %17786 = vst [vmem:[#allocation88_spill] sm:$0xff] %v14647_v18  ;;  %v14650_v10 = vpop.f32.mrb[131].mxu1  ;;  %11821 = vmatmul.mubr.msk.f32.gmra.mrb[236].mxu1 %vm5320_vm2, %v5159_v63  ;;  %v5161_v21 = vmax.f32 %v4311_v49, 0.0 }
 0x3d3   : > { %17787 = vst [vmem:[#allocation89_spill] sm:$0xff] %v14650_v10  ;;  %v5160_v0 = vmax.f32 %v4306_v2, 0.0  ;;  %v11438_v43 = vpop.f32.mrb[108].mxu0 }
 0x3d4   : > { %v4321_v45 = vadd.f32 %v14588_v26, %v11438_v43  ;;  %v4315_v36 = vpop.f32.mrb[109].mxu0 }
 0x3d5   : > { %v4316_v53 = vadd.f32 %v14588_v26, %v4315_v36  ;;  %v11666_v18 = vpop.f32.mrb[132].mxu1  ;;  %11823 = vmatprep.mubr.msk.f32.mxu1 %vm5320_vm2, %v5160_v0 }
 0x3d6   : > { %v14662_v27 = vadd.f32 %v11666_v18, %v14656_v24  ;;  %v6155_v63 = vpop.f32.mrb[133].mxu1  ;;  %11824 = vmatmul.mubr.msk.f32.gmra.mrb[238].mxu1 %vm5320_vm2, %v5161_v21  ;;  %v5163_v49 = vmax.f32 %v4321_v45, 0.0 }
 0x3d7   : > { %v5162_v2 = vmax.f32 %v4316_v53, 0.0  ;;  %v14666_v10 = vadd.f32 %v14656_v24, %v6155_v63  ;;  %v11441_v46 = vpop.f32.mrb[110].mxu0 }
 0x3d8   : > { %17788 = vst [vmem:[#allocation90_spill] sm:$0xff] %v14662_v27  ;;  %v4331_v43 = vadd.f32 %v14588_v26, %v11441_v46  ;;  %v4325_v59 = vpop.f32.mrb[111].mxu0  ;;  %v7435_v36 = vmul.f32 %v14662_v27, %v14662_v27 }
 0x3d9   : > { %17789 = vst [vmem:[#allocation91_spill] sm:$0xff] %v14666_v10  ;;  %v4326_v0 = vadd.f32 %v14588_v26, %v4325_v59  ;;  %v11669_v18 = vpop.f32.mrb[134].mxu1  ;;  %11826 = vmatprep.mubr.msk.f32.mxu1 %vm5320_vm2, %v5162_v2  ;;  %v7434_v46 = vmul.f32 %v14666_v10, %v14666_v10 }
 0x3da   : > { %v14674_v21 = vadd.f32 %v11669_v18, %v14656_v24  ;;  %v6165_v53 = vpop.f32.mrb[135].mxu1  ;;  %11827 = vmatmul.mubr.msk.f32.gmra.mrb[240].mxu1 %vm5320_vm2, %v5163_v49  ;;  %v7694_v63 = vsel %vm7690_vm3, %v7435_v36, 0.0  ;;  %v5165_v59 = vmax.f32 %v4331_v43, 0.0 }
 0x3db   : > { %v5164_v45 = vmax.f32 %v4326_v0, 0.0  ;;  %v14681_v35 = vadd.f32 %v14656_v24, %v6165_v53  ;;  %v11444_v27 = vpop.f32.mrb[112].mxu0  ;;  %7695 = vadd.xlane.f32.xlu0 %v7694_v63  ;;  %v7691_v43 = vsel %vm7690_vm3, %v7434_v46, 0.0 }
 0x3dc   : > { %17790 = vst [vmem:[#allocation92_spill] sm:$0xff] %v14674_v21  ;;  %v4341_v2 = vadd.f32 %v14588_v26, %v11444_v27  ;;  %v4335_v44 = vpop.f32.mrb[113].mxu0  ;;  %v7437_v18 = vmul.f32 %v14674_v21, %v14674_v21 }
 0x3dd   : > { %17791 = vst [vmem:[#allocation93_spill] sm:$0xff] %v14681_v35  ;;  %v4336_v49 = vadd.f32 %v14588_v26, %v4335_v44  ;;  %v11672_v52 = vpop.f32.mrb[136].mxu1  ;;  %11829 = vmatprep.mubr.msk.f32.mxu1 %vm5320_vm2, %v5164_v45  ;;  %v7436_v27 = vmul.f32 %v14681_v35, %v14681_v35 }
 0x3de   : > { %v14689_v36 = vadd.f32 %v11672_v52, %v14656_v24  ;;  %v6175_v0 = vpop.f32.mrb[137].mxu1  ;;  %11830 = vmatmul.mubr.msk.f32.gmra.mrb[242].mxu1 %vm5320_vm2, %v5165_v59  ;;  %v7700_v53 = vsel %vm7690_vm3, %v7437_v18, 0.0  ;;  %v5167_v45 = vmax.f32 %v4341_v2, 0.0 }
 0x3df   : > { %v5166_v63 = vmax.f32 %v4336_v49, 0.0  ;;  %v14697_v10 = vadd.f32 %v14656_v24, %v6175_v0  ;;  %v11447_v44 = vpop.f32.mrb[114].mxu0  ;;  %7701 = vadd.xlane.f32.xlu1 %v7700_v53  ;;  %7692 = vadd.xlane.f32.xlu0 %v7691_v43  ;;  %v7697_v0 = vsel %vm7690_vm3, %v7436_v27, 0.0 }
 0x3e0   : > { %17792 = vst [vmem:[#allocation94_spill] sm:$0xff] %v14689_v36  ;;  %v4351_v52 = vadd.f32 %v14588_v26, %v11447_v44  ;;  %v4345_v21 = vpop.f32.mrb[115].mxu0  ;;  %v7439_v2 = vmul.f32 %v14689_v36, %v14689_v36 }
 0x3e1   : > { %17793 = vst [vmem:[#allocation95_spill] sm:$0xff] %v14697_v10  ;;  %v4346_v59 = vadd.f32 %v14588_v26, %v4345_v21  ;;  %v11675_v19 = vpop.f32.mrb[138].mxu1  ;;  %11832 = vmatprep.mubr.msk.f32.mxu1 %vm5320_vm2, %v5166_v63  ;;  %v7438_v46 = vmul.f32 %v14697_v10, %v14697_v10 }
 0x3e2   : > { %v14705_v18 = vadd.f32 %v11675_v19, %v14656_v24  ;;  %v6185_v49 = vpop.f32.mrb[139].mxu1  ;;  %11833 = vmatmul.mubr.msk.f32.gmra.mrb[244].mxu1 %vm5320_vm2, %v5167_v45  ;;  %v5169_v44 = vmax.f32 %v4351_v52, 0.0  ;;  %v7706_v52 = vsel %vm7690_vm3, %v7439_v2, 0.0 }
 0x3e3   : > { %v5168_v53 = vmax.f32 %v4346_v59, 0.0  ;;  %v14712_v21 = vadd.f32 %v14656_v24, %v6185_v49  ;;  %v11450_v43 = vpop.f32.mrb[116].mxu0  ;;  %7698 = vadd.xlane.f32.xlu1 %v7697_v0  ;;  %v7703_v63 = vsel %vm7690_vm3, %v7438_v46, 0.0 }
 0x3e4   : > { %17794 = vst [vmem:[#allocation96_spill] sm:$0xff] %v14705_v18  ;;  %v4361_v19 = vadd.f32 %v14588_v26, %v11450_v43  ;;  %v4355_v10 = vpop.f32.mrb[117].mxu0  ;;  %7704 = vadd.xlane.f32.xlu0 %v7703_v63  ;;  %v7441_v46 = vmul.f32 %v14705_v18, %v14705_v18 }
 0x3e5   : > { %17795 = vst [vmem:[#allocation97_spill] sm:$0xff] %v14712_v21  ;;  %v4356_v45 = vadd.f32 %v14588_v26, %v4355_v10  ;;  %v11678_v35 = vpop.f32.mrb[140].mxu1  ;;  %11835 = vmatprep.mubr.msk.f32.mxu1 %vm5320_vm2, %v5168_v53  ;;  %v7440_v27 = vmul.f32 %v14712_v21, %v14712_v21 }
 0x3e6   : > { %v14721_v59 = vadd.f32 %v11678_v35, %v14656_v24  ;;  %v6195_v49 = vpop.f32.mrb[141].mxu1  ;;  %11836 = vmatmul.mubr.msk.f32.gmra.mrb[246].mxu1 %vm5320_vm2, %v5169_v44  ;;  %v5171_v63 = vmax.f32 %v4361_v19, 0.0  ;;  %v7712_v19 = vsel %vm7690_vm3, %v7441_v46, 0.0 }
 0x3e7   : > { %v5170_v0 = vmax.f32 %v4356_v45, 0.0  ;;  %v14728_v10 = vadd.f32 %v14656_v24, %v6195_v49  ;;  %v11453_v43 = vpop.f32.mrb[118].mxu0  ;;  %7707 = vadd.xlane.f32.xlu1 %v7706_v52  ;;  %v7709_v53 = vsel %vm7690_vm3, %v7440_v27, 0.0 }
 0x3e8   : > { %17796 = vst [vmem:[#allocation98_spill] sm:$0xff] %v14721_v59  ;;  %v4371_v35 = vadd.f32 %v14588_v26, %v11453_v43  ;;  %v4365_v21 = vpop.f32.mrb[119].mxu0  ;;  %7710 = vadd.xlane.f32.xlu0 %v7709_v53  ;;  %v7443_v27 = vmul.f32 %v14721_v59, %v14721_v59 }
 0x3e9   : > { %17797 = vst [vmem:[#allocation99_spill] sm:$0xff] %v14728_v10  ;;  %v4366_v44 = vadd.f32 %v14588_v26, %v4365_v21  ;;  %v11681_v36 = vpop.f32.mrb[142].mxu1  ;;  %11838 = vmatprep.mubr.msk.f32.mxu1 %vm5320_vm2, %v5170_v0  ;;  %v7442_v2 = vmul.f32 %v14728_v10, %v14728_v10 }
 0x3ea   : > { %v14737_v45 = vadd.f32 %v11681_v36, %v14656_v24  ;;  %v6205_v49 = vpop.f32.mrb[143].mxu1  ;;  %11839 = vmatmul.mubr.msk.f32.gmra.mrb[248].mxu1 %vm5320_vm2, %v5171_v63  ;;  %v5173_v53 = vmax.f32 %v4371_v35, 0.0  ;;  %v7718_v35 = vsel %vm7690_vm3, %v7443_v27, 0.0 }
 0x3eb   : > { %v5172_v52 = vmax.f32 %v4366_v44, 0.0  ;;  %v14744_v21 = vadd.f32 %v14656_v24, %v6205_v49  ;;  %v11456_v43 = vpop.f32.mrb[120].mxu0  ;;  %7713 = vadd.xlane.f32.xlu1 %v7712_v19  ;;  %v7715_v0 = vsel %vm7690_vm3, %v7442_v2, 0.0 }
 0x3ec   : > { %v4381_v36 = vadd.f32 %v14588_v26, %v11456_v43  ;;  %v4375_v10 = vpop.f32.mrb[121].mxu0  ;;  %7716 = vadd.xlane.f32.xlu0 %v7715_v0  ;;  %v7445_v2 = vmul.f32 %v14737_v45, %v14737_v45 }
 0x3ed   : > { %17798 = vst [vmem:[#allocation100_spill] sm:$0xff] %v14744_v21  ;;  %v4376_v63 = vadd.f32 %v14588_v26, %v4375_v10  ;;  %v11684_v18 = vpop.f32.mrb[144].mxu1  ;;  %11841 = vmatprep.mubr.msk.f32.mxu1 %vm5320_vm2, %v5172_v52  ;;  %v7444_v46 = vmul.f32 %v14744_v21, %v14744_v21 }
 0x3ee   : > { %v14753_v44 = vadd.f32 %v11684_v18, %v14656_v24  ;;  %v6215_v49 = vpop.f32.mrb[145].mxu1  ;;  %11842 = vmatmul.mubr.msk.f32.gmra.mrb[250].mxu1 %vm5320_vm2, %v5173_v53  ;;  %v5175_v0 = vmax.f32 %v4381_v36, 0.0  ;;  %v4396_v53 = vadd.f32 %v14588_v26, %v14008_v50  ;;  %v7724_v36 = vsel %vm7690_vm3, %v7445_v2, 0.0 }
 0x3ef   : > { %v5174_v19 = vmax.f32 %v4376_v63, 0.0  ;;  %v14760_v10 = vadd.f32 %v14656_v24, %v6215_v49  ;;  %v11459_v43 = vpop.f32.mrb[122].mxu0  ;;  %7719 = vadd.xlane.f32.xlu1 %v7718_v35  ;;  %v7721_v52 = vsel %vm7690_vm3, %v7444_v46, 0.0 }
 0x3f0   : > { %v4391_v18 = vadd.f32 %v14588_v26, %v11459_v43  ;;  %v4385_v21 = vpop.f32.mrb[123].mxu0  ;;  %7722 = vadd.xlane.f32.xlu0 %v7721_v52  ;;  %v7447_v35 = vmul.f32 %v14753_v44, %v14753_v44  ;;  %v4401_v43 = vadd.f32 %v14588_v26, %v14003_v31  ;;  %v5178_v52 = vmax.f32 %v4396_v53, 0.0 }
 0x3f1   : > { %v4386_v27 = vadd.f32 %v14588_v26, %v4385_v21  ;;  %v11687_v59 = vpop.f32.mrb[146].mxu1  ;;  %11844 = vmatprep.mubr.msk.f32.mxu1 %vm5320_vm2, %v5174_v19  ;;  %v7446_v63 = vmul.f32 %v14760_v10, %v14760_v10 }
 0x3f2   : > { %v14771_v49 = vadd.f32 %v11687_v59, %v14656_v24  ;;  %v6225_v46 = vpop.f32.mrb[147].mxu1  ;;  %11845 = vmatmul.mubr.msk.f32.gmra.mrb[252].mxu1 %vm5320_vm2, %v5175_v0  ;;  %v5177_v59 = vmax.f32 %v4391_v18, 0.0  ;;  %v4406_v0 = vadd.f32 %v14588_v26, %v14022_v5  ;;  %v7730_v31 = vsel %vm7690_vm3, %v7447_v35, 0.0 }
 0x3f3   : > { %v5176_v50 = vmax.f32 %v4386_v27, 0.0  ;;  %v14778_v21 = vadd.f32 %v14656_v24, %v6225_v46  ;;  %7725 = vadd.xlane.f32.xlu1 %v7724_v36  ;;  %v7727_v19 = vsel %vm7690_vm3, %v7446_v63, 0.0  ;;  %v5179_v63 = vmax.f32 %v4401_v43, 0.0 }
 0x3f4   : > { %7728 = vadd.xlane.f32.xlu0 %v7727_v19  ;;  %v7449_v18 = vmul.f32 %v14771_v49, %v14771_v49  ;;  %v5180_v19 = vmax.f32 %v4406_v0, 0.0  ;;  %v4416_v35 = vadd.f32 %v14588_v26, %v14036_v28 }
 0x3f5   : > { %v11690_v2 = vpop.f32.mrb[148].mxu1  ;;  %11847 = vmatprep.mubr.msk.f32.mxu1 %vm5320_vm2, %v5176_v50  ;;  %v7448_v27 = vmul.f32 %v14778_v21, %v14778_v21  ;;  %v4411_v50 = vadd.f32 %v14588_v26, %v14017_v58 }
 0x3f6   : > { %v14789_v46 = vadd.f32 %v11690_v2, %v14656_v24  ;;  %v6235_v36 = vpop.f32.mrb[149].mxu1  ;;  %11848 = vmatmul.mubr.msk.f32.gmra.mrb[254].mxu1 %vm5320_vm2, %v5177_v59  ;;  %v7736_v43 = vsel %vm7690_vm3, %v7449_v18, 0.0  ;;  %v4426_v18 = vadd.f32 %v14588_v26, %v14050_v6 }
 0x3f7   : > { %v14796_v53 = vadd.f32 %v14656_v24, %v6235_v36  ;;  %11850 = vmatprep.mubr.msk.f32.mxu1 %vm5320_vm2, %v5178_v52  ;;  %7731 = vadd.xlane.f32.xlu1 %v7730_v31  ;;  %v7733_v5 = vsel %vm7690_vm3, %v7448_v27, 0.0  ;;  %v5181_v27 = vmax.f32 %v4411_v50, 0.0  ;;  %v4421_v31 = vadd.f32 %v14588_v26, %v14031_v47 }
 0x3f8   : > { %7734 = vadd.xlane.f32.xlu0 %v7733_v5  ;;  %v7451_v58 = vmul.f32 %v14789_v46, %v14789_v46  ;;  %v5182_v5 = vmax.f32 %v4416_v35, 0.0 }
 0x3f9   : > { %v11693_v59 = vpop.f32.mrb[150].mxu1  ;;  %v7450_v2 = vmul.f32 %v14796_v53, %v14796_v53 }
 0x3fa   : > { %v14807_v36 = vadd.f32 %v11693_v59, %v14656_v24  ;;  %v6245_v52 = vpop.f32.mrb[151].mxu1  ;;  %11851 = vmatmul.mubr.msk.f32.gmra.mrb[0].mxu1 %vm5320_vm2, %v5179_v63  ;;  %v7742_v50 = vsel %vm7690_vm3, %v7451_v58, 0.0  ;;  %v4436_v58 = vadd.f32 %v14588_v26, %v14064_v30 }
 0x3fb   : > { %v14814_v0 = vadd.f32 %v14656_v24, %v6245_v52  ;;  %11853 = vmatprep.mubr.msk.f32.mxu1 %vm5320_vm2, %v5180_v19  ;;  %7737 = vadd.xlane.f32.xlu1 %v7736_v43  ;;  %v7739_v28 = vsel %vm7690_vm3, %v7450_v2, 0.0  ;;  %v5183_v2 = vmax.f32 %v4421_v31, 0.0  ;;  %v4431_v43 = vadd.f32 %v14588_v26, %v14045_v1 }
 0x3fc   : > { %7740 = vadd.xlane.f32.xlu0 %v7739_v28  ;;  %v7453_v47 = vmul.f32 %v14807_v36, %v14807_v36  ;;  %v5184_v28 = vmax.f32 %v4426_v18, 0.0 }
 0x3fd   : > { %v11696_v63 = vpop.f32.mrb[152].mxu1  ;;  %v7452_v59 = vmul.f32 %v14814_v0, %v14814_v0 }
 0x3fe   : > { %v14825_v52 = vadd.f32 %v11696_v63, %v14656_v24  ;;  %v6255_v19 = vpop.f32.mrb[153].mxu1  ;;  %11854 = vmatmul.mubr.msk.f32.gmra.mrb[2].mxu1 %vm5320_vm2, %v5181_v27  ;;  %v7748_v31 = vsel %vm7690_vm3, %v7453_v47, 0.0  ;;  %v4446_v47 = vadd.f32 %v14588_v26, %v14078_v11 }
 0x3ff   : > { %v14832_v35 = vadd.f32 %v14656_v24, %v6255_v19  ;;  %11856 = vmatprep.mubr.msk.f32.mxu1 %vm5320_vm2, %v5182_v5  ;;  %7743 = vadd.xlane.f32.xlu1 %v7742_v50  ;;  %v7745_v6 = vsel %vm7690_vm3, %v7452_v59, 0.0  ;;  %v5185_v59 = vmax.f32 %v4431_v43, 0.0  ;;  %v4441_v50 = vadd.f32 %v14588_v26, %v14059_v42 }
 0x400   : > { %7746 = vadd.xlane.f32.xlu0 %v7745_v6  ;;  %v7455_v1 = vmul.f32 %v14825_v52, %v14825_v52  ;;  %v5186_v6 = vmax.f32 %v4436_v58, 0.0 }
 0x401   : > { %v11699_v27 = vpop.f32.mrb[154].mxu1  ;;  %v7454_v63 = vmul.f32 %v14832_v35, %v14832_v35 }
 0x402   : > { %v14843_v19 = vadd.f32 %v11699_v27, %v14656_v24  ;;  %v6265_v5 = vpop.f32.mrb[155].mxu1  ;;  %11857 = vmatmul.mubr.msk.f32.gmra.mrb[4].mxu1 %vm5320_vm2, %v5183_v2  ;;  %v7754_v43 = vsel %vm7690_vm3, %v7455_v1, 0.0  ;;  %v4456_v1 = vadd.f32 %v14588_v26, %v14092_v61 }
 0x403   : > { %v14850_v18 = vadd.f32 %v14656_v24, %v6265_v5  ;;  %11859 = vmatprep.mubr.msk.f32.mxu1 %vm5320_vm2, %v5184_v28  ;;  %7749 = vadd.xlane.f32.xlu1 %v7748_v31  ;;  %v7751_v30 = vsel %vm7690_vm3, %v7454_v63, 0.0  ;;  %v5187_v63 = vmax.f32 %v4441_v50, 0.0  ;;  %v4451_v31 = vadd.f32 %v14588_v26, %v14073_v41 }
 0x404   : > { %7752 = vadd.xlane.f32.xlu0 %v7751_v30  ;;  %v7457_v42 = vmul.f32 %v14843_v19, %v14843_v19  ;;  %v5188_v30 = vmax.f32 %v4446_v47, 0.0 }
 0x405   : > { %v11702_v2 = vpop.f32.mrb[156].mxu1  ;;  %v7456_v27 = vmul.f32 %v14850_v18, %v14850_v18 }
 0x406   : > { %v14861_v5 = vadd.f32 %v11702_v2, %v14656_v24  ;;  %v6275_v28 = vpop.f32.mrb[157].mxu1  ;;  %11860 = vmatmul.mubr.msk.f32.gmra.mrb[6].mxu1 %vm5320_vm2, %v5185_v59  ;;  %v7760_v50 = vsel %vm7690_vm3, %v7457_v42, 0.0  ;;  %v4466_v42 = vadd.f32 %v14588_v26, %v14106_v34 }
 0x407   : > { %v14868_v58 = vadd.f32 %v14656_v24, %v6275_v28  ;;  %11862 = vmatprep.mubr.msk.f32.mxu1 %vm5320_vm2, %v5186_v6  ;;  %7755 = vadd.xlane.f32.xlu1 %v7754_v43  ;;  %v7757_v11 = vsel %vm7690_vm3, %v7456_v27, 0.0  ;;  %v5189_v27 = vmax.f32 %v4451_v31, 0.0  ;;  %v4461_v43 = vadd.f32 %v14588_v26, %v14087_v56 }
 0x408   : > { %7758 = vadd.xlane.f32.xlu0 %v7757_v11  ;;  %v7459_v41 = vmul.f32 %v14861_v5, %v14861_v5  ;;  %v5190_v11 = vmax.f32 %v4456_v1, 0.0 }
 0x409   : > { %v11705_v59 = vpop.f32.mrb[158].mxu1  ;;  %v7458_v2 = vmul.f32 %v14868_v58, %v14868_v58 }
 0x40a   : > { %v14879_v28 = vadd.f32 %v11705_v59, %v14656_v24  ;;  %v6285_v6 = vpop.f32.mrb[159].mxu1  ;;  %11863 = vmatmul.mubr.msk.f32.gmra.mrb[8].mxu1 %vm5320_vm2, %v5187_v63  ;;  %v7766_v31 = vsel %vm7690_vm3, %v7459_v41, 0.0  ;;  %v4476_v41 = vadd.f32 %v14588_v26, %v14120_v4 }
 0x40b   : > { %v14886_v47 = vadd.f32 %v14656_v24, %v6285_v6  ;;  %11865 = vmatprep.mubr.msk.f32.mxu1 %vm5320_vm2, %v5188_v30  ;;  %7761 = vadd.xlane.f32.xlu1 %v7760_v50  ;;  %v7763_v61 = vsel %vm7690_vm3, %v7458_v2, 0.0  ;;  %v5191_v2 = vmax.f32 %v4461_v43, 0.0  ;;  %v4471_v50 = vadd.f32 %v14588_v26, %v14101_v23 }
 0x40c   : > { %7764 = vadd.xlane.f32.xlu0 %v7763_v61  ;;  %v7461_v56 = vmul.f32 %v14879_v28, %v14879_v28  ;;  %v5192_v61 = vmax.f32 %v4466_v42, 0.0 }
 0x40d   : > { %v11708_v63 = vpop.f32.mrb[160].mxu1  ;;  %v7460_v59 = vmul.f32 %v14886_v47, %v14886_v47 }
 0x40e   : > { %v14897_v6 = vadd.f32 %v11708_v63, %v14656_v24  ;;  %v6295_v30 = vpop.f32.mrb[161].mxu1  ;;  %11866 = vmatmul.mubr.msk.f32.gmra.mrb[10].mxu1 %vm5320_vm2, %v5189_v27  ;;  %v7772_v43 = vsel %vm7690_vm3, %v7461_v56, 0.0  ;;  %v4486_v56 = vadd.f32 %v14588_v26, %v14134_v22 }
 0x40f   : > { %v14904_v1 = vadd.f32 %v14656_v24, %v6295_v30  ;;  %11868 = vmatprep.mubr.msk.f32.mxu1 %vm5320_vm2, %v5190_v11  ;;  %7767 = vadd.xlane.f32.xlu1 %v7766_v31  ;;  %v7769_v34 = vsel %vm7690_vm3, %v7460_v59, 0.0  ;;  %v5193_v59 = vmax.f32 %v4471_v50, 0.0  ;;  %v4481_v31 = vadd.f32 %v14588_v26, %v14115_v51 }
 0x410   : > { %7770 = vadd.xlane.f32.xlu0 %v7769_v34  ;;  %v7463_v23 = vmul.f32 %v14897_v6, %v14897_v6  ;;  %v5194_v34 = vmax.f32 %v4476_v41, 0.0 }
 0x411   : > { %v11711_v27 = vpop.f32.mrb[162].mxu1  ;;  %v7462_v63 = vmul.f32 %v14904_v1, %v14904_v1 }
 0x412   : > { %v14915_v30 = vadd.f32 %v11711_v27, %v14656_v24  ;;  %v6305_v11 = vpop.f32.mrb[163].mxu1  ;;  %11869 = vmatmul.mubr.msk.f32.gmra.mrb[12].mxu1 %vm5320_vm2, %v5191_v2  ;;  %v7778_v50 = vsel %vm7690_vm3, %v7463_v23, 0.0  ;;  %v4496_v23 = vadd.f32 %v14588_v26, %v14148_v8 }
 0x413   : > { %v14922_v42 = vadd.f32 %v14656_v24, %v6305_v11  ;;  %11871 = vmatprep.mubr.msk.f32.mxu1 %vm5320_vm2, %v5192_v61  ;;  %7773 = vadd.xlane.f32.xlu1 %v7772_v43  ;;  %v7775_v4 = vsel %vm7690_vm3, %v7462_v63, 0.0  ;;  %v5195_v63 = vmax.f32 %v4481_v31, 0.0  ;;  %v4491_v43 = vadd.f32 %v14588_v26, %v14129_v54 }
 0x414   : > { %7776 = vadd.xlane.f32.xlu0 %v7775_v4  ;;  %v7465_v51 = vmul.f32 %v14915_v30, %v14915_v30  ;;  %v5196_v4 = vmax.f32 %v4486_v56, 0.0 }
 0x415   : > { %v11714_v2 = vpop.f32.mrb[164].mxu1  ;;  %v7464_v27 = vmul.f32 %v14922_v42, %v14922_v42 }
 0x416   : > { %v14933_v11 = vadd.f32 %v11714_v2, %v14656_v24  ;;  %v6315_v61 = vpop.f32.mrb[165].mxu1  ;;  %11872 = vmatmul.mubr.msk.f32.gmra.mrb[14].mxu1 %vm5320_vm2, %v5193_v59  ;;  %v7784_v31 = vsel %vm7690_vm3, %v7465_v51, 0.0  ;;  %v4506_v51 = vadd.f32 %v14588_v26, %v14162_v48 }
 0x417   : > { %v14940_v41 = vadd.f32 %v14656_v24, %v6315_v61  ;;  %11874 = vmatprep.mubr.msk.f32.mxu1 %vm5320_vm2, %v5194_v34  ;;  %7779 = vadd.xlane.f32.xlu1 %v7778_v50  ;;  %v7781_v22 = vsel %vm7690_vm3, %v7464_v27, 0.0  ;;  %v5197_v27 = vmax.f32 %v4491_v43, 0.0  ;;  %v4501_v50 = vadd.f32 %v14588_v26, %v14143_v33 }
 0x418   : > { %7782 = vadd.xlane.f32.xlu0 %v7781_v22  ;;  %v7467_v54 = vmul.f32 %v14933_v11, %v14933_v11  ;;  %v5198_v22 = vmax.f32 %v4496_v23, 0.0 }
 0x419   : > { %v11717_v59 = vpop.f32.mrb[166].mxu1  ;;  %v7466_v2 = vmul.f32 %v14940_v41, %v14940_v41 }
 0x41a   : > { %v14951_v61 = vadd.f32 %v11717_v59, %v14656_v24  ;;  %v6325_v34 = vpop.f32.mrb[167].mxu1  ;;  %11875 = vmatmul.mubr.msk.f32.gmra.mrb[16].mxu1 %vm5320_vm2, %v5195_v63  ;;  %v7790_v43 = vsel %vm7690_vm3, %v7467_v54, 0.0  ;;  %v4516_v54 = vadd.f32 %v14588_v26, %v14181_v16 }
 0x41b   : > { %v14958_v56 = vadd.f32 %v14656_v24, %v6325_v34  ;;  %11877 = vmatprep.mubr.msk.f32.mxu1 %vm5320_vm2, %v5196_v4  ;;  %7785 = vadd.xlane.f32.xlu1 %v7784_v31  ;;  %v7787_v8 = vsel %vm7690_vm3, %v7466_v2, 0.0  ;;  %v5199_v2 = vmax.f32 %v4501_v50, 0.0  ;;  %v4511_v31 = vadd.f32 %v14588_v26, %v14157_v37 }
 0x41c   : > { %7788 = vadd.xlane.f32.xlu0 %v7787_v8  ;;  %v7469_v33 = vmul.f32 %v14951_v61, %v14951_v61  ;;  %v5200_v8 = vmax.f32 %v4506_v51, 0.0 }
 0x41d   : > { %v11720_v63 = vpop.f32.mrb[168].mxu1  ;;  %v7468_v59 = vmul.f32 %v14958_v56, %v14958_v56 }
 0x41e   : > { %v14969_v34 = vadd.f32 %v11720_v63, %v14656_v24  ;;  %v6335_v4 = vpop.f32.mrb[169].mxu1  ;;  %11878 = vmatmul.mubr.msk.f32.gmra.mrb[18].mxu1 %vm5320_vm2, %v5197_v27  ;;  %v7796_v50 = vsel %vm7690_vm3, %v7469_v33, 0.0  ;;  %v4526_v33 = vadd.f32 %v14588_v26, %v14195_v60 }
 0x41f   : > { %v14976_v23 = vadd.f32 %v14656_v24, %v6335_v4  ;;  %11880 = vmatprep.mubr.msk.f32.mxu1 %vm5320_vm2, %v5198_v22  ;;  %7791 = vadd.xlane.f32.xlu1 %v7790_v43  ;;  %v7793_v48 = vsel %vm7690_vm3, %v7468_v59, 0.0  ;;  %v5201_v59 = vmax.f32 %v4511_v31, 0.0  ;;  %v4521_v43 = vadd.f32 %v14588_v26, %v14176_v29 }
 0x420   : > { %7794 = vadd.xlane.f32.xlu0 %v7793_v48  ;;  %v7471_v37 = vmul.f32 %v14969_v34, %v14969_v34  ;;  %v5202_v48 = vmax.f32 %v4516_v54, 0.0 }
 0x421   : > { %v11723_v27 = vpop.f32.mrb[170].mxu1  ;;  %v7470_v63 = vmul.f32 %v14976_v23, %v14976_v23 }
 0x422   : > { %v14987_v4 = vadd.f32 %v11723_v27, %v14656_v24  ;;  %v6345_v22 = vpop.f32.mrb[171].mxu1  ;;  %11881 = vmatmul.mubr.msk.f32.gmra.mrb[20].mxu1 %vm5320_vm2, %v5199_v2  ;;  %v7802_v31 = vsel %vm7690_vm3, %v7471_v37, 0.0  ;;  %v4536_v37 = vadd.f32 %v14588_v26, %v14209_v13 }
 0x423   : > { %v14994_v51 = vadd.f32 %v14656_v24, %v6345_v22  ;;  %11883 = vmatprep.mubr.msk.f32.mxu1 %vm5320_vm2, %v5200_v8  ;;  %7797 = vadd.xlane.f32.xlu1 %v7796_v50  ;;  %v7799_v16 = vsel %vm7690_vm3, %v7470_v63, 0.0  ;;  %v5203_v63 = vmax.f32 %v4521_v43, 0.0  ;;  %v4531_v50 = vadd.f32 %v14588_v26, %v14190_v62 }
 0x424   : > { %7800 = vadd.xlane.f32.xlu0 %v7799_v16  ;;  %v7473_v29 = vmul.f32 %v14987_v4, %v14987_v4  ;;  %v5204_v16 = vmax.f32 %v4526_v33, 0.0 }
 0x425   : > { %v11726_v2 = vpop.f32.mrb[172].mxu1  ;;  %v7472_v27 = vmul.f32 %v14994_v51, %v14994_v51 }
 0x426   : > { %v15005_v22 = vadd.f32 %v11726_v2, %v14656_v24  ;;  %v6355_v8 = vpop.f32.mrb[173].mxu1  ;;  %11884 = vmatmul.mubr.msk.f32.gmra.mrb[22].mxu1 %vm5320_vm2, %v5201_v59  ;;  %v7808_v43 = vsel %vm7690_vm3, %v7473_v29, 0.0  ;;  %v4546_v29 = vadd.f32 %v14588_v26, %v14223_v15 }
 0x427   : > { %v15012_v54 = vadd.f32 %v14656_v24, %v6355_v8  ;;  %11886 = vmatprep.mubr.msk.f32.mxu1 %vm5320_vm2, %v5202_v48  ;;  %7803 = vadd.xlane.f32.xlu1 %v7802_v31  ;;  %v7805_v60 = vsel %vm7690_vm3, %v7472_v27, 0.0  ;;  %v5205_v27 = vmax.f32 %v4531_v50, 0.0  ;;  %v4541_v31 = vadd.f32 %v14588_v26, %v14204_v17 }
 0x428   : > { %7806 = vadd.xlane.f32.xlu0 %v7805_v60  ;;  %v7475_v62 = vmul.f32 %v15005_v22, %v15005_v22  ;;  %v5206_v60 = vmax.f32 %v4536_v37, 0.0 }
 0x429   : > { %v11729_v59 = vpop.f32.mrb[174].mxu1  ;;  %v7474_v2 = vmul.f32 %v15012_v54, %v15012_v54 }
 0x42a   : > { %v15023_v8 = vadd.f32 %v11729_v59, %v14656_v24  ;;  %v6365_v48 = vpop.f32.mrb[175].mxu1  ;;  %11887 = vmatmul.mubr.msk.f32.gmra.mrb[24].mxu1 %vm5320_vm2, %v5203_v63  ;;  %v7814_v50 = vsel %vm7690_vm3, %v7475_v62, 0.0  ;;  %v4556_v62 = vadd.f32 %v14588_v26, %v14237_v7 }
 0x42b   : > { %v15030_v33 = vadd.f32 %v14656_v24, %v6365_v48  ;;  %11889 = vmatprep.mubr.msk.f32.mxu1 %vm5320_vm2, %v5204_v16  ;;  %7809 = vadd.xlane.f32.xlu1 %v7808_v43  ;;  %v7811_v13 = vsel %vm7690_vm3, %v7474_v2, 0.0  ;;  %v5207_v2 = vmax.f32 %v4541_v31, 0.0  ;;  %v4551_v43 = vadd.f32 %v14588_v26, %v14218_v12 }
 0x42c   : > { %7812 = vadd.xlane.f32.xlu0 %v7811_v13  ;;  %v7477_v17 = vmul.f32 %v15023_v8, %v15023_v8  ;;  %v5208_v13 = vmax.f32 %v4546_v29, 0.0 }
 0x42d   : > { %v11732_v63 = vpop.f32.mrb[176].mxu1  ;;  %v7476_v59 = vmul.f32 %v15030_v33, %v15030_v33 }
 0x42e   : > { %v15041_v48 = vadd.f32 %v11732_v63, %v14656_v24  ;;  %v6375_v16 = vpop.f32.mrb[177].mxu1  ;;  %11890 = vmatmul.mubr.msk.f32.gmra.mrb[26].mxu1 %vm5320_vm2, %v5205_v27  ;;  %v7820_v31 = vsel %vm7690_vm3, %v7477_v17, 0.0  ;;  %v4566_v17 = vadd.f32 %v14588_v26, %v14251_v40 }
 0x42f   : > { %v15048_v37 = vadd.f32 %v14656_v24, %v6375_v16  ;;  %11892 = vmatprep.mubr.msk.f32.mxu1 %vm5320_vm2, %v5206_v60  ;;  %7815 = vadd.xlane.f32.xlu1 %v7814_v50  ;;  %v7817_v15 = vsel %vm7690_vm3, %v7476_v59, 0.0  ;;  %v5209_v59 = vmax.f32 %v4551_v43, 0.0  ;;  %v4561_v50 = vadd.f32 %v14588_v26, %v14232_v25 }
 0x430   : > { %7818 = vadd.xlane.f32.xlu0 %v7817_v15  ;;  %v7479_v12 = vmul.f32 %v15041_v48, %v15041_v48  ;;  %v5210_v15 = vmax.f32 %v4556_v62, 0.0 }
 0x431   : > { %v11735_v27 = vpop.f32.mrb[178].mxu1  ;;  %v7478_v63 = vmul.f32 %v15048_v37, %v15048_v37 }
 0x432   : > { %v15059_v16 = vadd.f32 %v11735_v27, %v14656_v24  ;;  %v6385_v60 = vpop.f32.mrb[179].mxu1  ;;  %11893 = vmatmul.mubr.msk.f32.gmra.mrb[28].mxu1 %vm5320_vm2, %v5207_v2  ;;  %v7826_v43 = vsel %vm7690_vm3, %v7479_v12, 0.0  ;;  %v4576_v12 = vadd.f32 %v14588_v26, %v14266_v9 }
 0x433   : > { %v15066_v29 = vadd.f32 %v14656_v24, %v6385_v60  ;;  %11895 = vmatprep.mubr.msk.f32.mxu1 %vm5320_vm2, %v5208_v13  ;;  %7821 = vadd.xlane.f32.xlu1 %v7820_v31  ;;  %v7823_v7 = vsel %vm7690_vm3, %v7478_v63, 0.0  ;;  %v5211_v63 = vmax.f32 %v4561_v50, 0.0  ;;  %v4571_v31 = vadd.f32 %v14588_v26, %v14246_v57 }
 0x434   : > { %7824 = vadd.xlane.f32.xlu0 %v7823_v7  ;;  %v7481_v25 = vmul.f32 %v15059_v16, %v15059_v16  ;;  %v5212_v7 = vmax.f32 %v4566_v17, 0.0 }
 0x435   : > { %v11738_v2 = vpop.f32.mrb[180].mxu1  ;;  %v7480_v27 = vmul.f32 %v15066_v29, %v15066_v29 }
 0x436   : > { %v15077_v60 = vadd.f32 %v11738_v2, %v14656_v24  ;;  %v6395_v13 = vpop.f32.mrb[181].mxu1  ;;  %11896 = vmatmul.mubr.msk.f32.gmra.mrb[30].mxu1 %vm5320_vm2, %v5209_v59  ;;  %v7832_v50 = vsel %vm7690_vm3, %v7481_v25, 0.0  ;;  %v4586_v25 = vadd.f32 %v14588_v26, %v14276_v3 }
 0x437   : > { %v15084_v62 = vadd.f32 %v14656_v24, %v6395_v13  ;;  %11898 = vmatprep.mubr.msk.f32.mxu1 %vm5320_vm2, %v5210_v15  ;;  %7827 = vadd.xlane.f32.xlu1 %v7826_v43  ;;  %v7829_v40 = vsel %vm7690_vm3, %v7480_v27, 0.0  ;;  %v5213_v27 = vmax.f32 %v4571_v31, 0.0  ;;  %v4581_v43 = vadd.f32 %v14588_v26, %v14262_v20 }
 0x438   : > { %7830 = vadd.xlane.f32.xlu0 %v7829_v40  ;;  %v7483_v57 = vmul.f32 %v15077_v60, %v15077_v60  ;;  %v5214_v40 = vmax.f32 %v4576_v12, 0.0 }
 0x439   : > { %v11741_v59 = vpop.f32.mrb[182].mxu1  ;;  %v7482_v2 = vmul.f32 %v15084_v62, %v15084_v62  ;;  %v5215_v26 = vmax.f32 %v4581_v43, 0.0 }
 0x43a   : > { %v15095_v13 = vadd.f32 %v11741_v59, %v14656_v24  ;;  %v6405_v15 = vpop.f32.mrb[183].mxu1  ;;  %11899 = vmatmul.mubr.msk.f32.gmra.mrb[32].mxu1 %vm5320_vm2, %v5211_v63  ;;  %v7838_v31 = vsel %vm7690_vm3, %v7483_v57, 0.0  ;;  %v5216_v57 = vmax.f32 %v4586_v25, 0.0 }
 0x43b   : > { %v15102_v17 = vadd.f32 %v14656_v24, %v6405_v15  ;;  %11901 = vmatprep.mubr.msk.f32.mxu1 %vm5320_vm2, %v5212_v7  ;;  %7833 = vadd.xlane.f32.xlu1 %v7832_v50  ;;  %v7835_v9 = vsel %vm7690_vm3, %v7482_v2, 0.0  ;;  %v15127_v2 = vld [vmem:[%s17435_s4] ss:$0 sm:$0xff] }
 0x43c   : > { %17799 = vst [vmem:[#allocation101_spill] sm:$0xff] %v15095_v13  ;;  %7836 = vadd.xlane.f32.xlu0 %v7835_v9  ;;  %v7485_v20 = vmul.f32 %v15095_v13, %v15095_v13  ;;  %v4591_v50 = vadd.f32 %v15127_v2, %v14273_v14  ;;  %v4596_v9 = vadd.f32 %v15127_v2, %v14285_v55 }
 0x43d   : > { %v11744_v63 = vpop.f32.mrb[184].mxu1  ;;  %v7484_v59 = vmul.f32 %v15102_v17, %v15102_v17 }
 0x43e   : > { %v15113_v15 = vadd.f32 %v11744_v63, %v14656_v24  ;;  %v6415_v7 = vpop.f32.mrb[185].mxu1  ;;  %11902 = vmatmul.mubr.msk.f32.gmra.mrb[34].mxu1 %vm5320_vm2, %v5213_v27 }
 0x43f   : > { %v15120_v12 = vadd.f32 %v14656_v24, %v6415_v7  ;;  %11904 = vmatprep.mubr.msk.f32.mxu1 %vm5320_vm2, %v5214_v40  ;;  %7839 = vadd.xlane.f32.xlu1 %v7838_v31  ;;  %v7841_v3 = vsel %vm7690_vm3, %v7484_v59, 0.0  ;;  %v7844_v59 = vsel %vm7690_vm3, %v7485_v20, 0.0  ;;  %v5217_v7 = vmax.f32 %v4591_v50, 0.0 }
 0x440   : > { %17800 = vst [vmem:[#allocation102_spill] sm:$0xff] %v15113_v15  ;;  %7842 = vadd.xlane.f32.xlu0 %v7841_v3  ;;  %v7487_v14 = vmul.f32 %v15113_v15, %v15113_v15  ;;  %v4601_v31 = vadd.f32 %v15127_v2, %v14282_v38  ;;  %v5218_v3 = vmax.f32 %v4596_v9, 0.0  ;;  %v4606_v20 = vadd.f32 %v15127_v2, %v14293_v39 }
 0x441   : > { %17801 = vst [vmem:[#allocation103_spill] sm:$0xff] %v15120_v12  ;;  %v11747_v27 = vpop.f32.mrb[186].mxu1  ;;  %v7486_v40 = vmul.f32 %v15120_v12, %v15120_v12 }
 0x442   : > { %v15136_v63 = vadd.f32 %v11747_v27, %v14656_v24  ;;  %v6425_v43 = vpop.f32.mrb[187].mxu1  ;;  %11905 = vmatmul.mubr.msk.f32.gmra.mrb[36].mxu1 %vm5320_vm2, %v5215_v26  ;;  %v7850_v50 = vsel %vm7690_vm3, %v7487_v14, 0.0 }
 0x443   : > { %v15143_v25 = vadd.f32 %v14656_v24, %v6425_v43  ;;  %11907 = vmatprep.mubr.msk.f32.mxu1 %vm5320_vm2, %v5216_v57  ;;  %7845 = vadd.xlane.f32.xlu1 %v7844_v59  ;;  %v7847_v55 = vsel %vm7690_vm3, %v7486_v40, 0.0  ;;  %v5219_v40 = vmax.f32 %v4601_v31, 0.0  ;;  %v4611_v59 = vadd.f32 %v15127_v2, %v14290_v32 }
 0x444   : > { %17802 = vst [vmem:[#allocation104_spill] sm:$0xff] %v15136_v63  ;;  %7848 = vadd.xlane.f32.xlu0 %v7847_v55  ;;  %v7489_v38 = vmul.f32 %v15136_v63, %v15136_v63  ;;  %v5220_v55 = vmax.f32 %v4606_v20, 0.0 }
 0x445   : > { %17803 = vst [vmem:[#allocation105_spill] sm:$0xff] %v15143_v25  ;;  %v11750_v26 = vpop.f32.mrb[188].mxu1  ;;  %v7488_v27 = vmul.f32 %v15143_v25, %v15143_v25 }
 0x446   : > { %v15154_v43 = vadd.f32 %v11750_v26, %v14656_v24  ;;  %v6435_v57 = vpop.f32.mrb[189].mxu1  ;;  %11908 = vmatmul.mubr.msk.f32.gmra.mrb[38].mxu1 %vm5320_vm2, %v5217_v7  ;;  %v17806_v7 = vld [vmem:[#allocation4_spill] sm:$0xff]  ;;  %v7856_v31 = vsel %vm7690_vm3, %v7489_v38, 0.0 }
 0x447   : > { %v15161_v9 = vadd.f32 %v14656_v24, %v6435_v57  ;;  %11910 = vmatprep.mubr.msk.f32.mxu1 %vm5320_vm2, %v5218_v3  ;;  %7851 = vadd.xlane.f32.xlu1 %v7850_v50  ;;  %v7853_v39 = vsel %vm7690_vm3, %v7488_v27, 0.0  ;;  %v4616_v14 = vadd.f32 %v15127_v2, %v17806_v7  ;;  %v5221_v50 = vmax.f32 %v4611_v59, 0.0 }
 0x448   : > { %17804 = vst [vmem:[#allocation106_spill] sm:$0xff] %v15154_v43  ;;  %7854 = vadd.xlane.f32.xlu0 %v7853_v39  ;;  %v7491_v32 = vmul.f32 %v15154_v43, %v15154_v43  ;;  %v17809_v39 = vld [vmem:[#allocation2_spill] sm:$0xff] }
 0x449   : > { %17805 = vst [vmem:[#allocation107_spill] sm:$0xff] %v15161_v9  ;;  %v11753_v26 = vpop.f32.mrb[190].mxu1  ;;  %v7490_v63 = vmul.f32 %v15161_v9, %v15161_v9  ;;  %v4621_v7 = vadd.f32 %v15127_v2, %v17809_v39  ;;  %v17813_v39 = vld [vmem:[#allocation3_spill] sm:$0xff] }
 0x44a   : > { %v15172_v57 = vadd.f32 %v11753_v26, %v14656_v24  ;;  %v6445_v3 = vpop.f32.mrb[191].mxu1  ;;  %11911 = vmatmul.mubr.msk.f32.gmra.mrb[40].mxu1 %vm5320_vm2, %v5219_v40  ;;  %v5222_v26 = vmax.f32 %v4616_v14, 0.0  ;;  %v17810_v40 = vld [vmem:[#allocation6_spill] sm:$0xff] }
 0x44b   : > { %v15179_v20 = vadd.f32 %v14656_v24, %v6445_v3  ;;  %11913 = vmatprep.mubr.msk.f32.mxu1 %vm5320_vm2, %v5220_v55  ;;  %7857 = vadd.xlane.f32.xlu1 %v7856_v31  ;;  %v7859_v27 = vsel %vm7690_vm3, %v7490_v63, 0.0  ;;  %v4626_v38 = vadd.f32 %v15127_v2, %v17810_v40  ;;  %v7862_v63 = vsel %vm7690_vm3, %v7491_v32, 0.0 }
 0x44c   : > { %17807 = vst [vmem:[#allocation4_spill] sm:$0xff] %v15172_v57  ;;  %7860 = vadd.xlane.f32.xlu0 %v7859_v27  ;;  %v7493_v59 = vmul.f32 %v15172_v57, %v15172_v57  ;;  %v5223_v27 = vmax.f32 %v4621_v7, 0.0 }
 0x44d   : > { %17808 = vst [vmem:[#allocation108_spill] sm:$0xff] %v15179_v20  ;;  %v11756_v9 = vpop.f32.mrb[192].mxu1  ;;  %v7492_v43 = vmul.f32 %v15179_v20, %v15179_v20  ;;  %v5224_v40 = vmax.f32 %v4626_v38, 0.0 }
 0x44e   : > { %v15190_v3 = vadd.f32 %v11756_v9, %v14656_v24  ;;  %v6455_v55 = vpop.f32.mrb[193].mxu1  ;;  %11914 = vmatmul.mubr.msk.f32.gmra.mrb[42].mxu1 %vm5320_vm2, %v5221_v50  ;;  %v4631_v9 = vadd.f32 %v15127_v2, %v17813_v39  ;;  %v17814_v50 = vld [vmem:[#allocation8_spill] sm:$0xff]  ;;  %v17817_v39 = vld [vmem:[#allocation5_spill] sm:$0xff] }
 0x44f   : > { %v15197_v14 = vadd.f32 %v14656_v24, %v6455_v55  ;;  %11916 = vmatprep.mubr.msk.f32.mxu1 %vm5320_vm2, %v5222_v26  ;;  %7863 = vadd.xlane.f32.xlu1 %v7862_v63  ;;  %v7865_v31 = vsel %vm7690_vm3, %v7492_v43, 0.0  ;;  %v4636_v32 = vadd.f32 %v15127_v2, %v17814_v50  ;;  %v15210_v24 = vld [vmem:[%s17437_s6] ss:$0 sm:$0xff]  ;;  %v7868_v26 = vsel %vm7690_vm3, %v7493_v59, 0.0 }
 0x450   : > { %17811 = vst [vmem:[#allocation2_spill] sm:$0xff] %v15190_v3  ;;  %7866 = vadd.xlane.f32.xlu0 %v7865_v31  ;;  %v7495_v38 = vmul.f32 %v15190_v3, %v15190_v3  ;;  %v5225_v31 = vmax.f32 %v4631_v9, 0.0 }
 0x451   : > { %17812 = vst [vmem:[#allocation6_spill] sm:$0xff] %v15197_v14  ;;  %v11759_v20 = vpop.f32.mrb[194].mxu1  ;;  %v7494_v57 = vmul.f32 %v15197_v14, %v15197_v14  ;;  %v5226_v50 = vmax.f32 %v4636_v32, 0.0 }
 0x452   : > { %v15213_v43 = vadd.f32 %v15210_v24, %v11759_v20  ;;  %v6465_v7 = vpop.f32.mrb[195].mxu1  ;;  %11917 = vmatmul.mubr.msk.f32.gmra.mrb[44].mxu1 %vm5320_vm2, %v5223_v27  ;;  %v4641_v20 = vadd.f32 %v15127_v2, %v17817_v39  ;;  %v17818_v27 = vld [vmem:[#allocation10_spill] sm:$0xff]  ;;  %v17821_v39 = vld [vmem:[#allocation7_spill] sm:$0xff] }
 0x453   : > { %v15220_v55 = vadd.f32 %v15210_v24, %v6465_v7  ;;  %11919 = vmatprep.mubr.msk.f32.mxu1 %vm5320_vm2, %v5224_v40  ;;  %7869 = vadd.xlane.f32.xlu1 %v7868_v26  ;;  %v7871_v63 = vsel %vm7690_vm3, %v7494_v57, 0.0  ;;  %v4646_v59 = vadd.f32 %v15127_v2, %v17818_v27  ;;  %v7874_v57 = vsel %vm7690_vm3, %v7495_v38, 0.0 }
 0x454   : > { %17815 = vst [vmem:[#allocation3_spill] sm:$0xff] %v15213_v43  ;;  %7872 = vadd.xlane.f32.xlu0 %v7871_v63  ;;  %v7497_v9 = vmul.f32 %v15213_v43, %v15213_v43  ;;  %v5227_v63 = vmax.f32 %v4641_v20, 0.0 }
 0x455   : > { %17816 = vst [vmem:[#allocation8_spill] sm:$0xff] %v15220_v55  ;;  %v11762_v14 = vpop.f32.mrb[196].mxu1  ;;  %v7496_v3 = vmul.f32 %v15220_v55, %v15220_v55  ;;  %v5228_v27 = vmax.f32 %v4646_v59, 0.0 }
 0x456   : > { %v15231_v7 = vadd.f32 %v15210_v24, %v11762_v14  ;;  %v6475_v40 = vpop.f32.mrb[197].mxu1  ;;  %11920 = vmatmul.mubr.msk.f32.gmra.mrb[46].mxu1 %vm5320_vm2, %v5225_v31  ;;  %v4651_v14 = vadd.f32 %v15127_v2, %v17821_v39  ;;  %v17822_v31 = vld [vmem:[#allocation12_spill] sm:$0xff]  ;;  %v17825_v39 = vld [vmem:[#allocation9_spill] sm:$0xff] }
 0x457   : > { %v15238_v32 = vadd.f32 %v15210_v24, %v6475_v40  ;;  %11922 = vmatprep.mubr.msk.f32.mxu1 %vm5320_vm2, %v5226_v50  ;;  %7875 = vadd.xlane.f32.xlu1 %v7874_v57  ;;  %v7877_v26 = vsel %vm7690_vm3, %v7496_v3, 0.0  ;;  %v4656_v38 = vadd.f32 %v15127_v2, %v17822_v31  ;;  %v7880_v3 = vsel %vm7690_vm3, %v7497_v9, 0.0 }
 0x458   : > { %17819 = vst [vmem:[#allocation5_spill] sm:$0xff] %v15231_v7  ;;  %7878 = vadd.xlane.f32.xlu0 %v7877_v26  ;;  %v7499_v20 = vmul.f32 %v15231_v7, %v15231_v7  ;;  %v5229_v26 = vmax.f32 %v4651_v14, 0.0 }
 0x459   : > { %17820 = vst [vmem:[#allocation10_spill] sm:$0xff] %v15238_v32  ;;  %v11765_v55 = vpop.f32.mrb[198].mxu1  ;;  %v7498_v43 = vmul.f32 %v15238_v32, %v15238_v32  ;;  %v5230_v31 = vmax.f32 %v4656_v38, 0.0 }
 0x45a   : > { %v15249_v40 = vadd.f32 %v15210_v24, %v11765_v55  ;;  %v6485_v50 = vpop.f32.mrb[199].mxu1  ;;  %11923 = vmatmul.mubr.msk.f32.gmra.mrb[48].mxu1 %vm5320_vm2, %v5227_v63  ;;  %v4661_v55 = vadd.f32 %v15127_v2, %v17825_v39  ;;  %v17826_v63 = vld [vmem:[#allocation14_spill] sm:$0xff]  ;;  %v17829_v39 = vld [vmem:[#allocation11_spill] sm:$0xff] }
 0x45b   : > { %v15256_v59 = vadd.f32 %v15210_v24, %v6485_v50  ;;  %11925 = vmatprep.mubr.msk.f32.mxu1 %vm5320_vm2, %v5228_v27  ;;  %7881 = vadd.xlane.f32.xlu1 %v7880_v3  ;;  %v7883_v57 = vsel %vm7690_vm3, %v7498_v43, 0.0  ;;  %v4666_v9 = vadd.f32 %v15127_v2, %v17826_v63  ;;  %v7886_v43 = vsel %vm7690_vm3, %v7499_v20, 0.0 }
 0x45c   : > { %17823 = vst [vmem:[#allocation7_spill] sm:$0xff] %v15249_v40  ;;  %7884 = vadd.xlane.f32.xlu0 %v7883_v57  ;;  %v7501_v14 = vmul.f32 %v15249_v40, %v15249_v40  ;;  %v5231_v57 = vmax.f32 %v4661_v55, 0.0 }
 0x45d   : > { %17824 = vst [vmem:[#allocation12_spill] sm:$0xff] %v15256_v59  ;;  %v11768_v32 = vpop.f32.mrb[200].mxu1  ;;  %v7500_v7 = vmul.f32 %v15256_v59, %v15256_v59  ;;  %v5232_v63 = vmax.f32 %v4666_v9, 0.0 }
 0x45e   : > { %v15267_v50 = vadd.f32 %v15210_v24, %v11768_v32  ;;  %v6495_v27 = vpop.f32.mrb[201].mxu1  ;;  %11926 = vmatmul.mubr.msk.f32.gmra.mrb[50].mxu1 %vm5320_vm2, %v5229_v26  ;;  %v4671_v32 = vadd.f32 %v15127_v2, %v17829_v39  ;;  %v17830_v26 = vld [vmem:[#allocation16_spill] sm:$0xff]  ;;  %v17833_v39 = vld [vmem:[#allocation13_spill] sm:$0xff] }
 0x45f   : > { %v15274_v38 = vadd.f32 %v15210_v24, %v6495_v27  ;;  %11928 = vmatprep.mubr.msk.f32.mxu1 %vm5320_vm2, %v5230_v31  ;;  %7887 = vadd.xlane.f32.xlu1 %v7886_v43  ;;  %v7889_v3 = vsel %vm7690_vm3, %v7500_v7, 0.0  ;;  %v4676_v20 = vadd.f32 %v15127_v2, %v17830_v26  ;;  %v7892_v7 = vsel %vm7690_vm3, %v7501_v14, 0.0 }
 0x460   : > { %17827 = vst [vmem:[#allocation9_spill] sm:$0xff] %v15267_v50  ;;  %7890 = vadd.xlane.f32.xlu0 %v7889_v3  ;;  %v7503_v55 = vmul.f32 %v15267_v50, %v15267_v50  ;;  %v5233_v3 = vmax.f32 %v4671_v32, 0.0 }
 0x461   : > { %17828 = vst [vmem:[#allocation14_spill] sm:$0xff] %v15274_v38  ;;  %v11771_v59 = vpop.f32.mrb[202].mxu1  ;;  %v7502_v40 = vmul.f32 %v15274_v38, %v15274_v38  ;;  %v5234_v26 = vmax.f32 %v4676_v20, 0.0 }
 0x462   : > { %v15285_v27 = vadd.f32 %v15210_v24, %v11771_v59  ;;  %v6505_v31 = vpop.f32.mrb[203].mxu1  ;;  %11929 = vmatmul.mubr.msk.f32.gmra.mrb[52].mxu1 %vm5320_vm2, %v5231_v57  ;;  %v4681_v59 = vadd.f32 %v15127_v2, %v17833_v39  ;;  %v17834_v57 = vld [vmem:[#allocation18_spill] sm:$0xff]  ;;  %v17837_v39 = vld [vmem:[#allocation15_spill] sm:$0xff] }
 0x463   : > { %v15292_v9 = vadd.f32 %v15210_v24, %v6505_v31  ;;  %11931 = vmatprep.mubr.msk.f32.mxu1 %vm5320_vm2, %v5232_v63  ;;  %7893 = vadd.xlane.f32.xlu1 %v7892_v7  ;;  %v7895_v43 = vsel %vm7690_vm3, %v7502_v40, 0.0  ;;  %v4686_v14 = vadd.f32 %v15127_v2, %v17834_v57  ;;  %v7898_v40 = vsel %vm7690_vm3, %v7503_v55, 0.0 }
 0x464   : > { %17831 = vst [vmem:[#allocation11_spill] sm:$0xff] %v15285_v27  ;;  %7896 = vadd.xlane.f32.xlu0 %v7895_v43  ;;  %v7505_v32 = vmul.f32 %v15285_v27, %v15285_v27  ;;  %v5235_v43 = vmax.f32 %v4681_v59, 0.0 }
 0x465   : > { %17832 = vst [vmem:[#allocation16_spill] sm:$0xff] %v15292_v9  ;;  %v11774_v38 = vpop.f32.mrb[204].mxu1  ;;  %v7504_v50 = vmul.f32 %v15292_v9, %v15292_v9  ;;  %v17838_v9 = vld [vmem:[#allocation20_spill] sm:$0xff] }
 0x466   : > { %v15303_v31 = vadd.f32 %v15210_v24, %v11774_v38  ;;  %v6515_v63 = vpop.f32.mrb[205].mxu1  ;;  %11932 = vmatmul.mubr.msk.f32.gmra.mrb[54].mxu1 %vm5320_vm2, %v5233_v3  ;;  %v4691_v38 = vadd.f32 %v15127_v2, %v17837_v39  ;;  %v5236_v3 = vmax.f32 %v4686_v14, 0.0  ;;  %v4696_v55 = vadd.f32 %v15127_v2, %v17838_v9  ;;  %v17841_v39 = vld [vmem:[#allocation17_spill] sm:$0xff] }
 0x467   : > { %v15310_v20 = vadd.f32 %v15210_v24, %v6515_v63  ;;  %11934 = vmatprep.mubr.msk.f32.mxu1 %vm5320_vm2, %v5234_v26  ;;  %7899 = vadd.xlane.f32.xlu1 %v7898_v40  ;;  %v7901_v7 = vsel %vm7690_vm3, %v7504_v50, 0.0  ;;  %v7904_v50 = vsel %vm7690_vm3, %v7505_v32, 0.0  ;;  %v17842_v32 = vld [vmem:[#allocation22_spill] sm:$0xff] }
 0x468   : > { %17835 = vst [vmem:[#allocation13_spill] sm:$0xff] %v15303_v31  ;;  %v7696_v57 = vpop.xlane.xlu0 %7695  ;;  %7902 = vadd.xlane.f32.xlu0 %v7901_v7  ;;  %v7507_v59 = vmul.f32 %v15303_v31, %v15303_v31  ;;  %v5237_v7 = vmax.f32 %v4691_v38, 0.0  ;;  %v4706_v25 = vadd.f32 %v15127_v2, %v17842_v32 }
 0x469   : > { %17836 = vst [vmem:[#allocation18_spill] sm:$0xff] %v15310_v20  ;;  %12102 = vrsqrt.f32 %v7696_v57  ;;  %v11777_v27 = vpop.f32.mrb[206].mxu1  ;;  %v7506_v63 = vmul.f32 %v15310_v20, %v15310_v20  ;;  %v5238_v20 = vmax.f32 %v4696_v55, 0.0 }
 0x46a   : > { %v15321_v26 = vadd.f32 %v15210_v24, %v11777_v27  ;;  %v6525_v40 = vpop.f32.mrb[207].mxu1  ;;  %11935 = vmatmul.mubr.msk.f32.gmra.mrb[56].mxu1 %vm5320_vm2, %v5235_v43  ;;  %v4701_v27 = vadd.f32 %v15127_v2, %v17841_v39 }
 0x46b   : > { %v15328_v14 = vadd.f32 %v15210_v24, %v6525_v40  ;;  %11937 = vmatprep.mubr.msk.f32.mxu1 %vm5320_vm2, %v5236_v3  ;;  %7905 = vadd.xlane.f32.xlu1 %v7904_v50  ;;  %v7907_v9 = vsel %vm7690_vm3, %v7506_v63, 0.0  ;;  %v7910_v63 = vsel %vm7690_vm3, %v7507_v59, 0.0  ;;  %v17846_v59 = vld [vmem:[#allocation24_spill] sm:$0xff] }
 0x46c   : > { %17839 = vst [vmem:[#allocation15_spill] sm:$0xff] %v15321_v26  ;;  %v7702_v57 = vpop.xlane.xlu1 %7701  ;;  %7908 = vadd.xlane.f32.xlu0 %v7907_v9  ;;  %v7693_v43 = vpop.xlane.xlu0 %7692  ;;  %v7509_v55 = vmul.f32 %v15321_v26, %v15321_v26  ;;  %v5239_v39 = vmax.f32 %v4701_v27, 0.0  ;;  %v4716_v32 = vadd.f32 %v15127_v2, %v17846_v59  ;;  %v17850_v59 = vld [vmem:[#allocation90_spill] sm:$0xff] }
 0x46d   : > { %17840 = vst [vmem:[#allocation20_spill] sm:$0xff] %v15328_v14  ;;  %12104 = vrsqrt.f32 %v7702_v57  ;;  %v11780_v31 = vpop.f32.mrb[208].mxu1  ;;  %v7508_v40 = vmul.f32 %v15328_v14, %v15328_v14  ;;  %v17845_v57 = vld [vmem:[#allocation19_spill] sm:$0xff]  ;;  %v17851_v14 = vld [vmem:[#allocation26_spill] sm:$0xff] }
 0x46e   : > { %12106 = vrsqrt.f32 %v7693_v43  ;;  %v15339_v3 = vadd.f32 %v15210_v24, %v11780_v31  ;;  %v6535_v38 = vpop.f32.mrb[209].mxu1  ;;  %11938 = vmatmul.mubr.msk.f32.gmra.mrb[58].mxu1 %vm5320_vm2, %v5237_v7  ;;  %v4711_v31 = vadd.f32 %v15127_v2, %v17845_v57  ;;  %v5240_v7 = vmax.f32 %v4706_v25, 0.0  ;;  %v17849_v57 = vld [vmem:[#allocation21_spill] sm:$0xff] }
 0x46f   : > { %v15346_v50 = vadd.f32 %v15210_v24, %v6535_v38  ;;  %11940 = vmatprep.mubr.msk.f32.mxu1 %vm5320_vm2, %v5238_v20  ;;  %7911 = vadd.xlane.f32.xlu1 %v7910_v63  ;;  %v7913_v9 = vsel %vm7690_vm3, %v7508_v40, 0.0  ;;  %v7916_v40 = vsel %vm7690_vm3, %v7509_v55, 0.0  ;;  %v4726_v15 = vadd.f32 %v15127_v2, %v17851_v14 }
 0x470   : > { %17843 = vst [vmem:[#allocation17_spill] sm:$0xff] %v15339_v3  ;;  %v7699_v43 = vpop.xlane.xlu1 %7698  ;;  %7914 = vadd.xlane.f32.xlu0 %v7913_v9  ;;  %v7511_v25 = vmul.f32 %v15339_v3, %v15339_v3  ;;  %v5241_v55 = vmax.f32 %v4711_v31, 0.0 }
 0x471   : > { %17844 = vst [vmem:[#allocation22_spill] sm:$0xff] %v15346_v50  ;;  %12108 = vrsqrt.f32 %v7699_v43  ;;  %v11783_v26 = vpop.f32.mrb[210].mxu1  ;;  %v7705_v38 = vpop.xlane.xlu0 %7704  ;;  %v7510_v20 = vmul.f32 %v15346_v50, %v15346_v50  ;;  %v4721_v43 = vadd.f32 %v15127_v2, %v17849_v57  ;;  %v5242_v50 = vmax.f32 %v4716_v32, 0.0  ;;  %v17854_v57 = vld [vmem:[#allocation23_spill] sm:$0xff] }
 0x472   : > { %v15357_v63 = vadd.f32 %v15210_v24, %v11783_v26  ;;  %12110 = vrsqrt.f32 %v7705_v38  ;;  %v6545_v27 = vpop.f32.mrb[211].mxu1  ;;  %11941 = vmatmul.mubr.msk.f32.gmra.mrb[60].mxu1 %vm5320_vm2, %v5239_v39  ;;  %v7922_v32 = vsel %vm7690_vm3, %v7511_v25, 0.0 }
 0x473   : > { %v12103_v9 = vpop.eup %12102  ;;  %v15371_v26 = vadd.f32 %v15210_v24, %v6545_v27  ;;  %11943 = vmatprep.mubr.msk.f32.mxu1 %vm5320_vm2, %v5240_v7  ;;  %7917 = vadd.xlane.f32.xlu1 %v7916_v40  ;;  %v7919_v39 = vsel %vm7690_vm3, %v7510_v20, 0.0 }
 0x474   : > { %17847 = vst [vmem:[#allocation19_spill] sm:$0xff] %v15357_v63  ;;  %v8716_v38 = vmul.f32 %v12103_v9, %v17850_v59  ;;  %v7708_v3 = vpop.xlane.xlu1 %7707  ;;  %7920 = vadd.xlane.f32.xlu0 %v7919_v39  ;;  %v7513_v14 = vmul.f32 %v15357_v63, %v15357_v63  ;;  %v17855_v59 = vld [vmem:[#allocation28_spill] sm:$0xff] }
 0x475   : > { %17848 = vst [vmem:[#allocation24_spill] sm:$0xff] %v15371_v26  ;;  %12112 = vrsqrt.f32 %v7708_v3  ;;  %v11786_v27 = vpop.f32.mrb[212].mxu1  ;;  %v7711_v12 = vpop.xlane.xlu0 %7710  ;;  %v7512_v7 = vmul.f32 %v15371_v26, %v15371_v26  ;;  %v4736_v25 = vadd.f32 %v15127_v2, %v17855_v59  ;;  %v17857_v26 = vld [vmem:[#allocation91_spill] sm:$0xff] }
 0x476   : > { %8972 = vst.msk [vmem:[%s15368_s30 + $0x8] sm:$0xff] %vm7690_vm3, %v8716_v38  ;;  %v15385_v31 = vadd.f32 %v15210_v24, %v11786_v27  ;;  %12114 = vrsqrt.f32 %v7711_v12  ;;  %v6555_v20 = vpop.f32.mrb[213].mxu1  ;;  %11944 = vmatmul.mubr.msk.f32.gmra.mrb[62].mxu1 %vm5320_vm2, %v5241_v55  ;;  %v5243_v12 = vmax.f32 %v4721_v43, 0.0  ;;  %v4731_v55 = vadd.f32 %v15127_v2, %v17854_v57  ;;  %v17856_v38 = vld [vmem:[#allocation92_spill] sm:$0xff] }
 0x477   : > { %v12105_v3 = vpop.eup %12104  ;;  %v15392_v40 = vadd.f32 %v15210_v24, %v6555_v20  ;;  %11946 = vmatprep.mubr.msk.f32.mxu1 %vm5320_vm2, %v5242_v50  ;;  %7923 = vadd.xlane.f32.xlu1 %v7922_v32  ;;  %v7925_v9 = vsel %vm7690_vm3, %v7512_v7, 0.0  ;;  %v5244_v20 = vmax.f32 %v4726_v15, 0.0  ;;  %v5246_v59 = vmax.f32 %v4736_v25, 0.0 }
 0x478   : > { %17852 = vst [vmem:[#allocation21_spill] sm:$0xff] %v15385_v31  ;;  %v12107_v39 = vpop.eup %12106  ;;  %v8718_v27 = vmul.f32 %v12105_v3, %v17856_v38  ;;  %v7714_v63 = vpop.xlane.xlu1 %7713  ;;  %7926 = vadd.xlane.f32.xlu0 %v7925_v9  ;;  %v7928_v3 = vsel %vm7690_vm3, %v7513_v14, 0.0  ;;  %v7515_v15 = vmul.f32 %v15385_v31, %v15385_v31  ;;  %v17861_v38 = vld [vmem:[#allocation93_spill] sm:$0xff]  ;;  %v17863_v31 = vld [vmem:[#allocation95_spill] sm:$0xff] }
 0x479   : > { %17853 = vst [vmem:[#allocation90_spill] sm:$0xff] %v15392_v40  ;;  %v8715_v50 = vmul.f32 %v12107_v39, %v17857_v26  ;;  %12116 = vrsqrt.f32 %v7714_v63  ;;  %v11789_v32 = vpop.f32.mrb[214].mxu1  ;;  %v7717_v13 = vpop.xlane.xlu0 %7716  ;;  %v7514_v43 = vmul.f32 %v15392_v40, %v15392_v40  ;;  %v5245_v39 = vmax.f32 %v4731_v55, 0.0 }
 0x47a   : > { %8974 = vst.msk [vmem:[%s15368_s30 + $0x18] sm:$0xff] %vm7690_vm3, %v8718_v27  ;;  %v15407_v7 = vadd.f32 %v15210_v24, %v11789_v32  ;;  %12118 = vrsqrt.f32 %v7717_v13  ;;  %v6565_v57 = vpop.f32.mrb[215].mxu1  ;;  %11947 = vmatmul.mubr.msk.f32.gmra.mrb[64].mxu1 %vm5320_vm2, %v5243_v12  ;;  %v17860_v12 = vld [vmem:[#allocation25_spill] sm:$0xff] }
 0x47b   : > { %v12109_v63 = vpop.eup %12108  ;;  %8971 = vst.msk [vmem:[%s15368_s30] sm:$0xff] %vm7690_vm3, %v8715_v50  ;;  %v15416_v26 = vadd.f32 %v15210_v24, %v6565_v57  ;;  %11949 = vmatprep.mubr.msk.f32.mxu1 %vm5320_vm2, %v5244_v20  ;;  %7929 = vadd.xlane.f32.xlu1 %v7928_v3  ;;  %v7931_v13 = vsel %vm7690_vm3, %v7514_v43, 0.0  ;;  %v4741_v14 = vadd.f32 %v15127_v2, %v17860_v12  ;;  %v17862_v50 = vld [vmem:[#allocation30_spill] sm:$0xff] }
 0x47c   : > { %17858 = vst [vmem:[#allocation26_spill] sm:$0xff] %v15407_v7  ;;  %v12111_v9 = vpop.eup %12110  ;;  %v8717_v27 = vmul.f32 %v12109_v63, %v17861_v38  ;;  %v7720_v32 = vpop.xlane.xlu1 %7719  ;;  %7932 = vadd.xlane.f32.xlu0 %v7931_v13  ;;  %v4746_v57 = vadd.f32 %v15127_v2, %v17862_v50  ;;  %v7934_v63 = vsel %vm7690_vm3, %v7515_v15, 0.0  ;;  %v17868_v50 = vld [vmem:[#allocation94_spill] sm:$0xff] }
 0x47d   : > { %17859 = vst [vmem:[#allocation23_spill] sm:$0xff] %v15416_v26  ;;  %v8719_v20 = vmul.f32 %v12111_v9, %v17863_v31  ;;  %12120 = vrsqrt.f32 %v7720_v32  ;;  %v11792_v3 = vpop.f32.mrb[216].mxu1  ;;  %v7723_v40 = vpop.xlane.xlu0 %7722  ;;  %v7516_v55 = vmul.f32 %v15416_v26, %v15416_v26  ;;  %v7517_v31 = vmul.f32 %v15407_v7, %v15407_v7  ;;  %v17869_v7 = vld [vmem:[#allocation97_spill] sm:$0xff] }
 0x47e   : > { %8973 = vst.msk [vmem:[%s15368_s30 + $0x10] sm:$0xff] %vm7690_vm3, %v8717_v27  ;;  %v15431_v25 = vadd.f32 %v15210_v24, %v11792_v3  ;;  %12122 = vrsqrt.f32 %v7723_v40  ;;  %v6575_v43 = vpop.f32.mrb[217].mxu1  ;;  %11950 = vmatmul.mubr.msk.f32.gmra.mrb[66].mxu1 %vm5320_vm2, %v5245_v39  ;;  %v5247_v38 = vmax.f32 %v4741_v14, 0.0  ;;  %v17866_v39 = vld [vmem:[#allocation27_spill] sm:$0xff]  ;;  %v17867_v27 = vld [vmem:[#allocation32_spill] sm:$0xff] }
 0x47f   : > { %v12113_v13 = vpop.eup %12112  ;;  %8975 = vst.msk [vmem:[%s15368_s30 + $0x20] sm:$0xff] %vm7690_vm3, %v8719_v20  ;;  %v15440_v9 = vadd.f32 %v15210_v24, %v6575_v43  ;;  %11952 = vmatprep.mubr.msk.f32.mxu1 %vm5320_vm2, %v5246_v59  ;;  %7935 = vadd.xlane.f32.xlu1 %v7934_v63  ;;  %v7937_v40 = vsel %vm7690_vm3, %v7516_v55, 0.0  ;;  %v4751_v15 = vadd.f32 %v15127_v2, %v17866_v39  ;;  %v5248_v43 = vmax.f32 %v4746_v57, 0.0 }
 0x480   : > { %17864 = vst [vmem:[#allocation28_spill] sm:$0xff] %v15431_v25  ;;  %v12115_v12 = vpop.eup %12114  ;;  %v4756_v32 = vadd.f32 %v15127_v2, %v17867_v27  ;;  %v8720_v3 = vmul.f32 %v12113_v13, %v17868_v50  ;;  %v7726_v20 = vpop.xlane.xlu1 %7725  ;;  %7938 = vadd.xlane.f32.xlu0 %v7937_v40  ;;  %v7940_v13 = vsel %vm7690_vm3, %v7517_v31, 0.0 }
 0x481   : > { %17865 = vst [vmem:[#allocation92_spill] sm:$0xff] %v15440_v9  ;;  %v8721_v59 = vmul.f32 %v12115_v12, %v17869_v7  ;;  %12124 = vrsqrt.f32 %v7726_v20  ;;  %v11795_v63 = vpop.f32.mrb[218].mxu1  ;;  %v7729_v26 = vpop.xlane.xlu0 %7728  ;;  %v7518_v14 = vmul.f32 %v15440_v9, %v15440_v9  ;;  %v7519_v7 = vmul.f32 %v15431_v25, %v15431_v25  ;;  %v17875_v25 = vld [vmem:[#allocation99_spill] sm:$0xff] }
 0x482   : > { %8976 = vst.msk [vmem:[%s15368_s30 + $0x28] sm:$0xff] %vm7690_vm3, %v8720_v3  ;;  %v15455_v55 = vadd.f32 %v15210_v24, %v11795_v63  ;;  %12126 = vrsqrt.f32 %v7729_v26  ;;  %v6585_v39 = vpop.f32.mrb[219].mxu1  ;;  %11953 = vmatmul.mubr.msk.f32.gmra.mrb[68].mxu1 %vm5320_vm2, %v5247_v38  ;;  %v5249_v27 = vmax.f32 %v4751_v15, 0.0  ;;  %v17872_v38 = vld [vmem:[#allocation29_spill] sm:$0xff]  ;;  %v5250_v50 = vmax.f32 %v4756_v32, 0.0  ;;  %v17873_v3 = vld [vmem:[#allocation96_spill] sm:$0xff] }
 0x483   : > { %v12117_v57 = vpop.eup %12116  ;;  %8977 = vst.msk [vmem:[%s15368_s30 + $0x30] sm:$0xff] %vm7690_vm3, %v8721_v59  ;;  %v15464_v40 = vadd.f32 %v15210_v24, %v6585_v39  ;;  %11955 = vmatprep.mubr.msk.f32.mxu1 %vm5320_vm2, %v5248_v43  ;;  %7941 = vadd.xlane.f32.xlu1 %v7940_v13  ;;  %v7943_v26 = vsel %vm7690_vm3, %v7518_v14, 0.0  ;;  %v4761_v31 = vadd.f32 %v15127_v2, %v17872_v38  ;;  %v17874_v59 = vld [vmem:[#allocation34_spill] sm:$0xff] }
 0x484   : > { %17870 = vst [vmem:[#allocation91_spill] sm:$0xff] %v15455_v55  ;;  %v12119_v12 = vpop.eup %12118  ;;  %v8722_v20 = vmul.f32 %v12117_v57, %v17873_v3  ;;  %v7732_v63 = vpop.xlane.xlu1 %7731  ;;  %7944 = vadd.xlane.f32.xlu0 %v7943_v26  ;;  %v4766_v39 = vadd.f32 %v15127_v2, %v17874_v59  ;;  %v7946_v57 = vsel %vm7690_vm3, %v7519_v7, 0.0  ;;  %v17878_v59 = vld [vmem:[#allocation98_spill] sm:$0xff] }
 0x485   : > { %17871 = vst [vmem:[#allocation25_spill] sm:$0xff] %v15464_v40  ;;  %v8723_v43 = vmul.f32 %v12119_v12, %v17875_v25  ;;  %12128 = vrsqrt.f32 %v7732_v63  ;;  %v11798_v13 = vpop.f32.mrb[220].mxu1  ;;  %v7735_v9 = vpop.xlane.xlu0 %7734  ;;  %v7520_v15 = vmul.f32 %v15464_v40, %v15464_v40  ;;  %v7521_v25 = vmul.f32 %v15455_v55, %v15455_v55  ;;  %v17879_v55 = vld [vmem:[#allocation100_spill] sm:$0xff] }
 0x486   : > { %8978 = vst.msk [vmem:[%s15368_s30 + $0x38] sm:$0xff] %vm7690_vm3, %v8722_v20  ;;  %v15479_v32 = vadd.f32 %v15210_v24, %v11798_v13  ;;  %12130 = vrsqrt.f32 %v7735_v9  ;;  %v6595_v14 = vpop.f32.mrb[221].mxu1  ;;  %11956 = vmatmul.mubr.msk.f32.gmra.mrb[70].mxu1 %vm5320_vm2, %v5249_v27  ;;  %v5251_v3 = vmax.f32 %v4761_v31, 0.0  ;;  %v17876_v27 = vld [vmem:[#allocation31_spill] sm:$0xff]  ;;  %v17877_v20 = vld [vmem:[#allocation36_spill] sm:$0xff] }
 0x487   : > { %v12121_v26 = vpop.eup %12120  ;;  %8979 = vst.msk [vmem:[%s15368_s30 + $0x40] sm:$0xff] %vm7690_vm3, %v8723_v43  ;;  %v15488_v12 = vadd.f32 %v15210_v24, %v6595_v14  ;;  %11958 = vmatprep.mubr.msk.f32.mxu1 %vm5320_vm2, %v5250_v50  ;;  %7947 = vadd.xlane.f32.xlu1 %v7946_v57  ;;  %v7949_v9 = vsel %vm7690_vm3, %v7520_v15, 0.0  ;;  %v4771_v7 = vadd.f32 %v15127_v2, %v17876_v27  ;;  %v5252_v14 = vmax.f32 %v4766_v39, 0.0 }
 0x488   : > { %v12123_v38 = vpop.eup %12122  ;;  %v4776_v63 = vadd.f32 %v15127_v2, %v17877_v20  ;;  %v8724_v13 = vmul.f32 %v12121_v26, %v17878_v59  ;;  %v7738_v43 = vpop.xlane.xlu1 %7737  ;;  %7950 = vadd.xlane.f32.xlu0 %v7949_v9  ;;  %v7952_v26 = vsel %vm7690_vm3, %v7521_v25, 0.0 }
 0x489   : > { %v8725_v50 = vmul.f32 %v12123_v38, %v17879_v55  ;;  %12132 = vrsqrt.f32 %v7738_v43  ;;  %v11801_v57 = vpop.f32.mrb[222].mxu1  ;;  %v7741_v40 = vpop.xlane.xlu0 %7740  ;;  %v7522_v31 = vmul.f32 %v15488_v12, %v15488_v12  ;;  %v7523_v55 = vmul.f32 %v15479_v32, %v15479_v32 }
 0x48a   : > { %8980 = vst.msk [vmem:[%s15368_s30 + $0x48] sm:$0xff] %vm7690_vm3, %v8724_v13  ;;  %v15503_v15 = vadd.f32 %v15210_v24, %v11801_v57  ;;  %12134 = vrsqrt.f32 %v7741_v40  ;;  %v6605_v27 = vpop.f32.mrb[223].mxu1  ;;  %11959 = vmatmul.mubr.msk.f32.gmra.mrb[72].mxu1 %vm5320_vm2, %v5251_v3  ;;  %v5253_v20 = vmax.f32 %v4771_v7, 0.0  ;;  %v17880_v3 = vld [vmem:[#allocation33_spill] sm:$0xff]  ;;  %v5254_v59 = vmax.f32 %v4776_v63, 0.0 }
 0x48b   : > { %v12125_v39 = vpop.eup %12124  ;;  %8981 = vst.msk [vmem:[%s15368_s30 + $0x50] sm:$0xff] %vm7690_vm3, %v8725_v50  ;;  %v15512_v9 = vadd.f32 %v15210_v24, %v6605_v27  ;;  %11961 = vmatprep.mubr.msk.f32.mxu1 %vm5320_vm2, %v5252_v14  ;;  %7953 = vadd.xlane.f32.xlu1 %v7952_v26  ;;  %v7955_v40 = vsel %vm7690_vm3, %v7522_v31, 0.0  ;;  %v4781_v25 = vadd.f32 %v15127_v2, %v17880_v3  ;;  %v17881_v50 = vld [vmem:[#allocation38_spill] sm:$0xff]  ;;  %v7958_v31 = vsel %vm7690_vm3, %v7523_v55, 0.0 }
 0x48c   : > { %v12127_v38 = vpop.eup %12126  ;;  %v8726_v13 = vmul.f32 %v12125_v39, %v14737_v45  ;;  %v7744_v43 = vpop.xlane.xlu1 %7743  ;;  %7956 = vadd.xlane.f32.xlu0 %v7955_v40  ;;  %v4786_v57 = vadd.f32 %v15127_v2, %v17881_v50 }
 0x48d   : > { %v8727_v14 = vmul.f32 %v12127_v38, %v14760_v10  ;;  %12136 = vrsqrt.f32 %v7744_v43  ;;  %v11804_v27 = vpop.f32.mrb[224].mxu1  ;;  %v7747_v26 = vpop.xlane.xlu0 %7746  ;;  %v7524_v7 = vmul.f32 %v15512_v9, %v15512_v9  ;;  %v7525_v10 = vmul.f32 %v15503_v15, %v15503_v15  ;;  %v17883_v43 = vld [vmem:[#allocation40_spill] sm:$0xff] }
 0x48e   : > { %8982 = vst.msk [vmem:[%s15368_s30 + $0x58] sm:$0xff] %vm7690_vm3, %v8726_v13  ;;  %v15527_v63 = vadd.f32 %v15210_v24, %v11804_v27  ;;  %12138 = vrsqrt.f32 %v7747_v26  ;;  %v6615_v45 = vpop.f32.mrb[225].mxu1  ;;  %11962 = vmatmul.mubr.msk.f32.gmra.mrb[74].mxu1 %vm5320_vm2, %v5253_v20  ;;  %v5255_v13 = vmax.f32 %v4781_v25, 0.0  ;;  %v17882_v20 = vld [vmem:[#allocation35_spill] sm:$0xff]  ;;  %v4796_v50 = vadd.f32 %v15127_v2, %v17883_v43 }
 0x48f   : > { %v12129_v39 = vpop.eup %12128  ;;  %8983 = vst.msk [vmem:[%s15368_s30 + $0x60] sm:$0xff] %vm7690_vm3, %v8727_v14  ;;  %v15536_v40 = vadd.f32 %v15210_v24, %v6615_v45  ;;  %11964 = vmatprep.mubr.msk.f32.mxu1 %vm5320_vm2, %v5254_v59  ;;  %7959 = vadd.xlane.f32.xlu1 %v7958_v31  ;;  %v7961_v38 = vsel %vm7690_vm3, %v7524_v7, 0.0  ;;  %v4791_v55 = vadd.f32 %v15127_v2, %v17882_v20  ;;  %v5256_v26 = vmax.f32 %v4786_v57, 0.0 }
 0x490   : > { %v12131_v3 = vpop.eup %12130  ;;  %v8728_v27 = vmul.f32 %v12129_v39, %v14753_v44  ;;  %v7750_v14 = vpop.xlane.xlu1 %7749  ;;  %7962 = vadd.xlane.f32.xlu0 %v7961_v38  ;;  %v7964_v44 = vsel %vm7690_vm3, %v7525_v10, 0.0 }
 0x491   : > { %v8729_v59 = vmul.f32 %v12131_v3, %v14778_v21  ;;  %12140 = vrsqrt.f32 %v7750_v14  ;;  %v11807_v45 = vpop.f32.mrb[226].mxu1  ;;  %v7753_v31 = vpop.xlane.xlu0 %7752  ;;  %v7526_v25 = vmul.f32 %v15536_v40, %v15536_v40  ;;  %v7527_v21 = vmul.f32 %v15527_v63, %v15527_v63 }
 0x492   : > { %8984 = vst.msk [vmem:[%s15368_s30 + $0x68] sm:$0xff] %vm7690_vm3, %v8728_v27  ;;  %v15551_v7 = vadd.f32 %v15210_v24, %v11807_v45  ;;  %12142 = vrsqrt.f32 %v7753_v31  ;;  %v6625_v20 = vpop.f32.mrb[227].mxu1  ;;  %11965 = vmatmul.mubr.msk.f32.gmra.mrb[76].mxu1 %vm5320_vm2, %v5255_v13  ;;  %v5257_v43 = vmax.f32 %v4791_v55, 0.0  ;;  %v17884_v13 = vld [vmem:[#allocation37_spill] sm:$0xff]  ;;  %v5258_v27 = vmax.f32 %v4796_v50, 0.0 }
 0x493   : > { %v12133_v57 = vpop.eup %12132  ;;  %8985 = vst.msk [vmem:[%s15368_s30 + $0x70] sm:$0xff] %vm7690_vm3, %v8729_v59  ;;  %v15560_v39 = vadd.f32 %v15210_v24, %v6625_v20  ;;  %11967 = vmatprep.mubr.msk.f32.mxu1 %vm5320_vm2, %v5256_v26  ;;  %7965 = vadd.xlane.f32.xlu1 %v7964_v44  ;;  %v7967_v38 = vsel %vm7690_vm3, %v7526_v25, 0.0  ;;  %v4801_v10 = vadd.f32 %v15127_v2, %v17884_v13  ;;  %v17885_v59 = vld [vmem:[#allocation42_spill] sm:$0xff]  ;;  %v7970_v25 = vsel %vm7690_vm3, %v7527_v21, 0.0 }
 0x494   : > { %v12135_v3 = vpop.eup %12134  ;;  %v8730_v14 = vmul.f32 %v12133_v57, %v14771_v49  ;;  %v7756_v45 = vpop.xlane.xlu1 %7755  ;;  %7968 = vadd.xlane.f32.xlu0 %v7967_v38  ;;  %v4806_v31 = vadd.f32 %v15127_v2, %v17885_v59 }
 0x495   : > { %v8731_v26 = vmul.f32 %v12135_v3, %v14796_v53  ;;  %12144 = vrsqrt.f32 %v7756_v45  ;;  %v11810_v20 = vpop.f32.mrb[228].mxu1  ;;  %v7759_v44 = vpop.xlane.xlu0 %7758  ;;  %v7528_v55 = vmul.f32 %v15560_v39, %v15560_v39  ;;  %v7529_v53 = vmul.f32 %v15551_v7, %v15551_v7  ;;  %v17887_v45 = vld [vmem:[#allocation44_spill] sm:$0xff] }
 0x496   : > { %8986 = vst.msk [vmem:[%s15368_s30 + $0x78] sm:$0xff] %vm7690_vm3, %v8730_v14  ;;  %v15575_v50 = vadd.f32 %v15210_v24, %v11810_v20  ;;  %12146 = vrsqrt.f32 %v7759_v44  ;;  %v6635_v49 = vpop.f32.mrb[229].mxu1  ;;  %11968 = vmatmul.mubr.msk.f32.gmra.mrb[78].mxu1 %vm5320_vm2, %v5257_v43  ;;  %v5259_v14 = vmax.f32 %v4801_v10, 0.0  ;;  %v17886_v43 = vld [vmem:[#allocation39_spill] sm:$0xff]  ;;  %v4816_v59 = vadd.f32 %v15127_v2, %v17887_v45 }
 0x497   : > { %v12137_v57 = vpop.eup %12136  ;;  %8987 = vst.msk [vmem:[%s15368_s30 + $0x80] sm:$0xff] %vm7690_vm3, %v8731_v26  ;;  %v15584_v38 = vadd.f32 %v15210_v24, %v6635_v49  ;;  %11970 = vmatprep.mubr.msk.f32.mxu1 %vm5320_vm2, %v5258_v27  ;;  %7971 = vadd.xlane.f32.xlu1 %v7970_v25  ;;  %v7973_v3 = vsel %vm7690_vm3, %v7528_v55, 0.0  ;;  %v4811_v21 = vadd.f32 %v15127_v2, %v17886_v43  ;;  %v5260_v44 = vmax.f32 %v4806_v31, 0.0 }
 0x498   : > { %v12139_v13 = vpop.eup %12138  ;;  %v8732_v20 = vmul.f32 %v12137_v57, %v14789_v46  ;;  %v7762_v26 = vpop.xlane.xlu1 %7761  ;;  %7974 = vadd.xlane.f32.xlu0 %v7973_v3  ;;  %v7976_v46 = vsel %vm7690_vm3, %v7529_v53, 0.0 }
 0x499   : > { %v8733_v27 = vmul.f32 %v12139_v13, %v14814_v0  ;;  %12148 = vrsqrt.f32 %v7762_v26  ;;  %v11813_v49 = vpop.f32.mrb[230].mxu1  ;;  %v7765_v25 = vpop.xlane.xlu0 %7764  ;;  %v7530_v10 = vmul.f32 %v15584_v38, %v15584_v38  ;;  %v7531_v0 = vmul.f32 %v15575_v50, %v15575_v50 }
 0x49a   : > { %8988 = vst.msk [vmem:[%s15368_s30 + $0x88] sm:$0xff] %vm7690_vm3, %v8732_v20  ;;  %v15599_v55 = vadd.f32 %v15210_v24, %v11813_v49  ;;  %12150 = vrsqrt.f32 %v7765_v25  ;;  %v6645_v43 = vpop.f32.mrb[231].mxu1  ;;  %11971 = vmatmul.mubr.msk.f32.gmra.mrb[80].mxu1 %vm5320_vm2, %v5259_v14  ;;  %v5261_v45 = vmax.f32 %v4811_v21, 0.0  ;;  %v17888_v14 = vld [vmem:[#allocation41_spill] sm:$0xff]  ;;  %v5262_v20 = vmax.f32 %v4816_v59, 0.0 }
 0x49b   : > { %v12141_v31 = vpop.eup %12140  ;;  %8989 = vst.msk [vmem:[%s15368_s30 + $0x90] sm:$0xff] %vm7690_vm3, %v8733_v27  ;;  %v15608_v57 = vadd.f32 %v15210_v24, %v6645_v43  ;;  %11973 = vmatprep.mubr.msk.f32.mxu1 %vm5320_vm2, %v5260_v44  ;;  %7977 = vadd.xlane.f32.xlu1 %v7976_v46  ;;  %v7979_v3 = vsel %vm7690_vm3, %v7530_v10, 0.0  ;;  %v4821_v53 = vadd.f32 %v15127_v2, %v17888_v14  ;;  %v17889_v27 = vld [vmem:[#allocation46_spill] sm:$0xff] }
 0x49c   : > { %v12143_v13 = vpop.eup %12142  ;;  %v8734_v26 = vmul.f32 %v12141_v31, %v14807_v36  ;;  %v7768_v49 = vpop.xlane.xlu1 %7767  ;;  %7980 = vadd.xlane.f32.xlu0 %v7979_v3  ;;  %v4826_v25 = vadd.f32 %v15127_v2, %v17889_v27  ;;  %v7533_v59 = vmul.f32 %v15599_v55, %v15599_v55 }
 0x49d   : > { %v8735_v44 = vmul.f32 %v12143_v13, %v14832_v35  ;;  %v7532_v43 = vmul.f32 %v15608_v57, %v15608_v57  ;;  %12152 = vrsqrt.f32 %v7768_v49  ;;  %v11816_v10 = vpop.f32.mrb[232].mxu1  ;;  %v7771_v21 = vpop.xlane.xlu0 %7770  ;;  %v7982_v35 = vsel %vm7690_vm3, %v7531_v0, 0.0  ;;  %v17890_v49 = vld [vmem:[#allocation43_spill] sm:$0xff] }
 0x49e   : > { %8990 = vst.msk [vmem:[%s15368_s30 + $0x98] sm:$0xff] %vm7690_vm3, %v8734_v26  ;;  %v15625_v36 = vadd.f32 %v15210_v24, %v11816_v10  ;;  %12154 = vrsqrt.f32 %v7771_v21  ;;  %v6655_v46 = vpop.f32.mrb[233].mxu1  ;;  %11974 = vmatmul.mubr.msk.f32.gmra.mrb[82].mxu1 %vm5320_vm2, %v5261_v45  ;;  %v5263_v26 = vmax.f32 %v4821_v53, 0.0  ;;  %v4831_v27 = vadd.f32 %v15127_v2, %v17890_v49  ;;  %v17891_v45 = vld [vmem:[#allocation48_spill] sm:$0xff] }
 0x49f   : > { %v12145_v31 = vpop.eup %12144  ;;  %8991 = vst.msk [vmem:[%s15368_s30 + $0xa0] sm:$0xff] %vm7690_vm3, %v8735_v44  ;;  %v15632_v3 = vadd.f32 %v15210_v24, %v6655_v46  ;;  %11976 = vmatprep.mubr.msk.f32.mxu1 %vm5320_vm2, %v5262_v20  ;;  %7983 = vadd.xlane.f32.xlu1 %v7982_v35  ;;  %v7985_v13 = vsel %vm7690_vm3, %v7532_v43, 0.0  ;;  %v4836_v0 = vadd.f32 %v15127_v2, %v17891_v45  ;;  %v5264_v21 = vmax.f32 %v4826_v25, 0.0 }
 0x4a0   : > { %v12147_v14 = vpop.eup %12146  ;;  %v8736_v10 = vmul.f32 %v12145_v31, %v14825_v52  ;;  %v7774_v44 = vpop.xlane.xlu1 %7773  ;;  %7986 = vadd.xlane.f32.xlu0 %v7985_v13  ;;  %v7535_v35 = vmul.f32 %v15625_v36, %v15625_v36  ;;  %v5265_v49 = vmax.f32 %v4831_v27, 0.0 }
 0x4a1   : > { %v8737_v20 = vmul.f32 %v12147_v14, %v14850_v18  ;;  %v7534_v46 = vmul.f32 %v15632_v3, %v15632_v3  ;;  %12156 = vrsqrt.f32 %v7774_v44  ;;  %v11819_v43 = vpop.f32.mrb[234].mxu1  ;;  %v7777_v53 = vpop.xlane.xlu0 %7776  ;;  %v7988_v18 = vsel %vm7690_vm3, %v7533_v59, 0.0  ;;  %v17892_v59 = vld [vmem:[#allocation45_spill] sm:$0xff] }
 0x4a2   : > { %8992 = vst.msk [vmem:[%s15368_s30 + $0xa8] sm:$0xff] %vm7690_vm3, %v8736_v10  ;;  %v15649_v2 = vadd.f32 %v15210_v24, %v11819_v43  ;;  %12158 = vrsqrt.f32 %v7777_v53  ;;  %v6665_v52 = vpop.f32.mrb[235].mxu1  ;;  %11977 = vmatmul.mubr.msk.f32.gmra.mrb[84].mxu1 %vm5320_vm2, %v5263_v26  ;;  %v15663_v26 = vld [vmem:[%s17435_s4] ss:$0 sm:$0xff]  ;;  %v5266_v10 = vmax.f32 %v4836_v0, 0.0 }
 0x4a3   : > { %v12149_v25 = vpop.eup %12148  ;;  %8993 = vst.msk [vmem:[%s15368_s30 + $0xb0] sm:$0xff] %vm7690_vm3, %v8737_v20  ;;  %v15656_v31 = vadd.f32 %v15210_v24, %v6665_v52  ;;  %11979 = vmatprep.mubr.msk.f32.mxu1 %vm5320_vm2, %v5264_v21  ;;  %7989 = vadd.xlane.f32.xlu1 %v7988_v18  ;;  %v7991_v13 = vsel %vm7690_vm3, %v7534_v46, 0.0  ;;  %v4841_v45 = vadd.f32 %v15663_v26, %v17892_v59  ;;  %v17893_v21 = vld [vmem:[#allocation50_spill] sm:$0xff] }
 0x4a4   : > { %v12151_v14 = vpop.eup %12150  ;;  %v8738_v44 = vmul.f32 %v12149_v25, %v14843_v19  ;;  %v7780_v20 = vpop.xlane.xlu1 %7779  ;;  %7992 = vadd.xlane.f32.xlu0 %v7991_v13  ;;  %v4846_v43 = vadd.f32 %v15663_v26, %v17893_v21  ;;  %v7537_v0 = vmul.f32 %v15649_v2, %v15649_v2 }
 0x4a5   : > { %v8739_v46 = vmul.f32 %v12151_v14, %v14868_v58  ;;  %v7536_v27 = vmul.f32 %v15656_v31, %v15656_v31  ;;  %12160 = vrsqrt.f32 %v7780_v20  ;;  %v11822_v53 = vpop.f32.mrb[236].mxu1  ;;  %v7783_v52 = vpop.xlane.xlu0 %7782  ;;  %v7994_v58 = vsel %vm7690_vm3, %v7535_v35, 0.0  ;;  %v17894_v20 = vld [vmem:[#allocation47_spill] sm:$0xff] }
 0x4a6   : > { %8994 = vst.msk [vmem:[%s15368_s30 + $0xb8] sm:$0xff] %vm7690_vm3, %v8738_v44  ;;  %v15678_v19 = vadd.f32 %v15210_v24, %v11822_v53  ;;  %12162 = vrsqrt.f32 %v7783_v52  ;;  %v6675_v18 = vpop.f32.mrb[237].mxu1  ;;  %11980 = vmatmul.mubr.msk.f32.gmra.mrb[86].mxu1 %vm5320_vm2, %v5265_v49  ;;  %v5267_v44 = vmax.f32 %v4841_v45, 0.0  ;;  %v4851_v21 = vadd.f32 %v15663_v26, %v17894_v20  ;;  %v17895_v49 = vld [vmem:[#allocation52_spill] sm:$0xff] }
 0x4a7   : > { %v12153_v25 = vpop.eup %12152  ;;  %8995 = vst.msk [vmem:[%s15368_s30 + $0xc0] sm:$0xff] %vm7690_vm3, %v8739_v46  ;;  %v15685_v13 = vadd.f32 %v15210_v24, %v6675_v18  ;;  %11982 = vmatprep.mubr.msk.f32.mxu1 %vm5320_vm2, %v5266_v10  ;;  %7995 = vadd.xlane.f32.xlu1 %v7994_v58  ;;  %v7997_v14 = vsel %vm7690_vm3, %v7536_v27, 0.0  ;;  %v4856_v35 = vadd.f32 %v15663_v26, %v17895_v49  ;;  %v5268_v52 = vmax.f32 %v4846_v43, 0.0 }
 0x4a8   : > { %v12155_v59 = vpop.eup %12154  ;;  %v8740_v53 = vmul.f32 %v12153_v25, %v14861_v5  ;;  %v7786_v46 = vpop.xlane.xlu1 %7785  ;;  %7998 = vadd.xlane.f32.xlu0 %v7997_v14  ;;  %v7539_v58 = vmul.f32 %v15678_v19, %v15678_v19  ;;  %v5269_v49 = vmax.f32 %v4851_v21, 0.0 }
 0x4a9   : > { %v8741_v10 = vmul.f32 %v12155_v59, %v14886_v47  ;;  %v7538_v18 = vmul.f32 %v15685_v13, %v15685_v13  ;;  %12164 = vrsqrt.f32 %v7786_v46  ;;  %v11825_v27 = vpop.f32.mrb[238].mxu1  ;;  %v7789_v45 = vpop.xlane.xlu0 %7788  ;;  %v8000_v47 = vsel %vm7690_vm3, %v7537_v0, 0.0 }
 0x4aa   : > { %8996 = vst.msk [vmem:[%s15368_s30 + $0xc8] sm:$0xff] %vm7690_vm3, %v8740_v53  ;;  %v15702_v20 = vadd.f32 %v15210_v24, %v11825_v27  ;;  %12166 = vrsqrt.f32 %v7789_v45  ;;  %v6685_v5 = vpop.f32.mrb[239].mxu1  ;;  %11983 = vmatmul.mubr.msk.f32.gmra.mrb[88].mxu1 %vm5320_vm2, %v5267_v44  ;;  %v17896_v53 = vld [vmem:[#allocation49_spill] sm:$0xff]  ;;  %v5270_v44 = vmax.f32 %v4856_v35, 0.0 }
 0x4ab   : > { %v12157_v43 = vpop.eup %12156  ;;  %8997 = vst.msk [vmem:[%s15368_s30 + $0xd0] sm:$0xff] %vm7690_vm3, %v8741_v10  ;;  %v15709_v25 = vadd.f32 %v15210_v24, %v6685_v5  ;;  %11985 = vmatprep.mubr.msk.f32.mxu1 %vm5320_vm2, %v5268_v52  ;;  %8001 = vadd.xlane.f32.xlu1 %v8000_v47  ;;  %v8003_v14 = vsel %vm7690_vm3, %v7538_v18, 0.0  ;;  %v4861_v46 = vadd.f32 %v15663_v26, %v17896_v53  ;;  %v17897_v10 = vld [vmem:[#allocation54_spill] sm:$0xff]  ;;  %v8006_v47 = vsel %vm7690_vm3, %v7539_v58, 0.0 }
 0x4ac   : > { %v12159_v59 = vpop.eup %12158  ;;  %v8742_v0 = vmul.f32 %v12157_v43, %v14879_v28  ;;  %v7792_v27 = vpop.xlane.xlu1 %7791  ;;  %8004 = vadd.xlane.f32.xlu0 %v8003_v14  ;;  %v4866_v24 = vadd.f32 %v15663_v26, %v17897_v10  ;;  %v7541_v35 = vmul.f32 %v15702_v20, %v15702_v20  ;;  %v15728_v28 = vld [vmem:[%s17437_s6] ss:$0 sm:$0xff] }
 0x4ad   : > { %v8743_v52 = vmul.f32 %v12159_v59, %v14904_v1  ;;  %v7540_v45 = vmul.f32 %v15709_v25, %v15709_v25  ;;  %12168 = vrsqrt.f32 %v7792_v27  ;;  %v11828_v18 = vpop.f32.mrb[240].mxu1  ;;  %v7795_v21 = vpop.xlane.xlu0 %7794  ;;  %v17898_v27 = vld [vmem:[#allocation51_spill] sm:$0xff] }
 0x4ae   : > { %8998 = vst.msk [vmem:[%s15368_s30 + $0xd8] sm:$0xff] %vm7690_vm3, %v8742_v0  ;;  %v15731_v5 = vadd.f32 %v15728_v28, %v11828_v18  ;;  %12170 = vrsqrt.f32 %v7795_v21  ;;  %v6695_v1 = vpop.f32.mrb[241].mxu1  ;;  %11986 = vmatmul.mubr.msk.f32.gmra.mrb[90].mxu1 %vm5320_vm2, %v5269_v49  ;;  %v5271_v0 = vmax.f32 %v4861_v46, 0.0  ;;  %v4871_v10 = vadd.f32 %v15663_v26, %v17898_v27  ;;  %v17899_v49 = vld [vmem:[#allocation56_spill] sm:$0xff] }
 0x4af   : > { %v12161_v43 = vpop.eup %12160  ;;  %8999 = vst.msk [vmem:[%s15368_s30 + $0xe0] sm:$0xff] %vm7690_vm3, %v8743_v52  ;;  %v15738_v14 = vadd.f32 %v15728_v28, %v6695_v1  ;;  %11988 = vmatprep.mubr.msk.f32.mxu1 %vm5320_vm2, %v5270_v44  ;;  %8007 = vadd.xlane.f32.xlu1 %v8006_v47  ;;  %v8009_v59 = vsel %vm7690_vm3, %v7540_v45, 0.0  ;;  %v4876_v58 = vadd.f32 %v15663_v26, %v17899_v49  ;;  %v5272_v21 = vmax.f32 %v4866_v24, 0.0 }
 0x4b0   : > { %v12163_v53 = vpop.eup %12162  ;;  %v8744_v18 = vmul.f32 %v12161_v43, %v14897_v6  ;;  %v7798_v52 = vpop.xlane.xlu1 %7797  ;;  %8010 = vadd.xlane.f32.xlu0 %v8009_v59  ;;  %v7543_v47 = vmul.f32 %v15731_v5, %v15731_v5  ;;  %v5273_v49 = vmax.f32 %v4871_v10, 0.0 }
 0x4b1   : > { %v8745_v44 = vmul.f32 %v12163_v53, %v14922_v42  ;;  %v7542_v1 = vmul.f32 %v15738_v14, %v15738_v14  ;;  %12172 = vrsqrt.f32 %v7798_v52  ;;  %v11831_v45 = vpop.f32.mrb[242].mxu1  ;;  %v7801_v46 = vpop.xlane.xlu0 %7800  ;;  %v8012_v42 = vsel %vm7690_vm3, %v7541_v35, 0.0 }
 0x4b2   : > { %9000 = vst.msk [vmem:[%s15368_s30 + $0xe8] sm:$0xff] %vm7690_vm3, %v8744_v18  ;;  %v15755_v27 = vadd.f32 %v15728_v28, %v11831_v45  ;;  %12174 = vrsqrt.f32 %v7801_v46  ;;  %v6705_v6 = vpop.f32.mrb[243].mxu1  ;;  %11989 = vmatmul.mubr.msk.f32.gmra.mrb[92].mxu1 %vm5320_vm2, %v5271_v0  ;;  %v17900_v18 = vld [vmem:[#allocation53_spill] sm:$0xff]  ;;  %v5274_v0 = vmax.f32 %v4876_v58, 0.0 }
 0x4b3   : > { %v12165_v24 = vpop.eup %12164  ;;  %9001 = vst.msk [vmem:[%s15368_s30 + $0xf0] sm:$0xff] %vm7690_vm3, %v8745_v44  ;;  %v15762_v43 = vadd.f32 %v15728_v28, %v6705_v6  ;;  %11991 = vmatprep.mubr.msk.f32.mxu1 %vm5320_vm2, %v5272_v21  ;;  %8013 = vadd.xlane.f32.xlu1 %v8012_v42  ;;  %v8015_v59 = vsel %vm7690_vm3, %v7542_v1, 0.0  ;;  %v4881_v52 = vadd.f32 %v15663_v26, %v17900_v18  ;;  %v17901_v44 = vld [vmem:[#allocation58_spill] sm:$0xff] }
 0x4b4   : > { %v12167_v53 = vpop.eup %12166  ;;  %v8746_v35 = vmul.f32 %v12165_v24, %v14915_v30  ;;  %v7804_v45 = vpop.xlane.xlu1 %7803  ;;  %8016 = vadd.xlane.f32.xlu0 %v8015_v59  ;;  %v4886_v46 = vadd.f32 %v15663_v26, %v17901_v44  ;;  %v7545_v58 = vmul.f32 %v15755_v27, %v15755_v27 }
 0x4b5   : > { %v8747_v21 = vmul.f32 %v12167_v53, %v14940_v41  ;;  %v7544_v6 = vmul.f32 %v15762_v43, %v15762_v43  ;;  %12176 = vrsqrt.f32 %v7804_v45  ;;  %v11834_v1 = vpop.f32.mrb[244].mxu1  ;;  %v7807_v10 = vpop.xlane.xlu0 %7806  ;;  %v8018_v41 = vsel %vm7690_vm3, %v7543_v47, 0.0  ;;  %v17902_v45 = vld [vmem:[#allocation55_spill] sm:$0xff] }
 0x4b6   : > { %9002 = vst.msk [vmem:[%s15368_s30 + $0xf8] sm:$0xff] %vm7690_vm3, %v8746_v35  ;;  %v15779_v30 = vadd.f32 %v15728_v28, %v11834_v1  ;;  %12178 = vrsqrt.f32 %v7807_v10  ;;  %v6715_v42 = vpop.f32.mrb[245].mxu1  ;;  %11992 = vmatmul.mubr.msk.f32.gmra.mrb[94].mxu1 %vm5320_vm2, %v5273_v49  ;;  %v5275_v35 = vmax.f32 %v4881_v52, 0.0  ;;  %v4891_v44 = vadd.f32 %v15663_v26, %v17902_v45  ;;  %v17903_v49 = vld [vmem:[#allocation60_spill] sm:$0xff] }
 0x4b7   : > { %v12169_v24 = vpop.eup %12168  ;;  %9003 = vst.msk [vmem:[%s15368_s30 + $0x100] sm:$0xff] %vm7690_vm3, %v8747_v21  ;;  %v15786_v59 = vadd.f32 %v15728_v28, %v6715_v42  ;;  %11994 = vmatprep.mubr.msk.f32.mxu1 %vm5320_vm2, %v5274_v0  ;;  %8019 = vadd.xlane.f32.xlu1 %v8018_v41  ;;  %v8021_v53 = vsel %vm7690_vm3, %v7544_v6, 0.0  ;;  %v4896_v47 = vadd.f32 %v15663_v26, %v17903_v49  ;;  %v5276_v10 = vmax.f32 %v4886_v46, 0.0 }
 0x4b8   : > { %v12171_v18 = vpop.eup %12170  ;;  %v8748_v1 = vmul.f32 %v12169_v24, %v14933_v11  ;;  %v7810_v21 = vpop.xlane.xlu1 %7809  ;;  %8022 = vadd.xlane.f32.xlu0 %v8021_v53  ;;  %v7547_v41 = vmul.f32 %v15779_v30, %v15779_v30  ;;  %v5277_v49 = vmax.f32 %v4891_v44, 0.0 }
 0x4b9   : > { %v8749_v0 = vmul.f32 %v12171_v18, %v14958_v56  ;;  %v7546_v42 = vmul.f32 %v15786_v59, %v15786_v59  ;;  %12180 = vrsqrt.f32 %v7810_v21  ;;  %v11837_v6 = vpop.f32.mrb[246].mxu1  ;;  %v7813_v52 = vpop.xlane.xlu0 %7812  ;;  %v8024_v56 = vsel %vm7690_vm3, %v7545_v58, 0.0 }
 0x4ba   : > { %9004 = vst.msk [vmem:[%s15368_s30 + $0x108] sm:$0xff] %vm7690_vm3, %v8748_v1  ;;  %v15803_v45 = vadd.f32 %v15728_v28, %v11837_v6  ;;  %12182 = vrsqrt.f32 %v7813_v52  ;;  %v6725_v11 = vpop.f32.mrb[247].mxu1  ;;  %11995 = vmatmul.mubr.msk.f32.gmra.mrb[96].mxu1 %vm5320_vm2, %v5275_v35  ;;  %v17904_v1 = vld [vmem:[#allocation57_spill] sm:$0xff]  ;;  %v5278_v35 = vmax.f32 %v4896_v47, 0.0 }
 0x4bb   : > { %v12173_v46 = vpop.eup %12172  ;;  %9005 = vst.msk [vmem:[%s15368_s30 + $0x110] sm:$0xff] %vm7690_vm3, %v8749_v0  ;;  %v15810_v24 = vadd.f32 %v15728_v28, %v6725_v11  ;;  %11997 = vmatprep.mubr.msk.f32.mxu1 %vm5320_vm2, %v5276_v10  ;;  %8025 = vadd.xlane.f32.xlu1 %v8024_v56  ;;  %v8027_v53 = vsel %vm7690_vm3, %v7546_v42, 0.0  ;;  %v4901_v21 = vadd.f32 %v15663_v26, %v17904_v1  ;;  %v17905_v0 = vld [vmem:[#allocation62_spill] sm:$0xff] }
 0x4bc   : > { %v12175_v18 = vpop.eup %12174  ;;  %v8750_v58 = vmul.f32 %v12173_v46, %v14951_v61  ;;  %v7816_v6 = vpop.xlane.xlu1 %7815  ;;  %8028 = vadd.xlane.f32.xlu0 %v8027_v53  ;;  %v4906_v52 = vadd.f32 %v15663_v26, %v17905_v0  ;;  %v7549_v47 = vmul.f32 %v15803_v45, %v15803_v45 }
 0x4bd   : > { %v8751_v10 = vmul.f32 %v12175_v18, %v14976_v23  ;;  %v7548_v11 = vmul.f32 %v15810_v24, %v15810_v24  ;;  %12184 = vrsqrt.f32 %v7816_v6  ;;  %v11840_v42 = vpop.f32.mrb[248].mxu1  ;;  %v7819_v44 = vpop.xlane.xlu0 %7818  ;;  %v8030_v23 = vsel %vm7690_vm3, %v7547_v41, 0.0  ;;  %v17906_v6 = vld [vmem:[#allocation59_spill] sm:$0xff] }
 0x4be   : > { %9006 = vst.msk [vmem:[%s15368_s30 + $0x118] sm:$0xff] %vm7690_vm3, %v8750_v58  ;;  %v15827_v61 = vadd.f32 %v15728_v28, %v11840_v42  ;;  %12186 = vrsqrt.f32 %v7819_v44  ;;  %v6735_v56 = vpop.f32.mrb[249].mxu1  ;;  %11998 = vmatmul.mubr.msk.f32.gmra.mrb[98].mxu1 %vm5320_vm2, %v5277_v49  ;;  %v5279_v58 = vmax.f32 %v4901_v21, 0.0  ;;  %v4911_v0 = vadd.f32 %v15663_v26, %v17906_v6  ;;  %v17907_v49 = vld [vmem:[#allocation64_spill] sm:$0xff] }
 0x4bf   : > { %v12177_v46 = vpop.eup %12176  ;;  %9007 = vst.msk [vmem:[%s15368_s30 + $0x120] sm:$0xff] %vm7690_vm3, %v8751_v10  ;;  %v15834_v53 = vadd.f32 %v15728_v28, %v6735_v56  ;;  %12000 = vmatprep.mubr.msk.f32.mxu1 %vm5320_vm2, %v5278_v35  ;;  %8031 = vadd.xlane.f32.xlu1 %v8030_v23  ;;  %v8033_v18 = vsel %vm7690_vm3, %v7548_v11, 0.0  ;;  %v4916_v41 = vadd.f32 %v15663_v26, %v17907_v49  ;;  %v5280_v44 = vmax.f32 %v4906_v52, 0.0 }
 0x4c0   : > { %v12179_v1 = vpop.eup %12178  ;;  %v8752_v42 = vmul.f32 %v12177_v46, %v14969_v34  ;;  %v7822_v10 = vpop.xlane.xlu1 %7821  ;;  %8034 = vadd.xlane.f32.xlu0 %v8033_v18  ;;  %v7551_v23 = vmul.f32 %v15827_v61, %v15827_v61  ;;  %v5281_v49 = vmax.f32 %v4911_v0, 0.0 }
 0x4c1   : > { %v8753_v35 = vmul.f32 %v12179_v1, %v14994_v51  ;;  %v7550_v56 = vmul.f32 %v15834_v53, %v15834_v53  ;;  %12188 = vrsqrt.f32 %v7822_v10  ;;  %v11843_v11 = vpop.f32.mrb[250].mxu1  ;;  %v7825_v21 = vpop.xlane.xlu0 %7824  ;;  %v8036_v51 = vsel %vm7690_vm3, %v7549_v47, 0.0 }
 0x4c2   : > { %9008 = vst.msk [vmem:[%s15368_s30 + $0x128] sm:$0xff] %vm7690_vm3, %v8752_v42  ;;  %v15851_v6 = vadd.f32 %v15728_v28, %v11843_v11  ;;  %12190 = vrsqrt.f32 %v7825_v21  ;;  %v6745_v34 = vpop.f32.mrb[251].mxu1  ;;  %12001 = vmatmul.mubr.msk.f32.gmra.mrb[100].mxu1 %vm5320_vm2, %v5279_v58  ;;  %v17908_v42 = vld [vmem:[#allocation61_spill] sm:$0xff]  ;;  %v5282_v58 = vmax.f32 %v4916_v41, 0.0 }
 0x4c3   : > { %v12181_v52 = vpop.eup %12180  ;;  %9009 = vst.msk [vmem:[%s15368_s30 + $0x130] sm:$0xff] %vm7690_vm3, %v8753_v35  ;;  %v15858_v46 = vadd.f32 %v15728_v28, %v6745_v34  ;;  %12003 = vmatprep.mubr.msk.f32.mxu1 %vm5320_vm2, %v5280_v44  ;;  %8037 = vadd.xlane.f32.xlu1 %v8036_v51  ;;  %v8039_v18 = vsel %vm7690_vm3, %v7550_v56, 0.0  ;;  %v4921_v10 = vadd.f32 %v15663_v26, %v17908_v42  ;;  %v17909_v35 = vld [vmem:[#allocation66_spill] sm:$0xff] }
 0x4c4   : > { %v12183_v1 = vpop.eup %12182  ;;  %v8754_v47 = vmul.f32 %v12181_v52, %v14987_v4  ;;  %v7828_v11 = vpop.xlane.xlu1 %7827  ;;  %8040 = vadd.xlane.f32.xlu0 %v8039_v18  ;;  %v4926_v21 = vadd.f32 %v15663_v26, %v17909_v35  ;;  %v7553_v41 = vmul.f32 %v15851_v6, %v15851_v6 }
 0x4c5   : > { %v8755_v44 = vmul.f32 %v12183_v1, %v15012_v54  ;;  %v7552_v34 = vmul.f32 %v15858_v46, %v15858_v46  ;;  %12192 = vrsqrt.f32 %v7828_v11  ;;  %v11846_v56 = vpop.f32.mrb[252].mxu1  ;;  %v7831_v0 = vpop.xlane.xlu0 %7830  ;;  %v8042_v54 = vsel %vm7690_vm3, %v7551_v23, 0.0  ;;  %v17910_v11 = vld [vmem:[#allocation63_spill] sm:$0xff] }
 0x4c6   : > { %9010 = vst.msk [vmem:[%s15368_s30 + $0x138] sm:$0xff] %vm7690_vm3, %v8754_v47  ;;  %v15875_v4 = vadd.f32 %v15728_v28, %v11846_v56  ;;  %12194 = vrsqrt.f32 %v7831_v0  ;;  %v6755_v51 = vpop.f32.mrb[253].mxu1  ;;  %12004 = vmatmul.mubr.msk.f32.gmra.mrb[102].mxu1 %vm5320_vm2, %v5281_v49  ;;  %v5283_v47 = vmax.f32 %v4921_v10, 0.0  ;;  %v4931_v35 = vadd.f32 %v15663_v26, %v17910_v11  ;;  %v17911_v49 = vld [vmem:[#allocation68_spill] sm:$0xff] }
 0x4c7   : > { %v12185_v52 = vpop.eup %12184  ;;  %9011 = vst.msk [vmem:[%s15368_s30 + $0x140] sm:$0xff] %vm7690_vm3, %v8755_v44  ;;  %v15882_v18 = vadd.f32 %v15728_v28, %v6755_v51  ;;  %12006 = vmatprep.mubr.msk.f32.mxu1 %vm5320_vm2, %v5282_v58  ;;  %8043 = vadd.xlane.f32.xlu1 %v8042_v54  ;;  %v8045_v1 = vsel %vm7690_vm3, %v7552_v34, 0.0  ;;  %v4936_v23 = vadd.f32 %v15663_v26, %v17911_v49  ;;  %v5284_v0 = vmax.f32 %v4926_v21, 0.0 }
 0x4c8   : > { %v12187_v42 = vpop.eup %12186  ;;  %v8756_v56 = vmul.f32 %v12185_v52, %v15005_v22  ;;  %v7834_v44 = vpop.xlane.xlu1 %7833  ;;  %8046 = vadd.xlane.f32.xlu0 %v8045_v1  ;;  %v7555_v54 = vmul.f32 %v15875_v4, %v15875_v4  ;;  %v5285_v49 = vmax.f32 %v4931_v35, 0.0 }
 0x4c9   : > { %v8757_v58 = vmul.f32 %v12187_v42, %v15030_v33  ;;  %v7554_v51 = vmul.f32 %v15882_v18, %v15882_v18  ;;  %12196 = vrsqrt.f32 %v7834_v44  ;;  %v11849_v34 = vpop.f32.mrb[254].mxu1  ;;  %v7837_v10 = vpop.xlane.xlu0 %7836  ;;  %v8048_v33 = vsel %vm7690_vm3, %v7553_v41, 0.0 }
 0x4ca   : > { %9012 = vst.msk [vmem:[%s15368_s30 + $0x148] sm:$0xff] %vm7690_vm3, %v8756_v56  ;;  %v15899_v11 = vadd.f32 %v15728_v28, %v11849_v34  ;;  %12198 = vrsqrt.f32 %v7837_v10  ;;  %v6765_v22 = vpop.f32.mrb[255].mxu1  ;;  %12007 = vmatmul.mubr.msk.f32.gmra.mrb[104].mxu1 %vm5320_vm2, %v5283_v47  ;;  %v17912_v56 = vld [vmem:[#allocation65_spill] sm:$0xff]  ;;  %v5286_v47 = vmax.f32 %v4936_v23, 0.0 }
 0x4cb   : > { %v12189_v21 = vpop.eup %12188  ;;  %9013 = vst.msk [vmem:[%s15368_s30 + $0x150] sm:$0xff] %vm7690_vm3, %v8757_v58  ;;  %v15906_v52 = vadd.f32 %v15728_v28, %v6765_v22  ;;  %12009 = vmatprep.mubr.msk.f32.mxu1 %vm5320_vm2, %v5284_v0  ;;  %8049 = vadd.xlane.f32.xlu1 %v8048_v33  ;;  %v8051_v1 = vsel %vm7690_vm3, %v7554_v51, 0.0  ;;  %v4941_v44 = vadd.f32 %v15663_v26, %v17912_v56  ;;  %v17913_v58 = vld [vmem:[#allocation70_spill] sm:$0xff] }
 0x4cc   : > { %v12191_v42 = vpop.eup %12190  ;;  %v8758_v41 = vmul.f32 %v12189_v21, %v15023_v8  ;;  %v7840_v34 = vpop.xlane.xlu1 %7839  ;;  %8052 = vadd.xlane.f32.xlu0 %v8051_v1  ;;  %v4946_v10 = vadd.f32 %v15663_v26, %v17913_v58  ;;  %v7557_v23 = vmul.f32 %v15899_v11, %v15899_v11 }
 0x4cd   : > { %v8759_v0 = vmul.f32 %v12191_v42, %v15048_v37  ;;  %v7556_v22 = vmul.f32 %v15906_v52, %v15906_v52  ;;  %12200 = vrsqrt.f32 %v7840_v34  ;;  %v11852_v51 = vpop.f32.mrb[0].mxu1  ;;  %v7843_v35 = vpop.xlane.xlu0 %7842  ;;  %v8054_v37 = vsel %vm7690_vm3, %v7555_v54, 0.0  ;;  %v17914_v34 = vld [vmem:[#allocation67_spill] sm:$0xff] }
 0x4ce   : > { %9014 = vst.msk [vmem:[%s15368_s30 + $0x158] sm:$0xff] %vm7690_vm3, %v8758_v41  ;;  %v15923_v8 = vadd.f32 %v15728_v28, %v11852_v51  ;;  %12202 = vrsqrt.f32 %v7843_v35  ;;  %v6775_v33 = vpop.f32.mrb[1].mxu1  ;;  %12010 = vmatmul.mubr.msk.f32.gmra.mrb[106].mxu1 %vm5320_vm2, %v5285_v49  ;;  %v5287_v41 = vmax.f32 %v4941_v44, 0.0  ;;  %v4951_v58 = vadd.f32 %v15663_v26, %v17914_v34  ;;  %v17915_v49 = vld [vmem:[#allocation72_spill] sm:$0xff] }
 0x4cf   : > { %v12193_v21 = vpop.eup %12192  ;;  %9015 = vst.msk [vmem:[%s15368_s30 + $0x160] sm:$0xff] %vm7690_vm3, %v8759_v0  ;;  %v15930_v1 = vadd.f32 %v15728_v28, %v6775_v33  ;;  %12012 = vmatprep.mubr.msk.f32.mxu1 %vm5320_vm2, %v5286_v47  ;;  %8055 = vadd.xlane.f32.xlu1 %v8054_v37  ;;  %v8057_v42 = vsel %vm7690_vm3, %v7556_v22, 0.0  ;;  %v4956_v54 = vadd.f32 %v15663_v26, %v17915_v49  ;;  %v5288_v35 = vmax.f32 %v4946_v10, 0.0 }
 0x4d0   : > { %v12195_v56 = vpop.eup %12194  ;;  %v8760_v51 = vmul.f32 %v12193_v21, %v15041_v48  ;;  %v7846_v0 = vpop.xlane.xlu1 %7845  ;;  %8058 = vadd.xlane.f32.xlu0 %v8057_v42  ;;  %v7559_v37 = vmul.f32 %v15923_v8, %v15923_v8  ;;  %v5289_v49 = vmax.f32 %v4951_v58, 0.0 }
 0x4d1   : > { %v8761_v47 = vmul.f32 %v12195_v56, %v15066_v29  ;;  %v7558_v33 = vmul.f32 %v15930_v1, %v15930_v1  ;;  %12204 = vrsqrt.f32 %v7846_v0  ;;  %v11855_v22 = vpop.f32.mrb[2].mxu1  ;;  %v7849_v44 = vpop.xlane.xlu0 %7848  ;;  %v8060_v29 = vsel %vm7690_vm3, %v7557_v23, 0.0 }
 0x4d2   : > { %9016 = vst.msk [vmem:[%s15368_s30 + $0x168] sm:$0xff] %vm7690_vm3, %v8760_v51  ;;  %v15947_v34 = vadd.f32 %v15728_v28, %v11855_v22  ;;  %12206 = vrsqrt.f32 %v7849_v44  ;;  %v6785_v48 = vpop.f32.mrb[3].mxu1  ;;  %12013 = vmatmul.mubr.msk.f32.gmra.mrb[108].mxu1 %vm5320_vm2, %v5287_v41  ;;  %v17916_v51 = vld [vmem:[#allocation69_spill] sm:$0xff]  ;;  %v5290_v41 = vmax.f32 %v4956_v54, 0.0 }
 0x4d3   : > { %v12197_v10 = vpop.eup %12196  ;;  %9017 = vst.msk [vmem:[%s15368_s30 + $0x170] sm:$0xff] %vm7690_vm3, %v8761_v47  ;;  %v15954_v21 = vadd.f32 %v15728_v28, %v6785_v48  ;;  %12015 = vmatprep.mubr.msk.f32.mxu1 %vm5320_vm2, %v5288_v35  ;;  %8061 = vadd.xlane.f32.xlu1 %v8060_v29  ;;  %v8063_v42 = vsel %vm7690_vm3, %v7558_v33, 0.0  ;;  %v4961_v0 = vadd.f32 %v15663_v26, %v17916_v51  ;;  %v17917_v47 = vld [vmem:[#allocation74_spill] sm:$0xff] }
 0x4d4   : > { %v12199_v56 = vpop.eup %12198  ;;  %v8762_v23 = vmul.f32 %v12197_v10, %v15059_v16  ;;  %v7852_v22 = vpop.xlane.xlu1 %7851  ;;  %8064 = vadd.xlane.f32.xlu0 %v8063_v42  ;;  %v4966_v44 = vadd.f32 %v15663_v26, %v17917_v47  ;;  %v7561_v54 = vmul.f32 %v15947_v34, %v15947_v34 }
 0x4d5   : > { %v8763_v35 = vmul.f32 %v12199_v56, %v15084_v62  ;;  %v7560_v48 = vmul.f32 %v15954_v21, %v15954_v21  ;;  %12208 = vrsqrt.f32 %v7852_v22  ;;  %v11858_v33 = vpop.f32.mrb[4].mxu1  ;;  %v7855_v58 = vpop.xlane.xlu0 %7854  ;;  %v8066_v62 = vsel %vm7690_vm3, %v7559_v37, 0.0  ;;  %v17919_v22 = vld [vmem:[#allocation71_spill] sm:$0xff] }
 0x4d6   : > { %9018 = vst.msk [vmem:[%s15368_s30 + $0x178] sm:$0xff] %vm7690_vm3, %v8762_v23  ;;  %v15971_v16 = vadd.f32 %v15728_v28, %v11858_v33  ;;  %12210 = vrsqrt.f32 %v7855_v58  ;;  %v6795_v29 = vpop.f32.mrb[5].mxu1  ;;  %12016 = vmatmul.mubr.msk.f32.gmra.mrb[110].mxu1 %vm5320_vm2, %v5289_v49  ;;  %v5291_v23 = vmax.f32 %v4961_v0, 0.0  ;;  %v4971_v47 = vadd.f32 %v15663_v26, %v17919_v22  ;;  %v17920_v49 = vld [vmem:[#allocation76_spill] sm:$0xff] }
 0x4d7   : > { %v12201_v10 = vpop.eup %12200  ;;  %9019 = vst.msk [vmem:[%s15368_s30 + $0x180] sm:$0xff] %vm7690_vm3, %v8763_v35  ;;  %v15978_v42 = vadd.f32 %v15728_v28, %v6795_v29  ;;  %12018 = vmatprep.mubr.msk.f32.mxu1 %vm5320_vm2, %v5290_v41  ;;  %8067 = vadd.xlane.f32.xlu1 %v8066_v62  ;;  %v8069_v56 = vsel %vm7690_vm3, %v7560_v48, 0.0  ;;  %v4976_v37 = vadd.f32 %v15663_v26, %v17920_v49  ;;  %v5292_v58 = vmax.f32 %v4966_v44, 0.0 }
 0x4d8   : > { %17918 = vst [vmem:[#allocation93_spill] sm:$0xff] %v15971_v16  ;;  %v12203_v51 = vpop.eup %12202  ;;  %v8764_v33 = vmul.f32 %v12201_v10, %v15077_v60  ;;  %v7858_v35 = vpop.xlane.xlu1 %7857  ;;  %8070 = vadd.xlane.f32.xlu0 %v8069_v56  ;;  %v7563_v62 = vmul.f32 %v15971_v16, %v15971_v16  ;;  %v5293_v49 = vmax.f32 %v4971_v47, 0.0  ;;  %v17926_v16 = vld [vmem:[#allocation103_spill] sm:$0xff] }
 0x4d9   : > { %v8765_v41 = vmul.f32 %v12203_v51, %v15102_v17  ;;  %v7562_v29 = vmul.f32 %v15978_v42, %v15978_v42  ;;  %12212 = vrsqrt.f32 %v7858_v35  ;;  %v11861_v48 = vpop.f32.mrb[6].mxu1  ;;  %v7861_v0 = vpop.xlane.xlu0 %7860  ;;  %v8072_v17 = vsel %vm7690_vm3, %v7561_v54, 0.0 }
 0x4da   : > { %9020 = vst.msk [vmem:[%s15368_s30 + $0x188] sm:$0xff] %vm7690_vm3, %v8764_v33  ;;  %v15995_v22 = vadd.f32 %v15728_v28, %v11861_v48  ;;  %12214 = vrsqrt.f32 %v7861_v0  ;;  %v6805_v60 = vpop.f32.mrb[7].mxu1  ;;  %12019 = vmatmul.mubr.msk.f32.gmra.mrb[112].mxu1 %vm5320_vm2, %v5291_v23  ;;  %v17923_v33 = vld [vmem:[#allocation73_spill] sm:$0xff]  ;;  %v5294_v23 = vmax.f32 %v4976_v37, 0.0 }
 0x4db   : > { %v12205_v44 = vpop.eup %12204  ;;  %9021 = vst.msk [vmem:[%s15368_s30 + $0x190] sm:$0xff] %vm7690_vm3, %v8765_v41  ;;  %v16002_v10 = vadd.f32 %v15728_v28, %v6805_v60  ;;  %12021 = vmatprep.mubr.msk.f32.mxu1 %vm5320_vm2, %v5292_v58  ;;  %8073 = vadd.xlane.f32.xlu1 %v8072_v17  ;;  %v8075_v56 = vsel %vm7690_vm3, %v7562_v29, 0.0  ;;  %v4981_v35 = vadd.f32 %v15663_v26, %v17923_v33  ;;  %v17924_v48 = vld [vmem:[#allocation101_spill] sm:$0xff] }
 0x4dc   : > { %17921 = vst [vmem:[#allocation30_spill] sm:$0xff] %v15995_v22  ;;  %v12207_v51 = vpop.eup %12206  ;;  %v8766_v54 = vmul.f32 %v12205_v44, %v17924_v48  ;;  %v7864_v0 = vpop.xlane.xlu1 %7863  ;;  %8076 = vadd.xlane.f32.xlu0 %v8075_v56  ;;  %v17925_v41 = vld [vmem:[#allocation77_spill] sm:$0xff]  ;;  %v7565_v37 = vmul.f32 %v15995_v22, %v15995_v22 }
 0x4dd   : > { %17922 = vst [vmem:[#allocation95_spill] sm:$0xff] %v16002_v10  ;;  %v4986_v60 = vadd.f32 %v15663_v26, %v17925_v41  ;;  %v8767_v58 = vmul.f32 %v12207_v51, %v17926_v16  ;;  %v7564_v17 = vmul.f32 %v16002_v10, %v16002_v10  ;;  %12216 = vrsqrt.f32 %v7864_v0  ;;  %v11864_v29 = vpop.f32.mrb[8].mxu1  ;;  %v7867_v47 = vpop.xlane.xlu0 %7866  ;;  %v17929_v41 = vld [vmem:[#allocation75_spill] sm:$0xff]  ;;  %v17932_v10 = vld [vmem:[#allocation105_spill] sm:$0xff] }
 0x4de   : > { %9022 = vst.msk [vmem:[%s15368_s30 + $0x198] sm:$0xff] %vm7690_vm3, %v8766_v54  ;;  %v16019_v44 = vadd.f32 %v15728_v28, %v11864_v29  ;;  %12218 = vrsqrt.f32 %v7867_v47  ;;  %v6815_v56 = vpop.f32.mrb[9].mxu1  ;;  %12022 = vmatmul.mubr.msk.f32.gmra.mrb[114].mxu1 %vm5320_vm2, %v5293_v49  ;;  %v8078_v16 = vsel %vm7690_vm3, %v7563_v62, 0.0  ;;  %v5295_v0 = vmax.f32 %v4981_v35, 0.0  ;;  %v17930_v49 = vld [vmem:[#allocation79_spill] sm:$0xff]  ;;  %v17931_v47 = vld [vmem:[#allocation102_spill] sm:$0xff] }
 0x4df   : > { %v12209_v51 = vpop.eup %12208  ;;  %9023 = vst.msk [vmem:[%s15368_s30 + $0x1a0] sm:$0xff] %vm7690_vm3, %v8767_v58  ;;  %v16026_v33 = vadd.f32 %v15728_v28, %v6815_v56  ;;  %12024 = vmatprep.mubr.msk.f32.mxu1 %vm5320_vm2, %v5294_v23  ;;  %8079 = vadd.xlane.f32.xlu1 %v8078_v16  ;;  %v8081_v48 = vsel %vm7690_vm3, %v7564_v17, 0.0  ;;  %v4991_v29 = vadd.f32 %v15663_v26, %v17929_v41  ;;  %v5296_v56 = vmax.f32 %v4986_v60, 0.0 }
 0x4e0   : > { %17927 = vst [vmem:[#allocation27_spill] sm:$0xff] %v16019_v44  ;;  %v12211_v54 = vpop.eup %12210  ;;  %v4996_v62 = vadd.f32 %v15663_v26, %v17930_v49  ;;  %v8768_v22 = vmul.f32 %v12209_v51, %v17931_v47  ;;  %v7870_v58 = vpop.xlane.xlu1 %7869  ;;  %8082 = vadd.xlane.f32.xlu0 %v8081_v48  ;;  %v7567_v41 = vmul.f32 %v16019_v44, %v16019_v44 }
 0x4e1   : > { %17928 = vst [vmem:[#allocation32_spill] sm:$0xff] %v16026_v33  ;;  %v8769_v23 = vmul.f32 %v12211_v54, %v17932_v10  ;;  %v7566_v16 = vmul.f32 %v16026_v33, %v16026_v33  ;;  %12220 = vrsqrt.f32 %v7870_v58  ;;  %v11867_v17 = vpop.f32.mrb[10].mxu1  ;;  %v7873_v35 = vpop.xlane.xlu0 %7872  ;;  %v8084_v10 = vsel %vm7690_vm3, %v7565_v37, 0.0  ;;  %v17935_v58 = vld [vmem:[#allocation78_spill] sm:$0xff]  ;;  %v17938_v33 = vld [vmem:[#allocation107_spill] sm:$0xff] }
 0x4e2   : > { %9024 = vst.msk [vmem:[%s15368_s30 + $0x1a8] sm:$0xff] %vm7690_vm3, %v8768_v22  ;;  %v16043_v49 = vadd.f32 %v15728_v28, %v11867_v17  ;;  %12222 = vrsqrt.f32 %v7873_v35  ;;  %v6825_v51 = vpop.f32.mrb[11].mxu1  ;;  %12025 = vmatmul.mubr.msk.f32.gmra.mrb[116].mxu1 %vm5320_vm2, %v5295_v0  ;;  %v5297_v47 = vmax.f32 %v4991_v29, 0.0  ;;  %v5001_v17 = vadd.f32 %v15663_v26, %v17935_v58  ;;  %v17936_v35 = vld [vmem:[#allocation104_spill] sm:$0xff] }
 0x4e3   : > { %v12213_v60 = vpop.eup %12212  ;;  %9025 = vst.msk [vmem:[%s15368_s30 + $0x1b0] sm:$0xff] %vm7690_vm3, %v8769_v23  ;;  %v16050_v48 = vadd.f32 %v15728_v28, %v6825_v51  ;;  %12027 = vmatprep.mubr.msk.f32.mxu1 %vm5320_vm2, %v5296_v56  ;;  %8085 = vadd.xlane.f32.xlu1 %v8084_v10  ;;  %v8087_v22 = vsel %vm7690_vm3, %v7566_v16, 0.0  ;;  %v5298_v0 = vmax.f32 %v4996_v62, 0.0  ;;  %v17937_v23 = vld [vmem:[#allocation81_spill] sm:$0xff] }
 0x4e4   : > { %17933 = vst [vmem:[#allocation94_spill] sm:$0xff] %v16043_v49  ;;  %v12215_v54 = vpop.eup %12214  ;;  %v8770_v37 = vmul.f32 %v12213_v60, %v17936_v35  ;;  %v7876_v44 = vpop.xlane.xlu1 %7875  ;;  %8088 = vadd.xlane.f32.xlu0 %v8087_v22  ;;  %v5006_v51 = vadd.f32 %v15663_v26, %v17937_v23  ;;  %v7569_v62 = vmul.f32 %v16043_v49, %v16043_v49  ;;  %v17941_v23 = vld [vmem:[#allocation80_spill] sm:$0xff] }
 0x4e5   : > { %17934 = vst [vmem:[#allocation97_spill] sm:$0xff] %v16050_v48  ;;  %v8771_v56 = vmul.f32 %v12215_v54, %v17938_v33  ;;  %v7568_v10 = vmul.f32 %v16050_v48, %v16050_v48  ;;  %12224 = vrsqrt.f32 %v7876_v44  ;;  %v11870_v16 = vpop.f32.mrb[12].mxu1  ;;  %v7879_v29 = vpop.xlane.xlu0 %7878  ;;  %v8090_v33 = vsel %vm7690_vm3, %v7567_v41, 0.0  ;;  %v17944_v48 = vld [vmem:[#allocation108_spill] sm:$0xff] }
 0x4e6   : > { %9026 = vst.msk [vmem:[%s15368_s30 + $0x1b8] sm:$0xff] %vm7690_vm3, %v8770_v37  ;;  %v16067_v60 = vadd.f32 %v15728_v28, %v11870_v16  ;;  %12226 = vrsqrt.f32 %v7879_v29  ;;  %v6835_v22 = vpop.f32.mrb[13].mxu1  ;;  %12028 = vmatmul.mubr.msk.f32.gmra.mrb[118].mxu1 %vm5320_vm2, %v5297_v47  ;;  %v5299_v37 = vmax.f32 %v5001_v17, 0.0  ;;  %v5011_v16 = vadd.f32 %v15663_v26, %v17941_v23  ;;  %v17942_v47 = vld [vmem:[#allocation83_spill] sm:$0xff]  ;;  %v17943_v29 = vld [vmem:[#allocation106_spill] sm:$0xff] }
 0x4e7   : > { %v12217_v54 = vpop.eup %12216  ;;  %9027 = vst.msk [vmem:[%s15368_s30 + $0x1c0] sm:$0xff] %vm7690_vm3, %v8771_v56  ;;  %v16074_v44 = vadd.f32 %v15728_v28, %v6835_v22  ;;  %12030 = vmatprep.mubr.msk.f32.mxu1 %vm5320_vm2, %v5298_v0  ;;  %8091 = vadd.xlane.f32.xlu1 %v8090_v33  ;;  %v8093_v58 = vsel %vm7690_vm3, %v7568_v10, 0.0  ;;  %v5016_v41 = vadd.f32 %v15663_v26, %v17942_v47  ;;  %v5300_v22 = vmax.f32 %v5006_v51, 0.0 }
 0x4e8   : > { %17939 = vst [vmem:[#allocation29_spill] sm:$0xff] %v16067_v60  ;;  %v12219_v35 = vpop.eup %12218  ;;  %v8772_v49 = vmul.f32 %v12217_v54, %v17943_v29  ;;  %v7882_v56 = vpop.xlane.xlu1 %7881  ;;  %8094 = vadd.xlane.f32.xlu0 %v8093_v58  ;;  %v7571_v23 = vmul.f32 %v16067_v60, %v16067_v60  ;;  %v5301_v29 = vmax.f32 %v5011_v16, 0.0 }
 0x4e9   : > { %17940 = vst [vmem:[#allocation96_spill] sm:$0xff] %v16074_v44  ;;  %v8773_v0 = vmul.f32 %v12219_v35, %v17944_v48  ;;  %v7570_v33 = vmul.f32 %v16074_v44, %v16074_v44  ;;  %12228 = vrsqrt.f32 %v7882_v56  ;;  %v11873_v10 = vpop.f32.mrb[14].mxu1  ;;  %v7885_v17 = vpop.xlane.xlu0 %7884  ;;  %v8096_v48 = vsel %vm7690_vm3, %v7569_v62, 0.0  ;;  %v17947_v56 = vld [vmem:[#allocation82_spill] sm:$0xff] }
 0x4ea   : > { %9028 = vst.msk [vmem:[%s15368_s30 + $0x1c8] sm:$0xff] %vm7690_vm3, %v8772_v49  ;;  %v16091_v47 = vadd.f32 %v15728_v28, %v11873_v10  ;;  %12230 = vrsqrt.f32 %v7885_v17  ;;  %v6845_v54 = vpop.f32.mrb[15].mxu1  ;;  %12031 = vmatmul.mubr.msk.f32.gmra.mrb[120].mxu1 %vm5320_vm2, %v5299_v37  ;;  %v5021_v10 = vadd.f32 %v15663_v26, %v17947_v56  ;;  %v5302_v37 = vmax.f32 %v5016_v41, 0.0  ;;  %v17948_v17 = vld [vmem:[#allocation4_spill] sm:$0xff]  ;;  %v17950_v44 = vld [vmem:[#allocation6_spill] sm:$0xff] }
 0x4eb   : > { %v12221_v51 = vpop.eup %12220  ;;  %9029 = vst.msk [vmem:[%s15368_s30 + $0x1d0] sm:$0xff] %vm7690_vm3, %v8773_v0  ;;  %v16098_v58 = vadd.f32 %v15728_v28, %v6845_v54  ;;  %12033 = vmatprep.mubr.msk.f32.mxu1 %vm5320_vm2, %v5300_v22  ;;  %8097 = vadd.xlane.f32.xlu1 %v8096_v48  ;;  %v8099_v49 = vsel %vm7690_vm3, %v7570_v33, 0.0  ;;  %v17949_v0 = vld [vmem:[#allocation85_spill] sm:$0xff] }
 0x4ec   : > { %17945 = vst [vmem:[#allocation34_spill] sm:$0xff] %v16091_v47  ;;  %v12223_v35 = vpop.eup %12222  ;;  %v8774_v62 = vmul.f32 %v12221_v51, %v17948_v17  ;;  %v7888_v60 = vpop.xlane.xlu1 %7887  ;;  %8100 = vadd.xlane.f32.xlu0 %v8099_v49  ;;  %v5026_v54 = vadd.f32 %v15663_v26, %v17949_v0  ;;  %v7573_v41 = vmul.f32 %v16091_v47, %v16091_v47  ;;  %v17953_v0 = vld [vmem:[#allocation84_spill] sm:$0xff] }
 0x4ed   : > { %17946 = vst [vmem:[#allocation99_spill] sm:$0xff] %v16098_v58  ;;  %v8775_v22 = vmul.f32 %v12223_v35, %v17950_v44  ;;  %v7572_v48 = vmul.f32 %v16098_v58, %v16098_v58  ;;  %12232 = vrsqrt.f32 %v7888_v60  ;;  %v11876_v33 = vpop.f32.mrb[16].mxu1  ;;  %v7891_v16 = vpop.xlane.xlu0 %7890  ;;  %v8102_v44 = vsel %vm7690_vm3, %v7571_v23, 0.0  ;;  %v17956_v58 = vld [vmem:[#allocation8_spill] sm:$0xff] }
 0x4ee   : > { %9030 = vst.msk [vmem:[%s15368_s30 + $0x1d8] sm:$0xff] %vm7690_vm3, %v8774_v62  ;;  %v16115_v51 = vadd.f32 %v15728_v28, %v11876_v33  ;;  %12234 = vrsqrt.f32 %v7891_v16  ;;  %v6855_v49 = vpop.f32.mrb[17].mxu1  ;;  %12034 = vmatmul.mubr.msk.f32.gmra.mrb[122].mxu1 %vm5320_vm2, %v5301_v29  ;;  %v5303_v62 = vmax.f32 %v5021_v10, 0.0  ;;  %v5031_v33 = vadd.f32 %v15663_v26, %v17953_v0  ;;  %v17954_v29 = vld [vmem:[#allocation87_spill] sm:$0xff]  ;;  %v17955_v16 = vld [vmem:[#allocation2_spill] sm:$0xff] }
 0x4ef   : > { %v12225_v35 = vpop.eup %12224  ;;  %9031 = vst.msk [vmem:[%s15368_s30 + $0x1e0] sm:$0xff] %vm7690_vm3, %v8775_v22  ;;  %v16122_v60 = vadd.f32 %v15728_v28, %v6855_v49  ;;  %12036 = vmatprep.mubr.msk.f32.mxu1 %vm5320_vm2, %v5302_v37  ;;  %8103 = vadd.xlane.f32.xlu1 %v8102_v44  ;;  %v8105_v56 = vsel %vm7690_vm3, %v7572_v48, 0.0  ;;  %v5036_v23 = vadd.f32 %v15663_v26, %v17954_v29  ;;  %v5304_v49 = vmax.f32 %v5026_v54, 0.0 }
 0x4f0   : > { %17951 = vst [vmem:[#allocation31_spill] sm:$0xff] %v16115_v51  ;;  %v12227_v17 = vpop.eup %12226  ;;  %v8776_v47 = vmul.f32 %v12225_v35, %v17955_v16  ;;  %v7894_v22 = vpop.xlane.xlu1 %7893  ;;  %8106 = vadd.xlane.f32.xlu0 %v8105_v56  ;;  %v7575_v0 = vmul.f32 %v16115_v51, %v16115_v51  ;;  %v5305_v29 = vmax.f32 %v5031_v33, 0.0  ;;  %v17959_v16 = vld [vmem:[#allocation86_spill] sm:$0xff] }
 0x4f1   : > { %17952 = vst [vmem:[#allocation36_spill] sm:$0xff] %v16122_v60  ;;  %v8777_v37 = vmul.f32 %v12227_v17, %v17956_v58  ;;  %v7574_v44 = vmul.f32 %v16122_v60, %v16122_v60  ;;  %12236 = vrsqrt.f32 %v7894_v22  ;;  %v11879_v48 = vpop.f32.mrb[18].mxu1  ;;  %v7897_v10 = vpop.xlane.xlu0 %7896  ;;  %v8108_v58 = vsel %vm7690_vm3, %v7573_v41, 0.0 }
 0x4f2   : > { %9032 = vst.msk [vmem:[%s15368_s30 + $0x1e8] sm:$0xff] %vm7690_vm3, %v8776_v47  ;;  %v16139_v26 = vadd.f32 %v15728_v28, %v11879_v48  ;;  %12238 = vrsqrt.f32 %v7897_v10  ;;  %v6865_v35 = vpop.f32.mrb[19].mxu1  ;;  %12037 = vmatmul.mubr.msk.f32.gmra.mrb[124].mxu1 %vm5320_vm2, %v5303_v62  ;;  %v12621_v62 = vld [vmem:[%s17435_s4] ss:$0 sm:$0xff]  ;;  %v5306_v22 = vmax.f32 %v5036_v23, 0.0  ;;  %v17960_v48 = vld [vmem:[#allocation3_spill] sm:$0xff] }
 0x4f3   : > { %v12229_v54 = vpop.eup %12228  ;;  %9033 = vst.msk [vmem:[%s15368_s30 + $0x1f0] sm:$0xff] %vm7690_vm3, %v8777_v37  ;;  %v16146_v56 = vadd.f32 %v15728_v28, %v6865_v35  ;;  %12039 = vmatprep.mubr.msk.f32.mxu1 %vm5320_vm2, %v5304_v49  ;;  %8109 = vadd.xlane.f32.xlu1 %v8108_v58  ;;  %v8111_v47 = vsel %vm7690_vm3, %v7574_v44, 0.0  ;;  %v5041_v41 = vadd.f32 %v12621_v62, %v17959_v16  ;;  %v17961_v35 = vld [vmem:[#allocation89_spill] sm:$0xff]  ;;  %v17962_v58 = vld [vmem:[#allocation10_spill] sm:$0xff] }
 0x4f4   : > { %17957 = vst [vmem:[#allocation98_spill] sm:$0xff] %v16139_v26  ;;  %v12231_v17 = vpop.eup %12230  ;;  %v8778_v37 = vmul.f32 %v12229_v54, %v17960_v48  ;;  %v7900_v10 = vpop.xlane.xlu1 %7899  ;;  %8112 = vadd.xlane.f32.xlu0 %v8111_v47  ;;  %v5046_v49 = vadd.f32 %v12621_v62, %v17961_v35  ;;  %v7577_v23 = vmul.f32 %v16139_v26, %v16139_v26 }
 0x4f5   : > { %17958 = vst [vmem:[#allocation100_spill] sm:$0xff] %v16146_v56  ;;  %v8779_v51 = vmul.f32 %v12231_v17, %v17962_v58  ;;  %v7576_v44 = vmul.f32 %v16146_v56, %v16146_v56  ;;  %12240 = vrsqrt.f32 %v7900_v10  ;;  %v11882_v33 = vpop.f32.mrb[20].mxu1  ;;  %v7903_v60 = vpop.xlane.xlu0 %7902  ;;  %v8114_v17 = vsel %vm7690_vm3, %v7575_v0, 0.0 }
 0x4f6   : > { %9034 = vst.msk [vmem:[%s15368_s30 + $0x1f8] sm:$0xff] %vm7690_vm3, %v8778_v37  ;;  %v16164_v54 = vadd.f32 %v15728_v28, %v11882_v33  ;;  %12242 = vrsqrt.f32 %v7903_v60  ;;  %v6875_v47 = vpop.f32.mrb[21].mxu1  ;;  %12040 = vmatmul.mubr.msk.f32.gmra.mrb[126].mxu1 %vm5320_vm2, %v5305_v29  ;;  %v5307_v35 = vmax.f32 %v5041_v41, 0.0  ;;  %v17963_v60 = vld [vmem:[#allocation88_spill] sm:$0xff]  ;;  %v17964_v33 = vld [vmem:[#allocation5_spill] sm:$0xff]  ;;  %v5308_v0 = vmax.f32 %v5046_v49, 0.0 }
 0x4f7   : > { %v12233_v16 = vpop.eup %12232  ;;  %9035 = vst.msk [vmem:[%s15368_s30 + $0x200] sm:$0xff] %vm7690_vm3, %v8779_v51  ;;  %v16171_v48 = vadd.f32 %v15728_v28, %v6875_v47  ;;  %12042 = vmatprep.mubr.msk.f32.mxu1 %vm5320_vm2, %v5306_v22  ;;  %8115 = vadd.xlane.f32.xlu1 %v8114_v17  ;;  %v8117_v37 = vsel %vm7690_vm3, %v7576_v44, 0.0  ;;  %v5051_v58 = vadd.f32 %v12621_v62, %v17963_v60  ;;  %v17965_v51 = vld [vmem:[#allocation12_spill] sm:$0xff]  ;;  %v8120_v49 = vsel %vm7690_vm3, %v7577_v23, 0.0  ;;  %v17967_v23 = vld [vmem:[#allocation14_spill] sm:$0xff] }
 0x4f8   : > { %v12235_v10 = vpop.eup %12234  ;;  %v8780_v29 = vmul.f32 %v12233_v16, %v17964_v33  ;;  %v7906_v26 = vpop.xlane.xlu1 %7905  ;;  %8118 = vadd.xlane.f32.xlu0 %v8117_v37  ;;  %v7579_v41 = vmul.f32 %v16164_v54, %v16164_v54  ;;  %v17966_v33 = vld [vmem:[#allocation7_spill] sm:$0xff] }
 0x4f9   : > { %v8781_v56 = vmul.f32 %v12235_v10, %v17965_v51  ;;  %v7578_v47 = vmul.f32 %v16171_v48, %v16171_v48  ;;  %12244 = vrsqrt.f32 %v7906_v26  ;;  %v11885_v22 = vpop.f32.mrb[22].mxu1  ;;  %v7909_v17 = vpop.xlane.xlu0 %7908  ;;  %v5309_v60 = vmax.f32 %v5051_v58, 0.0  ;;  %v16207_v58 = vld [vmem:[%s17437_s6] ss:$0 sm:$0xff] }
 0x4fa   : > { %9036 = vst.msk [vmem:[%s15368_s30 + $0x208] sm:$0xff] %vm7690_vm3, %v8780_v29  ;;  %v16185_v62 = vadd.f32 %v15728_v28, %v11885_v22  ;;  %12246 = vrsqrt.f32 %v7909_v17  ;;  %v6885_v44 = vpop.f32.mrb[23].mxu1  ;;  %12043 = vmatmul.mubr.msk.f32.gmra.mrb[128].mxu1 %vm5320_vm2, %v5307_v35 }
 0x4fb   : > { %v12237_v16 = vpop.eup %12236  ;;  %9037 = vst.msk [vmem:[%s15368_s30 + $0x210] sm:$0xff] %vm7690_vm3, %v8781_v56  ;;  %v16192_v26 = vadd.f32 %v15728_v28, %v6885_v44  ;;  %12045 = vmatprep.mubr.msk.f32.mxu1 %vm5320_vm2, %v5308_v0  ;;  %8121 = vadd.xlane.f32.xlu1 %v8120_v49  ;;  %v8123_v37 = vsel %vm7690_vm3, %v7578_v47, 0.0  ;;  %v8126_v44 = vsel %vm7690_vm3, %v7579_v41, 0.0 }
 0x4fc   : > { %v12239_v10 = vpop.eup %12238  ;;  %v8782_v29 = vmul.f32 %v12237_v16, %v17966_v33  ;;  %v7912_v51 = vpop.xlane.xlu1 %7911  ;;  %8124 = vadd.xlane.f32.xlu0 %v8123_v37  ;;  %v7581_v0 = vmul.f32 %v16185_v62, %v16185_v62  ;;  %v17969_v33 = vld [vmem:[#allocation9_spill] sm:$0xff] }
 0x4fd   : > { %v8783_v35 = vmul.f32 %v12239_v10, %v17967_v23  ;;  %v7580_v56 = vmul.f32 %v16192_v26, %v16192_v26  ;;  %12248 = vrsqrt.f32 %v7912_v51  ;;  %v11888_v28 = vpop.f32.mrb[24].mxu1  ;;  %v7915_v22 = vpop.xlane.xlu0 %7914  ;;  %v17970_v23 = vld [vmem:[#allocation16_spill] sm:$0xff] }
 0x4fe   : > { %9038 = vst.msk [vmem:[%s15368_s30 + $0x218] sm:$0xff] %vm7690_vm3, %v8782_v29  ;;  %v16210_v47 = vadd.f32 %v16207_v58, %v11888_v28  ;;  %12250 = vrsqrt.f32 %v7915_v22  ;;  %v6895_v17 = vpop.f32.mrb[25].mxu1  ;;  %12046 = vmatmul.mubr.msk.f32.gmra.mrb[130].mxu1 %vm5320_vm2, %v5309_v60 }
 0x4ff   : > { %v12241_v49 = vpop.eup %12240  ;;  %9039 = vst.msk [vmem:[%s15368_s30 + $0x220] sm:$0xff] %vm7690_vm3, %v8783_v35  ;;  %v16217_v16 = vadd.f32 %v16207_v58, %v6895_v17  ;;  %8127 = vadd.xlane.f32.xlu1 %v8126_v44  ;;  %v8129_v37 = vsel %vm7690_vm3, %v7580_v56, 0.0  ;;  %v8132_v44 = vsel %vm7690_vm3, %v7581_v0, 0.0 }
 0x500   : > { %17968 = vst [vmem:[#allocation33_spill] sm:$0xff] %v16210_v47  ;;  %v12243_v10 = vpop.eup %12242  ;;  %v8784_v29 = vmul.f32 %v12241_v49, %v17969_v33  ;;  %v7918_v51 = vpop.xlane.xlu1 %7917  ;;  %8130 = vadd.xlane.f32.xlu0 %v8129_v37  ;;  %v7583_v22 = vmul.f32 %v16210_v47, %v16210_v47 }
 0x501   : > { %v8785_v60 = vmul.f32 %v12243_v10, %v17970_v23  ;;  %v7582_v41 = vmul.f32 %v16217_v16, %v16217_v16  ;;  %12252 = vrsqrt.f32 %v7918_v51  ;;  %v11891_v28 = vpop.f32.mrb[26].mxu1  ;;  %v7921_v35 = vpop.xlane.xlu0 %7920 }
 0x502   : > { %9040 = vst.msk [vmem:[%s15368_s30 + $0x228] sm:$0xff] %vm7690_vm3, %v8784_v29  ;;  %v16229_v56 = vadd.f32 %v16207_v58, %v11891_v28  ;;  %12254 = vrsqrt.f32 %v7921_v35  ;;  %v6905_v17 = vpop.f32.mrb[27].mxu1  ;;  %v17973_v29 = vld [vmem:[#allocation11_spill] sm:$0xff]  ;;  %v17974_v28 = vld [vmem:[#allocation18_spill] sm:$0xff] }
 0x503   : > { %v12245_v49 = vpop.eup %12244  ;;  %9041 = vst.msk [vmem:[%s15368_s30 + $0x230] sm:$0xff] %vm7690_vm3, %v8785_v60  ;;  %v16235_v37 = vadd.f32 %v16207_v58, %v6905_v17  ;;  %8133 = vadd.xlane.f32.xlu1 %v8132_v44  ;;  %v8135_v10 = vsel %vm7690_vm3, %v7582_v41, 0.0 }
 0x504   : > { %17971 = vst [vmem:[#allocation38_spill] sm:$0xff] %v16229_v56  ;;  %v12247_v33 = vpop.eup %12246  ;;  %v8786_v51 = vmul.f32 %v12245_v49, %v17973_v29  ;;  %v7924_v23 = vpop.xlane.xlu1 %7923  ;;  %8136 = vadd.xlane.f32.xlu0 %v8135_v10  ;;  %v7585_v17 = vmul.f32 %v16229_v56, %v16229_v56  ;;  %v8138_v49 = vsel %vm7690_vm3, %v7583_v22, 0.0 }
 0x505   : > { %17972 = vst [vmem:[#allocation35_spill] sm:$0xff] %v16235_v37  ;;  %v8787_v35 = vmul.f32 %v12247_v33, %v17974_v28  ;;  %v7584_v0 = vmul.f32 %v16235_v37, %v16235_v37  ;;  %12256 = vrsqrt.f32 %v7924_v23  ;;  %v11894_v47 = vpop.f32.mrb[28].mxu1  ;;  %v7927_v60 = vpop.xlane.xlu0 %7926  ;;  %v17977_v23 = vld [vmem:[#allocation13_spill] sm:$0xff] }
 0x506   : > { %9042 = vst.msk [vmem:[%s15368_s30 + $0x238] sm:$0xff] %vm7690_vm3, %v8786_v51  ;;  %v16247_v41 = vadd.f32 %v16207_v58, %v11894_v47  ;;  %12258 = vrsqrt.f32 %v7927_v60  ;;  %v6915_v44 = vpop.f32.mrb[29].mxu1  ;;  %v17978_v60 = vld [vmem:[#allocation20_spill] sm:$0xff] }
 0x507   : > { %v12249_v10 = vpop.eup %12248  ;;  %9043 = vst.msk [vmem:[%s15368_s30 + $0x240] sm:$0xff] %vm7690_vm3, %v8787_v35  ;;  %v16253_v33 = vadd.f32 %v16207_v58, %v6915_v44  ;;  %8139 = vadd.xlane.f32.xlu1 %v8138_v49  ;;  %v8141_v29 = vsel %vm7690_vm3, %v7584_v0, 0.0 }
 0x508   : > { %17975 = vst [vmem:[#allocation40_spill] sm:$0xff] %v16247_v41  ;;  %v12251_v51 = vpop.eup %12250  ;;  %v8788_v28 = vmul.f32 %v12249_v10, %v17977_v23  ;;  %v7930_v47 = vpop.xlane.xlu1 %7929  ;;  %8142 = vadd.xlane.f32.xlu0 %v8141_v29  ;;  %v7587_v44 = vmul.f32 %v16247_v41, %v16247_v41  ;;  %v8144_v10 = vsel %vm7690_vm3, %v7585_v17, 0.0 }
 0x509   : > { %17976 = vst [vmem:[#allocation37_spill] sm:$0xff] %v16253_v33  ;;  %v8789_v56 = vmul.f32 %v12251_v51, %v17978_v60  ;;  %v7586_v22 = vmul.f32 %v16253_v33, %v16253_v33  ;;  %12260 = vrsqrt.f32 %v7930_v47  ;;  %v11897_v37 = vpop.f32.mrb[30].mxu1  ;;  %v7933_v35 = vpop.xlane.xlu0 %7932  ;;  %v17981_v47 = vld [vmem:[#allocation15_spill] sm:$0xff] }
 0x50a   : > { %9044 = vst.msk [vmem:[%s15368_s30 + $0x248] sm:$0xff] %vm7690_vm3, %v8788_v28  ;;  %v16265_v0 = vadd.f32 %v16207_v58, %v11897_v37  ;;  %12262 = vrsqrt.f32 %v7933_v35  ;;  %v6925_v49 = vpop.f32.mrb[31].mxu1  ;;  %v17982_v35 = vld [vmem:[#allocation22_spill] sm:$0xff] }
 0x50b   : > { %v12253_v29 = vpop.eup %12252  ;;  %9045 = vst.msk [vmem:[%s15368_s30 + $0x250] sm:$0xff] %vm7690_vm3, %v8789_v56  ;;  %v16271_v51 = vadd.f32 %v16207_v58, %v6925_v49  ;;  %8145 = vadd.xlane.f32.xlu1 %v8144_v10  ;;  %v8147_v23 = vsel %vm7690_vm3, %v7586_v22, 0.0 }
 0x50c   : > { %17979 = vst [vmem:[#allocation42_spill] sm:$0xff] %v16265_v0  ;;  %v12255_v28 = vpop.eup %12254  ;;  %v8790_v60 = vmul.f32 %v12253_v29, %v17981_v47  ;;  %v7936_v37 = vpop.xlane.xlu1 %7935  ;;  %8148 = vadd.xlane.f32.xlu0 %v8147_v23  ;;  %v7589_v49 = vmul.f32 %v16265_v0, %v16265_v0  ;;  %v8150_v29 = vsel %vm7690_vm3, %v7587_v44, 0.0 }
 0x50d   : > { %17980 = vst [vmem:[#allocation39_spill] sm:$0xff] %v16271_v51  ;;  %v8791_v41 = vmul.f32 %v12255_v28, %v17982_v35  ;;  %v7588_v17 = vmul.f32 %v16271_v51, %v16271_v51  ;;  %12264 = vrsqrt.f32 %v7936_v37  ;;  %v11900_v33 = vpop.f32.mrb[32].mxu1  ;;  %v7939_v56 = vpop.xlane.xlu0 %7938  ;;  %v17985_v37 = vld [vmem:[#allocation17_spill] sm:$0xff] }
 0x50e   : > { %9046 = vst.msk [vmem:[%s15368_s30 + $0x258] sm:$0xff] %vm7690_vm3, %v8790_v60  ;;  %v16283_v22 = vadd.f32 %v16207_v58, %v11900_v33  ;;  %12266 = vrsqrt.f32 %v7939_v56  ;;  %v6935_v10 = vpop.f32.mrb[33].mxu1  ;;  %v17986_v56 = vld [vmem:[#allocation24_spill] sm:$0xff] }
 0x50f   : > { %v12257_v23 = vpop.eup %12256  ;;  %9047 = vst.msk [vmem:[%s15368_s30 + $0x260] sm:$0xff] %vm7690_vm3, %v8791_v41  ;;  %v16289_v28 = vadd.f32 %v16207_v58, %v6935_v10  ;;  %8151 = vadd.xlane.f32.xlu1 %v8150_v29  ;;  %v8153_v47 = vsel %vm7690_vm3, %v7588_v17, 0.0 }
 0x510   : > { %17983 = vst [vmem:[#allocation44_spill] sm:$0xff] %v16283_v22  ;;  %v12259_v60 = vpop.eup %12258  ;;  %v8792_v35 = vmul.f32 %v12257_v23, %v17985_v37  ;;  %v7942_v33 = vpop.xlane.xlu1 %7941  ;;  %8154 = vadd.xlane.f32.xlu0 %v8153_v47  ;;  %v7591_v10 = vmul.f32 %v16283_v22, %v16283_v22  ;;  %v8156_v23 = vsel %vm7690_vm3, %v7589_v49, 0.0 }
 0x511   : > { %17984 = vst [vmem:[#allocation41_spill] sm:$0xff] %v16289_v28  ;;  %v8793_v0 = vmul.f32 %v12259_v60, %v17986_v56  ;;  %v7590_v44 = vmul.f32 %v16289_v28, %v16289_v28  ;;  %12268 = vrsqrt.f32 %v7942_v33  ;;  %v11903_v51 = vpop.f32.mrb[34].mxu1  ;;  %v7945_v41 = vpop.xlane.xlu0 %7944  ;;  %v17989_v33 = vld [vmem:[#allocation19_spill] sm:$0xff] }
 0x512   : > { %9048 = vst.msk [vmem:[%s15368_s30 + $0x268] sm:$0xff] %vm7690_vm3, %v8792_v35  ;;  %v16301_v17 = vadd.f32 %v16207_v58, %v11903_v51  ;;  %12270 = vrsqrt.f32 %v7945_v41  ;;  %v6945_v29 = vpop.f32.mrb[35].mxu1  ;;  %v17990_v41 = vld [vmem:[#allocation90_spill] sm:$0xff] }
 0x513   : > { %v12261_v47 = vpop.eup %12260  ;;  %9049 = vst.msk [vmem:[%s15368_s30 + $0x270] sm:$0xff] %vm7690_vm3, %v8793_v0  ;;  %v16307_v60 = vadd.f32 %v16207_v58, %v6945_v29  ;;  %8157 = vadd.xlane.f32.xlu1 %v8156_v23  ;;  %v8159_v37 = vsel %vm7690_vm3, %v7590_v44, 0.0 }
 0x514   : > { %17987 = vst [vmem:[#allocation46_spill] sm:$0xff] %v16301_v17  ;;  %v12263_v35 = vpop.eup %12262  ;;  %v8794_v56 = vmul.f32 %v12261_v47, %v17989_v33  ;;  %v7948_v51 = vpop.xlane.xlu1 %7947  ;;  %8160 = vadd.xlane.f32.xlu0 %v8159_v37  ;;  %v7593_v29 = vmul.f32 %v16301_v17, %v16301_v17  ;;  %v8162_v47 = vsel %vm7690_vm3, %v7591_v10, 0.0 }
 0x515   : > { %17988 = vst [vmem:[#allocation43_spill] sm:$0xff] %v16307_v60  ;;  %v8795_v22 = vmul.f32 %v12263_v35, %v17990_v41  ;;  %v7592_v49 = vmul.f32 %v16307_v60, %v16307_v60  ;;  %12272 = vrsqrt.f32 %v7948_v51  ;;  %v11906_v28 = vpop.f32.mrb[36].mxu1  ;;  %v7951_v0 = vpop.xlane.xlu0 %7950  ;;  %v17993_v51 = vld [vmem:[#allocation21_spill] sm:$0xff] }
 0x516   : > { %9050 = vst.msk [vmem:[%s15368_s30 + $0x278] sm:$0xff] %vm7690_vm3, %v8794_v56  ;;  %v16319_v44 = vadd.f32 %v16207_v58, %v11906_v28  ;;  %12274 = vrsqrt.f32 %v7951_v0  ;;  %v6955_v23 = vpop.f32.mrb[37].mxu1  ;;  %v17994_v0 = vld [vmem:[#allocation23_spill] sm:$0xff] }
 0x517   : > { %v12265_v37 = vpop.eup %12264  ;;  %9051 = vst.msk [vmem:[%s15368_s30 + $0x280] sm:$0xff] %vm7690_vm3, %v8795_v22  ;;  %v16325_v35 = vadd.f32 %v16207_v58, %v6955_v23  ;;  %8163 = vadd.xlane.f32.xlu1 %v8162_v47  ;;  %v8165_v33 = vsel %vm7690_vm3, %v7592_v49, 0.0 }
 0x518   : > { %17991 = vst [vmem:[#allocation48_spill] sm:$0xff] %v16319_v44  ;;  %v12267_v56 = vpop.eup %12266  ;;  %v8796_v41 = vmul.f32 %v12265_v37, %v17993_v51  ;;  %v7954_v28 = vpop.xlane.xlu1 %7953  ;;  %8166 = vadd.xlane.f32.xlu0 %v8165_v33  ;;  %v7595_v23 = vmul.f32 %v16319_v44, %v16319_v44  ;;  %v8168_v37 = vsel %vm7690_vm3, %v7593_v29, 0.0 }
 0x519   : > { %17992 = vst [vmem:[#allocation45_spill] sm:$0xff] %v16325_v35  ;;  %v8797_v17 = vmul.f32 %v12267_v56, %v17994_v0  ;;  %v7594_v10 = vmul.f32 %v16325_v35, %v16325_v35  ;;  %12276 = vrsqrt.f32 %v7954_v28  ;;  %v11909_v60 = vpop.f32.mrb[38].mxu1  ;;  %v7957_v22 = vpop.xlane.xlu0 %7956  ;;  %v17997_v28 = vld [vmem:[#allocation26_spill] sm:$0xff] }
 0x51a   : > { %9052 = vst.msk [vmem:[%s15368_s30 + $0x288] sm:$0xff] %vm7690_vm3, %v8796_v41  ;;  %v16337_v49 = vadd.f32 %v16207_v58, %v11909_v60  ;;  %12278 = vrsqrt.f32 %v7957_v22  ;;  %v6965_v47 = vpop.f32.mrb[39].mxu1  ;;  %v17998_v22 = vld [vmem:[#allocation92_spill] sm:$0xff] }
 0x51b   : > { %v12269_v33 = vpop.eup %12268  ;;  %9053 = vst.msk [vmem:[%s15368_s30 + $0x290] sm:$0xff] %vm7690_vm3, %v8797_v17  ;;  %v16343_v56 = vadd.f32 %v16207_v58, %v6965_v47  ;;  %8169 = vadd.xlane.f32.xlu1 %v8168_v37  ;;  %v8171_v51 = vsel %vm7690_vm3, %v7594_v10, 0.0 }
 0x51c   : > { %17995 = vst [vmem:[#allocation50_spill] sm:$0xff] %v16337_v49  ;;  %v12271_v41 = vpop.eup %12270  ;;  %v8798_v0 = vmul.f32 %v12269_v33, %v17997_v28  ;;  %v7960_v60 = vpop.xlane.xlu1 %7959  ;;  %8172 = vadd.xlane.f32.xlu0 %v8171_v51  ;;  %v7597_v47 = vmul.f32 %v16337_v49, %v16337_v49  ;;  %v8174_v33 = vsel %vm7690_vm3, %v7595_v23, 0.0 }
 0x51d   : > { %17996 = vst [vmem:[#allocation47_spill] sm:$0xff] %v16343_v56  ;;  %v8799_v44 = vmul.f32 %v12271_v41, %v17998_v22  ;;  %v7596_v29 = vmul.f32 %v16343_v56, %v16343_v56  ;;  %12280 = vrsqrt.f32 %v7960_v60  ;;  %v11912_v35 = vpop.f32.mrb[40].mxu1  ;;  %v7963_v17 = vpop.xlane.xlu0 %7962  ;;  %v18000_v60 = vld [vmem:[#allocation28_spill] sm:$0xff] }
 0x51e   : > { %9054 = vst.msk [vmem:[%s15368_s30 + $0x298] sm:$0xff] %vm7690_vm3, %v8798_v0  ;;  %v16355_v10 = vadd.f32 %v16207_v58, %v11912_v35  ;;  %12282 = vrsqrt.f32 %v7963_v17  ;;  %v6975_v37 = vpop.f32.mrb[41].mxu1  ;;  %v18001_v17 = vld [vmem:[#allocation25_spill] sm:$0xff] }
 0x51f   : > { %v12273_v51 = vpop.eup %12272  ;;  %9055 = vst.msk [vmem:[%s15368_s30 + $0x2a0] sm:$0xff] %vm7690_vm3, %v8799_v44  ;;  %v16361_v41 = vadd.f32 %v16207_v58, %v6975_v37  ;;  %8175 = vadd.xlane.f32.xlu1 %v8174_v33  ;;  %v8177_v28 = vsel %vm7690_vm3, %v7596_v29, 0.0 }
 0x520   : > { %17999 = vst [vmem:[#allocation52_spill] sm:$0xff] %v16355_v10  ;;  %v12275_v0 = vpop.eup %12274  ;;  %v8800_v22 = vmul.f32 %v12273_v51, %v18000_v60  ;;  %v7966_v35 = vpop.xlane.xlu1 %7965  ;;  %8178 = vadd.xlane.f32.xlu0 %v8177_v28  ;;  %v7599_v37 = vmul.f32 %v16355_v10, %v16355_v10  ;;  %v8180_v51 = vsel %vm7690_vm3, %v7597_v47, 0.0 }
 0x521   : > { %v8801_v49 = vmul.f32 %v12275_v0, %v18001_v17  ;;  %v7598_v23 = vmul.f32 %v16361_v41, %v16361_v41  ;;  %12284 = vrsqrt.f32 %v7966_v35  ;;  %v11915_v56 = vpop.f32.mrb[42].mxu1  ;;  %v7969_v44 = vpop.xlane.xlu0 %7968  ;;  %v18002_v35 = vld [vmem:[#allocation91_spill] sm:$0xff] }
 0x522   : > { %9056 = vst.msk [vmem:[%s15368_s30 + $0x2a8] sm:$0xff] %vm7690_vm3, %v8800_v22  ;;  %v16373_v29 = vadd.f32 %v16207_v58, %v11915_v56  ;;  %12286 = vrsqrt.f32 %v7969_v44  ;;  %v6985_v33 = vpop.f32.mrb[43].mxu1 }
 0x523   : > { %v12277_v28 = vpop.eup %12276  ;;  %9057 = vst.msk [vmem:[%s15368_s30 + $0x2b0] sm:$0xff] %vm7690_vm3, %v8801_v49  ;;  %v16379_v0 = vadd.f32 %v16207_v58, %v6985_v33  ;;  %8181 = vadd.xlane.f32.xlu1 %v8180_v51  ;;  %v8183_v60 = vsel %vm7690_vm3, %v7598_v23, 0.0 }
 0x524   : > { %v12279_v22 = vpop.eup %12278  ;;  %v8802_v17 = vmul.f32 %v12277_v28, %v18002_v35  ;;  %v7972_v56 = vpop.xlane.xlu1 %7971  ;;  %8184 = vadd.xlane.f32.xlu0 %v8183_v60  ;;  %v7601_v33 = vmul.f32 %v16373_v29, %v16373_v29  ;;  %v8186_v28 = vsel %vm7690_vm3, %v7599_v37, 0.0 }
 0x525   : > { %v8803_v44 = vmul.f32 %v12279_v22, %v15488_v12  ;;  %v7600_v47 = vmul.f32 %v16379_v0, %v16379_v0  ;;  %12288 = vrsqrt.f32 %v7972_v56  ;;  %v11918_v10 = vpop.f32.mrb[44].mxu1  ;;  %v7975_v49 = vpop.xlane.xlu0 %7974 }
 0x526   : > { %9058 = vst.msk [vmem:[%s15368_s30 + $0x2b8] sm:$0xff] %vm7690_vm3, %v8802_v17  ;;  %v16391_v23 = vadd.f32 %v16207_v58, %v11918_v10  ;;  %12290 = vrsqrt.f32 %v7975_v49  ;;  %v6995_v51 = vpop.f32.mrb[45].mxu1 }
 0x527   : > { %v12281_v12 = vpop.eup %12280  ;;  %9059 = vst.msk [vmem:[%s15368_s30 + $0x2c0] sm:$0xff] %vm7690_vm3, %v8803_v44  ;;  %v16397_v60 = vadd.f32 %v16207_v58, %v6995_v51  ;;  %8187 = vadd.xlane.f32.xlu1 %v8186_v28  ;;  %v8189_v22 = vsel %vm7690_vm3, %v7600_v47, 0.0  ;;  %v8192_v28 = vsel %vm7690_vm3, %v7601_v33, 0.0 }
 0x528   : > { %v12283_v35 = vpop.eup %12282  ;;  %v8804_v17 = vmul.f32 %v12281_v12, %v15479_v32  ;;  %v7978_v10 = vpop.xlane.xlu1 %7977  ;;  %8190 = vadd.xlane.f32.xlu0 %v8189_v22  ;;  %v7603_v51 = vmul.f32 %v16391_v23, %v16391_v23 }
 0x529   : > { %v8805_v56 = vmul.f32 %v12283_v35, %v15512_v9  ;;  %v7602_v37 = vmul.f32 %v16397_v60, %v16397_v60  ;;  %12292 = vrsqrt.f32 %v7978_v10  ;;  %v11921_v49 = vpop.f32.mrb[46].mxu1  ;;  %v7981_v44 = vpop.xlane.xlu0 %7980 }
 0x52a   : > { %9060 = vst.msk [vmem:[%s15368_s30 + $0x2c8] sm:$0xff] %vm7690_vm3, %v8804_v17  ;;  %v16409_v47 = vadd.f32 %v16207_v58, %v11921_v49  ;;  %12294 = vrsqrt.f32 %v7981_v44  ;;  %v7005_v32 = vpop.f32.mrb[47].mxu1 }
 0x52b   : > { %v12285_v9 = vpop.eup %12284  ;;  %9061 = vst.msk [vmem:[%s15368_s30 + $0x2d0] sm:$0xff] %vm7690_vm3, %v8805_v56  ;;  %v16415_v12 = vadd.f32 %v16207_v58, %v7005_v32  ;;  %8193 = vadd.xlane.f32.xlu1 %v8192_v28  ;;  %v8195_v22 = vsel %vm7690_vm3, %v7602_v37, 0.0  ;;  %v8198_v28 = vsel %vm7690_vm3, %v7603_v51, 0.0 }
 0x52c   : > { %v12287_v35 = vpop.eup %12286  ;;  %v8806_v17 = vmul.f32 %v12285_v9, %v15503_v15  ;;  %v7984_v10 = vpop.xlane.xlu1 %7983  ;;  %8196 = vadd.xlane.f32.xlu0 %v8195_v22  ;;  %v7605_v32 = vmul.f32 %v16409_v47, %v16409_v47 }
 0x52d   : > { %v8807_v49 = vmul.f32 %v12287_v35, %v15536_v40  ;;  %v7604_v33 = vmul.f32 %v16415_v12, %v16415_v12  ;;  %12296 = vrsqrt.f32 %v7984_v10  ;;  %v11924_v44 = vpop.f32.mrb[48].mxu1  ;;  %v7987_v56 = vpop.xlane.xlu0 %7986 }
 0x52e   : > { %9062 = vst.msk [vmem:[%s15368_s30 + $0x2d8] sm:$0xff] %vm7690_vm3, %v8806_v17  ;;  %v16427_v37 = vadd.f32 %v16207_v58, %v11924_v44  ;;  %12298 = vrsqrt.f32 %v7987_v56  ;;  %v7015_v15 = vpop.f32.mrb[49].mxu1 }
 0x52f   : > { %v12289_v40 = vpop.eup %12288  ;;  %9063 = vst.msk [vmem:[%s15368_s30 + $0x2e0] sm:$0xff] %vm7690_vm3, %v8807_v49  ;;  %v16433_v9 = vadd.f32 %v16207_v58, %v7015_v15  ;;  %8199 = vadd.xlane.f32.xlu1 %v8198_v28  ;;  %v8201_v22 = vsel %vm7690_vm3, %v7604_v33, 0.0  ;;  %v8204_v28 = vsel %vm7690_vm3, %v7605_v32, 0.0 }
 0x530   : > { %v12291_v35 = vpop.eup %12290  ;;  %v8808_v17 = vmul.f32 %v12289_v40, %v15527_v63  ;;  %v7990_v10 = vpop.xlane.xlu1 %7989  ;;  %8202 = vadd.xlane.f32.xlu0 %v8201_v22  ;;  %v7607_v15 = vmul.f32 %v16427_v37, %v16427_v37 }
 0x531   : > { %v8809_v44 = vmul.f32 %v12291_v35, %v15560_v39  ;;  %v7606_v51 = vmul.f32 %v16433_v9, %v16433_v9  ;;  %12300 = vrsqrt.f32 %v7990_v10  ;;  %v11927_v56 = vpop.f32.mrb[50].mxu1  ;;  %v7993_v49 = vpop.xlane.xlu0 %7992 }
 0x532   : > { %9064 = vst.msk [vmem:[%s15368_s30 + $0x2e8] sm:$0xff] %vm7690_vm3, %v8808_v17  ;;  %v16445_v33 = vadd.f32 %v16207_v58, %v11927_v56  ;;  %12302 = vrsqrt.f32 %v7993_v49  ;;  %v7025_v63 = vpop.f32.mrb[51].mxu1 }
 0x533   : > { %v12293_v39 = vpop.eup %12292  ;;  %9065 = vst.msk [vmem:[%s15368_s30 + $0x2f0] sm:$0xff] %vm7690_vm3, %v8809_v44  ;;  %v16451_v40 = vadd.f32 %v16207_v58, %v7025_v63  ;;  %8205 = vadd.xlane.f32.xlu1 %v8204_v28  ;;  %v8207_v22 = vsel %vm7690_vm3, %v7606_v51, 0.0  ;;  %v8210_v28 = vsel %vm7690_vm3, %v7607_v15, 0.0 }
 0x534   : > { %v12295_v35 = vpop.eup %12294  ;;  %v8810_v17 = vmul.f32 %v12293_v39, %v15551_v7  ;;  %v7996_v10 = vpop.xlane.xlu1 %7995  ;;  %8208 = vadd.xlane.f32.xlu0 %v8207_v22  ;;  %v7609_v63 = vmul.f32 %v16445_v33, %v16445_v33 }
 0x535   : > { %v8811_v56 = vmul.f32 %v12295_v35, %v15584_v38  ;;  %v7608_v32 = vmul.f32 %v16451_v40, %v16451_v40  ;;  %12304 = vrsqrt.f32 %v7996_v10  ;;  %v11930_v49 = vpop.f32.mrb[52].mxu1  ;;  %v7999_v44 = vpop.xlane.xlu0 %7998 }
 0x536   : > { %9066 = vst.msk [vmem:[%s15368_s30 + $0x2f8] sm:$0xff] %vm7690_vm3, %v8810_v17  ;;  %v16463_v51 = vadd.f32 %v16207_v58, %v11930_v49  ;;  %12306 = vrsqrt.f32 %v7999_v44  ;;  %v7035_v7 = vpop.f32.mrb[53].mxu1 }
 0x537   : > { %v12297_v38 = vpop.eup %12296  ;;  %9067 = vst.msk [vmem:[%s15368_s30 + $0x300] sm:$0xff] %vm7690_vm3, %v8811_v56  ;;  %v16469_v39 = vadd.f32 %v16207_v58, %v7035_v7  ;;  %8211 = vadd.xlane.f32.xlu1 %v8210_v28  ;;  %v8213_v22 = vsel %vm7690_vm3, %v7608_v32, 0.0  ;;  %v8216_v28 = vsel %vm7690_vm3, %v7609_v63, 0.0 }
 0x538   : > { %v12299_v35 = vpop.eup %12298  ;;  %v8812_v17 = vmul.f32 %v12297_v38, %v15575_v50  ;;  %v8002_v10 = vpop.xlane.xlu1 %8001  ;;  %8214 = vadd.xlane.f32.xlu0 %v8213_v22  ;;  %v7611_v7 = vmul.f32 %v16463_v51, %v16463_v51 }
 0x539   : > { %v8813_v49 = vmul.f32 %v12299_v35, %v15608_v57  ;;  %v7610_v15 = vmul.f32 %v16469_v39, %v16469_v39  ;;  %12308 = vrsqrt.f32 %v8002_v10  ;;  %v11933_v44 = vpop.f32.mrb[54].mxu1  ;;  %v8005_v56 = vpop.xlane.xlu0 %8004 }
 0x53a   : > { %9068 = vst.msk [vmem:[%s15368_s30 + $0x308] sm:$0xff] %vm7690_vm3, %v8812_v17  ;;  %v16481_v32 = vadd.f32 %v16207_v58, %v11933_v44  ;;  %12310 = vrsqrt.f32 %v8005_v56  ;;  %v7045_v50 = vpop.f32.mrb[55].mxu1 }
 0x53b   : > { %v12301_v57 = vpop.eup %12300  ;;  %9069 = vst.msk [vmem:[%s15368_s30 + $0x310] sm:$0xff] %vm7690_vm3, %v8813_v49  ;;  %v16487_v38 = vadd.f32 %v16207_v58, %v7045_v50  ;;  %8217 = vadd.xlane.f32.xlu1 %v8216_v28  ;;  %v8219_v22 = vsel %vm7690_vm3, %v7610_v15, 0.0  ;;  %v8222_v28 = vsel %vm7690_vm3, %v7611_v7, 0.0 }
 0x53c   : > { %v12303_v35 = vpop.eup %12302  ;;  %v8814_v17 = vmul.f32 %v12301_v57, %v15599_v55  ;;  %v8008_v10 = vpop.xlane.xlu1 %8007  ;;  %8220 = vadd.xlane.f32.xlu0 %v8219_v22  ;;  %v7613_v50 = vmul.f32 %v16481_v32, %v16481_v32 }
 0x53d   : > { %v8815_v44 = vmul.f32 %v12303_v35, %v15632_v3  ;;  %v7612_v63 = vmul.f32 %v16487_v38, %v16487_v38  ;;  %12312 = vrsqrt.f32 %v8008_v10  ;;  %v11936_v56 = vpop.f32.mrb[56].mxu1  ;;  %v8011_v49 = vpop.xlane.xlu0 %8010 }
 0x53e   : > { %9070 = vst.msk [vmem:[%s15368_s30 + $0x318] sm:$0xff] %vm7690_vm3, %v8814_v17  ;;  %v16499_v15 = vadd.f32 %v16207_v58, %v11936_v56  ;;  %12314 = vrsqrt.f32 %v8011_v49  ;;  %v7055_v55 = vpop.f32.mrb[57].mxu1 }
 0x53f   : > { %v12305_v3 = vpop.eup %12304  ;;  %9071 = vst.msk [vmem:[%s15368_s30 + $0x320] sm:$0xff] %vm7690_vm3, %v8815_v44  ;;  %v16505_v57 = vadd.f32 %v16207_v58, %v7055_v55  ;;  %8223 = vadd.xlane.f32.xlu1 %v8222_v28  ;;  %v8225_v22 = vsel %vm7690_vm3, %v7612_v63, 0.0  ;;  %v8228_v28 = vsel %vm7690_vm3, %v7613_v50, 0.0 }
 0x540   : > { %v12307_v35 = vpop.eup %12306  ;;  %v8816_v17 = vmul.f32 %v12305_v3, %v15625_v36  ;;  %v8014_v10 = vpop.xlane.xlu1 %8013  ;;  %8226 = vadd.xlane.f32.xlu0 %v8225_v22  ;;  %v7615_v55 = vmul.f32 %v16499_v15, %v16499_v15 }
 0x541   : > { %v8817_v56 = vmul.f32 %v12307_v35, %v15656_v31  ;;  %v7614_v7 = vmul.f32 %v16505_v57, %v16505_v57  ;;  %12316 = vrsqrt.f32 %v8014_v10  ;;  %v11939_v49 = vpop.f32.mrb[58].mxu1  ;;  %v8017_v44 = vpop.xlane.xlu0 %8016 }
 0x542   : > { %9072 = vst.msk [vmem:[%s15368_s30 + $0x328] sm:$0xff] %vm7690_vm3, %v8816_v17  ;;  %v16517_v63 = vadd.f32 %v16207_v58, %v11939_v49  ;;  %12318 = vrsqrt.f32 %v8017_v44  ;;  %v7065_v36 = vpop.f32.mrb[59].mxu1 }
 0x543   : > { %v12309_v31 = vpop.eup %12308  ;;  %9073 = vst.msk [vmem:[%s15368_s30 + $0x330] sm:$0xff] %vm7690_vm3, %v8817_v56  ;;  %v16523_v3 = vadd.f32 %v16207_v58, %v7065_v36  ;;  %8229 = vadd.xlane.f32.xlu1 %v8228_v28  ;;  %v8231_v22 = vsel %vm7690_vm3, %v7614_v7, 0.0  ;;  %v8234_v28 = vsel %vm7690_vm3, %v7615_v55, 0.0 }
 0x544   : > { %v12311_v35 = vpop.eup %12310  ;;  %v8818_v17 = vmul.f32 %v12309_v31, %v15649_v2  ;;  %v8020_v10 = vpop.xlane.xlu1 %8019  ;;  %8232 = vadd.xlane.f32.xlu0 %v8231_v22  ;;  %v7617_v36 = vmul.f32 %v16517_v63, %v16517_v63 }
 0x545   : > { %v8819_v49 = vmul.f32 %v12311_v35, %v15685_v13  ;;  %v7616_v50 = vmul.f32 %v16523_v3, %v16523_v3  ;;  %12320 = vrsqrt.f32 %v8020_v10  ;;  %v11942_v44 = vpop.f32.mrb[60].mxu1  ;;  %v8023_v56 = vpop.xlane.xlu0 %8022 }
 0x546   : > { %9074 = vst.msk [vmem:[%s15368_s30 + $0x338] sm:$0xff] %vm7690_vm3, %v8818_v17  ;;  %v16535_v7 = vadd.f32 %v16207_v58, %v11942_v44  ;;  %12322 = vrsqrt.f32 %v8023_v56  ;;  %v7075_v2 = vpop.f32.mrb[61].mxu1 }
 0x547   : > { %v12313_v13 = vpop.eup %12312  ;;  %9075 = vst.msk [vmem:[%s15368_s30 + $0x340] sm:$0xff] %vm7690_vm3, %v8819_v49  ;;  %v16541_v31 = vadd.f32 %v16207_v58, %v7075_v2  ;;  %8235 = vadd.xlane.f32.xlu1 %v8234_v28  ;;  %v8237_v22 = vsel %vm7690_vm3, %v7616_v50, 0.0  ;;  %v8240_v28 = vsel %vm7690_vm3, %v7617_v36, 0.0 }
 0x548   : > { %v12315_v35 = vpop.eup %12314  ;;  %v8820_v17 = vmul.f32 %v12313_v13, %v15678_v19  ;;  %v8026_v10 = vpop.xlane.xlu1 %8025  ;;  %8238 = vadd.xlane.f32.xlu0 %v8237_v22  ;;  %v7619_v2 = vmul.f32 %v16535_v7, %v16535_v7 }
 0x549   : > { %v8821_v44 = vmul.f32 %v12315_v35, %v15709_v25  ;;  %v7618_v55 = vmul.f32 %v16541_v31, %v16541_v31  ;;  %12324 = vrsqrt.f32 %v8026_v10  ;;  %v11945_v56 = vpop.f32.mrb[62].mxu1  ;;  %v8029_v49 = vpop.xlane.xlu0 %8028 }
 0x54a   : > { %9076 = vst.msk [vmem:[%s15368_s30 + $0x348] sm:$0xff] %vm7690_vm3, %v8820_v17  ;;  %v16553_v50 = vadd.f32 %v16207_v58, %v11945_v56  ;;  %12326 = vrsqrt.f32 %v8029_v49  ;;  %v7085_v19 = vpop.f32.mrb[63].mxu1 }
 0x54b   : > { %v12317_v25 = vpop.eup %12316  ;;  %9077 = vst.msk [vmem:[%s15368_s30 + $0x350] sm:$0xff] %vm7690_vm3, %v8821_v44  ;;  %v16559_v13 = vadd.f32 %v16207_v58, %v7085_v19  ;;  %8241 = vadd.xlane.f32.xlu1 %v8240_v28  ;;  %v8243_v22 = vsel %vm7690_vm3, %v7618_v55, 0.0  ;;  %v8246_v28 = vsel %vm7690_vm3, %v7619_v2, 0.0 }
 0x54c   : > { %v12319_v35 = vpop.eup %12318  ;;  %v8822_v17 = vmul.f32 %v12317_v25, %v15702_v20  ;;  %v8032_v10 = vpop.xlane.xlu1 %8031  ;;  %8244 = vadd.xlane.f32.xlu0 %v8243_v22  ;;  %v7621_v19 = vmul.f32 %v16553_v50, %v16553_v50 }
 0x54d   : > { %v8823_v56 = vmul.f32 %v12319_v35, %v15738_v14  ;;  %v7620_v36 = vmul.f32 %v16559_v13, %v16559_v13  ;;  %12328 = vrsqrt.f32 %v8032_v10  ;;  %v11948_v49 = vpop.f32.mrb[64].mxu1  ;;  %v8035_v44 = vpop.xlane.xlu0 %8034 }
 0x54e   : > { %9078 = vst.msk [vmem:[%s15368_s30 + $0x358] sm:$0xff] %vm7690_vm3, %v8822_v17  ;;  %v16571_v55 = vadd.f32 %v16207_v58, %v11948_v49  ;;  %12330 = vrsqrt.f32 %v8035_v44  ;;  %v7095_v20 = vpop.f32.mrb[65].mxu1 }
 0x54f   : > { %v12321_v14 = vpop.eup %12320  ;;  %9079 = vst.msk [vmem:[%s15368_s30 + $0x360] sm:$0xff] %vm7690_vm3, %v8823_v56  ;;  %v16577_v25 = vadd.f32 %v16207_v58, %v7095_v20  ;;  %8247 = vadd.xlane.f32.xlu1 %v8246_v28  ;;  %v8249_v22 = vsel %vm7690_vm3, %v7620_v36, 0.0  ;;  %v8252_v28 = vsel %vm7690_vm3, %v7621_v19, 0.0 }
 0x550   : > { %v12323_v35 = vpop.eup %12322  ;;  %v8824_v17 = vmul.f32 %v12321_v14, %v15731_v5  ;;  %v8038_v10 = vpop.xlane.xlu1 %8037  ;;  %8250 = vadd.xlane.f32.xlu0 %v8249_v22  ;;  %v7623_v20 = vmul.f32 %v16571_v55, %v16571_v55 }
 0x551   : > { %v8825_v49 = vmul.f32 %v12323_v35, %v15762_v43  ;;  %v7622_v2 = vmul.f32 %v16577_v25, %v16577_v25  ;;  %12332 = vrsqrt.f32 %v8038_v10  ;;  %v11951_v44 = vpop.f32.mrb[66].mxu1  ;;  %v8041_v56 = vpop.xlane.xlu0 %8040 }
 0x552   : > { %9080 = vst.msk [vmem:[%s15368_s30 + $0x368] sm:$0xff] %vm7690_vm3, %v8824_v17  ;;  %v16589_v36 = vadd.f32 %v16207_v58, %v11951_v44  ;;  %12334 = vrsqrt.f32 %v8041_v56  ;;  %v7105_v5 = vpop.f32.mrb[67].mxu1 }
 0x553   : > { %v12325_v43 = vpop.eup %12324  ;;  %9081 = vst.msk [vmem:[%s15368_s30 + $0x370] sm:$0xff] %vm7690_vm3, %v8825_v49  ;;  %v16595_v14 = vadd.f32 %v16207_v58, %v7105_v5  ;;  %8253 = vadd.xlane.f32.xlu1 %v8252_v28  ;;  %v8255_v22 = vsel %vm7690_vm3, %v7622_v2, 0.0  ;;  %v8258_v28 = vsel %vm7690_vm3, %v7623_v20, 0.0 }
 0x554   : > { %v12327_v35 = vpop.eup %12326  ;;  %v8826_v17 = vmul.f32 %v12325_v43, %v15755_v27  ;;  %v8044_v10 = vpop.xlane.xlu1 %8043  ;;  %8256 = vadd.xlane.f32.xlu0 %v8255_v22  ;;  %v7625_v5 = vmul.f32 %v16589_v36, %v16589_v36 }
 0x555   : > { %v8827_v44 = vmul.f32 %v12327_v35, %v15786_v59  ;;  %v7624_v19 = vmul.f32 %v16595_v14, %v16595_v14  ;;  %12336 = vrsqrt.f32 %v8044_v10  ;;  %v11954_v56 = vpop.f32.mrb[68].mxu1  ;;  %v8047_v49 = vpop.xlane.xlu0 %8046 }
 0x556   : > { %9082 = vst.msk [vmem:[%s15368_s30 + $0x378] sm:$0xff] %vm7690_vm3, %v8826_v17  ;;  %v16607_v2 = vadd.f32 %v16207_v58, %v11954_v56  ;;  %12338 = vrsqrt.f32 %v8047_v49  ;;  %v7115_v27 = vpop.f32.mrb[69].mxu1 }
 0x557   : > { %v12329_v59 = vpop.eup %12328  ;;  %9083 = vst.msk [vmem:[%s15368_s30 + $0x380] sm:$0xff] %vm7690_vm3, %v8827_v44  ;;  %v16613_v43 = vadd.f32 %v16207_v58, %v7115_v27  ;;  %8259 = vadd.xlane.f32.xlu1 %v8258_v28  ;;  %v8261_v22 = vsel %vm7690_vm3, %v7624_v19, 0.0  ;;  %v8264_v28 = vsel %vm7690_vm3, %v7625_v5, 0.0 }
 0x558   : > { %v12331_v35 = vpop.eup %12330  ;;  %v8828_v17 = vmul.f32 %v12329_v59, %v15779_v30  ;;  %v8050_v10 = vpop.xlane.xlu1 %8049  ;;  %8262 = vadd.xlane.f32.xlu0 %v8261_v22  ;;  %v7627_v27 = vmul.f32 %v16607_v2, %v16607_v2 }
 0x559   : > { %v8829_v56 = vmul.f32 %v12331_v35, %v15810_v24  ;;  %v7626_v20 = vmul.f32 %v16613_v43, %v16613_v43  ;;  %12340 = vrsqrt.f32 %v8050_v10  ;;  %v11957_v49 = vpop.f32.mrb[70].mxu1  ;;  %v8053_v44 = vpop.xlane.xlu0 %8052 }
 0x55a   : > { %9084 = vst.msk [vmem:[%s15368_s30 + $0x388] sm:$0xff] %vm7690_vm3, %v8828_v17  ;;  %v16625_v19 = vadd.f32 %v16207_v58, %v11957_v49  ;;  %12342 = vrsqrt.f32 %v8053_v44  ;;  %v7125_v30 = vpop.f32.mrb[71].mxu1 }
 0x55b   : > { %v12333_v24 = vpop.eup %12332  ;;  %9085 = vst.msk [vmem:[%s15368_s30 + $0x390] sm:$0xff] %vm7690_vm3, %v8829_v56  ;;  %v16631_v59 = vadd.f32 %v16207_v58, %v7125_v30  ;;  %8265 = vadd.xlane.f32.xlu1 %v8264_v28  ;;  %v8267_v22 = vsel %vm7690_vm3, %v7626_v20, 0.0  ;;  %v8270_v28 = vsel %vm7690_vm3, %v7627_v27, 0.0 }
 0x55c   : > { %v12335_v35 = vpop.eup %12334  ;;  %v8830_v17 = vmul.f32 %v12333_v24, %v15803_v45  ;;  %v8056_v10 = vpop.xlane.xlu1 %8055  ;;  %8268 = vadd.xlane.f32.xlu0 %v8267_v22  ;;  %v7629_v30 = vmul.f32 %v16625_v19, %v16625_v19 }
 0x55d   : > { %v8831_v49 = vmul.f32 %v12335_v35, %v15834_v53  ;;  %v7628_v5 = vmul.f32 %v16631_v59, %v16631_v59  ;;  %12344 = vrsqrt.f32 %v8056_v10  ;;  %v11960_v44 = vpop.f32.mrb[72].mxu1  ;;  %v8059_v56 = vpop.xlane.xlu0 %8058 }
 0x55e   : > { %9086 = vst.msk [vmem:[%s15368_s30 + $0x398] sm:$0xff] %vm7690_vm3, %v8830_v17  ;;  %v16643_v20 = vadd.f32 %v16207_v58, %v11960_v44  ;;  %12346 = vrsqrt.f32 %v8059_v56  ;;  %v7135_v45 = vpop.f32.mrb[73].mxu1 }
 0x55f   : > { %v12337_v53 = vpop.eup %12336  ;;  %9087 = vst.msk [vmem:[%s15368_s30 + $0x3a0] sm:$0xff] %vm7690_vm3, %v8831_v49  ;;  %v16649_v24 = vadd.f32 %v16207_v58, %v7135_v45  ;;  %8271 = vadd.xlane.f32.xlu1 %v8270_v28  ;;  %v8273_v22 = vsel %vm7690_vm3, %v7628_v5, 0.0  ;;  %v8276_v28 = vsel %vm7690_vm3, %v7629_v30, 0.0 }
 0x560   : > { %v12339_v35 = vpop.eup %12338  ;;  %v8832_v17 = vmul.f32 %v12337_v53, %v15827_v61  ;;  %v8062_v10 = vpop.xlane.xlu1 %8061  ;;  %8274 = vadd.xlane.f32.xlu0 %v8273_v22  ;;  %v7631_v45 = vmul.f32 %v16643_v20, %v16643_v20 }
 0x561   : > { %v8833_v44 = vmul.f32 %v12339_v35, %v15858_v46  ;;  %v7630_v27 = vmul.f32 %v16649_v24, %v16649_v24  ;;  %12348 = vrsqrt.f32 %v8062_v10  ;;  %v11963_v56 = vpop.f32.mrb[74].mxu1  ;;  %v8065_v49 = vpop.xlane.xlu0 %8064 }
 0x562   : > { %9088 = vst.msk [vmem:[%s15368_s30 + $0x3a8] sm:$0xff] %vm7690_vm3, %v8832_v17  ;;  %v16661_v5 = vadd.f32 %v16207_v58, %v11963_v56  ;;  %12350 = vrsqrt.f32 %v8065_v49  ;;  %v7145_v61 = vpop.f32.mrb[75].mxu1 }
 0x563   : > { %v12341_v46 = vpop.eup %12340  ;;  %9089 = vst.msk [vmem:[%s15368_s30 + $0x3b0] sm:$0xff] %vm7690_vm3, %v8833_v44  ;;  %v16667_v53 = vadd.f32 %v16207_v58, %v7145_v61  ;;  %8277 = vadd.xlane.f32.xlu1 %v8276_v28  ;;  %v8279_v22 = vsel %vm7690_vm3, %v7630_v27, 0.0  ;;  %v8282_v61 = vsel %vm7690_vm3, %v7631_v45, 0.0 }
 0x564   : > { %v12343_v35 = vpop.eup %12342  ;;  %v8834_v17 = vmul.f32 %v12341_v46, %v15851_v6  ;;  %v8068_v10 = vpop.xlane.xlu1 %8067  ;;  %8280 = vadd.xlane.f32.xlu0 %v8279_v22  ;;  %v7633_v58 = vmul.f32 %v16661_v5, %v16661_v5  ;;  %v16681_v6 = vld [vmem:[%s17437_s6] ss:$0 sm:$0xff] }
 0x565   : > { %v8835_v56 = vmul.f32 %v12343_v35, %v15882_v18  ;;  %v7632_v30 = vmul.f32 %v16667_v53, %v16667_v53  ;;  %12352 = vrsqrt.f32 %v8068_v10  ;;  %v11966_v49 = vpop.f32.mrb[76].mxu1  ;;  %v8071_v44 = vpop.xlane.xlu0 %8070 }
 0x566   : > { %9090 = vst.msk [vmem:[%s15368_s30 + $0x3b8] sm:$0xff] %vm7690_vm3, %v8834_v17  ;;  %v16684_v27 = vadd.f32 %v16681_v6, %v11966_v49  ;;  %12354 = vrsqrt.f32 %v8071_v44  ;;  %v7155_v18 = vpop.f32.mrb[77].mxu1 }
 0x567   : > { %v12345_v28 = vpop.eup %12344  ;;  %9091 = vst.msk [vmem:[%s15368_s30 + $0x3c0] sm:$0xff] %vm7690_vm3, %v8835_v56  ;;  %v16690_v46 = vadd.f32 %v16681_v6, %v7155_v18  ;;  %8283 = vadd.xlane.f32.xlu1 %v8282_v61  ;;  %v8285_v22 = vsel %vm7690_vm3, %v7632_v30, 0.0  ;;  %v8288_v61 = vsel %vm7690_vm3, %v7633_v58, 0.0 }
 0x568   : > { %v12347_v35 = vpop.eup %12346  ;;  %v8836_v17 = vmul.f32 %v12345_v28, %v15875_v4  ;;  %v8074_v10 = vpop.xlane.xlu1 %8073  ;;  %8286 = vadd.xlane.f32.xlu0 %v8285_v22  ;;  %v7635_v18 = vmul.f32 %v16684_v27, %v16684_v27 }
 0x569   : > { %v8837_v49 = vmul.f32 %v12347_v35, %v15906_v52  ;;  %v7634_v45 = vmul.f32 %v16690_v46, %v16690_v46  ;;  %12356 = vrsqrt.f32 %v8074_v10  ;;  %v11969_v44 = vpop.f32.mrb[78].mxu1  ;;  %v8077_v56 = vpop.xlane.xlu0 %8076 }
 0x56a   : > { %9092 = vst.msk [vmem:[%s15368_s30 + $0x3c8] sm:$0xff] %vm7690_vm3, %v8836_v17  ;;  %v16702_v30 = vadd.f32 %v16681_v6, %v11969_v44  ;;  %12358 = vrsqrt.f32 %v8077_v56  ;;  %v7165_v4 = vpop.f32.mrb[79].mxu1 }
 0x56b   : > { %v12349_v52 = vpop.eup %12348  ;;  %9093 = vst.msk [vmem:[%s15368_s30 + $0x3d0] sm:$0xff] %vm7690_vm3, %v8837_v49  ;;  %v16708_v28 = vadd.f32 %v16681_v6, %v7165_v4  ;;  %8289 = vadd.xlane.f32.xlu1 %v8288_v61  ;;  %v8291_v22 = vsel %vm7690_vm3, %v7634_v45, 0.0  ;;  %v8294_v61 = vsel %vm7690_vm3, %v7635_v18, 0.0 }
 0x56c   : > { %v12351_v35 = vpop.eup %12350  ;;  %v8838_v17 = vmul.f32 %v12349_v52, %v15899_v11  ;;  %v8080_v10 = vpop.xlane.xlu1 %8079  ;;  %8292 = vadd.xlane.f32.xlu0 %v8291_v22  ;;  %v7637_v4 = vmul.f32 %v16702_v30, %v16702_v30 }
 0x56d   : > { %v8839_v44 = vmul.f32 %v12351_v35, %v15930_v1  ;;  %v7636_v58 = vmul.f32 %v16708_v28, %v16708_v28  ;;  %12360 = vrsqrt.f32 %v8080_v10  ;;  %v11972_v56 = vpop.f32.mrb[80].mxu1  ;;  %v8083_v49 = vpop.xlane.xlu0 %8082 }
 0x56e   : > { %9094 = vst.msk [vmem:[%s15368_s30 + $0x3d8] sm:$0xff] %vm7690_vm3, %v8838_v17  ;;  %v16720_v45 = vadd.f32 %v16681_v6, %v11972_v56  ;;  %12362 = vrsqrt.f32 %v8083_v49  ;;  %v7175_v11 = vpop.f32.mrb[81].mxu1 }
 0x56f   : > { %v12353_v1 = vpop.eup %12352  ;;  %9095 = vst.msk [vmem:[%s15368_s30 + $0x3e0] sm:$0xff] %vm7690_vm3, %v8839_v44  ;;  %v16726_v52 = vadd.f32 %v16681_v6, %v7175_v11  ;;  %8295 = vadd.xlane.f32.xlu1 %v8294_v61  ;;  %v8297_v22 = vsel %vm7690_vm3, %v7636_v58, 0.0  ;;  %v8300_v61 = vsel %vm7690_vm3, %v7637_v4, 0.0 }
 0x570   : > { %v12355_v35 = vpop.eup %12354  ;;  %v8840_v17 = vmul.f32 %v12353_v1, %v15923_v8  ;;  %v8086_v10 = vpop.xlane.xlu1 %8085  ;;  %8298 = vadd.xlane.f32.xlu0 %v8297_v22  ;;  %v7639_v11 = vmul.f32 %v16720_v45, %v16720_v45 }
 0x571   : > { %v8841_v56 = vmul.f32 %v12355_v35, %v15954_v21  ;;  %v7638_v18 = vmul.f32 %v16726_v52, %v16726_v52  ;;  %12364 = vrsqrt.f32 %v8086_v10  ;;  %v11975_v49 = vpop.f32.mrb[82].mxu1  ;;  %v8089_v44 = vpop.xlane.xlu0 %8088 }
 0x572   : > { %9096 = vst.msk [vmem:[%s15368_s30 + $0x3e8] sm:$0xff] %vm7690_vm3, %v8840_v17  ;;  %v16738_v58 = vadd.f32 %v16681_v6, %v11975_v49  ;;  %12366 = vrsqrt.f32 %v8089_v44  ;;  %v7185_v8 = vpop.f32.mrb[83].mxu1 }
 0x573   : > { %v12357_v21 = vpop.eup %12356  ;;  %9097 = vst.msk [vmem:[%s15368_s30 + $0x3f0] sm:$0xff] %vm7690_vm3, %v8841_v56  ;;  %v16744_v1 = vadd.f32 %v16681_v6, %v7185_v8  ;;  %8301 = vadd.xlane.f32.xlu1 %v8300_v61  ;;  %v8303_v22 = vsel %vm7690_vm3, %v7638_v18, 0.0  ;;  %v8306_v61 = vsel %vm7690_vm3, %v7639_v11, 0.0 }
 0x574   : > { %18003 = vst [vmem:[#allocation49_spill] sm:$0xff] %v16738_v58  ;;  %v12359_v35 = vpop.eup %12358  ;;  %v8842_v17 = vmul.f32 %v12357_v21, %v15947_v34  ;;  %v8092_v10 = vpop.xlane.xlu1 %8091  ;;  %8304 = vadd.xlane.f32.xlu0 %v8303_v22  ;;  %v7641_v8 = vmul.f32 %v16738_v58, %v16738_v58 }
 0x575   : > { %18004 = vst [vmem:[#allocation54_spill] sm:$0xff] %v16744_v1  ;;  %v8843_v49 = vmul.f32 %v12359_v35, %v15978_v42  ;;  %v7640_v4 = vmul.f32 %v16744_v1, %v16744_v1  ;;  %12368 = vrsqrt.f32 %v8092_v10  ;;  %v11978_v44 = vpop.f32.mrb[84].mxu1  ;;  %v8095_v56 = vpop.xlane.xlu0 %8094 }
 0x576   : > { %9098 = vst.msk [vmem:[%s15368_s30 + $0x3f8] sm:$0xff] %vm7690_vm3, %v8842_v17  ;;  %v16756_v18 = vadd.f32 %v16681_v6, %v11978_v44  ;;  %12370 = vrsqrt.f32 %v8095_v56  ;;  %v7195_v34 = vpop.f32.mrb[85].mxu1  ;;  %v18007_v17 = vld [vmem:[#allocation93_spill] sm:$0xff]  ;;  %v18008_v56 = vld [vmem:[#allocation95_spill] sm:$0xff] }
 0x577   : > { %v12361_v42 = vpop.eup %12360  ;;  %9099 = vst.msk [vmem:[%s15368_s30 + $0x400] sm:$0xff] %vm7690_vm3, %v8843_v49  ;;  %v16762_v21 = vadd.f32 %v16681_v6, %v7195_v34  ;;  %8307 = vadd.xlane.f32.xlu1 %v8306_v61  ;;  %v8309_v22 = vsel %vm7690_vm3, %v7640_v4, 0.0 }
 0x578   : > { %18005 = vst [vmem:[#allocation51_spill] sm:$0xff] %v16756_v18  ;;  %v12363_v35 = vpop.eup %12362  ;;  %v8844_v10 = vmul.f32 %v12361_v42, %v18007_v17  ;;  %v8098_v44 = vpop.xlane.xlu1 %8097  ;;  %8310 = vadd.xlane.f32.xlu0 %v8309_v22  ;;  %v7643_v34 = vmul.f32 %v16756_v18, %v16756_v18  ;;  %v8312_v42 = vsel %vm7690_vm3, %v7641_v8, 0.0 }
 0x579   : > { %18006 = vst [vmem:[#allocation56_spill] sm:$0xff] %v16762_v21  ;;  %v8845_v58 = vmul.f32 %v12363_v35, %v18008_v56  ;;  %v7642_v11 = vmul.f32 %v16762_v21, %v16762_v21  ;;  %12372 = vrsqrt.f32 %v8098_v44  ;;  %v11981_v1 = vpop.f32.mrb[86].mxu1  ;;  %v8101_v49 = vpop.xlane.xlu0 %8100  ;;  %v18011_v44 = vld [vmem:[#allocation30_spill] sm:$0xff] }
 0x57a   : > { %9100 = vst.msk [vmem:[%s15368_s30 + $0x408] sm:$0xff] %vm7690_vm3, %v8844_v10  ;;  %v16774_v4 = vadd.f32 %v16681_v6, %v11981_v1  ;;  %12374 = vrsqrt.f32 %v8101_v49  ;;  %v7205_v61 = vpop.f32.mrb[87].mxu1  ;;  %v18012_v49 = vld [vmem:[#allocation32_spill] sm:$0xff] }
 0x57b   : > { %v12365_v22 = vpop.eup %12364  ;;  %9101 = vst.msk [vmem:[%s15368_s30 + $0x410] sm:$0xff] %vm7690_vm3, %v8845_v58  ;;  %v16780_v35 = vadd.f32 %v16681_v6, %v7205_v61  ;;  %8313 = vadd.xlane.f32.xlu1 %v8312_v42  ;;  %v8315_v17 = vsel %vm7690_vm3, %v7642_v11, 0.0 }
 0x57c   : > { %18009 = vst [vmem:[#allocation53_spill] sm:$0xff] %v16774_v4  ;;  %v12367_v10 = vpop.eup %12366  ;;  %v8846_v56 = vmul.f32 %v12365_v22, %v18011_v44  ;;  %v8104_v1 = vpop.xlane.xlu1 %8103  ;;  %8316 = vadd.xlane.f32.xlu0 %v8315_v17  ;;  %v7645_v61 = vmul.f32 %v16774_v4, %v16774_v4  ;;  %v8318_v22 = vsel %vm7690_vm3, %v7643_v34, 0.0 }
 0x57d   : > { %18010 = vst [vmem:[#allocation58_spill] sm:$0xff] %v16780_v35  ;;  %v8847_v18 = vmul.f32 %v12367_v10, %v18012_v49  ;;  %v7644_v8 = vmul.f32 %v16780_v35, %v16780_v35  ;;  %12376 = vrsqrt.f32 %v8104_v1  ;;  %v11984_v21 = vpop.f32.mrb[88].mxu1  ;;  %v8107_v58 = vpop.xlane.xlu0 %8106  ;;  %v18015_v1 = vld [vmem:[#allocation27_spill] sm:$0xff] }
 0x57e   : > { %9102 = vst.msk [vmem:[%s15368_s30 + $0x418] sm:$0xff] %vm7690_vm3, %v8846_v56  ;;  %v16792_v11 = vadd.f32 %v16681_v6, %v11984_v21  ;;  %12378 = vrsqrt.f32 %v8107_v58  ;;  %v7215_v42 = vpop.f32.mrb[89].mxu1  ;;  %v18016_v58 = vld [vmem:[#allocation97_spill] sm:$0xff] }
 0x57f   : > { %v12369_v17 = vpop.eup %12368  ;;  %9103 = vst.msk [vmem:[%s15368_s30 + $0x420] sm:$0xff] %vm7690_vm3, %v8847_v18  ;;  %v16798_v10 = vadd.f32 %v16681_v6, %v7215_v42  ;;  %8319 = vadd.xlane.f32.xlu1 %v8318_v22  ;;  %v8321_v44 = vsel %vm7690_vm3, %v7644_v8, 0.0 }
 0x580   : > { %18013 = vst [vmem:[#allocation55_spill] sm:$0xff] %v16792_v11  ;;  %v12371_v56 = vpop.eup %12370  ;;  %v8848_v49 = vmul.f32 %v12369_v17, %v18015_v1  ;;  %v8110_v21 = vpop.xlane.xlu1 %8109  ;;  %8322 = vadd.xlane.f32.xlu0 %v8321_v44  ;;  %v7647_v42 = vmul.f32 %v16792_v11, %v16792_v11  ;;  %v8324_v17 = vsel %vm7690_vm3, %v7645_v61, 0.0 }
 0x581   : > { %18014 = vst [vmem:[#allocation60_spill] sm:$0xff] %v16798_v10  ;;  %v8849_v4 = vmul.f32 %v12371_v56, %v18016_v58  ;;  %v7646_v34 = vmul.f32 %v16798_v10, %v16798_v10  ;;  %12380 = vrsqrt.f32 %v8110_v21  ;;  %v11987_v35 = vpop.f32.mrb[90].mxu1  ;;  %v8113_v18 = vpop.xlane.xlu0 %8112  ;;  %v18019_v21 = vld [vmem:[#allocation94_spill] sm:$0xff] }
 0x582   : > { %9104 = vst.msk [vmem:[%s15368_s30 + $0x428] sm:$0xff] %vm7690_vm3, %v8848_v49  ;;  %v16810_v8 = vadd.f32 %v16681_v6, %v11987_v35  ;;  %12382 = vrsqrt.f32 %v8113_v18  ;;  %v7225_v22 = vpop.f32.mrb[91].mxu1  ;;  %v18020_v18 = vld [vmem:[#allocation96_spill] sm:$0xff] }
 0x583   : > { %v12373_v44 = vpop.eup %12372  ;;  %9105 = vst.msk [vmem:[%s15368_s30 + $0x430] sm:$0xff] %vm7690_vm3, %v8849_v4  ;;  %v16816_v56 = vadd.f32 %v16681_v6, %v7225_v22  ;;  %8325 = vadd.xlane.f32.xlu1 %v8324_v17  ;;  %v8327_v1 = vsel %vm7690_vm3, %v7646_v34, 0.0 }
 0x584   : > { %18017 = vst [vmem:[#allocation57_spill] sm:$0xff] %v16810_v8  ;;  %v12375_v49 = vpop.eup %12374  ;;  %v8850_v58 = vmul.f32 %v12373_v44, %v18019_v21  ;;  %v8116_v35 = vpop.xlane.xlu1 %8115  ;;  %8328 = vadd.xlane.f32.xlu0 %v8327_v1  ;;  %v7649_v22 = vmul.f32 %v16810_v8, %v16810_v8  ;;  %v8330_v44 = vsel %vm7690_vm3, %v7647_v42, 0.0 }
 0x585   : > { %18018 = vst [vmem:[#allocation62_spill] sm:$0xff] %v16816_v56  ;;  %v8851_v11 = vmul.f32 %v12375_v49, %v18020_v18  ;;  %v7648_v61 = vmul.f32 %v16816_v56, %v16816_v56  ;;  %12384 = vrsqrt.f32 %v8116_v35  ;;  %v11990_v10 = vpop.f32.mrb[92].mxu1  ;;  %v8119_v4 = vpop.xlane.xlu0 %8118  ;;  %v18023_v35 = vld [vmem:[#allocation29_spill] sm:$0xff] }
 0x586   : > { %9106 = vst.msk [vmem:[%s15368_s30 + $0x438] sm:$0xff] %vm7690_vm3, %v8850_v58  ;;  %v16828_v34 = vadd.f32 %v16681_v6, %v11990_v10  ;;  %12386 = vrsqrt.f32 %v8119_v4  ;;  %v7235_v17 = vpop.f32.mrb[93].mxu1  ;;  %v18024_v4 = vld [vmem:[#allocation99_spill] sm:$0xff] }
 0x587   : > { %v12377_v1 = vpop.eup %12376  ;;  %9107 = vst.msk [vmem:[%s15368_s30 + $0x440] sm:$0xff] %vm7690_vm3, %v8851_v11  ;;  %v16834_v49 = vadd.f32 %v16681_v6, %v7235_v17  ;;  %8331 = vadd.xlane.f32.xlu1 %v8330_v44  ;;  %v8333_v21 = vsel %vm7690_vm3, %v7648_v61, 0.0 }
 0x588   : > { %18021 = vst [vmem:[#allocation59_spill] sm:$0xff] %v16828_v34  ;;  %v12379_v58 = vpop.eup %12378  ;;  %v8852_v18 = vmul.f32 %v12377_v1, %v18023_v35  ;;  %v8122_v10 = vpop.xlane.xlu1 %8121  ;;  %8334 = vadd.xlane.f32.xlu0 %v8333_v21  ;;  %v7651_v17 = vmul.f32 %v16828_v34, %v16828_v34  ;;  %v8336_v1 = vsel %vm7690_vm3, %v7649_v22, 0.0 }
 0x589   : > { %18022 = vst [vmem:[#allocation64_spill] sm:$0xff] %v16834_v49  ;;  %v8853_v8 = vmul.f32 %v12379_v58, %v18024_v4  ;;  %v7650_v42 = vmul.f32 %v16834_v49, %v16834_v49  ;;  %12388 = vrsqrt.f32 %v8122_v10  ;;  %v11993_v56 = vpop.f32.mrb[94].mxu1  ;;  %v8125_v11 = vpop.xlane.xlu0 %8124  ;;  %v18027_v10 = vld [vmem:[#allocation34_spill] sm:$0xff] }
 0x58a   : > { %9108 = vst.msk [vmem:[%s15368_s30 + $0x448] sm:$0xff] %vm7690_vm3, %v8852_v18  ;;  %v16846_v61 = vadd.f32 %v16681_v6, %v11993_v56  ;;  %12390 = vrsqrt.f32 %v8125_v11  ;;  %v7245_v44 = vpop.f32.mrb[95].mxu1  ;;  %v18028_v11 = vld [vmem:[#allocation36_spill] sm:$0xff] }
 0x58b   : > { %v12381_v21 = vpop.eup %12380  ;;  %9109 = vst.msk [vmem:[%s15368_s30 + $0x450] sm:$0xff] %vm7690_vm3, %v8853_v8  ;;  %v16852_v58 = vadd.f32 %v16681_v6, %v7245_v44  ;;  %8337 = vadd.xlane.f32.xlu1 %v8336_v1  ;;  %v8339_v35 = vsel %vm7690_vm3, %v7650_v42, 0.0 }
 0x58c   : > { %18025 = vst [vmem:[#allocation61_spill] sm:$0xff] %v16846_v61  ;;  %v12383_v18 = vpop.eup %12382  ;;  %v8854_v4 = vmul.f32 %v12381_v21, %v18027_v10  ;;  %v8128_v56 = vpop.xlane.xlu1 %8127  ;;  %8340 = vadd.xlane.f32.xlu0 %v8339_v35  ;;  %v7653_v44 = vmul.f32 %v16846_v61, %v16846_v61  ;;  %v8342_v21 = vsel %vm7690_vm3, %v7651_v17, 0.0 }
 0x58d   : > { %18026 = vst [vmem:[#allocation66_spill] sm:$0xff] %v16852_v58  ;;  %v8855_v34 = vmul.f32 %v12383_v18, %v18028_v11  ;;  %v7652_v22 = vmul.f32 %v16852_v58, %v16852_v58  ;;  %12392 = vrsqrt.f32 %v8128_v56  ;;  %v11996_v49 = vpop.f32.mrb[96].mxu1  ;;  %v8131_v8 = vpop.xlane.xlu0 %8130  ;;  %v18030_v56 = vld [vmem:[#allocation31_spill] sm:$0xff] }
 0x58e   : > { %9110 = vst.msk [vmem:[%s15368_s30 + $0x458] sm:$0xff] %vm7690_vm3, %v8854_v4  ;;  %v16864_v42 = vadd.f32 %v16681_v6, %v11996_v49  ;;  %12394 = vrsqrt.f32 %v8131_v8  ;;  %v7255_v1 = vpop.f32.mrb[97].mxu1  ;;  %v18031_v8 = vld [vmem:[#allocation100_spill] sm:$0xff] }
 0x58f   : > { %v12385_v35 = vpop.eup %12384  ;;  %9111 = vst.msk [vmem:[%s15368_s30 + $0x460] sm:$0xff] %vm7690_vm3, %v8855_v34  ;;  %v16870_v18 = vadd.f32 %v16681_v6, %v7255_v1  ;;  %8343 = vadd.xlane.f32.xlu1 %v8342_v21  ;;  %v8345_v10 = vsel %vm7690_vm3, %v7652_v22, 0.0 }
 0x590   : > { %18029 = vst [vmem:[#allocation63_spill] sm:$0xff] %v16864_v42  ;;  %v12387_v4 = vpop.eup %12386  ;;  %v8856_v11 = vmul.f32 %v12385_v35, %v18030_v56  ;;  %v8134_v49 = vpop.xlane.xlu1 %8133  ;;  %8346 = vadd.xlane.f32.xlu0 %v8345_v10  ;;  %v7655_v1 = vmul.f32 %v16864_v42, %v16864_v42  ;;  %v8348_v35 = vsel %vm7690_vm3, %v7653_v44, 0.0 }
 0x591   : > { %v8857_v61 = vmul.f32 %v12387_v4, %v18031_v8  ;;  %v7654_v17 = vmul.f32 %v16870_v18, %v16870_v18  ;;  %12396 = vrsqrt.f32 %v8134_v49  ;;  %v11999_v58 = vpop.f32.mrb[98].mxu1  ;;  %v8137_v34 = vpop.xlane.xlu0 %8136  ;;  %v18032_v49 = vld [vmem:[#allocation98_spill] sm:$0xff] }
 0x592   : > { %9112 = vst.msk [vmem:[%s15368_s30 + $0x468] sm:$0xff] %vm7690_vm3, %v8856_v11  ;;  %v16882_v22 = vadd.f32 %v16681_v6, %v11999_v58  ;;  %12398 = vrsqrt.f32 %v8137_v34  ;;  %v7265_v21 = vpop.f32.mrb[99].mxu1 }
 0x593   : > { %v12389_v10 = vpop.eup %12388  ;;  %9113 = vst.msk [vmem:[%s15368_s30 + $0x470] sm:$0xff] %vm7690_vm3, %v8857_v61  ;;  %v16888_v4 = vadd.f32 %v16681_v6, %v7265_v21  ;;  %8349 = vadd.xlane.f32.xlu1 %v8348_v35  ;;  %v8351_v56 = vsel %vm7690_vm3, %v7654_v17, 0.0 }
 0x594   : > { %v12391_v11 = vpop.eup %12390  ;;  %v8858_v8 = vmul.f32 %v12389_v10, %v18032_v49  ;;  %v8140_v58 = vpop.xlane.xlu1 %8139  ;;  %8352 = vadd.xlane.f32.xlu0 %v8351_v56  ;;  %v7657_v21 = vmul.f32 %v16882_v22, %v16882_v22  ;;  %v8354_v10 = vsel %vm7690_vm3, %v7655_v1, 0.0 }
 0x595   : > { %v8859_v34 = vmul.f32 %v12391_v11, %v16171_v48  ;;  %v7656_v44 = vmul.f32 %v16888_v4, %v16888_v4  ;;  %12400 = vrsqrt.f32 %v8140_v58  ;;  %v12002_v42 = vpop.f32.mrb[100].mxu1  ;;  %v8143_v61 = vpop.xlane.xlu0 %8142 }
 0x596   : > { %9114 = vst.msk [vmem:[%s15368_s30 + $0x478] sm:$0xff] %vm7690_vm3, %v8858_v8  ;;  %v16900_v17 = vadd.f32 %v16681_v6, %v12002_v42  ;;  %12402 = vrsqrt.f32 %v8143_v61  ;;  %v7275_v35 = vpop.f32.mrb[101].mxu1 }
 0x597   : > { %v12393_v48 = vpop.eup %12392  ;;  %9115 = vst.msk [vmem:[%s15368_s30 + $0x480] sm:$0xff] %vm7690_vm3, %v8859_v34  ;;  %v16906_v56 = vadd.f32 %v16681_v6, %v7275_v35  ;;  %8355 = vadd.xlane.f32.xlu1 %v8354_v10  ;;  %v8357_v11 = vsel %vm7690_vm3, %v7656_v44, 0.0  ;;  %v8360_v10 = vsel %vm7690_vm3, %v7657_v21, 0.0 }
 0x598   : > { %v12395_v49 = vpop.eup %12394  ;;  %v8860_v8 = vmul.f32 %v12393_v48, %v16164_v54  ;;  %v8146_v42 = vpop.xlane.xlu1 %8145  ;;  %8358 = vadd.xlane.f32.xlu0 %v8357_v11  ;;  %v7659_v35 = vmul.f32 %v16900_v17, %v16900_v17 }
 0x599   : > { %v8861_v58 = vmul.f32 %v12395_v49, %v16192_v26  ;;  %v7658_v1 = vmul.f32 %v16906_v56, %v16906_v56  ;;  %12404 = vrsqrt.f32 %v8146_v42  ;;  %v12005_v61 = vpop.f32.mrb[102].mxu1  ;;  %v8149_v34 = vpop.xlane.xlu0 %8148 }
 0x59a   : > { %9116 = vst.msk [vmem:[%s15368_s30 + $0x488] sm:$0xff] %vm7690_vm3, %v8860_v8  ;;  %v16918_v44 = vadd.f32 %v16681_v6, %v12005_v61  ;;  %12406 = vrsqrt.f32 %v8149_v34  ;;  %v7285_v54 = vpop.f32.mrb[103].mxu1 }
 0x59b   : > { %v12397_v26 = vpop.eup %12396  ;;  %9117 = vst.msk [vmem:[%s15368_s30 + $0x490] sm:$0xff] %vm7690_vm3, %v8861_v58  ;;  %v16924_v48 = vadd.f32 %v16681_v6, %v7285_v54  ;;  %8361 = vadd.xlane.f32.xlu1 %v8360_v10  ;;  %v8363_v11 = vsel %vm7690_vm3, %v7658_v1, 0.0  ;;  %v8366_v10 = vsel %vm7690_vm3, %v7659_v35, 0.0 }
 0x59c   : > { %18033 = vst [vmem:[#allocation68_spill] sm:$0xff] %v16918_v44  ;;  %v12399_v49 = vpop.eup %12398  ;;  %v8862_v8 = vmul.f32 %v12397_v26, %v16185_v62  ;;  %v8152_v42 = vpop.xlane.xlu1 %8151  ;;  %8364 = vadd.xlane.f32.xlu0 %v8363_v11  ;;  %v7661_v54 = vmul.f32 %v16918_v44, %v16918_v44 }
 0x59d   : > { %18034 = vst [vmem:[#allocation65_spill] sm:$0xff] %v16924_v48  ;;  %v8863_v61 = vmul.f32 %v12399_v49, %v16217_v16  ;;  %v7660_v21 = vmul.f32 %v16924_v48, %v16924_v48  ;;  %12408 = vrsqrt.f32 %v8152_v42  ;;  %v12008_v34 = vpop.f32.mrb[104].mxu1  ;;  %v8155_v58 = vpop.xlane.xlu0 %8154 }
 0x59e   : > { %9118 = vst.msk [vmem:[%s15368_s30 + $0x498] sm:$0xff] %vm7690_vm3, %v8862_v8  ;;  %v16936_v1 = vadd.f32 %v16681_v6, %v12008_v34  ;;  %12410 = vrsqrt.f32 %v8155_v58  ;;  %v7295_v62 = vpop.f32.mrb[105].mxu1  ;;  %v18037_v8 = vld [vmem:[#allocation33_spill] sm:$0xff]  ;;  %v18038_v58 = vld [vmem:[#allocation35_spill] sm:$0xff] }
 0x59f   : > { %v12401_v16 = vpop.eup %12400  ;;  %9119 = vst.msk [vmem:[%s15368_s30 + $0x4a0] sm:$0xff] %vm7690_vm3, %v8863_v61  ;;  %v16942_v26 = vadd.f32 %v16681_v6, %v7295_v62  ;;  %8367 = vadd.xlane.f32.xlu1 %v8366_v10  ;;  %v8369_v11 = vsel %vm7690_vm3, %v7660_v21, 0.0 }
 0x5a0   : > { %18035 = vst [vmem:[#allocation70_spill] sm:$0xff] %v16936_v1  ;;  %v12403_v49 = vpop.eup %12402  ;;  %v8864_v42 = vmul.f32 %v12401_v16, %v18037_v8  ;;  %v8158_v34 = vpop.xlane.xlu1 %8157  ;;  %8370 = vadd.xlane.f32.xlu0 %v8369_v11  ;;  %v7663_v62 = vmul.f32 %v16936_v1, %v16936_v1  ;;  %v8372_v16 = vsel %vm7690_vm3, %v7661_v54, 0.0 }
 0x5a1   : > { %18036 = vst [vmem:[#allocation67_spill] sm:$0xff] %v16942_v26  ;;  %v8865_v44 = vmul.f32 %v12403_v49, %v18038_v58  ;;  %v7662_v35 = vmul.f32 %v16942_v26, %v16942_v26  ;;  %12412 = vrsqrt.f32 %v8158_v34  ;;  %v12011_v48 = vpop.f32.mrb[106].mxu1  ;;  %v8161_v61 = vpop.xlane.xlu0 %8160  ;;  %v18041_v34 = vld [vmem:[#allocation38_spill] sm:$0xff] }
 0x5a2   : > { %9120 = vst.msk [vmem:[%s15368_s30 + $0x4a8] sm:$0xff] %vm7690_vm3, %v8864_v42  ;;  %v16954_v21 = vadd.f32 %v16681_v6, %v12011_v48  ;;  %12414 = vrsqrt.f32 %v8161_v61  ;;  %v7305_v10 = vpop.f32.mrb[107].mxu1  ;;  %v18042_v61 = vld [vmem:[#allocation37_spill] sm:$0xff] }
 0x5a3   : > { %v12405_v11 = vpop.eup %12404  ;;  %9121 = vst.msk [vmem:[%s15368_s30 + $0x4b0] sm:$0xff] %vm7690_vm3, %v8865_v44  ;;  %v16960_v49 = vadd.f32 %v16681_v6, %v7305_v10  ;;  %8373 = vadd.xlane.f32.xlu1 %v8372_v16  ;;  %v8375_v8 = vsel %vm7690_vm3, %v7662_v35, 0.0 }
 0x5a4   : > { %18039 = vst [vmem:[#allocation72_spill] sm:$0xff] %v16954_v21  ;;  %v12407_v42 = vpop.eup %12406  ;;  %v8866_v58 = vmul.f32 %v12405_v11, %v18041_v34  ;;  %v8164_v48 = vpop.xlane.xlu1 %8163  ;;  %8376 = vadd.xlane.f32.xlu0 %v8375_v8  ;;  %v7665_v10 = vmul.f32 %v16954_v21, %v16954_v21  ;;  %v8378_v11 = vsel %vm7690_vm3, %v7663_v62, 0.0 }
 0x5a5   : > { %18040 = vst [vmem:[#allocation69_spill] sm:$0xff] %v16960_v49  ;;  %v8867_v1 = vmul.f32 %v12407_v42, %v18042_v61  ;;  %v7664_v54 = vmul.f32 %v16960_v49, %v16960_v49  ;;  %12416 = vrsqrt.f32 %v8164_v48  ;;  %v12014_v26 = vpop.f32.mrb[108].mxu1  ;;  %v8167_v44 = vpop.xlane.xlu0 %8166  ;;  %v18045_v48 = vld [vmem:[#allocation40_spill] sm:$0xff] }
 0x5a6   : > { %9122 = vst.msk [vmem:[%s15368_s30 + $0x4b8] sm:$0xff] %vm7690_vm3, %v8866_v58  ;;  %v16972_v35 = vadd.f32 %v16681_v6, %v12014_v26  ;;  %12418 = vrsqrt.f32 %v8167_v44  ;;  %v7315_v16 = vpop.f32.mrb[109].mxu1  ;;  %v18046_v44 = vld [vmem:[#allocation39_spill] sm:$0xff] }
 0x5a7   : > { %v12409_v8 = vpop.eup %12408  ;;  %9123 = vst.msk [vmem:[%s15368_s30 + $0x4c0] sm:$0xff] %vm7690_vm3, %v8867_v1  ;;  %v16978_v42 = vadd.f32 %v16681_v6, %v7315_v16  ;;  %8379 = vadd.xlane.f32.xlu1 %v8378_v11  ;;  %v8381_v34 = vsel %vm7690_vm3, %v7664_v54, 0.0 }
 0x5a8   : > { %18043 = vst [vmem:[#allocation74_spill] sm:$0xff] %v16972_v35  ;;  %v12411_v58 = vpop.eup %12410  ;;  %v8868_v61 = vmul.f32 %v12409_v8, %v18045_v48  ;;  %v8170_v26 = vpop.xlane.xlu1 %8169  ;;  %8382 = vadd.xlane.f32.xlu0 %v8381_v34  ;;  %v7667_v16 = vmul.f32 %v16972_v35, %v16972_v35  ;;  %v8384_v8 = vsel %vm7690_vm3, %v7665_v10, 0.0 }
 0x5a9   : > { %18044 = vst [vmem:[#allocation71_spill] sm:$0xff] %v16978_v42  ;;  %v8869_v21 = vmul.f32 %v12411_v58, %v18046_v44  ;;  %v7666_v62 = vmul.f32 %v16978_v42, %v16978_v42  ;;  %12420 = vrsqrt.f32 %v8170_v26  ;;  %v12017_v49 = vpop.f32.mrb[110].mxu1  ;;  %v8173_v1 = vpop.xlane.xlu0 %8172  ;;  %v18049_v26 = vld [vmem:[#allocation42_spill] sm:$0xff] }
 0x5aa   : > { %9124 = vst.msk [vmem:[%s15368_s30 + $0x4c8] sm:$0xff] %vm7690_vm3, %v8868_v61  ;;  %v16990_v54 = vadd.f32 %v16681_v6, %v12017_v49  ;;  %12422 = vrsqrt.f32 %v8173_v1  ;;  %v7325_v11 = vpop.f32.mrb[111].mxu1  ;;  %v18050_v1 = vld [vmem:[#allocation41_spill] sm:$0xff] }
 0x5ab   : > { %v12413_v34 = vpop.eup %12412  ;;  %9125 = vst.msk [vmem:[%s15368_s30 + $0x4d0] sm:$0xff] %vm7690_vm3, %v8869_v21  ;;  %v16996_v58 = vadd.f32 %v16681_v6, %v7325_v11  ;;  %8385 = vadd.xlane.f32.xlu1 %v8384_v8  ;;  %v8387_v48 = vsel %vm7690_vm3, %v7666_v62, 0.0 }
 0x5ac   : > { %18047 = vst [vmem:[#allocation76_spill] sm:$0xff] %v16990_v54  ;;  %v12415_v61 = vpop.eup %12414  ;;  %v8870_v44 = vmul.f32 %v12413_v34, %v18049_v26  ;;  %v8176_v49 = vpop.xlane.xlu1 %8175  ;;  %8388 = vadd.xlane.f32.xlu0 %v8387_v48  ;;  %v7669_v11 = vmul.f32 %v16990_v54, %v16990_v54  ;;  %v8390_v34 = vsel %vm7690_vm3, %v7667_v16, 0.0 }
 0x5ad   : > { %18048 = vst [vmem:[#allocation73_spill] sm:$0xff] %v16996_v58  ;;  %v8871_v35 = vmul.f32 %v12415_v61, %v18050_v1  ;;  %v7668_v10 = vmul.f32 %v16996_v58, %v16996_v58  ;;  %12424 = vrsqrt.f32 %v8176_v49  ;;  %v12020_v42 = vpop.f32.mrb[112].mxu1  ;;  %v8179_v21 = vpop.xlane.xlu0 %8178  ;;  %v18053_v49 = vld [vmem:[#allocation44_spill] sm:$0xff] }
 0x5ae   : > { %9126 = vst.msk [vmem:[%s15368_s30 + $0x4d8] sm:$0xff] %vm7690_vm3, %v8870_v44  ;;  %v17008_v62 = vadd.f32 %v16681_v6, %v12020_v42  ;;  %12426 = vrsqrt.f32 %v8179_v21  ;;  %v7335_v8 = vpop.f32.mrb[113].mxu1  ;;  %v18054_v21 = vld [vmem:[#allocation43_spill] sm:$0xff] }
 0x5af   : > { %v12417_v48 = vpop.eup %12416  ;;  %9127 = vst.msk [vmem:[%s15368_s30 + $0x4e0] sm:$0xff] %vm7690_vm3, %v8871_v35  ;;  %v17014_v61 = vadd.f32 %v16681_v6, %v7335_v8  ;;  %8391 = vadd.xlane.f32.xlu1 %v8390_v34  ;;  %v8393_v26 = vsel %vm7690_vm3, %v7668_v10, 0.0 }
 0x5b0   : > { %18051 = vst [vmem:[#allocation101_spill] sm:$0xff] %v17008_v62  ;;  %v12419_v44 = vpop.eup %12418  ;;  %v8872_v1 = vmul.f32 %v12417_v48, %v18053_v49  ;;  %v8182_v42 = vpop.xlane.xlu1 %8181  ;;  %8394 = vadd.xlane.f32.xlu0 %v8393_v26  ;;  %v7671_v8 = vmul.f32 %v17008_v62, %v17008_v62  ;;  %v8396_v48 = vsel %vm7690_vm3, %v7669_v11, 0.0 }
 0x5b1   : > { %18052 = vst [vmem:[#allocation77_spill] sm:$0xff] %v17014_v61  ;;  %v8873_v54 = vmul.f32 %v12419_v44, %v18054_v21  ;;  %v7670_v16 = vmul.f32 %v17014_v61, %v17014_v61  ;;  %12428 = vrsqrt.f32 %v8182_v42  ;;  %v12023_v58 = vpop.f32.mrb[114].mxu1  ;;  %v8185_v35 = vpop.xlane.xlu0 %8184  ;;  %v18057_v42 = vld [vmem:[#allocation46_spill] sm:$0xff] }
 0x5b2   : > { %9128 = vst.msk [vmem:[%s15368_s30 + $0x4e8] sm:$0xff] %vm7690_vm3, %v8872_v1  ;;  %v17026_v10 = vadd.f32 %v16681_v6, %v12023_v58  ;;  %12430 = vrsqrt.f32 %v8185_v35  ;;  %v7345_v34 = vpop.f32.mrb[115].mxu1  ;;  %v18058_v35 = vld [vmem:[#allocation45_spill] sm:$0xff] }
 0x5b3   : > { %v12421_v26 = vpop.eup %12420  ;;  %9129 = vst.msk [vmem:[%s15368_s30 + $0x4f0] sm:$0xff] %vm7690_vm3, %v8873_v54  ;;  %v17032_v44 = vadd.f32 %v16681_v6, %v7345_v34  ;;  %8397 = vadd.xlane.f32.xlu1 %v8396_v48  ;;  %v8399_v49 = vsel %vm7690_vm3, %v7670_v16, 0.0 }
 0x5b4   : > { %18055 = vst [vmem:[#allocation103_spill] sm:$0xff] %v17026_v10  ;;  %v12423_v1 = vpop.eup %12422  ;;  %v8874_v21 = vmul.f32 %v12421_v26, %v18057_v42  ;;  %v8188_v58 = vpop.xlane.xlu1 %8187  ;;  %8400 = vadd.xlane.f32.xlu0 %v8399_v49  ;;  %v7673_v34 = vmul.f32 %v17026_v10, %v17026_v10  ;;  %v8402_v26 = vsel %vm7690_vm3, %v7671_v8, 0.0 }
 0x5b5   : > { %18056 = vst [vmem:[#allocation75_spill] sm:$0xff] %v17032_v44  ;;  %v8875_v62 = vmul.f32 %v12423_v1, %v18058_v35  ;;  %v7672_v11 = vmul.f32 %v17032_v44, %v17032_v44  ;;  %12432 = vrsqrt.f32 %v8188_v58  ;;  %v12026_v61 = vpop.f32.mrb[116].mxu1  ;;  %v8191_v54 = vpop.xlane.xlu0 %8190  ;;  %v18060_v58 = vld [vmem:[#allocation48_spill] sm:$0xff] }
 0x5b6   : > { %9130 = vst.msk [vmem:[%s15368_s30 + $0x4f8] sm:$0xff] %vm7690_vm3, %v8874_v21  ;;  %v17044_v16 = vadd.f32 %v16681_v6, %v12026_v61  ;;  %12434 = vrsqrt.f32 %v8191_v54  ;;  %v7355_v48 = vpop.f32.mrb[117].mxu1  ;;  %v18061_v54 = vld [vmem:[#allocation47_spill] sm:$0xff] }
 0x5b7   : > { %v12425_v49 = vpop.eup %12424  ;;  %9131 = vst.msk [vmem:[%s15368_s30 + $0x500] sm:$0xff] %vm7690_vm3, %v8875_v62  ;;  %v17050_v1 = vadd.f32 %v16681_v6, %v7355_v48  ;;  %8403 = vadd.xlane.f32.xlu1 %v8402_v26  ;;  %v8405_v42 = vsel %vm7690_vm3, %v7672_v11, 0.0 }
 0x5b8   : > { %18059 = vst [vmem:[#allocation79_spill] sm:$0xff] %v17044_v16  ;;  %v12427_v21 = vpop.eup %12426  ;;  %v8876_v35 = vmul.f32 %v12425_v49, %v18060_v58  ;;  %v8194_v61 = vpop.xlane.xlu1 %8193  ;;  %8406 = vadd.xlane.f32.xlu0 %v8405_v42  ;;  %v7675_v48 = vmul.f32 %v17044_v16, %v17044_v16  ;;  %v8408_v49 = vsel %vm7690_vm3, %v7673_v34, 0.0 }
 0x5b9   : > { %v8877_v10 = vmul.f32 %v12427_v21, %v18061_v54  ;;  %v7674_v8 = vmul.f32 %v17050_v1, %v17050_v1  ;;  %12436 = vrsqrt.f32 %v8194_v61  ;;  %v12029_v44 = vpop.f32.mrb[118].mxu1  ;;  %v8197_v62 = vpop.xlane.xlu0 %8196  ;;  %v18063_v61 = vld [vmem:[#allocation50_spill] sm:$0xff] }
 0x5ba   : > { %9132 = vst.msk [vmem:[%s15368_s30 + $0x508] sm:$0xff] %vm7690_vm3, %v8876_v35  ;;  %v17062_v11 = vadd.f32 %v16681_v6, %v12029_v44  ;;  %12438 = vrsqrt.f32 %v8197_v62  ;;  %v7365_v26 = vpop.f32.mrb[119].mxu1 }
 0x5bb   : > { %v12429_v42 = vpop.eup %12428  ;;  %9133 = vst.msk [vmem:[%s15368_s30 + $0x510] sm:$0xff] %vm7690_vm3, %v8877_v10  ;;  %v17068_v21 = vadd.f32 %v16681_v6, %v7365_v26  ;;  %8409 = vadd.xlane.f32.xlu1 %v8408_v49  ;;  %v8411_v58 = vsel %vm7690_vm3, %v7674_v8, 0.0 }
 0x5bc   : > { %18062 = vst [vmem:[#allocation102_spill] sm:$0xff] %v17062_v11  ;;  %v12431_v35 = vpop.eup %12430  ;;  %v8878_v54 = vmul.f32 %v12429_v42, %v18063_v61  ;;  %v8200_v44 = vpop.xlane.xlu1 %8199  ;;  %8412 = vadd.xlane.f32.xlu0 %v8411_v58  ;;  %v7677_v26 = vmul.f32 %v17062_v11, %v17062_v11  ;;  %v8414_v42 = vsel %vm7690_vm3, %v7675_v48, 0.0 }
 0x5bd   : > { %v8879_v62 = vmul.f32 %v12431_v35, %v16361_v41  ;;  %v7676_v34 = vmul.f32 %v17068_v21, %v17068_v21  ;;  %12440 = vrsqrt.f32 %v8200_v44  ;;  %v12032_v16 = vpop.f32.mrb[120].mxu1  ;;  %v8203_v10 = vpop.xlane.xlu0 %8202 }
 0x5be   : > { %9134 = vst.msk [vmem:[%s15368_s30 + $0x518] sm:$0xff] %vm7690_vm3, %v8878_v54  ;;  %v17080_v8 = vadd.f32 %v16681_v6, %v12032_v16  ;;  %12442 = vrsqrt.f32 %v8203_v10  ;;  %v7375_v49 = vpop.f32.mrb[121].mxu1  ;;  %v18064_v54 = vld [vmem:[#allocation52_spill] sm:$0xff] }
 0x5bf   : > { %v12433_v41 = vpop.eup %12432  ;;  %9135 = vst.msk [vmem:[%s15368_s30 + $0x520] sm:$0xff] %vm7690_vm3, %v8879_v62  ;;  %v17086_v58 = vadd.f32 %v16681_v6, %v7375_v49  ;;  %8415 = vadd.xlane.f32.xlu1 %v8414_v42  ;;  %v8417_v35 = vsel %vm7690_vm3, %v7676_v34, 0.0 }
 0x5c0   : > { %v12435_v61 = vpop.eup %12434  ;;  %v8880_v44 = vmul.f32 %v12433_v41, %v18064_v54  ;;  %v8206_v16 = vpop.xlane.xlu1 %8205  ;;  %8418 = vadd.xlane.f32.xlu0 %v8417_v35  ;;  %v7679_v49 = vmul.f32 %v17080_v8, %v17080_v8  ;;  %v8420_v41 = vsel %vm7690_vm3, %v7677_v26, 0.0 }
 0x5c1   : > { %v8881_v10 = vmul.f32 %v12435_v61, %v16379_v0  ;;  %v7678_v48 = vmul.f32 %v17086_v58, %v17086_v58  ;;  %12444 = vrsqrt.f32 %v8206_v16  ;;  %v12035_v11 = vpop.f32.mrb[122].mxu1  ;;  %v8209_v62 = vpop.xlane.xlu0 %8208 }
 0x5c2   : > { %9136 = vst.msk [vmem:[%s15368_s30 + $0x528] sm:$0xff] %vm7690_vm3, %v8880_v44  ;;  %v17098_v34 = vadd.f32 %v16681_v6, %v12035_v11  ;;  %12446 = vrsqrt.f32 %v8209_v62  ;;  %v7385_v42 = vpop.f32.mrb[123].mxu1 }
 0x5c3   : > { %v12437_v0 = vpop.eup %12436  ;;  %9137 = vst.msk [vmem:[%s15368_s30 + $0x530] sm:$0xff] %vm7690_vm3, %v8881_v10  ;;  %v17104_v35 = vadd.f32 %v16681_v6, %v7385_v42  ;;  %8421 = vadd.xlane.f32.xlu1 %v8420_v41  ;;  %v8423_v61 = vsel %vm7690_vm3, %v7678_v48, 0.0  ;;  %v8426_v41 = vsel %vm7690_vm3, %v7679_v49, 0.0 }
 0x5c4   : > { %v12439_v54 = vpop.eup %12438  ;;  %v8882_v44 = vmul.f32 %v12437_v0, %v16373_v29  ;;  %v8212_v11 = vpop.xlane.xlu1 %8211  ;;  %8424 = vadd.xlane.f32.xlu0 %v8423_v61  ;;  %v7681_v42 = vmul.f32 %v17098_v34, %v17098_v34 }
 0x5c5   : > { %v8883_v16 = vmul.f32 %v12439_v54, %v16397_v60  ;;  %v7680_v26 = vmul.f32 %v17104_v35, %v17104_v35  ;;  %12448 = vrsqrt.f32 %v8212_v11  ;;  %v12038_v62 = vpop.f32.mrb[124].mxu1  ;;  %v8215_v10 = vpop.xlane.xlu0 %8214 }
 0x5c6   : > { %9138 = vst.msk [vmem:[%s15368_s30 + $0x538] sm:$0xff] %vm7690_vm3, %v8882_v44  ;;  %v17116_v48 = vadd.f32 %v16681_v6, %v12038_v62  ;;  %12450 = vrsqrt.f32 %v8215_v10  ;;  %v7395_v29 = vpop.f32.mrb[125].mxu1 }
 0x5c7   : > { %v12441_v60 = vpop.eup %12440  ;;  %9139 = vst.msk [vmem:[%s15368_s30 + $0x540] sm:$0xff] %vm7690_vm3, %v8883_v16  ;;  %v17122_v0 = vadd.f32 %v16681_v6, %v7395_v29  ;;  %8427 = vadd.xlane.f32.xlu1 %v8426_v41  ;;  %v8429_v61 = vsel %vm7690_vm3, %v7680_v26, 0.0  ;;  %v8432_v41 = vsel %vm7690_vm3, %v7681_v42, 0.0 }
 0x5c8   : > { %v12443_v54 = vpop.eup %12442  ;;  %v8884_v44 = vmul.f32 %v12441_v60, %v16391_v23  ;;  %v8218_v11 = vpop.xlane.xlu1 %8217  ;;  %8430 = vadd.xlane.f32.xlu0 %v8429_v61  ;;  %v7683_v29 = vmul.f32 %v17116_v48, %v17116_v48 }
 0x5c9   : > { %v8885_v62 = vmul.f32 %v12443_v54, %v16415_v12  ;;  %v7682_v49 = vmul.f32 %v17122_v0, %v17122_v0  ;;  %12452 = vrsqrt.f32 %v8218_v11  ;;  %v12041_v10 = vpop.f32.mrb[126].mxu1  ;;  %v8221_v16 = vpop.xlane.xlu0 %8220 }
 0x5ca   : > { %9140 = vst.msk [vmem:[%s15368_s30 + $0x548] sm:$0xff] %vm7690_vm3, %v8884_v44  ;;  %v17134_v26 = vadd.f32 %v16681_v6, %v12041_v10  ;;  %12454 = vrsqrt.f32 %v8221_v16  ;;  %v7405_v23 = vpop.f32.mrb[127].mxu1 }
 0x5cb   : > { %v12445_v12 = vpop.eup %12444  ;;  %9141 = vst.msk [vmem:[%s15368_s30 + $0x550] sm:$0xff] %vm7690_vm3, %v8885_v62  ;;  %v17140_v60 = vadd.f32 %v16681_v6, %v7405_v23  ;;  %8433 = vadd.xlane.f32.xlu1 %v8432_v41  ;;  %v8435_v61 = vsel %vm7690_vm3, %v7682_v49, 0.0 }
 0x5cc   : > { %18065 = vst [vmem:[#allocation105_spill] sm:$0xff] %v17134_v26  ;;  %v12447_v54 = vpop.eup %12446  ;;  %v8886_v44 = vmul.f32 %v12445_v12, %v16409_v47  ;;  %v8224_v11 = vpop.xlane.xlu1 %8223  ;;  %8436 = vadd.xlane.f32.xlu0 %v8435_v61  ;;  %v7685_v6 = vmul.f32 %v17134_v26, %v17134_v26  ;;  %v12624_v47 = vld [vmem:[%s17437_s6] ss:$0 sm:$0xff] }
 0x5cd   : > { %v8887_v10 = vmul.f32 %v12447_v54, %v16433_v9  ;;  %v7684_v42 = vmul.f32 %v17140_v60, %v17140_v60  ;;  %12456 = vrsqrt.f32 %v8224_v11  ;;  %v12044_v16 = vpop.f32.mrb[128].mxu1  ;;  %v8227_v62 = vpop.xlane.xlu0 %8226  ;;  %v8438_v9 = vsel %vm7690_vm3, %v7683_v29, 0.0 }
 0x5ce   : > { %9142 = vst.msk [vmem:[%s15368_s30 + $0x558] sm:$0xff] %vm7690_vm3, %v8886_v44  ;;  %v17154_v49 = vadd.f32 %v12624_v47, %v12044_v16  ;;  %12458 = vrsqrt.f32 %v8227_v62  ;;  %v7415_v23 = vpop.f32.mrb[129].mxu1 }
 0x5cf   : > { %v12449_v41 = vpop.eup %12448  ;;  %9143 = vst.msk [vmem:[%s15368_s30 + $0x560] sm:$0xff] %vm7690_vm3, %v8887_v10  ;;  %v17159_v12 = vadd.f32 %v12624_v47, %v7415_v23  ;;  %8439 = vadd.xlane.f32.xlu1 %v8438_v9  ;;  %v8441_v61 = vsel %vm7690_vm3, %v7684_v42, 0.0  ;;  %v8444_v23 = vsel %vm7690_vm3, %v7685_v6, 0.0 }
 0x5d0   : > { %v12451_v54 = vpop.eup %12450  ;;  %v8888_v44 = vmul.f32 %v12449_v41, %v16427_v37  ;;  %v8230_v11 = vpop.xlane.xlu1 %8229  ;;  %8442 = vadd.xlane.f32.xlu0 %v8441_v61  ;;  %v7687_v10 = vmul.f32 %v17154_v49, %v17154_v49 }
 0x5d1   : > { %v8889_v16 = vmul.f32 %v12451_v54, %v16451_v40  ;;  %v7686_v62 = vmul.f32 %v17159_v12, %v17159_v12  ;;  %12460 = vrsqrt.f32 %v8230_v11  ;;  %v12047_v29 = vpop.f32.mrb[130].mxu1  ;;  %v8233_v26 = vpop.xlane.xlu0 %8232 }
 0x5d2   : > { %9144 = vst.msk [vmem:[%s15368_s30 + $0x568] sm:$0xff] %vm7690_vm3, %v8888_v44  ;;  %v17170_v42 = vadd.f32 %v12624_v47, %v12047_v29  ;;  %12462 = vrsqrt.f32 %v8233_v26  ;;  %v7425_v37 = vpop.f32.mrb[131].mxu1 }
 0x5d3   : > { %v12453_v9 = vpop.eup %12452  ;;  %9145 = vst.msk [vmem:[%s15368_s30 + $0x570] sm:$0xff] %vm7690_vm3, %v8889_v16  ;;  %v17175_v40 = vadd.f32 %v12624_v47, %v7425_v37  ;;  %8445 = vadd.xlane.f32.xlu1 %v8444_v23  ;;  %v8447_v41 = vsel %vm7690_vm3, %v7686_v62, 0.0  ;;  %v8450_v16 = vsel %vm7690_vm3, %v7687_v10, 0.0 }
 0x5d4   : > { %v12455_v61 = vpop.eup %12454  ;;  %v8890_v54 = vmul.f32 %v12453_v9, %v16445_v33  ;;  %v8236_v44 = vpop.xlane.xlu1 %8235  ;;  %8448 = vadd.xlane.f32.xlu0 %v8447_v41  ;;  %v7689_v47 = vmul.f32 %v17170_v42, %v17170_v42 }
 0x5d5   : > { %v8891_v26 = vmul.f32 %v12455_v61, %v16469_v39  ;;  %v7688_v11 = vmul.f32 %v17175_v40, %v17175_v40  ;;  %12464 = vrsqrt.f32 %v8236_v44  ;;  %v8239_v6 = vpop.xlane.xlu0 %8238 }
 0x5d6   : > { %9146 = vst.msk [vmem:[%s15368_s30 + $0x578] sm:$0xff] %vm7690_vm3, %v8890_v54  ;;  %12466 = vrsqrt.f32 %v8239_v6  ;;  %v8456_v10 = vsel %vm7690_vm3, %v7689_v47, 0.0 }
 0x5d7   : > { %v12457_v33 = vpop.eup %12456  ;;  %9147 = vst.msk [vmem:[%s15368_s30 + $0x580] sm:$0xff] %vm7690_vm3, %v8891_v26  ;;  %8451 = vadd.xlane.f32.xlu1 %v8450_v16  ;;  %v8453_v39 = vsel %vm7690_vm3, %v7688_v11, 0.0 }
 0x5d8   : > { %v12459_v62 = vpop.eup %12458  ;;  %v8892_v29 = vmul.f32 %v12457_v33, %v16463_v51  ;;  %v8242_v37 = vpop.xlane.xlu1 %8241  ;;  %8454 = vadd.xlane.f32.xlu0 %v8453_v39 }
 0x5d9   : > { %v8893_v23 = vmul.f32 %v12459_v62, %v16487_v38  ;;  %12468 = vrsqrt.f32 %v8242_v37  ;;  %v8245_v9 = vpop.xlane.xlu0 %8244 }
 0x5da   : > { %9148 = vst.msk [vmem:[%s15368_s30 + $0x588] sm:$0xff] %vm7690_vm3, %v8892_v29  ;;  %12470 = vrsqrt.f32 %v8245_v9 }
 0x5db   : > { %v12461_v41 = vpop.eup %12460  ;;  %9149 = vst.msk [vmem:[%s15368_s30 + $0x590] sm:$0xff] %vm7690_vm3, %v8893_v23  ;;  %8457 = vadd.xlane.f32.xlu1 %v8456_v10 }
 0x5dc   : > { %v12463_v61 = vpop.eup %12462  ;;  %v8894_v51 = vmul.f32 %v12461_v41, %v16481_v32  ;;  %v8248_v54 = vpop.xlane.xlu1 %8247 }
 0x5dd   : > { %v8895_v44 = vmul.f32 %v12463_v61, %v16505_v57  ;;  %12472 = vrsqrt.f32 %v8248_v54  ;;  %v8251_v38 = vpop.xlane.xlu0 %8250 }
 0x5de   : > { %9150 = vst.msk [vmem:[%s15368_s30 + $0x598] sm:$0xff] %vm7690_vm3, %v8894_v51  ;;  %12474 = vrsqrt.f32 %v8251_v38 }
 0x5df   : > { %v12465_v26 = vpop.eup %12464  ;;  %9151 = vst.msk [vmem:[%s15368_s30 + $0x5a0] sm:$0xff] %vm7690_vm3, %v8895_v44 }
 0x5e0   : > { %v12467_v11 = vpop.eup %12466  ;;  %v8896_v6 = vmul.f32 %v12465_v26, %v16499_v15  ;;  %v8254_v47 = vpop.xlane.xlu1 %8253 }
 0x5e1   : > { %v8897_v16 = vmul.f32 %v12467_v11, %v16523_v3  ;;  %12476 = vrsqrt.f32 %v8254_v47  ;;  %v8257_v32 = vpop.xlane.xlu0 %8256 }
 0x5e2   : > { %9152 = vst.msk [vmem:[%s15368_s30 + $0x5a8] sm:$0xff] %vm7690_vm3, %v8896_v6  ;;  %12478 = vrsqrt.f32 %v8257_v32 }
 0x5e3   : > { %v12469_v57 = vpop.eup %12468  ;;  %9153 = vst.msk [vmem:[%s15368_s30 + $0x5b0] sm:$0xff] %vm7690_vm3, %v8897_v16 }
 0x5e4   : > { %v12471_v33 = vpop.eup %12470  ;;  %v8898_v39 = vmul.f32 %v12469_v57, %v16517_v63  ;;  %v8260_v62 = vpop.xlane.xlu1 %8259 }
 0x5e5   : > { %v8899_v29 = vmul.f32 %v12471_v33, %v16541_v31  ;;  %12480 = vrsqrt.f32 %v8260_v62  ;;  %v8263_v15 = vpop.xlane.xlu0 %8262 }
 0x5e6   : > { %9154 = vst.msk [vmem:[%s15368_s30 + $0x5b8] sm:$0xff] %vm7690_vm3, %v8898_v39  ;;  %12482 = vrsqrt.f32 %v8263_v15 }
 0x5e7   : > { %v12473_v3 = vpop.eup %12472  ;;  %9155 = vst.msk [vmem:[%s15368_s30 + $0x5c0] sm:$0xff] %vm7690_vm3, %v8899_v29 }
 0x5e8   : > { %v12475_v37 = vpop.eup %12474  ;;  %v8900_v23 = vmul.f32 %v12473_v3, %v16535_v7  ;;  %v8266_v9 = vpop.xlane.xlu1 %8265 }
 0x5e9   : > { %v8901_v10 = vmul.f32 %v12475_v37, %v16559_v13  ;;  %12484 = vrsqrt.f32 %v8266_v9  ;;  %v8269_v63 = vpop.xlane.xlu0 %8268 }
 0x5ea   : > { %9156 = vst.msk [vmem:[%s15368_s30 + $0x5c8] sm:$0xff] %vm7690_vm3, %v8900_v23  ;;  %12486 = vrsqrt.f32 %v8269_v63 }
 0x5eb   : > { %v12477_v31 = vpop.eup %12476  ;;  %9157 = vst.msk [vmem:[%s15368_s30 + $0x5d0] sm:$0xff] %vm7690_vm3, %v8901_v10 }
 0x5ec   : > { %v12479_v41 = vpop.eup %12478  ;;  %v8902_v61 = vmul.f32 %v12477_v31, %v16553_v50  ;;  %v8272_v51 = vpop.xlane.xlu1 %8271 }
 0x5ed   : > { %v8903_v54 = vmul.f32 %v12479_v41, %v16577_v25  ;;  %12488 = vrsqrt.f32 %v8272_v51  ;;  %v8275_v7 = vpop.xlane.xlu0 %8274 }
 0x5ee   : > { %9158 = vst.msk [vmem:[%s15368_s30 + $0x5d8] sm:$0xff] %vm7690_vm3, %v8902_v61  ;;  %12490 = vrsqrt.f32 %v8275_v7 }
 0x5ef   : > { %v12481_v13 = vpop.eup %12480  ;;  %9159 = vst.msk [vmem:[%s15368_s30 + $0x5e0] sm:$0xff] %vm7690_vm3, %v8903_v54 }
 0x5f0   : > { %v12483_v44 = vpop.eup %12482  ;;  %v8904_v38 = vmul.f32 %v12481_v13, %v16571_v55  ;;  %v8278_v26 = vpop.xlane.xlu1 %8277 }
 0x5f1   : > { %v8905_v11 = vmul.f32 %v12483_v44, %v16595_v14  ;;  %12492 = vrsqrt.f32 %v8278_v26  ;;  %v8281_v50 = vpop.xlane.xlu0 %8280 }
 0x5f2   : > { %9160 = vst.msk [vmem:[%s15368_s30 + $0x5e8] sm:$0xff] %vm7690_vm3, %v8904_v38  ;;  %12494 = vrsqrt.f32 %v8281_v50 }
 0x5f3   : > { %v12485_v25 = vpop.eup %12484  ;;  %9161 = vst.msk [vmem:[%s15368_s30 + $0x5f0] sm:$0xff] %vm7690_vm3, %v8905_v11 }
 0x5f4   : > { %v12487_v6 = vpop.eup %12486  ;;  %v8906_v47 = vmul.f32 %v12485_v25, %v16589_v36  ;;  %v8284_v16 = vpop.xlane.xlu1 %8283 }
 0x5f5   : > { %v8907_v32 = vmul.f32 %v12487_v6, %v16613_v43  ;;  %12496 = vrsqrt.f32 %v8284_v16  ;;  %v8287_v55 = vpop.xlane.xlu0 %8286  ;;  %v18066_v16 = vld [vmem:[#allocation54_spill] sm:$0xff] }
 0x5f6   : > { %9162 = vst.msk [vmem:[%s15368_s30 + $0x5f8] sm:$0xff] %vm7690_vm3, %v8906_v47  ;;  %12498 = vrsqrt.f32 %v8287_v55 }
 0x5f7   : > { %v12489_v14 = vpop.eup %12488  ;;  %9163 = vst.msk [vmem:[%s15368_s30 + $0x600] sm:$0xff] %vm7690_vm3, %v8907_v32 }
 0x5f8   : > { %v12491_v57 = vpop.eup %12490  ;;  %v8908_v33 = vmul.f32 %v12489_v14, %v16607_v2  ;;  %v8290_v39 = vpop.xlane.xlu1 %8289  ;;  %v18067_v14 = vld [vmem:[#allocation49_spill] sm:$0xff] }
 0x5f9   : > { %v8909_v62 = vmul.f32 %v12491_v57, %v16631_v59  ;;  %12500 = vrsqrt.f32 %v8290_v39  ;;  %v8293_v36 = vpop.xlane.xlu0 %8292  ;;  %v18068_v39 = vld [vmem:[#allocation56_spill] sm:$0xff] }
 0x5fa   : > { %9164 = vst.msk [vmem:[%s15368_s30 + $0x608] sm:$0xff] %vm7690_vm3, %v8908_v33  ;;  %12502 = vrsqrt.f32 %v8293_v36 }
 0x5fb   : > { %v12493_v43 = vpop.eup %12492  ;;  %9165 = vst.msk [vmem:[%s15368_s30 + $0x610] sm:$0xff] %vm7690_vm3, %v8909_v62 }
 0x5fc   : > { %v12495_v29 = vpop.eup %12494  ;;  %v8910_v15 = vmul.f32 %v12493_v43, %v16625_v19  ;;  %v8296_v3 = vpop.xlane.xlu1 %8295 }
 0x5fd   : > { %v8911_v37 = vmul.f32 %v12495_v29, %v16649_v24  ;;  %12504 = vrsqrt.f32 %v8296_v3  ;;  %v8299_v2 = vpop.xlane.xlu0 %8298  ;;  %v18069_v29 = vld [vmem:[#allocation51_spill] sm:$0xff] }
 0x5fe   : > { %9166 = vst.msk [vmem:[%s15368_s30 + $0x618] sm:$0xff] %vm7690_vm3, %v8910_v15  ;;  %12506 = vrsqrt.f32 %v8299_v2 }
 0x5ff   : > { %v12497_v59 = vpop.eup %12496  ;;  %9167 = vst.msk [vmem:[%s15368_s30 + $0x620] sm:$0xff] %vm7690_vm3, %v8911_v37  ;;  %v18070_v37 = vld [vmem:[#allocation58_spill] sm:$0xff] }
 0x600   : > { %v12499_v23 = vpop.eup %12498  ;;  %v8912_v9 = vmul.f32 %v12497_v59, %v16643_v20  ;;  %v8302_v10 = vpop.xlane.xlu1 %8301 }
 0x601   : > { %v8913_v63 = vmul.f32 %v12499_v23, %v16667_v53  ;;  %12508 = vrsqrt.f32 %v8302_v10  ;;  %v8305_v19 = vpop.xlane.xlu0 %8304  ;;  %v18071_v10 = vld [vmem:[#allocation53_spill] sm:$0xff] }
 0x602   : > { %9168 = vst.msk [vmem:[%s15368_s30 + $0x628] sm:$0xff] %vm7690_vm3, %v8912_v9  ;;  %12510 = vrsqrt.f32 %v8305_v19 }
 0x603   : > { %v12501_v24 = vpop.eup %12500  ;;  %9169 = vst.msk [vmem:[%s15368_s30 + $0x630] sm:$0xff] %vm7690_vm3, %v8913_v63 }
 0x604   : > { %v12503_v31 = vpop.eup %12502  ;;  %v8914_v41 = vmul.f32 %v12501_v24, %v16661_v5  ;;  %v8308_v61 = vpop.xlane.xlu1 %8307  ;;  %v18072_v24 = vld [vmem:[#allocation60_spill] sm:$0xff] }
 0x605   : > { %v8915_v51 = vmul.f32 %v12503_v31, %v16690_v46  ;;  %12512 = vrsqrt.f32 %v8308_v61  ;;  %v8311_v20 = vpop.xlane.xlu0 %8310 }
 0x606   : > { %9170 = vst.msk [vmem:[%s15368_s30 + $0x638] sm:$0xff] %vm7690_vm3, %v8914_v41  ;;  %12514 = vrsqrt.f32 %v8311_v20  ;;  %v18073_v20 = vld [vmem:[#allocation55_spill] sm:$0xff] }
 0x607   : > { %v12505_v53 = vpop.eup %12504  ;;  %9171 = vst.msk [vmem:[%s15368_s30 + $0x640] sm:$0xff] %vm7690_vm3, %v8915_v51 }
 0x608   : > { %v12507_v54 = vpop.eup %12506  ;;  %v8916_v7 = vmul.f32 %v12505_v53, %v16684_v27  ;;  %v8314_v13 = vpop.xlane.xlu1 %8313 }
 0x609   : > { %v8917_v44 = vmul.f32 %v12507_v54, %v16708_v28  ;;  %12516 = vrsqrt.f32 %v8314_v13  ;;  %v8317_v5 = vpop.xlane.xlu0 %8316 }
 0x60a   : > { %9172 = vst.msk [vmem:[%s15368_s30 + $0x648] sm:$0xff] %vm7690_vm3, %v8916_v7  ;;  %12518 = vrsqrt.f32 %v8317_v5  ;;  %v18074_v7 = vld [vmem:[#allocation62_spill] sm:$0xff] }
 0x60b   : > { %v12509_v46 = vpop.eup %12508  ;;  %9173 = vst.msk [vmem:[%s15368_s30 + $0x650] sm:$0xff] %vm7690_vm3, %v8917_v44 }
 0x60c   : > { %v12511_v38 = vpop.eup %12510  ;;  %v8918_v26 = vmul.f32 %v12509_v46, %v16702_v30  ;;  %v8320_v11 = vpop.xlane.xlu1 %8319 }
 0x60d   : > { %v8919_v50 = vmul.f32 %v12511_v38, %v16726_v52  ;;  %12520 = vrsqrt.f32 %v8320_v11  ;;  %v8323_v27 = vpop.xlane.xlu0 %8322  ;;  %v18075_v38 = vld [vmem:[#allocation57_spill] sm:$0xff] }
 0x60e   : > { %9174 = vst.msk [vmem:[%s15368_s30 + $0x658] sm:$0xff] %vm7690_vm3, %v8918_v26  ;;  %12522 = vrsqrt.f32 %v8323_v27 }
 0x60f   : > { %v12513_v28 = vpop.eup %12512  ;;  %9175 = vst.msk [vmem:[%s15368_s30 + $0x660] sm:$0xff] %vm7690_vm3, %v8919_v50  ;;  %v18076_v50 = vld [vmem:[#allocation64_spill] sm:$0xff] }
 0x610   : > { %v12515_v25 = vpop.eup %12514  ;;  %v8920_v6 = vmul.f32 %v12513_v28, %v16720_v45  ;;  %v8326_v47 = vpop.xlane.xlu1 %8325 }
 0x611   : > { %v8921_v32 = vmul.f32 %v12515_v25, %v18066_v16  ;;  %12524 = vrsqrt.f32 %v8326_v47  ;;  %v8329_v30 = vpop.xlane.xlu0 %8328  ;;  %v18077_v47 = vld [vmem:[#allocation59_spill] sm:$0xff] }
 0x612   : > { %9176 = vst.msk [vmem:[%s15368_s30 + $0x668] sm:$0xff] %vm7690_vm3, %v8920_v6  ;;  %12526 = vrsqrt.f32 %v8329_v30  ;;  %v18078_v30 = vld [vmem:[#allocation66_spill] sm:$0xff] }
 0x613   : > { %v12517_v52 = vpop.eup %12516  ;;  %9177 = vst.msk [vmem:[%s15368_s30 + $0x670] sm:$0xff] %vm7690_vm3, %v8921_v32 }
 0x614   : > { %v12519_v55 = vpop.eup %12518  ;;  %v8922_v57 = vmul.f32 %v12517_v52, %v18067_v14  ;;  %v8332_v33 = vpop.xlane.xlu1 %8331 }
 0x615   : > { %v8923_v62 = vmul.f32 %v12519_v55, %v18068_v39  ;;  %12528 = vrsqrt.f32 %v8332_v33  ;;  %v8335_v45 = vpop.xlane.xlu0 %8334  ;;  %v18079_v33 = vld [vmem:[#allocation61_spill] sm:$0xff] }
 0x616   : > { %9178 = vst.msk [vmem:[%s15368_s30 + $0x678] sm:$0xff] %vm7690_vm3, %v8922_v57  ;;  %12530 = vrsqrt.f32 %v8335_v45 }
 0x617   : > { %v12521_v36 = vpop.eup %12520  ;;  %9179 = vst.msk [vmem:[%s15368_s30 + $0x680] sm:$0xff] %vm7690_vm3, %v8923_v62 }
 0x618   : > { %v12523_v43 = vpop.eup %12522  ;;  %v8924_v15 = vmul.f32 %v12521_v36, %v18069_v29  ;;  %v8338_v3 = vpop.xlane.xlu1 %8337 }
 0x619   : > { %v8925_v2 = vmul.f32 %v12523_v43, %v18070_v37  ;;  %12532 = vrsqrt.f32 %v8338_v3  ;;  %v8341_v59 = vpop.xlane.xlu0 %8340 }
 0x61a   : > { %9180 = vst.msk [vmem:[%s15368_s30 + $0x688] sm:$0xff] %vm7690_vm3, %v8924_v15  ;;  %12534 = vrsqrt.f32 %v8341_v59  ;;  %v18080_v15 = vld [vmem:[#allocation63_spill] sm:$0xff] }
 0x61b   : > { %v12525_v23 = vpop.eup %12524  ;;  %9181 = vst.msk [vmem:[%s15368_s30 + $0x690] sm:$0xff] %vm7690_vm3, %v8925_v2 }
 0x61c   : > { %v12527_v9 = vpop.eup %12526  ;;  %v8926_v63 = vmul.f32 %v12525_v23, %v18071_v10  ;;  %v8344_v19 = vpop.xlane.xlu1 %8343 }
 0x61d   : > { %v8927_v31 = vmul.f32 %v12527_v9, %v18072_v24  ;;  %12536 = vrsqrt.f32 %v8344_v19  ;;  %v8347_v41 = vpop.xlane.xlu0 %8346 }
 0x61e   : > { %9182 = vst.msk [vmem:[%s15368_s30 + $0x698] sm:$0xff] %vm7690_vm3, %v8926_v63  ;;  %12538 = vrsqrt.f32 %v8347_v41 }
 0x61f   : > { %v12529_v61 = vpop.eup %12528  ;;  %9183 = vst.msk [vmem:[%s15368_s30 + $0x6a0] sm:$0xff] %vm7690_vm3, %v8927_v31 }
 0x620   : > { %v12531_v51 = vpop.eup %12530  ;;  %v8928_v53 = vmul.f32 %v12529_v61, %v18073_v20  ;;  %v8350_v54 = vpop.xlane.xlu1 %8349  ;;  %v18081_v61 = vld [vmem:[#allocation65_spill] sm:$0xff] }
 0x621   : > { %v8929_v13 = vmul.f32 %v12531_v51, %v18074_v7  ;;  %12540 = vrsqrt.f32 %v8350_v54  ;;  %v8353_v44 = vpop.xlane.xlu0 %8352 }
 0x622   : > { %9184 = vst.msk [vmem:[%s15368_s30 + $0x6a8] sm:$0xff] %vm7690_vm3, %v8928_v53  ;;  %12542 = vrsqrt.f32 %v8353_v44  ;;  %v18082_v53 = vld [vmem:[#allocation68_spill] sm:$0xff] }
 0x623   : > { %v12533_v5 = vpop.eup %12532  ;;  %9185 = vst.msk [vmem:[%s15368_s30 + $0x6b0] sm:$0xff] %vm7690_vm3, %v8929_v13  ;;  %v18083_v13 = vld [vmem:[#allocation67_spill] sm:$0xff] }
 0x624   : > { %v12535_v46 = vpop.eup %12534  ;;  %v8930_v26 = vmul.f32 %v12533_v5, %v18075_v38  ;;  %v8356_v11 = vpop.xlane.xlu1 %8355  ;;  %v18084_v38 = vld [vmem:[#allocation70_spill] sm:$0xff] }
 0x625   : > { %v8931_v27 = vmul.f32 %v12535_v46, %v18076_v50  ;;  %12544 = vrsqrt.f32 %v8356_v11  ;;  %v8359_v28 = vpop.xlane.xlu0 %8358  ;;  %v18085_v50 = vld [vmem:[#allocation69_spill] sm:$0xff] }
 0x626   : > { %9186 = vst.msk [vmem:[%s15368_s30 + $0x6b8] sm:$0xff] %vm7690_vm3, %v8930_v26  ;;  %12546 = vrsqrt.f32 %v8359_v28 }
 0x627   : > { %v12537_v25 = vpop.eup %12536  ;;  %9187 = vst.msk [vmem:[%s15368_s30 + $0x6c0] sm:$0xff] %vm7690_vm3, %v8931_v27 }
 0x628   : > { %v12539_v6 = vpop.eup %12538  ;;  %v8932_v16 = vmul.f32 %v12537_v25, %v18077_v47  ;;  %v8362_v32 = vpop.xlane.xlu1 %8361  ;;  %v18086_v47 = vld [vmem:[#allocation72_spill] sm:$0xff] }
 0x629   : > { %v8933_v52 = vmul.f32 %v12539_v6, %v18078_v30  ;;  %12548 = vrsqrt.f32 %v8362_v32  ;;  %v8365_v55 = vpop.xlane.xlu0 %8364  ;;  %v18087_v30 = vld [vmem:[#allocation71_spill] sm:$0xff] }
 0x62a   : > { %9188 = vst.msk [vmem:[%s15368_s30 + $0x6c8] sm:$0xff] %vm7690_vm3, %v8932_v16  ;;  %12550 = vrsqrt.f32 %v8365_v55 }
 0x62b   : > { %v12541_v14 = vpop.eup %12540  ;;  %9189 = vst.msk [vmem:[%s15368_s30 + $0x6d0] sm:$0xff] %vm7690_vm3, %v8933_v52 }
 0x62c   : > { %v12543_v57 = vpop.eup %12542  ;;  %v8934_v39 = vmul.f32 %v12541_v14, %v18079_v33  ;;  %v8368_v62 = vpop.xlane.xlu1 %8367  ;;  %v18088_v33 = vld [vmem:[#allocation74_spill] sm:$0xff] }
 0x62d   : > { %v8935_v45 = vmul.f32 %v12543_v57, %v16870_v18  ;;  %12552 = vrsqrt.f32 %v8368_v62  ;;  %v8371_v36 = vpop.xlane.xlu0 %8370 }
 0x62e   : > { %9190 = vst.msk [vmem:[%s15368_s30 + $0x6d8] sm:$0xff] %vm7690_vm3, %v8934_v39  ;;  %12554 = vrsqrt.f32 %v8371_v36 }
 0x62f   : > { %v12545_v43 = vpop.eup %12544  ;;  %9191 = vst.msk [vmem:[%s15368_s30 + $0x6e0] sm:$0xff] %vm7690_vm3, %v8935_v45  ;;  %v18089_v45 = vld [vmem:[#allocation73_spill] sm:$0xff] }
 0x630   : > { %v12547_v29 = vpop.eup %12546  ;;  %v8936_v3 = vmul.f32 %v12545_v43, %v18080_v15  ;;  %v8374_v37 = vpop.xlane.xlu1 %8373 }
 0x631   : > { %v8937_v2 = vmul.f32 %v12547_v29, %v16888_v4  ;;  %12556 = vrsqrt.f32 %v8374_v37  ;;  %v8377_v59 = vpop.xlane.xlu0 %8376 }
 0x632   : > { %9192 = vst.msk [vmem:[%s15368_s30 + $0x6e8] sm:$0xff] %vm7690_vm3, %v8936_v3  ;;  %12558 = vrsqrt.f32 %v8377_v59  ;;  %v18090_v3 = vld [vmem:[#allocation76_spill] sm:$0xff]  ;;  %v18091_v59 = vld [vmem:[#allocation77_spill] sm:$0xff] }
 0x633   : > { %v12549_v18 = vpop.eup %12548  ;;  %9193 = vst.msk [vmem:[%s15368_s30 + $0x6f0] sm:$0xff] %vm7690_vm3, %v8937_v2 }
 0x634   : > { %v12551_v23 = vpop.eup %12550  ;;  %v8938_v9 = vmul.f32 %v12549_v18, %v16882_v22  ;;  %v8380_v10 = vpop.xlane.xlu1 %8379 }
 0x635   : > { %v8939_v63 = vmul.f32 %v12551_v23, %v16906_v56  ;;  %12560 = vrsqrt.f32 %v8380_v10  ;;  %v8383_v19 = vpop.xlane.xlu0 %8382 }
 0x636   : > { %9194 = vst.msk [vmem:[%s15368_s30 + $0x6f8] sm:$0xff] %vm7690_vm3, %v8938_v9  ;;  %12562 = vrsqrt.f32 %v8383_v19 }
 0x637   : > { %v12553_v4 = vpop.eup %12552  ;;  %9195 = vst.msk [vmem:[%s15368_s30 + $0x700] sm:$0xff] %vm7690_vm3, %v8939_v63  ;;  %v18092_v63 = vld [vmem:[#allocation101_spill] sm:$0xff] }
 0x638   : > { %v12555_v24 = vpop.eup %12554  ;;  %v8940_v31 = vmul.f32 %v12553_v4, %v16900_v17  ;;  %v8386_v41 = vpop.xlane.xlu1 %8385 }
 0x639   : > { %v8941_v51 = vmul.f32 %v12555_v24, %v18081_v61  ;;  %12564 = vrsqrt.f32 %v8386_v41  ;;  %v8389_v22 = vpop.xlane.xlu0 %8388  ;;  %v18093_v24 = vld [vmem:[#allocation75_spill] sm:$0xff] }
 0x63a   : > { %9196 = vst.msk [vmem:[%s15368_s30 + $0x708] sm:$0xff] %vm7690_vm3, %v8940_v31  ;;  %12566 = vrsqrt.f32 %v8389_v22  ;;  %v18094_v22 = vld [vmem:[#allocation103_spill] sm:$0xff] }
 0x63b   : > { %v12557_v56 = vpop.eup %12556  ;;  %9197 = vst.msk [vmem:[%s15368_s30 + $0x710] sm:$0xff] %vm7690_vm3, %v8941_v51 }
 0x63c   : > { %v12559_v20 = vpop.eup %12558  ;;  %v8942_v54 = vmul.f32 %v12557_v56, %v18082_v53  ;;  %v8392_v7 = vpop.xlane.xlu1 %8391 }
 0x63d   : > { %v8943_v44 = vmul.f32 %v12559_v20, %v18083_v13  ;;  %12568 = vrsqrt.f32 %v8392_v7  ;;  %v8395_v17 = vpop.xlane.xlu0 %8394 }
 0x63e   : > { %9198 = vst.msk [vmem:[%s15368_s30 + $0x718] sm:$0xff] %vm7690_vm3, %v8942_v54  ;;  %12570 = vrsqrt.f32 %v8395_v17 }
 0x63f   : > { %v12561_v5 = vpop.eup %12560  ;;  %9199 = vst.msk [vmem:[%s15368_s30 + $0x720] sm:$0xff] %vm7690_vm3, %v8943_v44  ;;  %v18095_v44 = vld [vmem:[#allocation79_spill] sm:$0xff] }
 0x640   : > { %v12563_v46 = vpop.eup %12562  ;;  %v8944_v26 = vmul.f32 %v12561_v5, %v18084_v38  ;;  %v8398_v11 = vpop.xlane.xlu1 %8397 }
 0x641   : > { %v8945_v27 = vmul.f32 %v12563_v46, %v18085_v50  ;;  %12572 = vrsqrt.f32 %v8398_v11  ;;  %v8401_v28 = vpop.xlane.xlu0 %8400  ;;  %v18096_v11 = vld [vmem:[#allocation102_spill] sm:$0xff] }
 0x642   : > { %9200 = vst.msk [vmem:[%s15368_s30 + $0x728] sm:$0xff] %vm7690_vm3, %v8944_v26  ;;  %12574 = vrsqrt.f32 %v8401_v28 }
 0x643   : > { %v12565_v25 = vpop.eup %12564  ;;  %9201 = vst.msk [vmem:[%s15368_s30 + $0x730] sm:$0xff] %vm7690_vm3, %v8945_v27 }
 0x644   : > { %v12567_v6 = vpop.eup %12566  ;;  %v8946_v16 = vmul.f32 %v12565_v25, %v18086_v47  ;;  %v8404_v32 = vpop.xlane.xlu1 %8403 }
 0x645   : > { %v8947_v52 = vmul.f32 %v12567_v6, %v18087_v30  ;;  %12576 = vrsqrt.f32 %v8404_v32  ;;  %v8407_v55 = vpop.xlane.xlu0 %8406 }
 0x646   : > { %9202 = vst.msk [vmem:[%s15368_s30 + $0x738] sm:$0xff] %vm7690_vm3, %v8946_v16  ;;  %12578 = vrsqrt.f32 %v8407_v55 }
 0x647   : > { %v12569_v14 = vpop.eup %12568  ;;  %9203 = vst.msk [vmem:[%s15368_s30 + $0x740] sm:$0xff] %vm7690_vm3, %v8947_v52 }
 0x648   : > { %v12571_v57 = vpop.eup %12570  ;;  %v8948_v39 = vmul.f32 %v12569_v14, %v18088_v33  ;;  %v8410_v62 = vpop.xlane.xlu1 %8409 }
 0x649   : > { %v8949_v36 = vmul.f32 %v12571_v57, %v18089_v45  ;;  %12580 = vrsqrt.f32 %v8410_v62  ;;  %v8413_v43 = vpop.xlane.xlu0 %8412 }
 0x64a   : > { %9204 = vst.msk [vmem:[%s15368_s30 + $0x748] sm:$0xff] %vm7690_vm3, %v8948_v39  ;;  %12582 = vrsqrt.f32 %v8413_v43 }
 0x64b   : > { %v12573_v29 = vpop.eup %12572  ;;  %9205 = vst.msk [vmem:[%s15368_s30 + $0x750] sm:$0xff] %vm7690_vm3, %v8949_v36  ;;  %v18097_v36 = vld [vmem:[#allocation105_spill] sm:$0xff] }
 0x64c   : > { %v12575_v15 = vpop.eup %12574  ;;  %v8950_v37 = vmul.f32 %v12573_v29, %v18090_v3  ;;  %v8416_v2 = vpop.xlane.xlu1 %8415 }
 0x64d   : > { %v8951_v18 = vmul.f32 %v12575_v15, %v18091_v59  ;;  %12584 = vrsqrt.f32 %v8416_v2  ;;  %v8419_v23 = vpop.xlane.xlu0 %8418 }
 0x64e   : > { %9206 = vst.msk [vmem:[%s15368_s30 + $0x758] sm:$0xff] %vm7690_vm3, %v8950_v37  ;;  %12586 = vrsqrt.f32 %v8419_v23 }
 0x64f   : > { %v12577_v9 = vpop.eup %12576  ;;  %9207 = vst.msk [vmem:[%s15368_s30 + $0x760] sm:$0xff] %vm7690_vm3, %v8951_v18 }
 0x650   : > { %v12579_v10 = vpop.eup %12578  ;;  %v8952_v19 = vmul.f32 %v12577_v9, %v18092_v63  ;;  %v8422_v4 = vpop.xlane.xlu1 %8421 }
 0x651   : > { %v8953_v31 = vmul.f32 %v12579_v10, %v18093_v24  ;;  %12588 = vrsqrt.f32 %v8422_v4  ;;  %v8425_v41 = vpop.xlane.xlu0 %8424 }
 0x652   : > { %9208 = vst.msk [vmem:[%s15368_s30 + $0x768] sm:$0xff] %vm7690_vm3, %v8952_v19  ;;  %12590 = vrsqrt.f32 %v8425_v41 }
 0x653   : > { %v12581_v61 = vpop.eup %12580  ;;  %9209 = vst.msk [vmem:[%s15368_s30 + $0x770] sm:$0xff] %vm7690_vm3, %v8953_v31 }
 0x654   : > { %v12583_v51 = vpop.eup %12582  ;;  %v8954_v56 = vmul.f32 %v12581_v61, %v18094_v22  ;;  %v8428_v20 = vpop.xlane.xlu1 %8427 }
 0x655   : > { %v8955_v53 = vmul.f32 %v12583_v51, %v17050_v1  ;;  %12592 = vrsqrt.f32 %v8428_v20  ;;  %v8431_v54 = vpop.xlane.xlu0 %8430 }
 0x656   : > { %9210 = vst.msk [vmem:[%s15368_s30 + $0x778] sm:$0xff] %vm7690_vm3, %v8954_v56  ;;  %12594 = vrsqrt.f32 %v8431_v54 }
 0x657   : > { %v12585_v7 = vpop.eup %12584  ;;  %9211 = vst.msk [vmem:[%s15368_s30 + $0x780] sm:$0xff] %vm7690_vm3, %v8955_v53 }
 0x658   : > { %v12587_v13 = vpop.eup %12586  ;;  %v8956_v17 = vmul.f32 %v12585_v7, %v18095_v44  ;;  %v8434_v5 = vpop.xlane.xlu1 %8433 }
 0x659   : > { %v8957_v46 = vmul.f32 %v12587_v13, %v17068_v21  ;;  %12596 = vrsqrt.f32 %v8434_v5  ;;  %v8437_v38 = vpop.xlane.xlu0 %8436 }
 0x65a   : > { %9212 = vst.msk [vmem:[%s15368_s30 + $0x788] sm:$0xff] %vm7690_vm3, %v8956_v17  ;;  %12598 = vrsqrt.f32 %v8437_v38 }
 0x65b   : > { %v12589_v1 = vpop.eup %12588  ;;  %9213 = vst.msk [vmem:[%s15368_s30 + $0x790] sm:$0xff] %vm7690_vm3, %v8957_v46 }
 0x65c   : > { %v12591_v26 = vpop.eup %12590  ;;  %v8958_v50 = vmul.f32 %v12589_v1, %v18096_v11  ;;  %v8440_v27 = vpop.xlane.xlu1 %8439 }
 0x65d   : > { %v8959_v28 = vmul.f32 %v12591_v26, %v17086_v58  ;;  %12600 = vrsqrt.f32 %v8440_v27  ;;  %v8443_v25 = vpop.xlane.xlu0 %8442 }
 0x65e   : > { %9214 = vst.msk [vmem:[%s15368_s30 + $0x798] sm:$0xff] %vm7690_vm3, %v8958_v50  ;;  %12602 = vrsqrt.f32 %v8443_v25 }
 0x65f   : > { %v12593_v21 = vpop.eup %12592  ;;  %9215 = vst.msk [vmem:[%s15368_s30 + $0x7a0] sm:$0xff] %vm7690_vm3, %v8959_v28 }
 0x660   : > { %v12595_v6 = vpop.eup %12594  ;;  %v8960_v47 = vmul.f32 %v12593_v21, %v17080_v8  ;;  %v8446_v16 = vpop.xlane.xlu1 %8445 }
 0x661   : > { %v8961_v32 = vmul.f32 %v12595_v6, %v17104_v35  ;;  %12604 = vrsqrt.f32 %v8446_v16  ;;  %v8449_v30 = vpop.xlane.xlu0 %8448 }
 0x662   : > { %9216 = vst.msk [vmem:[%s15368_s30 + $0x7a8] sm:$0xff] %vm7690_vm3, %v8960_v47  ;;  %12606 = vrsqrt.f32 %v8449_v30 }
 0x663   : > { %v12597_v58 = vpop.eup %12596  ;;  %9217 = vst.msk [vmem:[%s15368_s30 + $0x7b0] sm:$0xff] %vm7690_vm3, %v8961_v32 }
 0x664   : > { %v12599_v52 = vpop.eup %12598  ;;  %v8962_v55 = vmul.f32 %v12597_v58, %v17098_v34  ;;  %v8452_v14 = vpop.xlane.xlu1 %8451 }
 0x665   : > { %v8963_v8 = vmul.f32 %v12599_v52, %v17122_v0  ;;  %12608 = vrsqrt.f32 %v8452_v14  ;;  %v8455_v57 = vpop.xlane.xlu0 %8454 }
 0x666   : > { %9218 = vst.msk [vmem:[%s15368_s30 + $0x7b8] sm:$0xff] %vm7690_vm3, %v8962_v55  ;;  %12610 = vrsqrt.f32 %v8455_v57 }
 0x667   : > { %v12601_v35 = vpop.eup %12600  ;;  %9219 = vst.msk [vmem:[%s15368_s30 + $0x7c0] sm:$0xff] %vm7690_vm3, %v8963_v8 }
 0x668   : > { %v12603_v33 = vpop.eup %12602  ;;  %v8964_v39 = vmul.f32 %v12601_v35, %v17116_v48  ;;  %v8458_v62 = vpop.xlane.xlu1 %8457 }
 0x669   : > { %v8965_v34 = vmul.f32 %v12603_v33, %v17140_v60  ;;  %12612 = vrsqrt.f32 %v8458_v62 }
 0x66a   : > { %9220 = vst.msk [vmem:[%s15368_s30 + $0x7c8] sm:$0xff] %vm7690_vm3, %v8964_v39 }
 0x66b   : > { %v12605_v0 = vpop.eup %12604  ;;  %9221 = vst.msk [vmem:[%s15368_s30 + $0x7d0] sm:$0xff] %vm7690_vm3, %v8965_v34 }
 0x66c   : > { %v12607_v45 = vpop.eup %12606  ;;  %v8966_v43 = vmul.f32 %v12605_v0, %v18097_v36 }
 0x66d   : > { %v8967_v29 = vmul.f32 %v12607_v45, %v17159_v12 }
 0x66e   : > { %9222 = vst.msk [vmem:[%s15368_s30 + $0x7d8] sm:$0xff] %vm7690_vm3, %v8966_v43 }
 0x66f   : > { %v12609_v48 = vpop.eup %12608  ;;  %9223 = vst.msk [vmem:[%s15368_s30 + $0x7e0] sm:$0xff] %vm7690_vm3, %v8967_v29 }
 0x670   : > { %v12611_v15 = vpop.eup %12610  ;;  %v8968_v60 = vmul.f32 %v12609_v48, %v17154_v49 }
 0x671   : > { %v8969_v3 = vmul.f32 %v12611_v15, %v17175_v40 }
 0x672   : > { %9224 = vst.msk [vmem:[%s15368_s30 + $0x7e8] sm:$0xff] %vm7690_vm3, %v8968_v60 }
 0x673   : > { %v12613_v37 = vpop.eup %12612  ;;  %9225 = vst.msk [vmem:[%s15368_s30 + $0x7f0] sm:$0xff] %vm7690_vm3, %v8969_v3 }
 0x674   : > { %v8970_v2 = vmul.f32 %v12613_v37, %v17170_v42 }
 0x676   : > { %9226 = vst.msk [vmem:[%s15368_s30 + $0x7f8] sm:$0xff] %vm7690_vm3, %v8970_v2 }
 0x677 PF: > { %s17_s24 = sadd.s32 1, %s12631_s24  }
 0x678   : > { %p14_p4 = scmp.ge.s32.totalorder %s17_s24, 5  }
 0x67a   :  { %16 = sbr.rel (!%p14_p4) target bundleno = 1 (0x1), region = 78 }

</bundles_post_ra>
